<compile_context>
chip_gen: v7x
topology: tpu7x:2x2x1
jax: 0.10.0
libtpu: 0.0.40
codegen_flags: <defaults>
</compile_context>

<pallas_src>
import functools

import jax
import jax.numpy as jnp
from jax.experimental import pallas as pl
from jax.experimental.pallas import tpu as pltpu

VMEM = pltpu.MemorySpace.VMEM
N_CLASSES = 10  # CGMNIST

# ---------------------------------------------------------------------------
# weight-slab row offsets (shared by init_params and the kernel)
# ---------------------------------------------------------------------------
# slab A (lane width  128): stem | layer1 | mmtm2.fc_squeeze | head
_A_STEM, _A_L1, _A_M2SQ, _A_HEAD, _A_END = 0, 128, 256, 512, 1536
# slab B (lane width  256): layer2 | mmtm2.gates | mmtm3.fc_squeeze
_B_L2, _B_M2G, _B_M3SQ, _B_END = 0, 128, 256, 768
# slab C (lane width  512): layer3 | mmtm3.gates | mmtm4.fc_squeeze
_C_L3, _C_M3G, _C_M4SQ, _C_END = 0, 256, 512, 1536
# slab D (lane width 1024): layer4 | mmtm4.gates
_D_L4, _D_M4G, _D_END = 0, 512, 1024
# bias slab: bias i lives at sublane row 8*i (always 8-aligned loads)
(_BI_STEM, _BI_L1, _BI_L2, _BI_L3, _BI_L4, _BI_M2SQ, _BI_M2G,
 _BI_M3SQ, _BI_M3G, _BI_M4SQ, _BI_M4G, _BI_HEAD) = range(12)
_N_BIAS = 12


# ---------------------------------------------------------------------------
# in-kernel helpers (pure jnp on values)
# ---------------------------------------------------------------------------
def _group_mean_outer(x, groups):
    """Mean over `groups` equal CONTIGUOUS outer row blocks: (G*S, C) -> (S, C).

    Tree reduction (depth log2(G)) of static row slices on the VPU.  Row
    blocks are contiguous by construction of the pooling-hierarchy row order.
    """
    inner = x.shape[0] // groups
    parts = [x[g * inner:(g + 1) * inner, :] for g in range(groups)]
    while len(parts) > 1:
        nxt = [parts[i] + parts[i + 1] for i in range(0, len(parts) - 1, 2)]
        if len(parts) % 2:
            nxt.append(parts[-1])
        parts = nxt
    return parts[0] * (1.0 / groups)


def _tile_rows(x, reps):
    """Repeat x along rows `reps` times (reps is a power of two here).

    Because batch is the innermost row factor, row r of the result equals
    x[r % B] -- exactly the per-row gate broadcast MMTM needs.  Implemented
    as log2(reps) sublane concatenations (no matmul, no reshape).
    """
    while reps > 1:
        x = jnp.concatenate([x, x], axis=0)
        reps //= 2
    return x


# ---------------------------------------------------------------------------
# the fused kernel
# ---------------------------------------------------------------------------
def _fused_forward_kernel(b, x_ref, wa_ref, wb_ref, wc_ref, wd_ref, bias_ref,
                          logits_ref, feats_ref):
    def bias(i, n):
        return bias_ref[8 * i:8 * i + 1, :n]                    # (1, n) f32

    def dot(x, w):                                              # bf16 MXU, f32 acc
        return jnp.dot(x.astype(jnp.bfloat16), w,
                       preferred_element_type=jnp.float32)

    def proj_relu(x, w, bi, n):
        return jnp.maximum(dot(x, w) + bias(bi, n), 0.0)

    def mmtm(f, wsq, bsq_i, c, wg, bg_i):
        """MMTM on the merged activation f = [f0 | f1] of shape (S*B, 2c)."""
        s = f.shape[0] // b
        sq = f if s == 1 else _group_mean_outer(f, s)           # (B, 2c)
        exc = jnp.maximum(dot(sq, wsq) + bias(bsq_i, c), 0.0)   # (B, c)
        gates = jax.nn.sigmoid(dot(exc, wg) + bias(bg_i, 2 * c))  # (B, 2c)
        return f * _tile_rows(gates, s)

    x = x_ref[...]                                              # (1024*B, 128)

    # stem: block-diagonal 1x1 conv + ReLU, then 4x4 avg pool
    f = proj_relu(x, wa_ref[_A_STEM:_A_L1, :], _BI_STEM, 128)   # (1024*B, 128)
    f = _group_mean_outer(f, 16)                                # (64*B, 128)

    # layer1 (64 -> 64 per modality, no downsample)
    f = proj_relu(f, wa_ref[_A_L1:_A_M2SQ, :], _BI_L1, 128)

    # layer2 (2x2 pool, 64 -> 128 per modality) + MMTM2
    f = proj_relu(_group_mean_outer(f, 4),
                  wb_ref[_B_L2:_B_M2G, :], _BI_L2, 256)         # (16*B, 256)
    f = mmtm(f, wa_ref[_A_M2SQ:_A_HEAD, :], _BI_M2SQ, 128,
             wb_ref[_B_M2G:_B_M3SQ, :], _BI_M2G)

    # layer3 (2x2 pool, 128 -> 256 per modality) + MMTM3
    f = proj_relu(_group_mean_outer(f, 4),
                  wc_ref[_C_L3:_C_M3G, :], _BI_L3, 512)         # (4*B, 512)
    f = mmtm(f, wb_ref[_B_M3SQ:_B_END, :], _BI_M3SQ, 256,
             wc_ref[_C_M3G:_C_M4SQ, :], _BI_M3G)

    # layer4 (2x2 pool -> spatial 1, 256 -> 512 per modality) + MMTM4
    f = proj_relu(_group_mean_outer(f, 4),
                  wd_ref[_D_L4:_D_M4G, :], _BI_L4, 1024)        # (B, 1024)
    f = mmtm(f, wc_ref[_C_M4SQ:_C_END, :], _BI_M4SQ, 512,
             wd_ref[_D_M4G:_D_END, :], _BI_M4G)

    # adaptive avg-pool is identity (spatial == 1); both fc heads are one
    # block-diagonal matmul, output padded lane-dense to 128.
    feats_ref[...] = f                                          # (B, 1024)
    logits_ref[...] = dot(f, wa_ref[_A_HEAD:_A_END, :]) + bias(_BI_HEAD, 128)


# ---------------------------------------------------------------------------
# plain-JAX plumbing (layout only)
# ---------------------------------------------------------------------------
def _rearrange_input(x_nchw):
    """NCHW (B, C, 32, 32) -> (1024*B, C) channels-last rows, ordered so every
    average-pool stage reduces over the OUTERMOST remaining row factor
    (batch stays innermost).  Exactly equivalent to 2D average pooling."""
    b, c, h, w = x_nchw.shape
    assert h == 32 and w == 32, "stand-in backbone expects 32x32 inputs"
    x = jnp.transpose(x_nchw, (0, 2, 3, 1))                 # (B, H, W, C)
    #            b  e4h e3h e2h h0  e4w e3w e2w w0  c
    x = x.reshape(b, 2,  2,  2,  4,  2,  2,  2,  4, c)
    x = jnp.transpose(x, (4, 8, 3, 7, 2, 6, 1, 5, 0, 9))    # h0,w0,e2,e3,e4,b,c
    return x.reshape(1024 * b, c)


def _build_input(audio, visual):
    """One lane-dense (1024*B, 128) input: [audio chans | visual chans | 0s]."""
    a = _rearrange_input(audio.astype(jnp.float32))          # (1024*B, Ca)
    v = _rearrange_input(visual.astype(jnp.float32))         # (1024*B, Cv)
    x = jnp.concatenate([a, v], axis=1)                      # (1024*B, Ca+Cv)
    return jnp.pad(x, ((0, 0), (0, 128 - x.shape[1])))


def mmtm_mvcnn_forward(params, audio, visual):
    b = audio.shape[0]
    x = _build_input(audio, visual)

    vspec = pl.BlockSpec(memory_space=VMEM)
    logits_pad, feats = pl.pallas_call(
        functools.partial(_fused_forward_kernel, b),
        out_shape=(
            jax.ShapeDtypeStruct((b, 128), jnp.float32),      # padded logits
            jax.ShapeDtypeStruct((b, 1024), jnp.float32),     # [feat0 | feat1]
        ),
        in_specs=[vspec] * 6,
        out_specs=(vspec, vspec),
        compiler_params=pltpu.CompilerParams(
            # actual working set ~8 MiB; 32 MiB is safe on v5e/v6e/v7x
            vmem_limit_bytes=32 * 1024 * 1024),
    )(x, params['wa'], params['wb'], params['wc'], params['wd'],
      params['bias'])

    x_0 = logits_pad[:, :N_CLASSES]
    x_1 = logits_pad[:, N_CLASSES:2 * N_CLASSES]
    feat0 = feats[:, :512]
    feat1 = feats[:, 512:]
    return (x_0 + x_1) * 0.5, [x_0, x_1], feat0, feat1


# ---------------------------------------------------------------------------
# deterministic in-script parameters, packed into 4 bf16 slabs + 1 f32 slab
# ---------------------------------------------------------------------------
def init_params(key, c_in_audio=1, c_in_visual=3):
    keys = list(jax.random.split(key, 32))
    kit = iter(keys)

    def lin(kin, kout, scale=0.05):
        kw, kb = jax.random.split(next(kit))
        w = jax.random.normal(kw, (kin, kout), jnp.float32) * scale
        bv = jax.random.normal(kb, (kout,), jnp.float32) * scale
        return w, bv

    def block_diag(w0, w1):
        k0, n0 = w0.shape
        k1, n1 = w1.shape
        out = jnp.zeros((k0 + k1, n0 + n1), jnp.float32)
        return out.at[:k0, :n0].set(w0).at[k0:, n0:].set(w1)

    # stems (1x1 conv stand-ins), block-diagonal over the two modalities,
    # input channels padded to 128 lanes.
    ws_a, bs_a = lin(c_in_audio, 64)
    ws_v, bs_v = lin(c_in_visual, 64)
    w_stem = jnp.zeros((128, 128), jnp.float32)
    w_stem = w_stem.at[:c_in_audio, :64].set(ws_a)
    w_stem = w_stem.at[c_in_audio:c_in_audio + c_in_visual, 64:].set(ws_v)
    b_stem = jnp.concatenate([bs_a, bs_v])

    def layer(cin, cout):
        w0, b0 = lin(cin, cout)
        w1, b1 = lin(cin, cout)
        return block_diag(w0, w1), jnp.concatenate([b0, b1])

    w_l1, b_l1 = layer(64, 64)        # (128, 128)
    w_l2, b_l2 = layer(64, 128)       # (128, 256)
    w_l3, b_l3 = layer(128, 256)      # (256, 512)
    w_l4, b_l4 = layer(256, 512)      # (512, 1024)

    def mmtm(c):                      # ratio = 4  ->  dim_out = c
        wsq, bsq = lin(2 * c, c)                       # fc_squeeze (2c, c)
        wv, bv = lin(c, c)                             # fc_visual
        ws, bs = lin(c, c)                             # fc_skeleton
        wg = jnp.concatenate([wv, ws], axis=1)         # (c, 2c)
        bg = jnp.concatenate([bv, bs])
        return wsq, bsq, wg, bg

    w_m2sq, b_m2sq, w_m2g, b_m2g = mmtm(128)
    w_m3sq, b_m3sq, w_m3g, b_m3g = mmtm(256)
    w_m4sq, b_m4sq, w_m4g, b_m4g = mmtm(512)

    # classifier heads as one block-diagonal (1024, 2*n_classes), lane-padded
    wh0, bh0 = lin(512, N_CLASSES)
    wh1, bh1 = lin(512, N_CLASSES)
    w_head = jnp.zeros((1024, 128), jnp.float32)
    w_head = w_head.at[:512, :N_CLASSES].set(wh0)
    w_head = w_head.at[512:, N_CLASSES:2 * N_CLASSES].set(wh1)
    b_head = jnp.zeros((128,), jnp.float32)
    b_head = b_head.at[:N_CLASSES].set(bh0).at[N_CLASSES:2 * N_CLASSES].set(bh1)

    # ---- pack into lane-width slabs (bf16) + one f32 bias slab -------------
    wa = jnp.concatenate([w_stem, w_l1, w_m2sq, w_head], 0).astype(jnp.bfloat16)
    wb = jnp.concatenate([w_l2, w_m2g, w_m3sq], 0).astype(jnp.bfloat16)
    wc = jnp.concatenate([w_l3, w_m3g, w_m4sq], 0).astype(jnp.bfloat16)
    wd = jnp.concatenate([w_l4, w_m4g], 0).astype(jnp.bfloat16)
    assert wa.shape == (_A_END, 128) and wb.shape == (_B_END, 256)
    assert wc.shape == (_C_END, 512) and wd.shape == (_D_END, 1024)

    bias_rows = [b_stem, b_l1, b_l2, b_l3, b_l4,
                 b_m2sq, b_m2g, b_m3sq, b_m3g, b_m4sq, b_m4g, b_head]
    bias = jnp.zeros((8 * _N_BIAS, 1024), jnp.float32)
    for i, bv in enumerate(bias_rows):
        bias = bias.at[8 * i, :bv.shape[0]].set(bv)

    return {'wa': wa, 'wb': wb, 'wc': wc, 'wd': wd, 'bias': bias}


# ---------------------------------------------------------------------------
if __name__ == "__main__":
    key = jax.random.PRNGKey(0)
    k_param, k_audio, k_visual = jax.random.split(key, 3)

    params = init_params(k_param)
    audio = jax.random.normal(k_audio, (2, 1, 32, 32), jnp.float32)    # NCHW
    visual = jax.random.normal(k_visual, (2, 3, 32, 32), jnp.float32)  # NCHW

    forward = jax.jit(mmtm_mvcnn_forward)
    avg_logits, both, feat0, feat1 = forward(params, audio, visual)
    jax.block_until_ready(avg_logits)
    jax.block_until_ready(both[0])
    jax.block_until_ready(both[1])
    jax.block_until_ready(feat0)
    jax.block_until_ready(feat1)

    assert avg_logits.shape == (2, N_CLASSES)
    assert both[0].shape == (2, N_CLASSES) and both[1].shape == (2, N_CLASSES)
    assert feat0.shape == (2, 512) and feat1.shape == (2, 512)
    print("KERNEL_OK")
</pallas_src>

<mosaic_0001>
module attributes {stable_mosaic.version = 11 : i64} {
  func.func @_fused_forward_kernel(%arg0: memref<2048x128xf32, #tpu.memory_space<vmem>>, %arg1: memref<1536x128xbf16, #tpu.memory_space<vmem>>, %arg2: memref<768x256xbf16, #tpu.memory_space<vmem>>, %arg3: memref<1536x512xbf16, #tpu.memory_space<vmem>>, %arg4: memref<1024x1024xbf16, #tpu.memory_space<vmem>>, %arg5: memref<96x1024xf32, #tpu.memory_space<vmem>>, %arg6: memref<2x128xf32, #tpu.memory_space<vmem>>, %arg7: memref<2x1024xf32, #tpu.memory_space<vmem>>) attributes {dimension_semantics = [], scalar_prefetch = 0 : i64, scratch_operands = 0 : i64, tpu.core_type = #tpu.core_type<tc>} {
    %c0 = arith.constant 0 : index
    %c0_0 = arith.constant 0 : index
    %0 = vector.load %arg0[%c0, %c0_0] : memref<2048x128xf32, #tpu.memory_space<vmem>>, vector<2048x128xf32>
    %c0_1 = arith.constant 0 : index
    %c0_2 = arith.constant 0 : index
    %1 = vector.load %arg1[%c0_1, %c0_2] : memref<1536x128xbf16, #tpu.memory_space<vmem>>, vector<128x128xbf16>
    %2 = arith.truncf %0 : vector<2048x128xf32> to vector<2048x128xbf16>
    %cst = arith.constant dense<0.000000e+00> : vector<2048x128xf32>
    %3 = tpu.matmul %2, %1, %cst {dimension_numbers = #tpu.dot_dimension_numbers<[1], [0], [0], [1], [0, 0, 1, 1], [], []>} : vector<2048x128xbf16>, vector<128x128xbf16>, vector<2048x128xf32> -> vector<2048x128xf32>
    %c0_3 = arith.constant 0 : index
    %c0_4 = arith.constant 0 : index
    %4 = vector.load %arg5[%c0_3, %c0_4] : memref<96x1024xf32, #tpu.memory_space<vmem>>, vector<1x128xf32>
    %5 = vector.broadcast %4 : vector<1x128xf32> to vector<2048x128xf32>
    %6 = arith.addf %3, %5 : vector<2048x128xf32>
    %cst_5 = arith.constant 0.000000e+00 : f32
    %7 = vector.broadcast %cst_5 : f32 to vector<2048x128xf32>
    %8 = arith.maximumf %6, %7 : vector<2048x128xf32>
    %9 = vector.extract_strided_slice %8 {offsets = [0, 0], sizes = [128, 128], strides = [1, 1]} : vector<2048x128xf32> to vector<128x128xf32>
    %10 = vector.extract_strided_slice %8 {offsets = [128, 0], sizes = [128, 128], strides = [1, 1]} : vector<2048x128xf32> to vector<128x128xf32>
    %11 = vector.extract_strided_slice %8 {offsets = [256, 0], sizes = [128, 128], strides = [1, 1]} : vector<2048x128xf32> to vector<128x128xf32>
    %12 = vector.extract_strided_slice %8 {offsets = [384, 0], sizes = [128, 128], strides = [1, 1]} : vector<2048x128xf32> to vector<128x128xf32>
    %13 = vector.extract_strided_slice %8 {offsets = [512, 0], sizes = [128, 128], strides = [1, 1]} : vector<2048x128xf32> to vector<128x128xf32>
    %14 = vector.extract_strided_slice %8 {offsets = [640, 0], sizes = [128, 128], strides = [1, 1]} : vector<2048x128xf32> to vector<128x128xf32>
    %15 = vector.extract_strided_slice %8 {offsets = [768, 0], sizes = [128, 128], strides = [1, 1]} : vector<2048x128xf32> to vector<128x128xf32>
    %16 = vector.extract_strided_slice %8 {offsets = [896, 0], sizes = [128, 128], strides = [1, 1]} : vector<2048x128xf32> to vector<128x128xf32>
    %17 = vector.extract_strided_slice %8 {offsets = [1024, 0], sizes = [128, 128], strides = [1, 1]} : vector<2048x128xf32> to vector<128x128xf32>
    %18 = vector.extract_strided_slice %8 {offsets = [1152, 0], sizes = [128, 128], strides = [1, 1]} : vector<2048x128xf32> to vector<128x128xf32>
    %19 = vector.extract_strided_slice %8 {offsets = [1280, 0], sizes = [128, 128], strides = [1, 1]} : vector<2048x128xf32> to vector<128x128xf32>
    %20 = vector.extract_strided_slice %8 {offsets = [1408, 0], sizes = [128, 128], strides = [1, 1]} : vector<2048x128xf32> to vector<128x128xf32>
    %21 = vector.extract_strided_slice %8 {offsets = [1536, 0], sizes = [128, 128], strides = [1, 1]} : vector<2048x128xf32> to vector<128x128xf32>
    %22 = vector.extract_strided_slice %8 {offsets = [1664, 0], sizes = [128, 128], strides = [1, 1]} : vector<2048x128xf32> to vector<128x128xf32>
    %23 = vector.extract_strided_slice %8 {offsets = [1792, 0], sizes = [128, 128], strides = [1, 1]} : vector<2048x128xf32> to vector<128x128xf32>
    %24 = vector.extract_strided_slice %8 {offsets = [1920, 0], sizes = [128, 128], strides = [1, 1]} : vector<2048x128xf32> to vector<128x128xf32>
    %25 = arith.addf %9, %10 : vector<128x128xf32>
    %26 = arith.addf %11, %12 : vector<128x128xf32>
    %27 = arith.addf %13, %14 : vector<128x128xf32>
    %28 = arith.addf %15, %16 : vector<128x128xf32>
    %29 = arith.addf %17, %18 : vector<128x128xf32>
    %30 = arith.addf %19, %20 : vector<128x128xf32>
    %31 = arith.addf %21, %22 : vector<128x128xf32>
    %32 = arith.addf %23, %24 : vector<128x128xf32>
    %33 = arith.addf %25, %26 : vector<128x128xf32>
    %34 = arith.addf %27, %28 : vector<128x128xf32>
    %35 = arith.addf %29, %30 : vector<128x128xf32>
    %36 = arith.addf %31, %32 : vector<128x128xf32>
    %37 = arith.addf %33, %34 : vector<128x128xf32>
    %38 = arith.addf %35, %36 : vector<128x128xf32>
    %39 = arith.addf %37, %38 : vector<128x128xf32>
    %cst_6 = arith.constant 6.250000e-02 : f32
    %40 = vector.broadcast %cst_6 : f32 to vector<128x128xf32>
    %41 = arith.mulf %39, %40 : vector<128x128xf32>
    %c128 = arith.constant 128 : index
    %c0_7 = arith.constant 0 : index
    %42 = vector.load %arg1[%c128, %c0_7] : memref<1536x128xbf16, #tpu.memory_space<vmem>>, vector<128x128xbf16>
    %43 = arith.truncf %41 : vector<128x128xf32> to vector<128x128xbf16>
    %cst_8 = arith.constant dense<0.000000e+00> : vector<128x128xf32>
    %44 = tpu.matmul %43, %42, %cst_8 {dimension_numbers = #tpu.dot_dimension_numbers<[1], [0], [0], [1], [0, 0, 1, 1], [], []>} : vector<128x128xbf16>, vector<128x128xbf16>, vector<128x128xf32> -> vector<128x128xf32>
    %c8 = arith.constant 8 : index
    %c0_9 = arith.constant 0 : index
    %45 = vector.load %arg5[%c8, %c0_9] : memref<96x1024xf32, #tpu.memory_space<vmem>>, vector<1x128xf32>
    %46 = vector.broadcast %45 : vector<1x128xf32> to vector<128x128xf32>
    %47 = arith.addf %44, %46 : vector<128x128xf32>
    %cst_10 = arith.constant 0.000000e+00 : f32
    %48 = vector.broadcast %cst_10 : f32 to vector<128x128xf32>
    %49 = arith.maximumf %47, %48 : vector<128x128xf32>
    %50 = vector.extract_strided_slice %49 {offsets = [0, 0], sizes = [32, 128], strides = [1, 1]} : vector<128x128xf32> to vector<32x128xf32>
    %51 = vector.extract_strided_slice %49 {offsets = [32, 0], sizes = [32, 128], strides = [1, 1]} : vector<128x128xf32> to vector<32x128xf32>
    %52 = vector.extract_strided_slice %49 {offsets = [64, 0], sizes = [32, 128], strides = [1, 1]} : vector<128x128xf32> to vector<32x128xf32>
    %53 = vector.extract_strided_slice %49 {offsets = [96, 0], sizes = [32, 128], strides = [1, 1]} : vector<128x128xf32> to vector<32x128xf32>
    %54 = arith.addf %50, %51 : vector<32x128xf32>
    %55 = arith.addf %52, %53 : vector<32x128xf32>
    %56 = arith.addf %54, %55 : vector<32x128xf32>
    %cst_11 = arith.constant 2.500000e-01 : f32
    %57 = vector.broadcast %cst_11 : f32 to vector<32x128xf32>
    %58 = arith.mulf %56, %57 : vector<32x128xf32>
    %c0_12 = arith.constant 0 : index
    %c0_13 = arith.constant 0 : index
    %59 = vector.load %arg2[%c0_12, %c0_13] : memref<768x256xbf16, #tpu.memory_space<vmem>>, vector<128x256xbf16>
    %60 = arith.truncf %58 : vector<32x128xf32> to vector<32x128xbf16>
    %cst_14 = arith.constant dense<0.000000e+00> : vector<32x256xf32>
    %61 = tpu.matmul %60, %59, %cst_14 {dimension_numbers = #tpu.dot_dimension_numbers<[1], [0], [0], [1], [0, 0, 1, 1], [], []>} : vector<32x128xbf16>, vector<128x256xbf16>, vector<32x256xf32> -> vector<32x256xf32>
    %c16 = arith.constant 16 : index
    %c0_15 = arith.constant 0 : index
    %62 = vector.load %arg5[%c16, %c0_15] : memref<96x1024xf32, #tpu.memory_space<vmem>>, vector<1x256xf32>
    %63 = vector.broadcast %62 : vector<1x256xf32> to vector<32x256xf32>
    %64 = arith.addf %61, %63 : vector<32x256xf32>
    %cst_16 = arith.constant 0.000000e+00 : f32
    %65 = vector.broadcast %cst_16 : f32 to vector<32x256xf32>
    %66 = arith.maximumf %64, %65 : vector<32x256xf32>
    %c256 = arith.constant 256 : index
    %c0_17 = arith.constant 0 : index
    %67 = vector.load %arg1[%c256, %c0_17] : memref<1536x128xbf16, #tpu.memory_space<vmem>>, vector<256x128xbf16>
    %c128_18 = arith.constant 128 : index
    %c0_19 = arith.constant 0 : index
    %68 = vector.load %arg2[%c128_18, %c0_19] : memref<768x256xbf16, #tpu.memory_space<vmem>>, vector<128x256xbf16>
    %69 = vector.extract_strided_slice %66 {offsets = [0, 0], sizes = [2, 256], strides = [1, 1]} : vector<32x256xf32> to vector<2x256xf32>
    %70 = vector.extract_strided_slice %66 {offsets = [2, 0], sizes = [2, 256], strides = [1, 1]} : vector<32x256xf32> to vector<2x256xf32>
    %71 = vector.extract_strided_slice %66 {offsets = [4, 0], sizes = [2, 256], strides = [1, 1]} : vector<32x256xf32> to vector<2x256xf32>
    %72 = vector.extract_strided_slice %66 {offsets = [6, 0], sizes = [2, 256], strides = [1, 1]} : vector<32x256xf32> to vector<2x256xf32>
    %73 = vector.extract_strided_slice %66 {offsets = [8, 0], sizes = [2, 256], strides = [1, 1]} : vector<32x256xf32> to vector<2x256xf32>
    %74 = vector.extract_strided_slice %66 {offsets = [10, 0], sizes = [2, 256], strides = [1, 1]} : vector<32x256xf32> to vector<2x256xf32>
    %75 = vector.extract_strided_slice %66 {offsets = [12, 0], sizes = [2, 256], strides = [1, 1]} : vector<32x256xf32> to vector<2x256xf32>
    %76 = vector.extract_strided_slice %66 {offsets = [14, 0], sizes = [2, 256], strides = [1, 1]} : vector<32x256xf32> to vector<2x256xf32>
    %77 = vector.extract_strided_slice %66 {offsets = [16, 0], sizes = [2, 256], strides = [1, 1]} : vector<32x256xf32> to vector<2x256xf32>
    %78 = vector.extract_strided_slice %66 {offsets = [18, 0], sizes = [2, 256], strides = [1, 1]} : vector<32x256xf32> to vector<2x256xf32>
    %79 = vector.extract_strided_slice %66 {offsets = [20, 0], sizes = [2, 256], strides = [1, 1]} : vector<32x256xf32> to vector<2x256xf32>
    %80 = vector.extract_strided_slice %66 {offsets = [22, 0], sizes = [2, 256], strides = [1, 1]} : vector<32x256xf32> to vector<2x256xf32>
    %81 = vector.extract_strided_slice %66 {offsets = [24, 0], sizes = [2, 256], strides = [1, 1]} : vector<32x256xf32> to vector<2x256xf32>
    %82 = vector.extract_strided_slice %66 {offsets = [26, 0], sizes = [2, 256], strides = [1, 1]} : vector<32x256xf32> to vector<2x256xf32>
    %83 = vector.extract_strided_slice %66 {offsets = [28, 0], sizes = [2, 256], strides = [1, 1]} : vector<32x256xf32> to vector<2x256xf32>
    %84 = vector.extract_strided_slice %66 {offsets = [30, 0], sizes = [2, 256], strides = [1, 1]} : vector<32x256xf32> to vector<2x256xf32>
    %85 = arith.addf %69, %70 : vector<2x256xf32>
    %86 = arith.addf %71, %72 : vector<2x256xf32>
    %87 = arith.addf %73, %74 : vector<2x256xf32>
    %88 = arith.addf %75, %76 : vector<2x256xf32>
    %89 = arith.addf %77, %78 : vector<2x256xf32>
    %90 = arith.addf %79, %80 : vector<2x256xf32>
    %91 = arith.addf %81, %82 : vector<2x256xf32>
    %92 = arith.addf %83, %84 : vector<2x256xf32>
    %93 = arith.addf %85, %86 : vector<2x256xf32>
    %94 = arith.addf %87, %88 : vector<2x256xf32>
    %95 = arith.addf %89, %90 : vector<2x256xf32>
    %96 = arith.addf %91, %92 : vector<2x256xf32>
    %97 = arith.addf %93, %94 : vector<2x256xf32>
    %98 = arith.addf %95, %96 : vector<2x256xf32>
    %99 = arith.addf %97, %98 : vector<2x256xf32>
    %cst_20 = arith.constant 6.250000e-02 : f32
    %100 = vector.broadcast %cst_20 : f32 to vector<2x256xf32>
    %101 = arith.mulf %99, %100 : vector<2x256xf32>
    %102 = arith.truncf %101 : vector<2x256xf32> to vector<2x256xbf16>
    %cst_21 = arith.constant dense<0.000000e+00> : vector<2x128xf32>
    %103 = tpu.matmul %102, %67, %cst_21 {dimension_numbers = #tpu.dot_dimension_numbers<[1], [0], [0], [1], [0, 0, 1, 1], [], []>} : vector<2x256xbf16>, vector<256x128xbf16>, vector<2x128xf32> -> vector<2x128xf32>
    %c40 = arith.constant 40 : index
    %c0_22 = arith.constant 0 : index
    %104 = vector.load %arg5[%c40, %c0_22] : memref<96x1024xf32, #tpu.memory_space<vmem>>, vector<1x128xf32>
    %105 = vector.broadcast %104 : vector<1x128xf32> to vector<2x128xf32>
    %106 = arith.addf %103, %105 : vector<2x128xf32>
    %cst_23 = arith.constant 0.000000e+00 : f32
    %107 = vector.broadcast %cst_23 : f32 to vector<2x128xf32>
    %108 = arith.maximumf %106, %107 : vector<2x128xf32>
    %109 = arith.truncf %108 : vector<2x128xf32> to vector<2x128xbf16>
    %cst_24 = arith.constant dense<0.000000e+00> : vector<2x256xf32>
    %110 = tpu.matmul %109, %68, %cst_24 {dimension_numbers = #tpu.dot_dimension_numbers<[1], [0], [0], [1], [0, 0, 1, 1], [], []>} : vector<2x128xbf16>, vector<128x256xbf16>, vector<2x256xf32> -> vector<2x256xf32>
    %c48 = arith.constant 48 : index
    %c0_25 = arith.constant 0 : index
    %111 = vector.load %arg5[%c48, %c0_25] : memref<96x1024xf32, #tpu.memory_space<vmem>>, vector<1x256xf32>
    %112 = vector.broadcast %111 : vector<1x256xf32> to vector<2x256xf32>
    %113 = arith.addf %110, %112 : vector<2x256xf32>
    %114 = arith.negf %113 : vector<2x256xf32>
    %115 = math.exp %114 : vector<2x256xf32>
    %cst_26 = arith.constant 1.000000e+00 : f32
    %116 = vector.broadcast %cst_26 : f32 to vector<2x256xf32>
    %117 = arith.addf %116, %115 : vector<2x256xf32>
    %118 = arith.divf %116, %117 : vector<2x256xf32>
    %119 = tpu.concatenate %118, %118 in 0 : vector<2x256xf32>, vector<2x256xf32> -> vector<4x256xf32>
    %120 = tpu.concatenate %119, %119 in 0 : vector<4x256xf32>, vector<4x256xf32> -> vector<8x256xf32>
    %121 = tpu.concatenate %120, %120 in 0 : vector<8x256xf32>, vector<8x256xf32> -> vector<16x256xf32>
    %122 = tpu.concatenate %121, %121 in 0 : vector<16x256xf32>, vector<16x256xf32> -> vector<32x256xf32>
    %123 = arith.mulf %66, %122 : vector<32x256xf32>
    %124 = vector.extract_strided_slice %123 {offsets = [0, 0], sizes = [8, 256], strides = [1, 1]} : vector<32x256xf32> to vector<8x256xf32>
    %125 = vector.extract_strided_slice %123 {offsets = [8, 0], sizes = [8, 256], strides = [1, 1]} : vector<32x256xf32> to vector<8x256xf32>
    %126 = vector.extract_strided_slice %123 {offsets = [16, 0], sizes = [8, 256], strides = [1, 1]} : vector<32x256xf32> to vector<8x256xf32>
    %127 = vector.extract_strided_slice %123 {offsets = [24, 0], sizes = [8, 256], strides = [1, 1]} : vector<32x256xf32> to vector<8x256xf32>
    %128 = arith.addf %124, %125 : vector<8x256xf32>
    %129 = arith.addf %126, %127 : vector<8x256xf32>
    %130 = arith.addf %128, %129 : vector<8x256xf32>
    %cst_27 = arith.constant 2.500000e-01 : f32
    %131 = vector.broadcast %cst_27 : f32 to vector<8x256xf32>
    %132 = arith.mulf %130, %131 : vector<8x256xf32>
    %c0_28 = arith.constant 0 : index
    %c0_29 = arith.constant 0 : index
    %133 = vector.load %arg3[%c0_28, %c0_29] : memref<1536x512xbf16, #tpu.memory_space<vmem>>, vector<256x512xbf16>
    %134 = arith.truncf %132 : vector<8x256xf32> to vector<8x256xbf16>
    %cst_30 = arith.constant dense<0.000000e+00> : vector<8x512xf32>
    %135 = tpu.matmul %134, %133, %cst_30 {dimension_numbers = #tpu.dot_dimension_numbers<[1], [0], [0], [1], [0, 0, 1, 1], [], []>} : vector<8x256xbf16>, vector<256x512xbf16>, vector<8x512xf32> -> vector<8x512xf32>
    %c24 = arith.constant 24 : index
    %c0_31 = arith.constant 0 : index
    %136 = vector.load %arg5[%c24, %c0_31] : memref<96x1024xf32, #tpu.memory_space<vmem>>, vector<1x512xf32>
    %137 = vector.broadcast %136 : vector<1x512xf32> to vector<8x512xf32>
    %138 = arith.addf %135, %137 : vector<8x512xf32>
    %cst_32 = arith.constant 0.000000e+00 : f32
    %139 = vector.broadcast %cst_32 : f32 to vector<8x512xf32>
    %140 = arith.maximumf %138, %139 : vector<8x512xf32>
    %c256_33 = arith.constant 256 : index
    %c0_34 = arith.constant 0 : index
    %141 = vector.load %arg2[%c256_33, %c0_34] : memref<768x256xbf16, #tpu.memory_space<vmem>>, vector<512x256xbf16>
    %c256_35 = arith.constant 256 : index
    %c0_36 = arith.constant 0 : index
    %142 = vector.load %arg3[%c256_35, %c0_36] : memref<1536x512xbf16, #tpu.memory_space<vmem>>, vector<256x512xbf16>
    %143 = vector.extract_strided_slice %140 {offsets = [0, 0], sizes = [2, 512], strides = [1, 1]} : vector<8x512xf32> to vector<2x512xf32>
    %144 = vector.extract_strided_slice %140 {offsets = [2, 0], sizes = [2, 512], strides = [1, 1]} : vector<8x512xf32> to vector<2x512xf32>
    %145 = vector.extract_strided_slice %140 {offsets = [4, 0], sizes = [2, 512], strides = [1, 1]} : vector<8x512xf32> to vector<2x512xf32>
    %146 = vector.extract_strided_slice %140 {offsets = [6, 0], sizes = [2, 512], strides = [1, 1]} : vector<8x512xf32> to vector<2x512xf32>
    %147 = arith.addf %143, %144 : vector<2x512xf32>
    %148 = arith.addf %145, %146 : vector<2x512xf32>
    %149 = arith.addf %147, %148 : vector<2x512xf32>
    %cst_37 = arith.constant 2.500000e-01 : f32
    %150 = vector.broadcast %cst_37 : f32 to vector<2x512xf32>
    %151 = arith.mulf %149, %150 : vector<2x512xf32>
    %152 = arith.truncf %151 : vector<2x512xf32> to vector<2x512xbf16>
    %cst_38 = arith.constant dense<0.000000e+00> : vector<2x256xf32>
    %153 = tpu.matmul %152, %141, %cst_38 {dimension_numbers = #tpu.dot_dimension_numbers<[1], [0], [0], [1], [0, 0, 1, 1], [], []>} : vector<2x512xbf16>, vector<512x256xbf16>, vector<2x256xf32> -> vector<2x256xf32>
    %c56 = arith.constant 56 : index
    %c0_39 = arith.constant 0 : index
    %154 = vector.load %arg5[%c56, %c0_39] : memref<96x1024xf32, #tpu.memory_space<vmem>>, vector<1x256xf32>
    %155 = vector.broadcast %154 : vector<1x256xf32> to vector<2x256xf32>
    %156 = arith.addf %153, %155 : vector<2x256xf32>
    %cst_40 = arith.constant 0.000000e+00 : f32
    %157 = vector.broadcast %cst_40 : f32 to vector<2x256xf32>
    %158 = arith.maximumf %156, %157 : vector<2x256xf32>
    %159 = arith.truncf %158 : vector<2x256xf32> to vector<2x256xbf16>
    %cst_41 = arith.constant dense<0.000000e+00> : vector<2x512xf32>
    %160 = tpu.matmul %159, %142, %cst_41 {dimension_numbers = #tpu.dot_dimension_numbers<[1], [0], [0], [1], [0, 0, 1, 1], [], []>} : vector<2x256xbf16>, vector<256x512xbf16>, vector<2x512xf32> -> vector<2x512xf32>
    %c64 = arith.constant 64 : index
    %c0_42 = arith.constant 0 : index
    %161 = vector.load %arg5[%c64, %c0_42] : memref<96x1024xf32, #tpu.memory_space<vmem>>, vector<1x512xf32>
    %162 = vector.broadcast %161 : vector<1x512xf32> to vector<2x512xf32>
    %163 = arith.addf %160, %162 : vector<2x512xf32>
    %164 = arith.negf %163 : vector<2x512xf32>
    %165 = math.exp %164 : vector<2x512xf32>
    %cst_43 = arith.constant 1.000000e+00 : f32
    %166 = vector.broadcast %cst_43 : f32 to vector<2x512xf32>
    %167 = arith.addf %166, %165 : vector<2x512xf32>
    %168 = arith.divf %166, %167 : vector<2x512xf32>
    %169 = tpu.concatenate %168, %168 in 0 : vector<2x512xf32>, vector<2x512xf32> -> vector<4x512xf32>
    %170 = tpu.concatenate %169, %169 in 0 : vector<4x512xf32>, vector<4x512xf32> -> vector<8x512xf32>
    %171 = arith.mulf %140, %170 : vector<8x512xf32>
    %172 = vector.extract_strided_slice %171 {offsets = [0, 0], sizes = [2, 512], strides = [1, 1]} : vector<8x512xf32> to vector<2x512xf32>
    %173 = vector.extract_strided_slice %171 {offsets = [2, 0], sizes = [2, 512], strides = [1, 1]} : vector<8x512xf32> to vector<2x512xf32>
    %174 = vector.extract_strided_slice %171 {offsets = [4, 0], sizes = [2, 512], strides = [1, 1]} : vector<8x512xf32> to vector<2x512xf32>
    %175 = vector.extract_strided_slice %171 {offsets = [6, 0], sizes = [2, 512], strides = [1, 1]} : vector<8x512xf32> to vector<2x512xf32>
    %176 = arith.addf %172, %173 : vector<2x512xf32>
    %177 = arith.addf %174, %175 : vector<2x512xf32>
    %178 = arith.addf %176, %177 : vector<2x512xf32>
    %cst_44 = arith.constant 2.500000e-01 : f32
    %179 = vector.broadcast %cst_44 : f32 to vector<2x512xf32>
    %180 = arith.mulf %178, %179 : vector<2x512xf32>
    %c0_45 = arith.constant 0 : index
    %c0_46 = arith.constant 0 : index
    %181 = vector.load %arg4[%c0_45, %c0_46] : memref<1024x1024xbf16, #tpu.memory_space<vmem>>, vector<512x1024xbf16>
    %182 = arith.truncf %180 : vector<2x512xf32> to vector<2x512xbf16>
    %cst_47 = arith.constant dense<0.000000e+00> : vector<2x1024xf32>
    %183 = tpu.matmul %182, %181, %cst_47 {dimension_numbers = #tpu.dot_dimension_numbers<[1], [0], [0], [1], [0, 0, 1, 1], [], []>} : vector<2x512xbf16>, vector<512x1024xbf16>, vector<2x1024xf32> -> vector<2x1024xf32>
    %c32 = arith.constant 32 : index
    %c0_48 = arith.constant 0 : index
    %184 = vector.load %arg5[%c32, %c0_48] : memref<96x1024xf32, #tpu.memory_space<vmem>>, vector<1x1024xf32>
    %185 = vector.broadcast %184 : vector<1x1024xf32> to vector<2x1024xf32>
    %186 = arith.addf %183, %185 : vector<2x1024xf32>
    %cst_49 = arith.constant 0.000000e+00 : f32
    %187 = vector.broadcast %cst_49 : f32 to vector<2x1024xf32>
    %188 = arith.maximumf %186, %187 : vector<2x1024xf32>
    %c512 = arith.constant 512 : index
    %c0_50 = arith.constant 0 : index
    %189 = vector.load %arg3[%c512, %c0_50] : memref<1536x512xbf16, #tpu.memory_space<vmem>>, vector<1024x512xbf16>
    %c512_51 = arith.constant 512 : index
    %c0_52 = arith.constant 0 : index
    %190 = vector.load %arg4[%c512_51, %c0_52] : memref<1024x1024xbf16, #tpu.memory_space<vmem>>, vector<512x1024xbf16>
    %191 = arith.truncf %188 : vector<2x1024xf32> to vector<2x1024xbf16>
    %cst_53 = arith.constant dense<0.000000e+00> : vector<2x512xf32>
    %192 = tpu.matmul %191, %189, %cst_53 {dimension_numbers = #tpu.dot_dimension_numbers<[1], [0], [0], [1], [0, 0, 1, 1], [], []>} : vector<2x1024xbf16>, vector<1024x512xbf16>, vector<2x512xf32> -> vector<2x512xf32>
    %c72 = arith.constant 72 : index
    %c0_54 = arith.constant 0 : index
    %193 = vector.load %arg5[%c72, %c0_54] : memref<96x1024xf32, #tpu.memory_space<vmem>>, vector<1x512xf32>
    %194 = vector.broadcast %193 : vector<1x512xf32> to vector<2x512xf32>
    %195 = arith.addf %192, %194 : vector<2x512xf32>
    %cst_55 = arith.constant 0.000000e+00 : f32
    %196 = vector.broadcast %cst_55 : f32 to vector<2x512xf32>
    %197 = arith.maximumf %195, %196 : vector<2x512xf32>
    %198 = arith.truncf %197 : vector<2x512xf32> to vector<2x512xbf16>
    %cst_56 = arith.constant dense<0.000000e+00> : vector<2x1024xf32>
    %199 = tpu.matmul %198, %190, %cst_56 {dimension_numbers = #tpu.dot_dimension_numbers<[1], [0], [0], [1], [0, 0, 1, 1], [], []>} : vector<2x512xbf16>, vector<512x1024xbf16>, vector<2x1024xf32> -> vector<2x1024xf32>
    %c80 = arith.constant 80 : index
    %c0_57 = arith.constant 0 : index
    %200 = vector.load %arg5[%c80, %c0_57] : memref<96x1024xf32, #tpu.memory_space<vmem>>, vector<1x1024xf32>
    %201 = vector.broadcast %200 : vector<1x1024xf32> to vector<2x1024xf32>
    %202 = arith.addf %199, %201 : vector<2x1024xf32>
    %203 = arith.negf %202 : vector<2x1024xf32>
    %204 = math.exp %203 : vector<2x1024xf32>
    %cst_58 = arith.constant 1.000000e+00 : f32
    %205 = vector.broadcast %cst_58 : f32 to vector<2x1024xf32>
    %206 = arith.addf %205, %204 : vector<2x1024xf32>
    %207 = arith.divf %205, %206 : vector<2x1024xf32>
    %208 = arith.mulf %188, %207 : vector<2x1024xf32>
    %c0_59 = arith.constant 0 : index
    %c0_60 = arith.constant 0 : index
    %209 = vector.load %arg7[%c0_59, %c0_60] : memref<2x1024xf32, #tpu.memory_space<vmem>>, vector<2x1024xf32>
    tpu.vector_store %arg7[%c0_59, %c0_60], %208 {strides = array<i32>} : memref<2x1024xf32, #tpu.memory_space<vmem>>, vector<2x1024xf32>,
    %c512_61 = arith.constant 512 : index
    %c0_62 = arith.constant 0 : index
    %210 = vector.load %arg1[%c512_61, %c0_62] : memref<1536x128xbf16, #tpu.memory_space<vmem>>, vector<1024x128xbf16>
    %211 = arith.truncf %208 : vector<2x1024xf32> to vector<2x1024xbf16>
    %cst_63 = arith.constant dense<0.000000e+00> : vector<2x128xf32>
    %212 = tpu.matmul %211, %210, %cst_63 {dimension_numbers = #tpu.dot_dimension_numbers<[1], [0], [0], [1], [0, 0, 1, 1], [], []>} : vector<2x1024xbf16>, vector<1024x128xbf16>, vector<2x128xf32> -> vector<2x128xf32>
    %c88 = arith.constant 88 : index
    %c0_64 = arith.constant 0 : index
    %213 = vector.load %arg5[%c88, %c0_64] : memref<96x1024xf32, #tpu.memory_space<vmem>>, vector<1x128xf32>
    %214 = vector.broadcast %213 : vector<1x128xf32> to vector<2x128xf32>
    %215 = arith.addf %212, %214 : vector<2x128xf32>
    %c0_65 = arith.constant 0 : index
    %c0_66 = arith.constant 0 : index
    %216 = vector.load %arg6[%c0_65, %c0_66] : memref<2x128xf32, #tpu.memory_space<vmem>>, vector<2x128xf32>
    tpu.vector_store %arg6[%c0_65, %c0_66], %215 {strides = array<i32>} : memref<2x128xf32, #tpu.memory_space<vmem>>, vector<2x128xf32>,
    return
  }
}

</mosaic_0001>

<bundles_post_ra>
// kernel: mmtm_mvcnn_forward.1
= control target key start
LH: loop header
LB: loop body
LE: loop exit
PB: predicated region body
PF: predicated region fallthrough
CT: control target
= control target key end

     0   :  { %vm2831_vm0 = vcmask 1041408   ;;  %vm2840_vm1 = vcmask 1043456   ;;  %s18894_s1 = inlined_call_operand.vmem [shape: bf16[1536,128], index: 1, kind: input, shape index: {}]   ;;  %s18895_s0 = inlined_call_operand.vmem [shape: f32[2048,128], index: 0, kind: input, shape index: {}]   ;;  %s18896_s5 = inlined_call_operand.vmem [shape: f32[96,1024], index: 5, kind: input, shape index: {}]   ;;  %s18897_s2 = inlined_call_operand.vmem [shape: bf16[768,256], index: 2, kind: input, shape index: {}]   ;;  %s18898_s3 = inlined_call_operand.vmem [shape: bf16[1536,512], index: 3, kind: input, shape index: {}]   ;;  %s18899_s4 = inlined_call_operand.vmem [shape: bf16[1024,1024], index: 4, kind: input, shape index: {}]   ;;  %s18900_s7 = inlined_call_operand.vmem [shape: f32[2,1024], index: 7, kind: output, shape index: {1}]   ;;  %s18901_s6 = inlined_call_operand.vmem [shape: f32[2,128], index: 6, kind: output, shape index: {0}]  }
   0x1   :  { %v12749_v0 = vld [vmem:[%s18894_s1] sm:$0xff]   ;;  %v12750_v1 = vld [vmem:[%s18894_s1 + $0x8] sm:$0xff]   ;;  %v12751_v2 = vld [vmem:[%s18894_s1 + $0x10] sm:$0xff]  }
   0x2   :  { %12361 = vmatprep.subr.bf16.mxu0 %v12749_v0  ;;  %v12752_v3 = vld [vmem:[%s18894_s1 + $0x18] sm:$0xff]   ;;  %v26_v4 = vld [vmem:[%s18895_s0] sm:$0xff]  ;;  %v27_v5 = vld [vmem:[%s18895_s0 + $0x8] sm:$0xff] }
   0x3   :  { %12362 = vmatpush3.bf16.msra.mxu0 %v12749_v0  ;;  %v298_v6 = vpack.c.bf16 %v27_v5, %v26_v4  ;;  %v12753_v7 = vld [vmem:[%s18894_s1 + $0x20] sm:$0xff]   ;;  %v12754_v8 = vld [vmem:[%s18894_s1 + $0x28] sm:$0xff]   ;;  %v12755_v9 = vld [vmem:[%s18894_s1 + $0x30] sm:$0xff]  }
   0x4   :  { %12363 = vmatprep.subr.bf16.mxu0 %v12750_v1  ;;  %v12756_v10 = vld [vmem:[%s18894_s1 + $0x38] sm:$0xff]   ;;  %v28_v11 = vld [vmem:[%s18895_s0 + $0x10] sm:$0xff]  ;;  %v30_v13 = vld [vmem:[%s18895_s0 + $0x20] sm:$0xff] }
   0x5   :  { %12377 = vmatprep.mubr.bf16.mxu0 %v298_v6  ;;  %v29_v12 = vld [vmem:[%s18895_s0 + $0x18] sm:$0xff]  ;;  %v31_v14 = vld [vmem:[%s18895_s0 + $0x28] sm:$0xff]  ;;  %v32_v17 = vld [vmem:[%s18895_s0 + $0x30] sm:$0xff] }
   0x6   :  { %v299_v15 = vpack.c.bf16 %v29_v12, %v28_v11  ;;  %v300_v16 = vpack.c.bf16 %v31_v14, %v30_v13  ;;  %v33_v18 = vld [vmem:[%s18895_s0 + $0x38] sm:$0xff]  ;;  %v34_v19 = vld [vmem:[%s18895_s0 + $0x40] sm:$0xff]  ;;  %v35_v20 = vld [vmem:[%s18895_s0 + $0x48] sm:$0xff] }
   0x7   :  { %12364 = vmatpush3.bf16.msra.mxu0 %v12750_v1  ;;  %v301_v21 = vpack.c.bf16 %v33_v18, %v32_v17  ;;  %v302_v22 = vpack.c.bf16 %v35_v20, %v34_v19  ;;  %v36_v23 = vld [vmem:[%s18895_s0 + $0x50] sm:$0xff]  ;;  %v37_v24 = vld [vmem:[%s18895_s0 + $0x58] sm:$0xff]  ;;  %v38_v25 = vld [vmem:[%s18895_s0 + $0x60] sm:$0xff] }
   0x8   :  { %12365 = vmatprep.subr.bf16.mxu0 %v12751_v2  ;;  %v39_v26 = vld [vmem:[%s18895_s0 + $0x68] sm:$0xff]  ;;  %v303_v27 = vpack.c.bf16 %v37_v24, %v36_v23  ;;  %v40_v29 = vld [vmem:[%s18895_s0 + $0x70] sm:$0xff]  ;;  %v41_v30 = vld [vmem:[%s18895_s0 + $0x78] sm:$0xff] }
   0x9   :  { %v304_v28 = vpack.c.bf16 %v39_v26, %v38_v25  ;;  %v42_v31 = vld [vmem:[%s18895_s0 + $0x80] sm:$0xff]  ;;  %v43_v32 = vld [vmem:[%s18895_s0 + $0x88] sm:$0xff]  ;;  %v305_v33 = vpack.c.bf16 %v41_v30, %v40_v29  ;;  %v44_v35 = vld [vmem:[%s18895_s0 + $0x90] sm:$0xff] }
   0xa   :  { %v306_v34 = vpack.c.bf16 %v43_v32, %v42_v31  ;;  %v45_v36 = vld [vmem:[%s18895_s0 + $0x98] sm:$0xff]  ;;  %v46_v37 = vld [vmem:[%s18895_s0 + $0xa0] sm:$0xff]  ;;  %v47_v38 = vld [vmem:[%s18895_s0 + $0xa8] sm:$0xff] }
   0xb   :  { %12366 = vmatpush3.bf16.msra.mxu0 %v12751_v2  ;;  %v307_v39 = vpack.c.bf16 %v45_v36, %v44_v35  ;;  %v308_v40 = vpack.c.bf16 %v47_v38, %v46_v37  ;;  %v48_v41 = vld [vmem:[%s18895_s0 + $0xb0] sm:$0xff]  ;;  %v49_v42 = vld [vmem:[%s18895_s0 + $0xb8] sm:$0xff]  ;;  %v50_v43 = vld [vmem:[%s18895_s0 + $0xc0] sm:$0xff] }
   0xc   :  { %12367 = vmatprep.subr.bf16.mxu0 %v12752_v3  ;;  %v51_v44 = vld [vmem:[%s18895_s0 + $0xc8] sm:$0xff]  ;;  %v309_v45 = vpack.c.bf16 %v49_v42, %v48_v41  ;;  %v52_v47 = vld [vmem:[%s18895_s0 + $0xd0] sm:$0xff]  ;;  %v53_v48 = vld [vmem:[%s18895_s0 + $0xd8] sm:$0xff] }
   0xd   :  { %v310_v46 = vpack.c.bf16 %v51_v44, %v50_v43  ;;  %v54_v49 = vld [vmem:[%s18895_s0 + $0xe0] sm:$0xff]  ;;  %v55_v50 = vld [vmem:[%s18895_s0 + $0xe8] sm:$0xff]  ;;  %v311_v51 = vpack.c.bf16 %v53_v48, %v52_v47  ;;  %v56_v53 = vld [vmem:[%s18895_s0 + $0xf0] sm:$0xff] }
   0xe   :  { %v312_v52 = vpack.c.bf16 %v55_v50, %v54_v49  ;;  %v57_v54 = vld [vmem:[%s18895_s0 + $0xf8] sm:$0xff]  ;;  %v58_v55 = vld [vmem:[%s18895_s0 + $0x100] sm:$0xff]  ;;  %v59_v56 = vld [vmem:[%s18895_s0 + $0x108] sm:$0xff] }
   0xf   :  { %12368 = vmatpush3.bf16.msra.mxu0 %v12752_v3  ;;  %v313_v57 = vpack.c.bf16 %v57_v54, %v56_v53  ;;  %v314_v58 = vpack.c.bf16 %v59_v56, %v58_v55  ;;  %v60_v59 = vld [vmem:[%s18895_s0 + $0x110] sm:$0xff]  ;;  %v61_v60 = vld [vmem:[%s18895_s0 + $0x118] sm:$0xff]  ;;  %v62_v61 = vld [vmem:[%s18895_s0 + $0x120] sm:$0xff] }
  0x10   :  { %12369 = vmatprep.subr.bf16.mxu0 %v12753_v7  ;;  %v63_v62 = vld [vmem:[%s18895_s0 + $0x128] sm:$0xff]  ;;  %v315_v63 = vpack.c.bf16 %v61_v60, %v60_v59  ;;  %v64_v1 = vld [vmem:[%s18895_s0 + $0x130] sm:$0xff]  ;;  %v65_v2 = vld [vmem:[%s18895_s0 + $0x138] sm:$0xff] }
  0x11   :  { %v316_v0 = vpack.c.bf16 %v63_v62, %v62_v61  ;;  %v66_v3 = vld [vmem:[%s18895_s0 + $0x140] sm:$0xff]  ;;  %v67_v4 = vld [vmem:[%s18895_s0 + $0x148] sm:$0xff]  ;;  %v317_v5 = vpack.c.bf16 %v65_v2, %v64_v1  ;;  %v72_v13 = vld [vmem:[%s18895_s0 + $0x170] sm:$0xff] }
  0x12   :  { %v318_v6 = vpack.c.bf16 %v67_v4, %v66_v3  ;;  %v73_v14 = vld [vmem:[%s18895_s0 + $0x178] sm:$0xff]  ;;  %v76_v19 = vld [vmem:[%s18895_s0 + $0x190] sm:$0xff] }
  0x13   :  { %12370 = vmatpush3.bf16.msra.mxu0 %v12753_v7  ;;  %v68_v7 = vld [vmem:[%s18895_s0 + $0x150] sm:$0xff]  ;;  %v321_v17 = vpack.c.bf16 %v73_v14, %v72_v13  ;;  %v77_v20 = vld [vmem:[%s18895_s0 + $0x198] sm:$0xff] }
  0x14   :  { %12371 = vmatprep.subr.bf16.mxu0 %v12754_v8  ;;  %v323_v23 = vpack.c.bf16 %v77_v20, %v76_v19  ;;  %v80_v25 = vld [vmem:[%s18895_s0 + $0x1b0] sm:$0xff]  ;;  %v81_v26 = vld [vmem:[%s18895_s0 + $0x1b8] sm:$0xff] }
  0x15   :  { %v325_v29 = vpack.c.bf16 %v81_v26, %v80_v25  ;;  %v84_v31 = vld [vmem:[%s18895_s0 + $0x1d0] sm:$0xff]  ;;  %v85_v32 = vld [vmem:[%s18895_s0 + $0x1d8] sm:$0xff] }
  0x16   :  { %v327_v35 = vpack.c.bf16 %v85_v32, %v84_v31  ;;  %v88_v37 = vld [vmem:[%s18895_s0 + $0x1f0] sm:$0xff]  ;;  %v89_v38 = vld [vmem:[%s18895_s0 + $0x1f8] sm:$0xff] }
  0x17   :  { %12372 = vmatpush3.bf16.msra.mxu0 %v12754_v8  ;;  %v69_v8 = vld [vmem:[%s18895_s0 + $0x158] sm:$0xff]  ;;  %v329_v41 = vpack.c.bf16 %v89_v38, %v88_v37  ;;  %v92_v43 = vld [vmem:[%s18895_s0 + $0x210] sm:$0xff] }
  0x18   :  { %12373 = vmatprep.subr.bf16.mxu0 %v12755_v9  ;;  %v319_v11 = vpack.c.bf16 %v69_v8, %v68_v7  ;;  %v93_v44 = vld [vmem:[%s18895_s0 + $0x218] sm:$0xff]  ;;  %v96_v49 = vld [vmem:[%s18895_s0 + $0x230] sm:$0xff] }
  0x19   :  { %v331_v47 = vpack.c.bf16 %v93_v44, %v92_v43  ;;  %v97_v50 = vld [vmem:[%s18895_s0 + $0x238] sm:$0xff]  ;;  %v100_v55 = vld [vmem:[%s18895_s0 + $0x250] sm:$0xff] }
  0x1a   :  { %v333_v53 = vpack.c.bf16 %v97_v50, %v96_v49  ;;  %v101_v56 = vld [vmem:[%s18895_s0 + $0x258] sm:$0xff]  ;;  %v104_v61 = vld [vmem:[%s18895_s0 + $0x270] sm:$0xff] }
  0x1b   :  { %12374 = vmatpush3.bf16.msra.mxu0 %v12755_v9  ;;  %v70_v9 = vld [vmem:[%s18895_s0 + $0x160] sm:$0xff]  ;;  %v335_v59 = vpack.c.bf16 %v101_v56, %v100_v55  ;;  %v105_v62 = vld [vmem:[%s18895_s0 + $0x278] sm:$0xff]  ;;  %v108_v3 = vld [vmem:[%s18895_s0 + $0x290] sm:$0xff] }
  0x1c   :  { %12375 = vmatprep.subr.bf16.mxu0 %v12756_v10  ;;  %v337_v1 = vpack.c.bf16 %v105_v62, %v104_v61  ;;  %v109_v4 = vld [vmem:[%s18895_s0 + $0x298] sm:$0xff]  ;;  %v140_v55 = vld [vmem:[%s18895_s0 + $0x390] sm:$0xff] }
  0x1d   :  { %v339_v7 = vpack.c.bf16 %v109_v4, %v108_v3  ;;  %v141_v56 = vld [vmem:[%s18895_s0 + $0x398] sm:$0xff]  ;;  %v146_v3 = vld [vmem:[%s18895_s0 + $0x3c0] sm:$0xff]  ;;  %v147_v4 = vld [vmem:[%s18895_s0 + $0x3c8] sm:$0xff] }
  0x1e   :  { %v355_v61 = vpack.c.bf16 %v141_v56, %v140_v55 }
  0x1f   :  { %12376 = vmatpush3.bf16.msra.mxu0 %v12756_v10  ;;  %v71_v10 = vld [vmem:[%s18895_s0 + $0x168] sm:$0xff] }
  0x20   :  { %v320_v12 = vpack.c.bf16 %v71_v10, %v70_v9  ;;  %v112_v9 = vld [vmem:[%s18895_s0 + $0x2b0] sm:$0xff]  ;;  %v113_v10 = vld [vmem:[%s18895_s0 + $0x2b8] sm:$0xff] }
  0x21   :  { %v341_v13 = vpack.c.bf16 %v113_v10, %v112_v9  ;;  %v358_v9 = vpack.c.bf16 %v147_v4, %v146_v3 }
  0x22   :  { %12378 = vmatmul.mubr.bf16.vlgmr.msra.gmra.mrb[0].mxu0 %v299_v15  ;;  %v74_v15 = vld [vmem:[%s18895_s0 + $0x180] sm:$0xff] }
  0x23   :  { %12381 = vmatprep.mubr.bf16.mxu0 %v300_v16  ;;  %v75_v16 = vld [vmem:[%s18895_s0 + $0x188] sm:$0xff] }
  0x24   :  { %v322_v18 = vpack.c.bf16 %v75_v16, %v74_v15  ;;  %v116_v15 = vld [vmem:[%s18895_s0 + $0x2d0] sm:$0xff]  ;;  %v117_v16 = vld [vmem:[%s18895_s0 + $0x2d8] sm:$0xff] }
  0x25   :  { %v343_v19 = vpack.c.bf16 %v117_v16, %v116_v15 }
  0x2a   :  { %12382 = vmatmul.mubr.bf16.gmra.mrb[4].mxu0 %v301_v21  ;;  %v78_v21 = vld [vmem:[%s18895_s0 + $0x1a0] sm:$0xff] }
  0x2b   :  { %12385 = vmatprep.mubr.bf16.mxu0 %v302_v22  ;;  %v79_v22 = vld [vmem:[%s18895_s0 + $0x1a8] sm:$0xff] }
  0x2c   :  { %v324_v24 = vpack.c.bf16 %v79_v22, %v78_v21  ;;  %v120_v21 = vld [vmem:[%s18895_s0 + $0x2f0] sm:$0xff]  ;;  %v121_v22 = vld [vmem:[%s18895_s0 + $0x2f8] sm:$0xff] }
  0x2d   :  { %v345_v25 = vpack.c.bf16 %v121_v22, %v120_v21  ;;  %v14094_v21 = vld [vmem:[%s18896_s5] ss:$0 sm:$0xff]  ;;  %v152_v22 = vld [vmem:[%s18895_s0 + $0x3f0] sm:$0xff] }
  0x32   :  { %12386 = vmatmul.mubr.bf16.gmra.mrb[8].mxu0 %v303_v27  ;;  %v82_v27 = vld [vmem:[%s18895_s0 + $0x1c0] sm:$0xff] }
  0x33   :  { %12389 = vmatprep.mubr.bf16.mxu0 %v304_v28  ;;  %v83_v28 = vld [vmem:[%s18895_s0 + $0x1c8] sm:$0xff] }
  0x34   :  { %v326_v30 = vpack.c.bf16 %v83_v28, %v82_v27  ;;  %v124_v27 = vld [vmem:[%s18895_s0 + $0x310] sm:$0xff]  ;;  %v125_v28 = vld [vmem:[%s18895_s0 + $0x318] sm:$0xff] }
  0x35   :  { %v347_v31 = vpack.c.bf16 %v125_v28, %v124_v27 }
  0x3a   :  { %12390 = vmatmul.mubr.bf16.gmra.mrb[12].mxu0 %v305_v33  ;;  %v86_v33 = vld [vmem:[%s18895_s0 + $0x1e0] sm:$0xff] }
  0x3b   :  { %12393 = vmatprep.mubr.bf16.mxu0 %v306_v34  ;;  %v87_v34 = vld [vmem:[%s18895_s0 + $0x1e8] sm:$0xff] }
  0x3c   :  { %v328_v36 = vpack.c.bf16 %v87_v34, %v86_v33  ;;  %v128_v33 = vld [vmem:[%s18895_s0 + $0x330] sm:$0xff]  ;;  %v129_v34 = vld [vmem:[%s18895_s0 + $0x338] sm:$0xff] }
  0x3d   :  { %v349_v37 = vpack.c.bf16 %v129_v34, %v128_v33 }
  0x42   :  { %12394 = vmatmul.mubr.bf16.gmra.mrb[16].mxu0 %v307_v39  ;;  %v90_v39 = vld [vmem:[%s18895_s0 + $0x200] sm:$0xff] }
  0x43   :  { %12397 = vmatprep.mubr.bf16.mxu0 %v308_v40  ;;  %v91_v40 = vld [vmem:[%s18895_s0 + $0x208] sm:$0xff] }
  0x44   :  { %v330_v42 = vpack.c.bf16 %v91_v40, %v90_v39  ;;  %v132_v39 = vld [vmem:[%s18895_s0 + $0x350] sm:$0xff]  ;;  %v133_v40 = vld [vmem:[%s18895_s0 + $0x358] sm:$0xff] }
  0x45   :  { %v351_v43 = vpack.c.bf16 %v133_v40, %v132_v39 }
  0x4a   :  { %12398 = vmatmul.mubr.bf16.gmra.mrb[20].mxu0 %v309_v45  ;;  %v94_v45 = vld [vmem:[%s18895_s0 + $0x220] sm:$0xff] }
  0x4b   :  { %12401 = vmatprep.mubr.bf16.mxu0 %v310_v46  ;;  %v95_v46 = vld [vmem:[%s18895_s0 + $0x228] sm:$0xff] }
  0x4c   :  { %v332_v48 = vpack.c.bf16 %v95_v46, %v94_v45  ;;  %v136_v45 = vld [vmem:[%s18895_s0 + $0x370] sm:$0xff]  ;;  %v137_v46 = vld [vmem:[%s18895_s0 + $0x378] sm:$0xff] }
  0x52   :  { %12402 = vmatmul.mubr.bf16.gmra.mrb[24].mxu0 %v311_v51  ;;  %v98_v51 = vld [vmem:[%s18895_s0 + $0x240] sm:$0xff] }
  0x53   :  { %12405 = vmatprep.mubr.bf16.mxu0 %v312_v52  ;;  %v99_v52 = vld [vmem:[%s18895_s0 + $0x248] sm:$0xff] }
  0x54   :  { %v334_v54 = vpack.c.bf16 %v99_v52, %v98_v51  ;;  %v353_v51 = vpack.c.bf16 %v137_v46, %v136_v45 }
  0x5a   :  { %12406 = vmatmul.mubr.bf16.gmra.mrb[28].mxu0 %v313_v57  ;;  %v102_v57 = vld [vmem:[%s18895_s0 + $0x260] sm:$0xff] }
  0x5b   :  { %12409 = vmatprep.mubr.bf16.mxu0 %v314_v58  ;;  %v103_v58 = vld [vmem:[%s18895_s0 + $0x268] sm:$0xff] }
  0x5c   :  { %v336_v60 = vpack.c.bf16 %v103_v58, %v102_v57  ;;  %v142_v57 = vld [vmem:[%s18895_s0 + $0x3a0] sm:$0xff]  ;;  %v143_v58 = vld [vmem:[%s18895_s0 + $0x3a8] sm:$0xff] }
  0x62   :  { %12410 = vmatmul.mubr.bf16.gmra.mrb[32].mxu0 %v315_v63  ;;  %v106_v63 = vld [vmem:[%s18895_s0 + $0x280] sm:$0xff] }
  0x63   :  { %12413 = vmatprep.mubr.bf16.mxu0 %v316_v0  ;;  %v107_v0 = vld [vmem:[%s18895_s0 + $0x288] sm:$0xff] }
  0x64   :  { %v338_v2 = vpack.c.bf16 %v107_v0, %v106_v63  ;;  %v356_v63 = vpack.c.bf16 %v143_v58, %v142_v57 }
  0x6a   :  { %12414 = vmatmul.mubr.bf16.gmra.mrb[36].mxu0 %v317_v5  ;;  %v110_v5 = vld [vmem:[%s18895_s0 + $0x2a0] sm:$0xff] }
  0x6b   :  { %12417 = vmatprep.mubr.bf16.mxu0 %v318_v6  ;;  %v111_v6 = vld [vmem:[%s18895_s0 + $0x2a8] sm:$0xff] }
  0x6c   :  { %v340_v8 = vpack.c.bf16 %v111_v6, %v110_v5 }
  0x72   :  { %12418 = vmatmul.mubr.bf16.gmra.mrb[40].mxu0 %v319_v11  ;;  %v114_v11 = vld [vmem:[%s18895_s0 + $0x2c0] sm:$0xff] }
  0x73   :  { %12421 = vmatprep.mubr.bf16.mxu0 %v320_v12  ;;  %v115_v12 = vld [vmem:[%s18895_s0 + $0x2c8] sm:$0xff] }
  0x74   :  { %v342_v14 = vpack.c.bf16 %v115_v12, %v114_v11  ;;  %v148_v11 = vld [vmem:[%s18895_s0 + $0x3d0] sm:$0xff]  ;;  %v149_v12 = vld [vmem:[%s18895_s0 + $0x3d8] sm:$0xff] }
  0x7a   :  { %12422 = vmatmul.mubr.bf16.gmra.mrb[44].mxu0 %v321_v17  ;;  %v118_v17 = vld [vmem:[%s18895_s0 + $0x2e0] sm:$0xff] }
  0x7b   :  { %12425 = vmatprep.mubr.bf16.mxu0 %v322_v18  ;;  %v119_v18 = vld [vmem:[%s18895_s0 + $0x2e8] sm:$0xff] }
  0x7c   :  { %v344_v20 = vpack.c.bf16 %v119_v18, %v118_v17  ;;  %v359_v17 = vpack.c.bf16 %v149_v12, %v148_v11 }
  0x82   :  { %12426 = vmatmul.mubr.bf16.gmra.mrb[48].mxu0 %v323_v23  ;;  %v122_v23 = vld [vmem:[%s18895_s0 + $0x300] sm:$0xff] }
  0x83   :  { %12429 = vmatprep.mubr.bf16.mxu0 %v324_v24  ;;  %v123_v24 = vld [vmem:[%s18895_s0 + $0x308] sm:$0xff] }
  0x84   :  { %v346_v26 = vpack.c.bf16 %v123_v24, %v122_v23  ;;  %v153_v23 = vld [vmem:[%s18895_s0 + $0x3f8] sm:$0xff] }
  0x8a   :  { %12430 = vmatmul.mubr.bf16.gmra.mrb[52].mxu0 %v325_v29  ;;  %v126_v29 = vld [vmem:[%s18895_s0 + $0x320] sm:$0xff] }
  0x8b   :  { %12433 = vmatprep.mubr.bf16.mxu0 %v326_v30  ;;  %v127_v30 = vld [vmem:[%s18895_s0 + $0x328] sm:$0xff] }
  0x8c   :  { %v348_v32 = vpack.c.bf16 %v127_v30, %v126_v29 }
  0x92   :  { %12434 = vmatmul.mubr.bf16.gmra.mrb[56].mxu0 %v327_v35  ;;  %v130_v35 = vld [vmem:[%s18895_s0 + $0x340] sm:$0xff] }
  0x93   :  { %12437 = vmatprep.mubr.bf16.mxu0 %v328_v36  ;;  %v131_v36 = vld [vmem:[%s18895_s0 + $0x348] sm:$0xff] }
  0x94   :  { %v350_v38 = vpack.c.bf16 %v131_v36, %v130_v35 }
  0x9a   :  { %12438 = vmatmul.mubr.bf16.gmra.mrb[60].mxu0 %v329_v41  ;;  %v134_v41 = vld [vmem:[%s18895_s0 + $0x360] sm:$0xff] }
  0x9b   :  { %12441 = vmatprep.mubr.bf16.mxu0 %v330_v42  ;;  %v135_v42 = vld [vmem:[%s18895_s0 + $0x368] sm:$0xff] }
  0x9c   :  { %v352_v44 = vpack.c.bf16 %v135_v42, %v134_v41 }
  0xa2   :  { %12442 = vmatmul.mubr.bf16.gmra.mrb[64].mxu0 %v331_v47  ;;  %v138_v47 = vld [vmem:[%s18895_s0 + $0x380] sm:$0xff] }
  0xa3   :  { %12445 = vmatprep.mubr.bf16.mxu0 %v332_v48  ;;  %v139_v48 = vld [vmem:[%s18895_s0 + $0x388] sm:$0xff] }
  0xaa   :  { %12446 = vmatmul.mubr.bf16.gmra.mrb[68].mxu0 %v333_v53  ;;  %v354_v53 = vpack.c.bf16 %v139_v48, %v138_v47 }
  0xab   :  { %12449 = vmatprep.mubr.bf16.mxu0 %v334_v54 }
  0xb2   :  { %12450 = vmatmul.mubr.bf16.gmra.mrb[72].mxu0 %v335_v59 }
  0xb3   :  { %12453 = vmatprep.mubr.bf16.mxu0 %v336_v60 }
  0xba   :  { %12454 = vmatmul.mubr.bf16.gmra.mrb[76].mxu0 %v337_v1  ;;  %v144_v1 = vld [vmem:[%s18895_s0 + $0x3b0] sm:$0xff] }
  0xbb   :  { %12457 = vmatprep.mubr.bf16.mxu0 %v338_v2  ;;  %v145_v2 = vld [vmem:[%s18895_s0 + $0x3b8] sm:$0xff] }
  0xc2   :  { %12458 = vmatmul.mubr.bf16.gmra.mrb[80].mxu0 %v339_v7  ;;  %v357_v7 = vpack.c.bf16 %v145_v2, %v144_v1 }
  0xc3   :  { %12461 = vmatprep.mubr.bf16.mxu0 %v340_v8 }
  0xca   :  { %12462 = vmatmul.mubr.bf16.gmra.mrb[84].mxu0 %v341_v13  ;;  %v150_v13 = vld [vmem:[%s18895_s0 + $0x3e0] sm:$0xff] }
  0xcb   :  { %12465 = vmatprep.mubr.bf16.mxu0 %v342_v14  ;;  %v151_v14 = vld [vmem:[%s18895_s0 + $0x3e8] sm:$0xff] }
  0xd2   :  { %12466 = vmatmul.mubr.bf16.gmra.mrb[88].mxu0 %v343_v19  ;;  %v360_v19 = vpack.c.bf16 %v151_v14, %v150_v13 }
  0xd3   :  { %12469 = vmatprep.mubr.bf16.mxu0 %v344_v20 }
  0xda   :  { %12470 = vmatmul.mubr.bf16.gmra.mrb[92].mxu0 %v345_v25  ;;  %v154_v25 = vld [vmem:[%s18895_s0 + $0x400] sm:$0xff] }
  0xdb   :  { %12473 = vmatprep.mubr.bf16.mxu0 %v346_v26  ;;  %v155_v26 = vld [vmem:[%s18895_s0 + $0x408] sm:$0xff] }
  0xdc   :  { %v362_v36 = vpack.c.bf16 %v155_v26, %v154_v25  ;;  %v160_v25 = vld [vmem:[%s18895_s0 + $0x430] sm:$0xff]  ;;  %v161_v26 = vld [vmem:[%s18895_s0 + $0x438] sm:$0xff] }
  0xe2   :  { %12474 = vmatmul.mubr.bf16.gmra.mrb[96].mxu0 %v347_v31 }
  0xe3   :  { %12477 = vmatprep.mubr.bf16.mxu0 %v348_v32  ;;  %v361_v32 = vpack.c.bf16 %v153_v23, %v152_v22 }
  0xea   :  { %12478 = vmatmul.mubr.bf16.gmra.mrb[100].mxu0 %v349_v37 }
  0xeb   :  { %12481 = vmatprep.mubr.bf16.mxu0 %v350_v38 }
  0xf2   :  { %12482 = vmatmul.mubr.bf16.gmra.mrb[104].mxu0 %v351_v43 }
  0xf3   :  { %12485 = vmatprep.mubr.bf16.mxu0 %v352_v44 }
  0xf5   :  { %v12379_v49 = vpop.f32.mrb[0].mxu0 }
  0xf6   :  { %v509_v50 = vpop.f32.mrb[1].mxu0  ;;  %v518_v24 = vadd.f32 %v12379_v49, %v14094_v21  ;;  %v156_v49 = vld [vmem:[%s18895_s0 + $0x410] sm:$0xff] }
  0xf7   :  { %v12380_v52 = vpop.f32.mrb[2].mxu0  ;;  %v510_v27 = vadd.f32 %v509_v50, %v14094_v21  ;;  %v157_v50 = vld [vmem:[%s18895_s0 + $0x418] sm:$0xff] }
  0xf8   :  { %v512_v54 = vpop.f32.mrb[3].mxu0  ;;  %v521_v29 = vadd.f32 %v12380_v52, %v14094_v21  ;;  %v1534_v37 = vmax.f32 %v518_v24, 0.0  ;;  %v363_v1 = vpack.c.bf16 %v157_v50, %v156_v49 }
  0xf9   :  { %v513_v33 = vadd.f32 %v512_v54, %v14094_v21  ;;  %v1532_v41 = vmax.f32 %v510_v27, 0.0  ;;  %v159_v54 = vld [vmem:[%s18895_s0 + $0x428] sm:$0xff] }
  0xfa   :  { %12486 = vmatmul.mubr.bf16.gmra.mrb[108].mxu0 %v353_v51  ;;  %v1535_v44 = vmax.f32 %v521_v29, 0.0  ;;  %v162_v29 = vld [vmem:[%s18895_s0 + $0x440] sm:$0xff] }
  0xfb   :  { %12489 = vmatprep.mubr.bf16.mxu0 %v354_v53  ;;  %v1533_v47 = vmax.f32 %v513_v33, 0.0  ;;  %v158_v53 = vld [vmem:[%s18895_s0 + $0x420] sm:$0xff] }
  0xfd   :  { %v14043_v59 = vpop.f32.mrb[4].mxu0 }
  0xfe   :  { %v14045_v60 = vpop.f32.mrb[5].mxu0  ;;  %v534_v52 = vadd.f32 %v14043_v59, %v14094_v21 }
  0xff   :  { %v14047_v62 = vpop.f32.mrb[6].mxu0  ;;  %v526_v56 = vadd.f32 %v14045_v60, %v14094_v21 }
 0x100   :  { %v14049_v0 = vpop.f32.mrb[7].mxu0 }
 0x101   :  { %v529_v2 = vadd.f32 %v14049_v0, %v14094_v21  ;;  %v1536_v13 = vmax.f32 %v526_v56, 0.0 }
 0x102   :  { %12490 = vmatmul.mubr.bf16.gmra.mrb[112].mxu0 %v355_v61  ;;  %v537_v61 = vadd.f32 %v14047_v62, %v14094_v21 }
 0x103   :  { %12493 = vmatprep.mubr.bf16.mxu0 %v356_v63  ;;  %v1537_v23 = vmax.f32 %v529_v2, 0.0 }
 0x105   :  { %v14063_v5 = vpop.f32.mrb[8].mxu0 }
 0x106   :  { %v14065_v6 = vpop.f32.mrb[9].mxu0 }
 0x107   :  { %v14067_v8 = vpop.f32.mrb[10].mxu0  ;;  %v542_v33 = vadd.f32 %v14065_v6, %v14094_v21 }
 0x108   :  { %v14069_v10 = vpop.f32.mrb[11].mxu0 }
 0x109   :  { %v1540_v6 = vmax.f32 %v542_v33, 0.0  ;;  %v170_v33 = vld [vmem:[%s18895_s0 + $0x480] sm:$0xff] }
 0x10a   :  { %12494 = vmatmul.mubr.bf16.gmra.mrb[116].mxu0 %v357_v7  ;;  %v364_v7 = vpack.c.bf16 %v159_v54, %v158_v53  ;;  %v165_v54 = vld [vmem:[%s18895_s0 + $0x458] sm:$0xff] }
 0x10b   :  { %12497 = vmatprep.mubr.bf16.mxu0 %v358_v9  ;;  %v1538_v9 = vmax.f32 %v534_v52, 0.0 }
 0x10d   :  { %v14083_v15 = vpop.f32.mrb[12].mxu0 }
 0x10e   :  { %v14085_v16 = vpop.f32.mrb[13].mxu0  ;;  %v566_v56 = vadd.f32 %v14083_v15, %v14094_v21 }
 0x10f   :  { %v14087_v18 = vpop.f32.mrb[14].mxu0 }
 0x110   :  { %v14089_v20 = vpop.f32.mrb[15].mxu0 }
 0x112   :  { %12498 = vmatmul.mubr.bf16.gmra.mrb[120].mxu0 %v359_v17  ;;  %v1539_v17 = vmax.f32 %v537_v61, 0.0  ;;  %v166_v61 = vld [vmem:[%s18895_s0 + $0x460] sm:$0xff] }
 0x113   :  { %12501 = vmatprep.mubr.bf16.mxu0 %v360_v19 }
 0x115   :  { %v12395_v28 = vpop.f32.mrb[16].mxu0 }
 0x116   :  { %v582_v30 = vadd.f32 %v12395_v28, %v14094_v21  ;;  %v573_v31 = vpop.f32.mrb[17].mxu0  ;;  %v550_v28 = vadd.f32 %v14063_v5, %v14094_v21  ;;  %v553_v5 = vadd.f32 %v14067_v8, %v14094_v21 }
 0x117   :  { %v574_v34 = vadd.f32 %v573_v31, %v14094_v21  ;;  %v12396_v35 = vpop.f32.mrb[18].mxu0 }
 0x118   :  { %v1550_v38 = vmax.f32 %v582_v30, 0.0  ;;  %v585_v39 = vadd.f32 %v12396_v35, %v14094_v21  ;;  %v576_v40 = vpop.f32.mrb[19].mxu0  ;;  %v163_v30 = vld [vmem:[%s18895_s0 + $0x448] sm:$0xff]  ;;  %v1543_v8 = vmax.f32 %v553_v5, 0.0 }
 0x119   :  { %v1548_v42 = vmax.f32 %v574_v34, 0.0  ;;  %v577_v43 = vadd.f32 %v576_v40, %v14094_v21  ;;  %v366_v40 = vpack.c.bf16 %v163_v30, %v162_v29  ;;  %v168_v29 = vld [vmem:[%s18895_s0 + $0x470] sm:$0xff]  ;;  %v169_v30 = vld [vmem:[%s18895_s0 + $0x478] sm:$0xff] }
 0x11a   :  { %v1551_v45 = vmax.f32 %v585_v39, 0.0  ;;  %12502 = vmatmul.mubr.bf16.gmra.mrb[124].mxu0 %v361_v32  ;;  %v14116_v46 = vadd.f32 %v1550_v38, %v1534_v37  ;;  %v545_v39 = vadd.f32 %v14069_v10, %v14094_v21  ;;  %v164_v10 = vld [vmem:[%s18895_s0 + $0x450] sm:$0xff] }
 0x11b   :  { %v1549_v48 = vmax.f32 %v577_v43, 0.0  ;;  %12505 = vmatprep.mubr.bf16.mxu0 %v362_v36  ;;  %v14124_v51 = vadd.f32 %v1548_v42, %v1532_v41  ;;  %v365_v36 = vpack.c.bf16 %v161_v26, %v160_v25  ;;  %v1542_v41 = vmax.f32 %v550_v28, 0.0 }
 0x11c   :  { %v14134_v55 = vadd.f32 %v1551_v45, %v1535_v44  ;;  %v1541_v52 = vmax.f32 %v545_v39, 0.0 }
 0x11d   :  { %v12399_v57 = vpop.f32.mrb[20].mxu0  ;;  %v14138_v58 = vadd.f32 %v1549_v48, %v1533_v47 }
 0x11e   :  { %v598_v59 = vadd.f32 %v12399_v57, %v14094_v21  ;;  %v589_v63 = vpop.f32.mrb[21].mxu0 }
 0x11f   :  { %v590_v3 = vadd.f32 %v589_v63, %v14094_v21  ;;  %v12400_v4 = vpop.f32.mrb[22].mxu0  ;;  %v558_v63 = vadd.f32 %v14085_v16, %v14094_v21 }
 0x120   :  { %v1554_v11 = vmax.f32 %v598_v59, 0.0  ;;  %v601_v60 = vadd.f32 %v12400_v4, %v14094_v21  ;;  %v592_v12 = vpop.f32.mrb[23].mxu0  ;;  %v167_v59 = vld [vmem:[%s18895_s0 + $0x468] sm:$0xff] }
 0x121   :  { %v1552_v14 = vmax.f32 %v590_v3, 0.0  ;;  %v593_v62 = vadd.f32 %v592_v12, %v14094_v21  ;;  %v569_v3 = vadd.f32 %v14087_v18, %v14094_v21  ;;  %v368_v12 = vpack.c.bf16 %v167_v59, %v166_v61 }
 0x122   :  { %v14148_v19 = vadd.f32 %v1554_v11, %v1538_v9  ;;  %v1555_v22 = vmax.f32 %v601_v60, 0.0  ;;  %12506 = vmatmul.mubr.bf16.gmra.mrb[128].mxu0 %v363_v1  ;;  %v561_v9 = vadd.f32 %v14089_v20, %v14094_v21 }
 0x123   :  { %v14150_v0 = vadd.f32 %v1552_v14, %v1536_v13  ;;  %v1553_v24 = vmax.f32 %v593_v62, 0.0  ;;  %12509 = vmatprep.mubr.bf16.mxu0 %v364_v7  ;;  %v367_v7 = vpack.c.bf16 %v165_v54, %v164_v10  ;;  %v1546_v13 = vmax.f32 %v566_v56, 0.0  ;;  %v177_v10 = vld [vmem:[%s18895_s0 + $0x4b8] sm:$0xff]  ;;  %v178_v54 = vld [vmem:[%s18895_s0 + $0x4c0] sm:$0xff]  ;;  %v179_v56 = vld [vmem:[%s18895_s0 + $0x4c8] sm:$0xff] }
 0x124   :  { %v14158_v27 = vadd.f32 %v1555_v22, %v1539_v17  ;;  %v1544_v17 = vmax.f32 %v558_v63, 0.0  ;;  %v1545_v26 = vmax.f32 %v561_v9, 0.0  ;;  %v182_v9 = vld [vmem:[%s18895_s0 + $0x4e0] sm:$0xff] }
 0x125   :  { %v14168_v31 = vadd.f32 %v1553_v24, %v1537_v23  ;;  %v12403_v32 = vpop.f32.mrb[24].mxu0  ;;  %v1547_v23 = vmax.f32 %v569_v3, 0.0  ;;  %v374_v3 = vpack.c.bf16 %v179_v56, %v178_v54 }
 0x126   :  { %v614_v34 = vadd.f32 %v12403_v32, %v14094_v21  ;;  %v605_v35 = vpop.f32.mrb[25].mxu0 }
 0x127   :  { %v606_v37 = vadd.f32 %v605_v35, %v14094_v21  ;;  %v12404_v38 = vpop.f32.mrb[26].mxu0 }
 0x128   :  { %v1558_v42 = vmax.f32 %v614_v34, 0.0  ;;  %v617_v43 = vadd.f32 %v12404_v38, %v14094_v21  ;;  %v608_v44 = vpop.f32.mrb[27].mxu0  ;;  %v171_v34 = vld [vmem:[%s18895_s0 + $0x488] sm:$0xff] }
 0x129   :  { %v1556_v45 = vmax.f32 %v606_v37, 0.0  ;;  %v609_v47 = vadd.f32 %v608_v44, %v14094_v21  ;;  %v369_v37 = vpack.c.bf16 %v169_v30, %v168_v29  ;;  %v370_v39 = vpack.c.bf16 %v171_v34, %v170_v33  ;;  %v175_v44 = vld [vmem:[%s18895_s0 + $0x4a8] sm:$0xff] }
 0x12a   :  { %v14180_v48 = vadd.f32 %v1558_v42, %v1542_v41  ;;  %v1559_v49 = vmax.f32 %v617_v43, 0.0  ;;  %12510 = vmatmul.mubr.bf16.gmra.mrb[132].mxu0 %v365_v36  ;;  %v172_v41 = vld [vmem:[%s18895_s0 + $0x490] sm:$0xff]  ;;  %v173_v42 = vld [vmem:[%s18895_s0 + $0x498] sm:$0xff]  ;;  %v174_v43 = vld [vmem:[%s18895_s0 + $0x4a0] sm:$0xff] }
 0x12b   :  { %v14182_v50 = vadd.f32 %v1556_v45, %v1540_v6  ;;  %v1557_v53 = vmax.f32 %v609_v47, 0.0  ;;  %12513 = vmatprep.mubr.bf16.mxu0 %v366_v40  ;;  %v371_v47 = vpack.c.bf16 %v173_v42, %v172_v41 }
 0x12c   :  { %v14192_v57 = vadd.f32 %v1559_v49, %v1543_v8  ;;  %v372_v49 = vpack.c.bf16 %v175_v44, %v174_v43 }
 0x12d   :  { %v14202_v1 = vadd.f32 %v1557_v53, %v1541_v52  ;;  %v12407_v2 = vpop.f32.mrb[28].mxu0  ;;  %v176_v53 = vld [vmem:[%s18895_s0 + $0x4b0] sm:$0xff] }
 0x12e   :  { %v630_v15 = vadd.f32 %v12407_v2, %v14094_v21  ;;  %v621_v4 = vpop.f32.mrb[29].mxu0  ;;  %v373_v63 = vpack.c.bf16 %v177_v10, %v176_v53 }
 0x12f   :  { %v622_v11 = vadd.f32 %v621_v4, %v14094_v21  ;;  %v12408_v60 = vpop.f32.mrb[30].mxu0  ;;  %v180_v4 = vld [vmem:[%s18895_s0 + $0x4d0] sm:$0xff] }
 0x130   :  { %v1562_v14 = vmax.f32 %v630_v15, 0.0  ;;  %v633_v16 = vadd.f32 %v12408_v60, %v14094_v21  ;;  %v624_v62 = vpop.f32.mrb[31].mxu0 }
 0x131   :  { %v1560_v22 = vmax.f32 %v622_v11, 0.0  ;;  %v625_v18 = vadd.f32 %v624_v62, %v14094_v21  ;;  %v183_v11 = vld [vmem:[%s18895_s0 + $0x4e8] sm:$0xff] }
 0x132   :  { %v14212_v24 = vadd.f32 %v1562_v14, %v1546_v13  ;;  %v1563_v25 = vmax.f32 %v633_v16, 0.0  ;;  %12514 = vmatmul.mubr.bf16.gmra.mrb[136].mxu0 %v367_v7  ;;  %v181_v7 = vld [vmem:[%s18895_s0 + $0x4d8] sm:$0xff]  ;;  %v376_v16 = vpack.c.bf16 %v183_v11, %v182_v9 }
 0x133   :  { %v14214_v20 = vadd.f32 %v1560_v22, %v1544_v17  ;;  %v1561_v28 = vmax.f32 %v625_v18, 0.0  ;;  %12517 = vmatprep.mubr.bf16.mxu0 %v368_v12  ;;  %v375_v13 = vpack.c.bf16 %v181_v7, %v180_v4  ;;  %v184_v17 = vld [vmem:[%s18895_s0 + $0x4f0] sm:$0xff]  ;;  %v185_v22 = vld [vmem:[%s18895_s0 + $0x4f8] sm:$0xff] }
 0x134   :  { %v14222_v32 = vadd.f32 %v1563_v25, %v1547_v23  ;;  %v186_v23 = vld [vmem:[%s18895_s0 + $0x500] sm:$0xff]  ;;  %v187_v25 = vld [vmem:[%s18895_s0 + $0x508] sm:$0xff]  ;;  %v377_v34 = vpack.c.bf16 %v185_v22, %v184_v17  ;;  %v189_v4 = vld [vmem:[%s18895_s0 + $0x518] sm:$0xff] }
 0x135   :  { %v14230_v35 = vadd.f32 %v1561_v28, %v1545_v26  ;;  %v12411_v5 = vpop.f32.mrb[32].mxu0  ;;  %v378_v41 = vpack.c.bf16 %v187_v25, %v186_v23 }
 0x136   :  { %v637_v36 = vpop.f32.mrb[33].mxu0  ;;  %v646_v18 = vadd.f32 %v12411_v5, %v14094_v21 }
 0x137   :  { %v12412_v38 = vpop.f32.mrb[34].mxu0  ;;  %v638_v26 = vadd.f32 %v637_v36, %v14094_v21 }
 0x138   :  { %v640_v40 = vpop.f32.mrb[35].mxu0  ;;  %v649_v29 = vadd.f32 %v12412_v38, %v14094_v21  ;;  %v1566_v42 = vmax.f32 %v646_v18, 0.0 }
 0x13a   :  { %12518 = vmatmul.mubr.bf16.gmra.mrb[140].mxu0 %v369_v37  ;;  %v641_v37 = vadd.f32 %v640_v40, %v14094_v21  ;;  %v1567_v38 = vmax.f32 %v649_v29, 0.0 }
 0x13b   :  { %12521 = vmatprep.mubr.bf16.mxu0 %v370_v39 }
 0x13c   :  { %v1565_v56 = vmax.f32 %v641_v37, 0.0 }
 0x13d   :  { %v14244_v6 = vpop.f32.mrb[36].mxu0 }
 0x13e   :  { %v14246_v45 = vpop.f32.mrb[37].mxu0  ;;  %v662_v7 = vadd.f32 %v14244_v6, %v14094_v21 }
 0x13f   :  { %v14248_v8 = vpop.f32.mrb[38].mxu0  ;;  %v654_v17 = vadd.f32 %v14246_v45, %v14094_v21 }
 0x140   :  { %v14250_v52 = vpop.f32.mrb[39].mxu0 }
 0x141   :  { %v657_v29 = vadd.f32 %v14250_v52, %v14094_v21 }
 0x142   :  { %12522 = vmatmul.mubr.bf16.gmra.mrb[144].mxu0 %v371_v47 }
 0x143   :  { %12525 = vmatprep.mubr.bf16.mxu0 %v372_v49  ;;  %v1564_v49 = vmax.f32 %v638_v26, 0.0  ;;  %v1569_v52 = vmax.f32 %v657_v29, 0.0 }
 0x145   :  { %v14264_v61 = vpop.f32.mrb[40].mxu0 }
 0x146   :  { %v14266_v59 = vpop.f32.mrb[41].mxu0 }
 0x147   :  { %v14268_v2 = vpop.f32.mrb[42].mxu0 }
 0x148   :  { %v14270_v15 = vpop.f32.mrb[43].mxu0 }
 0x14a   :  { %12526 = vmatmul.mubr.bf16.gmra.mrb[148].mxu0 %v373_v63 }
 0x14b   :  { %12529 = vmatprep.mubr.bf16.mxu0 %v374_v3  ;;  %v188_v3 = vld [vmem:[%s18895_s0 + $0x510] sm:$0xff] }
 0x14d   :  { %v14284_v60 = vpop.f32.mrb[44].mxu0 }
 0x14e   :  { %v14286_v12 = vpop.f32.mrb[45].mxu0 }
 0x14f   :  { %v14288_v14 = vpop.f32.mrb[46].mxu0 }
 0x150   :  { %v14290_v62 = vpop.f32.mrb[47].mxu0 }
 0x152   :  { %12530 = vmatmul.mubr.bf16.gmra.mrb[152].mxu0 %v375_v13  ;;  %v190_v13 = vld [vmem:[%s18895_s0 + $0x520] sm:$0xff] }
 0x153   :  { %12533 = vmatprep.mubr.bf16.mxu0 %v376_v16  ;;  %v191_v16 = vld [vmem:[%s18895_s0 + $0x528] sm:$0xff] }
 0x155   :  { %v12427_v28 = vpop.f32.mrb[48].mxu0 }
 0x156   :  { %v710_v30 = vadd.f32 %v12427_v28, %v14094_v21  ;;  %v701_v33 = vpop.f32.mrb[49].mxu0  ;;  %v379_v28 = vpack.c.bf16 %v189_v4, %v188_v3 }
 0x157   :  { %v702_v5 = vadd.f32 %v701_v33, %v14094_v21  ;;  %v12428_v39 = vpop.f32.mrb[50].mxu0  ;;  %v380_v33 = vpack.c.bf16 %v191_v16, %v190_v13  ;;  %v673_v16 = vadd.f32 %v14270_v15, %v14094_v21 }
 0x158   :  { %v1582_v43 = vmax.f32 %v710_v30, 0.0  ;;  %v713_v44 = vadd.f32 %v12428_v39, %v14094_v21  ;;  %v704_v47 = vpop.f32.mrb[51].mxu0 }
 0x159   :  { %v1580_v36 = vmax.f32 %v702_v5, 0.0  ;;  %v705_v53 = vadd.f32 %v704_v47, %v14094_v21  ;;  %v1568_v5 = vmax.f32 %v654_v17, 0.0  ;;  %v1573_v15 = vmax.f32 %v673_v16, 0.0  ;;  %v200_v16 = vld [vmem:[%s18895_s0 + $0x570] sm:$0xff] }
 0x15a   :  { %v1806_v10 = vadd.f32 %v1582_v43, %v1566_v42  ;;  %v1583_v54 = vmax.f32 %v713_v44, 0.0  ;;  %12534 = vmatmul.mubr.bf16.gmra.mrb[156].mxu0 %v377_v34  ;;  %v1570_v34 = vmax.f32 %v662_v7, 0.0 }
 0x15b   :  { %v1804_v63 = vadd.f32 %v1580_v36, %v1564_v49  ;;  %v1581_v40 = vmax.f32 %v705_v53, 0.0  ;;  %12537 = vmatprep.mubr.bf16.mxu0 %v378_v41  ;;  %v192_v49 = vld [vmem:[%s18895_s0 + $0x530] sm:$0xff]  ;;  %v193_v36 = vld [vmem:[%s18895_s0 + $0x538] sm:$0xff]  ;;  %v678_v53 = vadd.f32 %v14264_v61, %v14094_v21 }
 0x15c   :  { %v14321_v9 = vadd.f32 %v1806_v10, %v14116_v46  ;;  %v1807_v11 = vadd.f32 %v1583_v54, %v1567_v38  ;;  %v665_v46 = vadd.f32 %v14248_v8, %v14094_v21  ;;  %v194_v54 = vld [vmem:[%s18895_s0 + $0x540] sm:$0xff]  ;;  %v381_v13 = vpack.c.bf16 %v193_v36, %v192_v49 }
 0x15d   :  { %v14332_v22 = vadd.f32 %v1804_v63, %v14124_v51  ;;  %v1805_v18 = vadd.f32 %v1581_v40, %v1565_v56  ;;  %v12431_v6 = vpop.f32.mrb[52].mxu0  ;;  %v195_v56 = vld [vmem:[%s18895_s0 + $0x548] sm:$0xff]  ;;  %v670_v63 = vadd.f32 %v14266_v59, %v14094_v21  ;;  %v689_v36 = vadd.f32 %v14290_v62, %v14094_v21 }
 0x15e   :  { %v14337_v23 = vadd.f32 %v1807_v11, %v14134_v55  ;;  %v726_v25 = vadd.f32 %v12431_v6, %v14094_v21  ;;  %v717_v26 = vpop.f32.mrb[53].mxu0  ;;  %v1571_v42 = vmax.f32 %v665_v46, 0.0  ;;  %v1574_v6 = vmax.f32 %v678_v53, 0.0 }
 0x15f   :  { %v14343_v45 = vadd.f32 %v1805_v18, %v14138_v58  ;;  %v718_v51 = vadd.f32 %v717_v26, %v14094_v21  ;;  %v12432_v30 = vpop.f32.mrb[54].mxu0  ;;  %v382_v18 = vpack.c.bf16 %v195_v56, %v194_v54  ;;  %v1577_v62 = vmax.f32 %v689_v36, 0.0 }
 0x160   :  { %v1586_v37 = vmax.f32 %v726_v25, 0.0  ;;  %v729_v8 = vadd.f32 %v12432_v30, %v14094_v21  ;;  %v720_v55 = vpop.f32.mrb[55].mxu0  ;;  %v1572_v25 = vmax.f32 %v670_v63, 0.0 }
 0x161   :  { %v1584_v39 = vmax.f32 %v718_v51, 0.0  ;;  %v721_v41 = vadd.f32 %v720_v55, %v14094_v21 }
 0x162   :  { %v1810_v43 = vadd.f32 %v1586_v37, %v1570_v34  ;;  %v1587_v44 = vmax.f32 %v729_v8, 0.0  ;;  %12538 = vmatmul.mubr.bf16.gmra.mrb[160].mxu0 %v379_v28  ;;  %v196_v34 = vld [vmem:[%s18895_s0 + $0x550] sm:$0xff]  ;;  %v197_v37 = vld [vmem:[%s18895_s0 + $0x558] sm:$0xff]  ;;  %v694_v8 = vadd.f32 %v14284_v60, %v14094_v21 }
 0x163   :  { %v1808_v58 = vadd.f32 %v1584_v39, %v1568_v5  ;;  %v1585_v47 = vmax.f32 %v721_v41, 0.0  ;;  %12541 = vmatprep.mubr.bf16.mxu0 %v380_v33  ;;  %v198_v39 = vld [vmem:[%s18895_s0 + $0x560] sm:$0xff]  ;;  %v199_v41 = vld [vmem:[%s18895_s0 + $0x568] sm:$0xff]  ;;  %v383_v49 = vpack.c.bf16 %v197_v37, %v196_v34 }
 0x164   :  { %v14357_v38 = vadd.f32 %v1810_v43, %v14148_v19  ;;  %v1811_v10 = vadd.f32 %v1587_v44, %v1571_v42  ;;  %v681_v19 = vadd.f32 %v14268_v2, %v14094_v21  ;;  %v686_v42 = vadd.f32 %v14286_v12, %v14094_v21 }
 0x165   :  { %v14368_v40 = vadd.f32 %v1808_v58, %v14150_v0  ;;  %v1809_v3 = vadd.f32 %v1585_v47, %v1569_v52  ;;  %v12435_v61 = vpop.f32.mrb[56].mxu0  ;;  %v1578_v54 = vmax.f32 %v694_v8, 0.0 }
 0x166   :  { %v14373_v4 = vadd.f32 %v1811_v10, %v14158_v27  ;;  %v742_v7 = vadd.f32 %v12435_v61, %v14094_v21  ;;  %v733_v11 = vpop.f32.mrb[57].mxu0  ;;  %v1575_v29 = vmax.f32 %v681_v19, 0.0  ;;  %v384_v10 = vpack.c.bf16 %v199_v41, %v198_v39  ;;  %v208_v41 = vld [vmem:[%s18895_s0 + $0x5b0] sm:$0xff] }
 0x167   :  { %v14379_v59 = vadd.f32 %v1809_v3, %v14168_v31  ;;  %v734_v0 = vadd.f32 %v733_v11, %v14094_v21  ;;  %v12436_v17 = vpop.f32.mrb[58].mxu0  ;;  %v1576_v63 = vmax.f32 %v686_v42, 0.0  ;;  %v209_v42 = vld [vmem:[%s18895_s0 + $0x5b8] sm:$0xff] }
 0x168   :  { %v1590_v46 = vmax.f32 %v742_v7, 0.0  ;;  %v745_v2 = vadd.f32 %v12436_v17, %v14094_v21  ;;  %v736_v27 = vpop.f32.mrb[59].mxu0 }
 0x169   :  { %v1588_v26 = vmax.f32 %v734_v0, 0.0  ;;  %v737_v28 = vadd.f32 %v736_v27, %v14094_v21  ;;  %v201_v0 = vld [vmem:[%s18895_s0 + $0x578] sm:$0xff] }
 0x16a   :  { %v1814_v51 = vadd.f32 %v1590_v46, %v1574_v6  ;;  %v1591_v30 = vmax.f32 %v745_v2, 0.0  ;;  %12542 = vmatmul.mubr.bf16.gmra.mrb[164].mxu0 %v381_v13  ;;  %v202_v6 = vld [vmem:[%s18895_s0 + $0x580] sm:$0xff]  ;;  %v203_v46 = vld [vmem:[%s18895_s0 + $0x588] sm:$0xff] }
 0x16b   :  { %v1812_v31 = vadd.f32 %v1588_v26, %v1572_v25  ;;  %v1589_v33 = vmax.f32 %v737_v28, 0.0  ;;  %12545 = vmatprep.mubr.bf16.mxu0 %v382_v18 }
 0x16c   :  { %v14393_v55 = vadd.f32 %v1814_v51, %v14180_v48  ;;  %v1815_v5 = vadd.f32 %v1591_v30, %v1575_v29  ;;  %v697_v48 = vadd.f32 %v14288_v14, %v14094_v21  ;;  %v386_v30 = vpack.c.bf16 %v203_v46, %v202_v6 }
 0x16d   :  { %v14404_v43 = vadd.f32 %v1812_v31, %v14182_v50  ;;  %v1813_v44 = vadd.f32 %v1589_v33, %v1573_v15  ;;  %v12439_v60 = vpop.f32.mrb[60].mxu0  ;;  %v205_v31 = vld [vmem:[%s18895_s0 + $0x598] sm:$0xff] }
 0x16e   :  { %v14409_v52 = vadd.f32 %v1815_v5, %v14192_v57  ;;  %v758_v58 = vadd.f32 %v12439_v60, %v14094_v21  ;;  %v749_v47 = vpop.f32.mrb[61].mxu0  ;;  %v1579_v19 = vmax.f32 %v697_v48, 0.0  ;;  %v211_v60 = vld [vmem:[%s18895_s0 + $0x5c8] sm:$0xff] }
 0x16f   :  { %v14415_v12 = vadd.f32 %v1813_v44, %v14202_v1  ;;  %v750_v50 = vadd.f32 %v749_v47, %v14094_v21  ;;  %v12440_v53 = vpop.f32.mrb[62].mxu0  ;;  %v210_v44 = vld [vmem:[%s18895_s0 + $0x5c0] sm:$0xff]  ;;  %v389_v47 = vpack.c.bf16 %v209_v42, %v208_v41 }
 0x170   :  { %v1594_v56 = vmax.f32 %v758_v58, 0.0  ;;  %v761_v14 = vadd.f32 %v12440_v53, %v14094_v21  ;;  %v752_v57 = vpop.f32.mrb[63].mxu0  ;;  %v390_v36 = vpack.c.bf16 %v211_v60, %v210_v44  ;;  %v212_v53 = vld [vmem:[%s18895_s0 + $0x5d0] sm:$0xff] }
 0x171   :  { %v1592_v3 = vmax.f32 %v750_v50, 0.0  ;;  %v753_v61 = vadd.f32 %v752_v57, %v14094_v21 }
 0x172   :  { %v1818_v7 = vadd.f32 %v1594_v56, %v1578_v54  ;;  %v1595_v11 = vmax.f32 %v761_v14, 0.0  ;;  %12546 = vmatmul.mubr.bf16.gmra.mrb[168].mxu0 %v383_v49  ;;  %v214_v54 = vld [vmem:[%s18895_s0 + $0x5e0] sm:$0xff]  ;;  %v215_v56 = vld [vmem:[%s18895_s0 + $0x5e8] sm:$0xff] }
 0x173   :  { %v1816_v1 = vadd.f32 %v1592_v3, %v1576_v63  ;;  %v1593_v13 = vmax.f32 %v753_v61, 0.0  ;;  %12549 = vmatprep.mubr.bf16.mxu0 %v384_v10  ;;  %v213_v10 = vld [vmem:[%s18895_s0 + $0x5d8] sm:$0xff]  ;;  %v392_v61 = vpack.c.bf16 %v215_v56, %v214_v54  ;;  %v222_v56 = vld [vmem:[%s18895_s0 + $0x620] sm:$0xff] }
 0x174   :  { %v14427_v17 = vadd.f32 %v1818_v7, %v14212_v24  ;;  %v1819_v18 = vadd.f32 %v1595_v11, %v1579_v19  ;;  %v385_v24 = vpack.c.bf16 %v201_v0, %v200_v16  ;;  %v391_v63 = vpack.c.bf16 %v213_v10, %v212_v53  ;;  %v216_v7 = vld [vmem:[%s18895_s0 + $0x5f0] sm:$0xff]  ;;  %v217_v11 = vld [vmem:[%s18895_s0 + $0x5f8] sm:$0xff] }
 0x175   :  { %v14436_v2 = vadd.f32 %v1816_v1, %v14214_v20  ;;  %v1817_v27 = vadd.f32 %v1593_v13, %v1577_v62  ;;  %v12443_v25 = vpop.f32.mrb[64].mxu0  ;;  %v204_v20 = vld [vmem:[%s18895_s0 + $0x590] sm:$0xff]  ;;  %v218_v1 = vld [vmem:[%s18895_s0 + $0x600] sm:$0xff]  ;;  %v219_v13 = vld [vmem:[%s18895_s0 + $0x608] sm:$0xff] }
 0x176   :  { %v14439_v26 = vadd.f32 %v1819_v18, %v14222_v32  ;;  %v765_v28 = vpop.f32.mrb[65].mxu0  ;;  %v206_v32 = vld [vmem:[%s18895_s0 + $0x5a0] sm:$0xff]  ;;  %v387_v37 = vpack.c.bf16 %v205_v31, %v204_v20  ;;  %v774_v62 = vadd.f32 %v12443_v25, %v14094_v21  ;;  %v394_v20 = vpack.c.bf16 %v219_v13, %v218_v1  ;;  %v221_v53 = vld [vmem:[%s18895_s0 + $0x618] sm:$0xff] }
 0x177   :  { %18902 = vst [vmem:[#allocation2_spill] sm:$0xff] %v14436_v2  ;;  %v14442_v29 = vadd.f32 %v1817_v27, %v14230_v35  ;;  %v12444_v51 = vpop.f32.mrb[66].mxu0  ;;  %v207_v35 = vld [vmem:[%s18895_s0 + $0x5a8] sm:$0xff]  ;;  %v766_v16 = vadd.f32 %v765_v28, %v14094_v21  ;;  %v393_v27 = vpack.c.bf16 %v217_v11, %v216_v7 }
 0x178   :  { %18903 = vst [vmem:[#allocation3_spill] sm:$0xff] %v14439_v26  ;;  %v768_v15 = vpop.f32.mrb[67].mxu0  ;;  %v388_v5 = vpack.c.bf16 %v207_v35, %v206_v32  ;;  %v777_v18 = vadd.f32 %v12444_v51, %v14094_v21  ;;  %v1598_v31 = vmax.f32 %v774_v62, 0.0 }
 0x179   :  { %18904 = vst [vmem:[#allocation4_spill] sm:$0xff] %v14442_v29 }
 0x17a   :  { %12550 = vmatmul.mubr.bf16.gmra.mrb[172].mxu0 %v385_v24  ;;  %v769_v24 = vadd.f32 %v768_v15, %v14094_v21  ;;  %v1599_v51 = vmax.f32 %v777_v18, 0.0 }
 0x17b   :  { %12553 = vmatprep.mubr.bf16.mxu0 %v386_v30 }
 0x17c   :  { %v1597_v60 = vmax.f32 %v769_v24, 0.0 }
 0x17d   :  { %v14456_v33 = vpop.f32.mrb[68].mxu0 }
 0x17e   :  { %v14458_v34 = vpop.f32.mrb[69].mxu0  ;;  %v790_v10 = vadd.f32 %v14456_v33, %v14094_v21 }
 0x17f   :  { %v14460_v8 = vpop.f32.mrb[70].mxu0 }
 0x180   :  { %v14462_v39 = vpop.f32.mrb[71].mxu0  ;;  %v793_v62 = vadd.f32 %v14460_v8, %v14094_v21 }
 0x182   :  { %12554 = vmatmul.mubr.bf16.gmra.mrb[176].mxu0 %v387_v37 }
 0x183   :  { %12557 = vmatprep.mubr.bf16.mxu0 %v388_v5  ;;  %v1596_v5 = vmax.f32 %v766_v16, 0.0  ;;  %v785_v16 = vadd.f32 %v14462_v39, %v14094_v21 }
 0x185   :  { %v14476_v48 = vpop.f32.mrb[72].mxu0 }
 0x186   :  { %v14478_v58 = vpop.f32.mrb[73].mxu0 }
 0x187   :  { %v14480_v49 = vpop.f32.mrb[74].mxu0 }
 0x188   :  { %v14482_v50 = vpop.f32.mrb[75].mxu0 }
 0x18a   :  { %12558 = vmatmul.mubr.bf16.gmra.mrb[180].mxu0 %v389_v47 }
 0x18b   :  { %12561 = vmatprep.mubr.bf16.mxu0 %v390_v36  ;;  %v220_v36 = vld [vmem:[%s18895_s0 + $0x610] sm:$0xff] }
 0x18c   :  { %v395_v13 = vpack.c.bf16 %v221_v53, %v220_v36 }
 0x18d   :  { %v14496_v14 = vpop.f32.mrb[76].mxu0 }
 0x18e   :  { %v14498_v57 = vpop.f32.mrb[77].mxu0 }
 0x18f   :  { %v14500_v3 = vpop.f32.mrb[78].mxu0 }
 0x190   :  { %v14502_v19 = vpop.f32.mrb[79].mxu0 }
 0x192   :  { %12562 = vmatmul.mubr.bf16.gmra.mrb[184].mxu0 %v391_v63  ;;  %v223_v63 = vld [vmem:[%s18895_s0 + $0x628] sm:$0xff] }
 0x193   :  { %12565 = vmatprep.mubr.bf16.mxu0 %v392_v61  ;;  %v782_v61 = vadd.f32 %v14458_v34, %v14094_v21 }
 0x195   :  { %v12459_v0 = vpop.f32.mrb[80].mxu0 }
 0x196   :  { %v838_v6 = vadd.f32 %v12459_v0, %v14094_v21  ;;  %v829_v46 = vpop.f32.mrb[81].mxu0 }
 0x197   :  { %v830_v25 = vadd.f32 %v829_v46, %v14094_v21  ;;  %v12460_v30 = vpop.f32.mrb[82].mxu0  ;;  %v1602_v46 = vmax.f32 %v790_v10, 0.0  ;;  %v809_v10 = vadd.f32 %v14480_v49, %v14094_v21 }
 0x198   :  { %v1614_v32 = vmax.f32 %v838_v6, 0.0  ;;  %v841_v35 = vadd.f32 %v12460_v30, %v14094_v21  ;;  %v832_v37 = vpop.f32.mrb[83].mxu0  ;;  %v396_v6 = vpack.c.bf16 %v223_v63, %v222_v56 }
 0x199   :  { %v1612_v28 = vmax.f32 %v830_v25, 0.0  ;;  %v833_v41 = vadd.f32 %v832_v37, %v14094_v21  ;;  %v1600_v25 = vmax.f32 %v782_v61, 0.0  ;;  %v801_v61 = vadd.f32 %v14482_v50, %v14094_v21 }
 0x19a   :  { %v14524_v42 = vadd.f32 %v1614_v32, %v1598_v31  ;;  %v1615_v44 = vmax.f32 %v841_v35, 0.0  ;;  %12566 = vmatmul.mubr.bf16.gmra.mrb[188].mxu0 %v393_v27  ;;  %v1601_v35 = vmax.f32 %v785_v16, 0.0 }
 0x19b   :  { %v14526_v15 = vadd.f32 %v1612_v28, %v1596_v5  ;;  %v1613_v47 = vmax.f32 %v833_v41, 0.0  ;;  %12569 = vmatprep.mubr.bf16.mxu0 %v394_v20  ;;  %v1603_v20 = vmax.f32 %v793_v62, 0.0  ;;  %v224_v5 = vld [vmem:[%s18895_s0 + $0x630] sm:$0xff]  ;;  %v225_v28 = vld [vmem:[%s18895_s0 + $0x638] sm:$0xff]  ;;  %v806_v41 = vadd.f32 %v14476_v48, %v14094_v21 }
 0x19c   :  { %v14536_v54 = vadd.f32 %v1615_v44, %v1599_v51  ;;  %v226_v44 = vld [vmem:[%s18895_s0 + $0x640] sm:$0xff]  ;;  %v397_v63 = vpack.c.bf16 %v225_v28, %v224_v5 }
 0x19d   :  { %v14546_v7 = vadd.f32 %v1613_v47, %v1597_v60  ;;  %v12463_v11 = vpop.f32.mrb[84].mxu0  ;;  %v227_v60 = vld [vmem:[%s18895_s0 + $0x648] sm:$0xff]  ;;  %v798_v47 = vadd.f32 %v14478_v58, %v14094_v21 }
 0x19e   :  { %v854_v33 = vadd.f32 %v12463_v11, %v14094_v21  ;;  %v845_v1 = vpop.f32.mrb[85].mxu0 }
 0x19f   :  { %v846_v0 = vadd.f32 %v845_v1, %v14094_v21  ;;  %v12464_v18 = vpop.f32.mrb[86].mxu0  ;;  %v1606_v1 = vmax.f32 %v806_v41, 0.0  ;;  %v825_v41 = vadd.f32 %v14500_v3, %v14094_v21 }
 0x1a0   :  { %v1618_v27 = vmax.f32 %v854_v33, 0.0  ;;  %v857_v34 = vadd.f32 %v12464_v18, %v14094_v21  ;;  %v848_v24 = vpop.f32.mrb[87].mxu0  ;;  %v398_v33 = vpack.c.bf16 %v227_v60, %v226_v44 }
 0x1a1   :  { %v1616_v30 = vmax.f32 %v846_v0, 0.0  ;;  %v849_v8 = vadd.f32 %v848_v24, %v14094_v21  ;;  %v1604_v0 = vmax.f32 %v798_v47, 0.0  ;;  %v817_v47 = vadd.f32 %v14502_v19, %v14094_v21 }
 0x1a2   :  { %v14556_v31 = vadd.f32 %v1618_v27, %v1602_v46  ;;  %v1619_v32 = vmax.f32 %v857_v34, 0.0  ;;  %12570 = vmatmul.mubr.bf16.gmra.mrb[192].mxu0 %v395_v13  ;;  %v1605_v34 = vmax.f32 %v801_v61, 0.0 }
 0x1a3   :  { %v14558_v39 = vadd.f32 %v1616_v30, %v1600_v25  ;;  %v1617_v37 = vmax.f32 %v849_v8, 0.0  ;;  %12573 = vmatprep.mubr.bf16.mxu0 %v396_v6  ;;  %v1607_v6 = vmax.f32 %v809_v10, 0.0  ;;  %v228_v25 = vld [vmem:[%s18895_s0 + $0x650] sm:$0xff]  ;;  %v229_v30 = vld [vmem:[%s18895_s0 + $0x658] sm:$0xff]  ;;  %v822_v8 = vadd.f32 %v14496_v14, %v14094_v21 }
 0x1a4   :  { %v14568_v51 = vadd.f32 %v1619_v32, %v1603_v20  ;;  %v230_v32 = vld [vmem:[%s18895_s0 + $0x660] sm:$0xff]  ;;  %v399_v60 = vpack.c.bf16 %v229_v30, %v228_v25 }
 0x1a5   :  { %v14578_v36 = vadd.f32 %v1617_v37, %v1601_v35  ;;  %v12467_v53 = vpop.f32.mrb[88].mxu0  ;;  %v231_v35 = vld [vmem:[%s18895_s0 + $0x668] sm:$0xff]  ;;  %v814_v37 = vadd.f32 %v14498_v57, %v14094_v21 }
 0x1a6   :  { %v870_v48 = vadd.f32 %v12467_v53, %v14094_v21  ;;  %v861_v56 = vpop.f32.mrb[89].mxu0 }
 0x1a7   :  { %v862_v11 = vadd.f32 %v861_v56, %v14094_v21  ;;  %v12468_v62 = vpop.f32.mrb[90].mxu0  ;;  %v1610_v56 = vmax.f32 %v822_v8, 0.0 }
 0x1a8   :  { %v1622_v13 = vmax.f32 %v870_v48, 0.0  ;;  %v873_v58 = vadd.f32 %v12468_v62, %v14094_v21  ;;  %v864_v16 = vpop.f32.mrb[91].mxu0  ;;  %v400_v48 = vpack.c.bf16 %v231_v35, %v230_v32  ;;  %v236_v35 = vld [vmem:[%s18895_s0 + $0x690] sm:$0xff] }
 0x1a9   :  { %v1620_v18 = vmax.f32 %v862_v11, 0.0  ;;  %v865_v49 = vadd.f32 %v864_v16, %v14094_v21  ;;  %v1608_v11 = vmax.f32 %v814_v37, 0.0  ;;  %v237_v37 = vld [vmem:[%s18895_s0 + $0x698] sm:$0xff] }
 0x1aa   :  { %v14588_v46 = vadd.f32 %v1622_v13, %v1606_v1  ;;  %v1623_v27 = vmax.f32 %v873_v58, 0.0  ;;  %12574 = vmatmul.mubr.bf16.gmra.mrb[196].mxu0 %v397_v63  ;;  %v1609_v58 = vmax.f32 %v817_v47, 0.0 }
 0x1ab   :  { %v14590_v50 = vadd.f32 %v1620_v18, %v1604_v0  ;;  %v1621_v24 = vmax.f32 %v865_v49, 0.0  ;;  %12577 = vmatprep.mubr.bf16.mxu0 %v398_v33  ;;  %v1611_v33 = vmax.f32 %v825_v41, 0.0  ;;  %v232_v0 = vld [vmem:[%s18895_s0 + $0x670] sm:$0xff]  ;;  %v233_v18 = vld [vmem:[%s18895_s0 + $0x678] sm:$0xff]  ;;  %v239_v41 = vld [vmem:[%s18895_s0 + $0x6a8] sm:$0xff] }
 0x1ac   :  { %v14600_v20 = vadd.f32 %v1623_v27, %v1607_v6  ;;  %v235_v6 = vld [vmem:[%s18895_s0 + $0x688] sm:$0xff]  ;;  %v401_v25 = vpack.c.bf16 %v233_v18, %v232_v0  ;;  %v246_v0 = vld [vmem:[%s18895_s0 + $0x6e0] sm:$0xff] }
 0x1ad   :  { %v14610_v5 = vadd.f32 %v1621_v24, %v1605_v34  ;;  %v12471_v28 = vpop.f32.mrb[92].mxu0  ;;  %v247_v18 = vld [vmem:[%s18895_s0 + $0x6e8] sm:$0xff] }
 0x1ae   :  { %v886_v14 = vadd.f32 %v12471_v28, %v14094_v21  ;;  %v877_v44 = vpop.f32.mrb[93].mxu0  ;;  %v238_v28 = vld [vmem:[%s18895_s0 + $0x6a0] sm:$0xff] }
 0x1af   :  { %v878_v53 = vadd.f32 %v877_v44, %v14094_v21  ;;  %v12472_v10 = vpop.f32.mrb[94].mxu0 }
 0x1b0   :  { %v1626_v63 = vmax.f32 %v886_v14, 0.0  ;;  %v889_v57 = vadd.f32 %v12472_v10, %v14094_v21  ;;  %v880_v61 = vpop.f32.mrb[95].mxu0 }
 0x1b1   :  { %v1624_v62 = vmax.f32 %v878_v53, 0.0  ;;  %v881_v3 = vadd.f32 %v880_v61, %v14094_v21  ;;  %v234_v21 = vld [vmem:[%s18895_s0 + $0x680] sm:$0xff]  ;;  %v404_v53 = vpack.c.bf16 %v239_v41, %v238_v28  ;;  %v248_v28 = vld [vmem:[%s18895_s0 + $0x6f0] sm:$0xff]  ;;  %v249_v41 = vld [vmem:[%s18895_s0 + $0x6f8] sm:$0xff] }
 0x1b2   :  { %v14620_v1 = vadd.f32 %v1626_v63, %v1610_v56  ;;  %v1627_v13 = vmax.f32 %v889_v57, 0.0  ;;  %12578 = vmatmul.mubr.bf16.gmra.mrb[200].mxu0 %v399_v60  ;;  %v402_v8 = vpack.c.bf16 %v235_v6, %v234_v21  ;;  %v403_v60 = vpack.c.bf16 %v237_v37, %v236_v35  ;;  %v241_v56 = vld [vmem:[%s18895_s0 + $0x6b8] sm:$0xff]  ;;  %v242_v63 = vld [vmem:[%s18895_s0 + $0x6c0] sm:$0xff]  ;;  %v243_v57 = vld [vmem:[%s18895_s0 + $0x6c8] sm:$0xff] }
 0x1b3   :  { %v14622_v19 = vadd.f32 %v1624_v62, %v1608_v11  ;;  %v1625_v16 = vmax.f32 %v881_v3, 0.0  ;;  %12581 = vmatprep.mubr.bf16.mxu0 %v400_v48  ;;  %v240_v48 = vld [vmem:[%s18895_s0 + $0x6b0] sm:$0xff]  ;;  %v408_v35 = vpack.c.bf16 %v247_v18, %v246_v0 }
 0x1b4   :  { %v14630_v49 = vadd.f32 %v1627_v13, %v1611_v33  ;;  %v405_v62 = vpack.c.bf16 %v241_v56, %v240_v48  ;;  %v406_v33 = vpack.c.bf16 %v243_v57, %v242_v63  ;;  %v250_v48 = vld [vmem:[%s18895_s0 + $0x700] sm:$0xff]  ;;  %v251_v56 = vld [vmem:[%s18895_s0 + $0x708] sm:$0xff] }
 0x1b5   :  { %v14638_v27 = vadd.f32 %v1625_v16, %v1609_v58  ;;  %v12475_v34 = vpop.f32.mrb[96].mxu0  ;;  %v244_v58 = vld [vmem:[%s18895_s0 + $0x6d0] sm:$0xff]  ;;  %v245_v16 = vld [vmem:[%s18895_s0 + $0x6d8] sm:$0xff] }
 0x1b6   :  { %18905 = vst [vmem:[#allocation5_spill] sm:$0xff] %v14630_v49  ;;  %v893_v24 = vpop.f32.mrb[97].mxu0 }
 0x1b7   :  { %18906 = vst [vmem:[#allocation6_spill] sm:$0xff] %v14638_v27  ;;  %v12476_v30 = vpop.f32.mrb[98].mxu0 }
 0x1b8   :  { %v896_v32 = vpop.f32.mrb[99].mxu0 }
 0x1ba   :  { %12582 = vmatmul.mubr.bf16.gmra.mrb[204].mxu0 %v401_v25  ;;  %v407_v25 = vpack.c.bf16 %v245_v16, %v244_v58  ;;  %v409_v16 = vpack.c.bf16 %v249_v41, %v248_v28 }
 0x1bb   :  { %12585 = vmatprep.mubr.bf16.mxu0 %v402_v8 }
 0x1bd   :  { %v14652_v14 = vpop.f32.mrb[100].mxu0 }
 0x1be   :  { %v14654_v44 = vpop.f32.mrb[101].mxu0 }
 0x1bf   :  { %v14656_v47 = vpop.f32.mrb[102].mxu0 }
 0x1c0   :  { %v14658_v10 = vpop.f32.mrb[103].mxu0 }
 0x1c2   :  { %12586 = vmatmul.mubr.bf16.gmra.mrb[208].mxu0 %v403_v60  ;;  %v14709_v60 = vld [vmem:[%s18896_s5] ss:$0 sm:$0xff] }
 0x1c3   :  { %12589 = vmatprep.mubr.bf16.mxu0 %v404_v53  ;;  %v902_v53 = vadd.f32 %v14709_v60, %v12475_v34  ;;  %v894_v63 = vadd.f32 %v14709_v60, %v893_v24  ;;  %v897_v0 = vadd.f32 %v14709_v60, %v896_v32  ;;  %v253_v32 = vld [vmem:[%s18895_s0 + $0x718] sm:$0xff] }
 0x1c5   :  { %v14672_v61 = vpop.f32.mrb[104].mxu0  ;;  %v1628_v2 = vmax.f32 %v894_v63, 0.0 }
 0x1c6   :  { %v14674_v11 = vpop.f32.mrb[105].mxu0 }
 0x1c7   :  { %v14676_v3 = vpop.f32.mrb[106].mxu0 }
 0x1c8   :  { %v14678_v13 = vpop.f32.mrb[107].mxu0 }
 0x1ca   :  { %12590 = vmatmul.mubr.bf16.gmra.mrb[212].mxu0 %v405_v62  ;;  %v905_v62 = vadd.f32 %v14709_v60, %v12476_v30  ;;  %v252_v30 = vld [vmem:[%s18895_s0 + $0x710] sm:$0xff] }
 0x1cb   :  { %12593 = vmatprep.mubr.bf16.mxu0 %v406_v33 }
 0x1cc   :  { %v1631_v28 = vmax.f32 %v905_v62, 0.0 }
 0x1cd   :  { %v14692_v21 = vpop.f32.mrb[108].mxu0 }
 0x1ce   :  { %v14694_v6 = vpop.f32.mrb[109].mxu0 }
 0x1cf   :  { %v14696_v8 = vpop.f32.mrb[110].mxu0 }
 0x1d0   :  { %v14698_v37 = vpop.f32.mrb[111].mxu0 }
 0x1d2   :  { %12594 = vmatmul.mubr.bf16.gmra.mrb[216].mxu0 %v407_v25  ;;  %v410_v25 = vpack.c.bf16 %v251_v56, %v250_v48  ;;  %v1629_v56 = vmax.f32 %v897_v0, 0.0 }
 0x1d3   :  { %12597 = vmatprep.mubr.bf16.mxu0 %v408_v35  ;;  %v1630_v35 = vmax.f32 %v902_v53, 0.0  ;;  %v254_v53 = vld [vmem:[%s18895_s0 + $0x720] sm:$0xff] }
 0x1d5   :  { %v12491_v57 = vpop.f32.mrb[112].mxu0 }
 0x1d6   :  { %v966_v33 = vadd.f32 %v14709_v60, %v12491_v57  ;;  %v957_v58 = vpop.f32.mrb[113].mxu0 }
 0x1d7   :  { %v958_v34 = vadd.f32 %v14709_v60, %v957_v58  ;;  %v12492_v18 = vpop.f32.mrb[114].mxu0  ;;  %v910_v58 = vadd.f32 %v14709_v60, %v14654_v44 }
 0x1d8   :  { %v1646_v29 = vmax.f32 %v966_v33, 0.0  ;;  %v969_v26 = vadd.f32 %v14709_v60, %v12492_v18  ;;  %v960_v27 = vpop.f32.mrb[115].mxu0  ;;  %v918_v33 = vadd.f32 %v14709_v60, %v14652_v14 }
 0x1d9   :  { %v1644_v24 = vmax.f32 %v958_v34, 0.0  ;;  %v961_v49 = vadd.f32 %v14709_v60, %v960_v27  ;;  %v255_v27 = vld [vmem:[%s18895_s0 + $0x728] sm:$0xff] }
 0x1da   :  { %v1838_v41 = vadd.f32 %v1646_v29, %v1630_v35  ;;  %v1647_v48 = vmax.f32 %v969_v26, 0.0  ;;  %12598 = vmatmul.mubr.bf16.gmra.mrb[220].mxu0 %v409_v16  ;;  %v411_v26 = vpack.c.bf16 %v253_v32, %v252_v30  ;;  %v412_v35 = vpack.c.bf16 %v255_v27, %v254_v53 }
 0x1db   :  { %v1836_v63 = vadd.f32 %v1644_v24, %v1628_v2  ;;  %v1645_v57 = vmax.f32 %v961_v49, 0.0  ;;  %12601 = vmatprep.mubr.bf16.mxu0 %v410_v25  ;;  %v921_v2 = vadd.f32 %v14709_v60, %v14656_v47  ;;  %v913_v25 = vadd.f32 %v14709_v60, %v14658_v10 }
 0x1dc   :  { %v1934_v62 = vadd.f32 %v1838_v41, %v14524_v42  ;;  %v1839_v29 = vadd.f32 %v1647_v48, %v1631_v28  ;;  %v1634_v47 = vmax.f32 %v918_v33, 0.0  ;;  %v1632_v41 = vmax.f32 %v910_v58, 0.0 }
 0x1dd   :  { %v1932_v16 = vadd.f32 %v1836_v63, %v14526_v15  ;;  %v1837_v34 = vadd.f32 %v1645_v57, %v1629_v56  ;;  %v12495_v18 = vpop.f32.mrb[116].mxu0  ;;  %v258_v63 = vld [vmem:[%s18895_s0 + $0x740] sm:$0xff]  ;;  %v259_v57 = vld [vmem:[%s18895_s0 + $0x748] sm:$0xff]  ;;  %v1633_v33 = vmax.f32 %v913_v25, 0.0 }
 0x1de   :  { %v14746_v49 = vadd.f32 %v1934_v62, %v14321_v9  ;;  %v1935_v14 = vadd.f32 %v1839_v29, %v14536_v54  ;;  %v982_v42 = vadd.f32 %v14709_v60, %v12495_v18  ;;  %v973_v0 = vpop.f32.mrb[117].mxu0 }
 0x1df   :  { %v1933_v44 = vadd.f32 %v1837_v34, %v14546_v7  ;;  %v974_v15 = vadd.f32 %v14709_v60, %v973_v0  ;;  %v12496_v24 = vpop.f32.mrb[118].mxu0  ;;  %v14755_v30 = vadd.f32 %v1932_v16, %v14332_v22  ;;  %v256_v7 = vld [vmem:[%s18895_s0 + $0x730] sm:$0xff]  ;;  %v257_v22 = vld [vmem:[%s18895_s0 + $0x738] sm:$0xff]  ;;  %v937_v0 = vadd.f32 %v14709_v60, %v14676_v3 }
 0x1e0   :  { %v14758_v9 = vadd.f32 %v1935_v14, %v14337_v23  ;;  %v1650_v32 = vmax.f32 %v982_v42, 0.0  ;;  %v985_v54 = vadd.f32 %v14709_v60, %v12496_v24  ;;  %v976_v28 = vpop.f32.mrb[119].mxu0  ;;  %v1635_v23 = vmax.f32 %v921_v2, 0.0 }
 0x1e1   :  { %v1648_v48 = vmax.f32 %v974_v15, 0.0  ;;  %v977_v10 = vadd.f32 %v14709_v60, %v976_v28  ;;  %v14769_v53 = vadd.f32 %v1933_v44, %v14343_v45  ;;  %v934_v45 = vadd.f32 %v14709_v60, %v14672_v61 }
 0x1e2   :  { %v1842_v27 = vadd.f32 %v1650_v32, %v1634_v47  ;;  %v1651_v56 = vmax.f32 %v985_v54, 0.0  ;;  %12602 = vmatmul.mubr.bf16.gmra.mrb[224].mxu0 %v411_v26  ;;  %v413_v34 = vpack.c.bf16 %v257_v22, %v256_v7  ;;  %v926_v26 = vadd.f32 %v14709_v60, %v14674_v11  ;;  %v263_v7 = vld [vmem:[%s18895_s0 + $0x768] sm:$0xff] }
 0x1e3   :  { %v1840_v62 = vadd.f32 %v1648_v48, %v1632_v41  ;;  %v1649_v29 = vmax.f32 %v977_v10, 0.0  ;;  %12605 = vmatprep.mubr.bf16.mxu0 %v412_v35  ;;  %v414_v42 = vpack.c.bf16 %v259_v57, %v258_v63  ;;  %v929_v44 = vadd.f32 %v14709_v60, %v14678_v13 }
 0x1e4   :  { %v1938_v58 = vadd.f32 %v1842_v27, %v14556_v31  ;;  %v1843_v16 = vadd.f32 %v1651_v56, %v1635_v23  ;;  %v1638_v3 = vmax.f32 %v934_v45, 0.0  ;;  %v1636_v54 = vmax.f32 %v926_v26, 0.0 }
 0x1e5   :  { %v1936_v18 = vadd.f32 %v1840_v62, %v14558_v39  ;;  %v1841_v2 = vadd.f32 %v1649_v29, %v1633_v33  ;;  %v12499_v14 = vpop.f32.mrb[120].mxu0  ;;  %v1639_v41 = vmax.f32 %v937_v0, 0.0  ;;  %v1637_v22 = vmax.f32 %v929_v44, 0.0 }
 0x1e6   :  { %v14786_v35 = vadd.f32 %v1938_v58, %v14357_v38  ;;  %v1939_v61 = vadd.f32 %v1843_v16, %v14568_v51  ;;  %v998_v31 = vadd.f32 %v14709_v60, %v12499_v14  ;;  %v989_v25 = vpop.f32.mrb[121].mxu0  ;;  %v950_v56 = vadd.f32 %v14709_v60, %v14692_v21 }
 0x1e7   :  { %v14793_v11 = vadd.f32 %v1936_v18, %v14368_v40  ;;  %v1937_v39 = vadd.f32 %v1841_v2, %v14578_v36  ;;  %v990_v15 = vadd.f32 %v14709_v60, %v989_v25  ;;  %v12500_v24 = vpop.f32.mrb[122].mxu0  ;;  %v260_v36 = vld [vmem:[%s18895_s0 + $0x750] sm:$0xff]  ;;  %v942_v62 = vadd.f32 %v14709_v60, %v14694_v6 }
 0x1e8   :  { %v14798_v38 = vadd.f32 %v1939_v61, %v14373_v4  ;;  %v1654_v47 = vmax.f32 %v998_v31, 0.0  ;;  %v1001_v51 = vadd.f32 %v14709_v60, %v12500_v24  ;;  %v992_v32 = vpop.f32.mrb[123].mxu0  ;;  %v261_v4 = vld [vmem:[%s18895_s0 + $0x758] sm:$0xff]  ;;  %v945_v2 = vadd.f32 %v14709_v60, %v14698_v37 }
 0x1e9   :  { %v14802_v28 = vadd.f32 %v1937_v39, %v14379_v59  ;;  %v1652_v13 = vmax.f32 %v990_v15, 0.0  ;;  %v993_v40 = vadd.f32 %v14709_v60, %v992_v32  ;;  %v262_v59 = vld [vmem:[%s18895_s0 + $0x760] sm:$0xff]  ;;  %v415_v33 = vpack.c.bf16 %v261_v4, %v260_v36 }
 0x1ea   :  { %v1846_v48 = vadd.f32 %v1654_v47, %v1638_v3  ;;  %v1655_v10 = vmax.f32 %v1001_v51, 0.0  ;;  %12606 = vmatmul.mubr.bf16.gmra.mrb[228].mxu0 %v413_v34  ;;  %v416_v16 = vpack.c.bf16 %v263_v7, %v262_v59  ;;  %v953_v34 = vadd.f32 %v14709_v60, %v14696_v8  ;;  %v266_v32 = vld [vmem:[%s18895_s0 + $0x780] sm:$0xff] }
 0x1eb   :  { %v1844_v23 = vadd.f32 %v1652_v13, %v1636_v54  ;;  %v1653_v27 = vmax.f32 %v993_v40, 0.0  ;;  %12609 = vmatprep.mubr.bf16.mxu0 %v414_v42  ;;  %v1642_v8 = vmax.f32 %v950_v56, 0.0  ;;  %v1640_v31 = vmax.f32 %v942_v62, 0.0  ;;  %v267_v54 = vld [vmem:[%s18895_s0 + $0x788] sm:$0xff]  ;;  %v18913_v59 = vld [vmem:[#allocation2_spill] sm:$0xff] }
 0x1ec   :  { %v1942_v63 = vadd.f32 %v1846_v48, %v14588_v46  ;;  %v1847_v57 = vadd.f32 %v1655_v10, %v1639_v41  ;;  %v1643_v44 = vmax.f32 %v953_v34, 0.0  ;;  %v1641_v15 = vmax.f32 %v945_v2, 0.0  ;;  %v18912_v41 = vld [vmem:[#allocation5_spill] sm:$0xff] }
 0x1ed   :  { %v1940_v29 = vadd.f32 %v1844_v23, %v14590_v50  ;;  %v1845_v45 = vadd.f32 %v1653_v27, %v1637_v22  ;;  %v12503_v58 = vpop.f32.mrb[124].mxu0  ;;  %v18915_v22 = vld [vmem:[#allocation6_spill] sm:$0xff]  ;;  %v418_v56 = vpack.c.bf16 %v267_v54, %v266_v32  ;;  %v280_v32 = vld [vmem:[%s18895_s0 + $0x7f0] sm:$0xff]  ;;  %v281_v54 = vld [vmem:[%s18895_s0 + $0x7f8] sm:$0xff] }
 0x1ee   :  { %v14826_v26 = vadd.f32 %v1942_v63, %v14393_v55  ;;  %v1943_v21 = vadd.f32 %v1847_v57, %v14600_v20  ;;  %v1014_v46 = vadd.f32 %v14709_v60, %v12503_v58  ;;  %v1005_v18 = vpop.f32.mrb[125].mxu0  ;;  %v18916_v63 = vld [vmem:[#allocation3_spill] sm:$0xff] }
 0x1ef   :  { %v14833_v6 = vadd.f32 %v1940_v29, %v14404_v43  ;;  %v1941_v50 = vadd.f32 %v1845_v45, %v14610_v5  ;;  %v1006_v14 = vadd.f32 %v14709_v60, %v1005_v18  ;;  %v12504_v42 = vpop.f32.mrb[126].mxu0  ;;  %v269_v29 = vld [vmem:[%s18895_s0 + $0x798] sm:$0xff]  ;;  %v270_v45 = vld [vmem:[%s18895_s0 + $0x7a0] sm:$0xff]  ;;  %v271_v58 = vld [vmem:[%s18895_s0 + $0x7a8] sm:$0xff] }
 0x1f0   :  { %18907 = vst [vmem:[#allocation7_spill] sm:$0xff] %v14826_v26  ;;  %v14838_v55 = vadd.f32 %v1943_v21, %v14409_v52  ;;  %v1658_v0 = vmax.f32 %v1014_v46, 0.0  ;;  %v1017_v20 = vadd.f32 %v14709_v60, %v12504_v42  ;;  %v1008_v61 = vpop.f32.mrb[127].mxu0  ;;  %v264_v52 = vld [vmem:[%s18895_s0 + $0x770] sm:$0xff]  ;;  %v420_v18 = vpack.c.bf16 %v271_v58, %v270_v45  ;;  %v274_v42 = vld [vmem:[%s18895_s0 + $0x7c0] sm:$0xff] }
 0x1f1   :  { %18908 = vst [vmem:[#allocation8_spill] sm:$0xff] %v14833_v6  ;;  %v14842_v25 = vadd.f32 %v1941_v50, %v14415_v12  ;;  %v1656_v37 = vmax.f32 %v1006_v14, 0.0  ;;  %v1009_v43 = vadd.f32 %v14709_v60, %v1008_v61  ;;  %v265_v12 = vld [vmem:[%s18895_s0 + $0x778] sm:$0xff]  ;;  %v272_v50 = vld [vmem:[%s18895_s0 + $0x7b0] sm:$0xff] }
 0x1f2   :  { %18909 = vst [vmem:[#allocation9_spill] sm:$0xff] %v14838_v55  ;;  %v1850_v5 = vadd.f32 %v1658_v0, %v1642_v8  ;;  %v1659_v39 = vmax.f32 %v1017_v20, 0.0  ;;  %12610 = vmatmul.mubr.bf16.gmra.mrb[232].mxu0 %v415_v33  ;;  %v18918_v33 = vld [vmem:[#allocation4_spill] sm:$0xff]  ;;  %v273_v14 = vld [vmem:[%s18895_s0 + $0x7b8] sm:$0xff]  ;;  %v275_v8 = vld [vmem:[%s18895_s0 + $0x7c8] sm:$0xff] }
 0x1f3   :  { %18910 = vst [vmem:[#allocation10_spill] sm:$0xff] %v14842_v25  ;;  %v1848_v24 = vadd.f32 %v1656_v37, %v1640_v31  ;;  %v1657_v3 = vmax.f32 %v1009_v43, 0.0  ;;  %12613 = vmatprep.mubr.bf16.mxu0 %v416_v16  ;;  %v421_v61 = vpack.c.bf16 %v273_v14, %v272_v50  ;;  %v422_v37 = vpack.c.bf16 %v275_v8, %v274_v42 }
 0x1f4   :  { %v1946_v47 = vadd.f32 %v1850_v5, %v14620_v1  ;;  %v1851_v51 = vadd.f32 %v1659_v39, %v1643_v44  ;;  %v417_v1 = vpack.c.bf16 %v265_v12, %v264_v52  ;;  %v276_v44 = vld [vmem:[%s18895_s0 + $0x7d0] sm:$0xff]  ;;  %v277_v5 = vld [vmem:[%s18895_s0 + $0x7d8] sm:$0xff]  ;;  %v278_v39 = vld [vmem:[%s18895_s0 + $0x7e0] sm:$0xff] }
 0x1f5   :  { %v1944_v13 = vadd.f32 %v1848_v24, %v14622_v19  ;;  %v1849_v40 = vadd.f32 %v1657_v3, %v1641_v15  ;;  %v12507_v36 = vpop.f32.mrb[128].mxu0  ;;  %v279_v15 = vld [vmem:[%s18895_s0 + $0x7e8] sm:$0xff]  ;;  %v423_v52 = vpack.c.bf16 %v277_v5, %v276_v44 }
 0x1f6   :  { %v14860_v4 = vadd.f32 %v1946_v47, %v14427_v17  ;;  %v1947_v48 = vadd.f32 %v1851_v51, %v18912_v41  ;;  %v1021_v10 = vpop.f32.mrb[129].mxu0  ;;  %v268_v17 = vld [vmem:[%s18895_s0 + $0x790] sm:$0xff]  ;;  %v424_v47 = vpack.c.bf16 %v279_v15, %v278_v39 }
 0x1f7   :  { %v14864_v7 = vadd.f32 %v1944_v13, %v18913_v59  ;;  %v1945_v23 = vadd.f32 %v1849_v40, %v18915_v22  ;;  %v12508_v27 = vpop.f32.mrb[130].mxu0  ;;  %v419_v21 = vpack.c.bf16 %v269_v29, %v268_v17  ;;  %v1030_v13 = vadd.f32 %v14709_v60, %v12507_v36 }
 0x1f8   :  { %18911 = vst [vmem:[#allocation11_spill] sm:$0xff] %v14860_v4  ;;  %v14868_v57 = vadd.f32 %v1947_v48, %v18916_v63  ;;  %v1024_v19 = vpop.f32.mrb[131].mxu0  ;;  %v1022_v40 = vadd.f32 %v14709_v60, %v1021_v10  ;;  %v1033_v48 = vadd.f32 %v14709_v60, %v12508_v27  ;;  %v425_v22 = vpack.c.bf16 %v281_v54, %v280_v32 }
 0x1f9   :  { %18914 = vst [vmem:[#allocation5_spill] sm:$0xff] %v14864_v7  ;;  %v14871_v62 = vadd.f32 %v1945_v23, %v18918_v33  ;;  %v1025_v23 = vadd.f32 %v14709_v60, %v1024_v19  ;;  %v1662_v33 = vmax.f32 %v1030_v13, 0.0 }
 0x1fa   :  { %18917 = vst [vmem:[#allocation2_spill] sm:$0xff] %v14868_v57  ;;  %12614 = vmatmul.mubr.bf16.gmra.mrb[236].mxu0 %v417_v1  ;;  %v1660_v36 = vmax.f32 %v1022_v40, 0.0 }
 0x1fb   :  { %18919 = vst [vmem:[#allocation6_spill] sm:$0xff] %v14871_v62  ;;  %12617 = vmatprep.mubr.bf16.mxu0 %v418_v56  ;;  %v1661_v50 = vmax.f32 %v1025_v23, 0.0 }
 0x1fd   :  { %v12511_v16 = vpop.f32.mrb[132].mxu0 }
 0x1fe   :  { %v1037_v34 = vpop.f32.mrb[133].mxu0  ;;  %v1046_v42 = vadd.f32 %v14709_v60, %v12511_v16 }
 0x1ff   :  { %v12512_v46 = vpop.f32.mrb[134].mxu0 }
 0x200   :  { %v1040_v2 = vpop.f32.mrb[135].mxu0  ;;  %v1049_v5 = vadd.f32 %v14709_v60, %v12512_v46  ;;  %v1666_v54 = vmax.f32 %v1046_v42, 0.0 }
 0x202   :  { %12618 = vmatmul.mubr.bf16.gmra.mrb[240].mxu0 %v419_v21  ;;  %v1663_v21 = vmax.f32 %v1033_v48, 0.0 }
 0x203   :  { %12621 = vmatprep.mubr.bf16.mxu0 %v420_v18 }
 0x205   :  { %v14897_v0 = vpop.f32.mrb[136].mxu0 }
 0x206   :  { %v14899_v20 = vpop.f32.mrb[137].mxu0 }
 0x207   :  { %v14901_v31 = vpop.f32.mrb[138].mxu0 }
 0x208   :  { %v14903_v43 = vpop.f32.mrb[139].mxu0 }
 0x20a   :  { %12622 = vmatmul.mubr.bf16.gmra.mrb[244].mxu0 %v421_v61  ;;  %v1038_v61 = vadd.f32 %v14709_v60, %v1037_v34 }
 0x20b   :  { %12625 = vmatprep.mubr.bf16.mxu0 %v422_v37 }
 0x20d   :  { %v14917_v24 = vpop.f32.mrb[140].mxu0 }
 0x20e   :  { %v14919_v3 = vpop.f32.mrb[141].mxu0 }
 0x20f   :  { %v14921_v12 = vpop.f32.mrb[142].mxu0 }
 0x210   :  { %v14923_v51 = vpop.f32.mrb[143].mxu0 }
 0x212   :  { %12626 = vmatmul.mubr.bf16.gmra.mrb[248].mxu0 %v423_v52  ;;  %v1041_v52 = vadd.f32 %v14709_v60, %v1040_v2 }
 0x213   :  { %12629 = vmatprep.mubr.bf16.mxu0 %v424_v47 }
 0x215   :  { %v12523_v41 = vpop.f32.mrb[144].mxu0 }
 0x216   :  { %v1094_v1 = vadd.f32 %v14709_v60, %v12523_v41  ;;  %v1085_v59 = vpop.f32.mrb[145].mxu0  ;;  %v1664_v41 = vmax.f32 %v1038_v61, 0.0 }
 0x217   :  { %v1086_v56 = vadd.f32 %v14709_v60, %v1085_v59  ;;  %v12524_v63 = vpop.f32.mrb[146].mxu0 }
 0x218   :  { %v1678_v17 = vmax.f32 %v1094_v1, 0.0  ;;  %v1097_v29 = vadd.f32 %v14709_v60, %v12524_v63  ;;  %v1088_v45 = vpop.f32.mrb[147].mxu0  ;;  %v1667_v1 = vmax.f32 %v1049_v5, 0.0 }
 0x219   :  { %v1676_v58 = vmax.f32 %v1086_v56, 0.0  ;;  %v1089_v10 = vadd.f32 %v14709_v60, %v1088_v45  ;;  %v1062_v56 = vadd.f32 %v14709_v60, %v14897_v0  ;;  %v1065_v45 = vadd.f32 %v14709_v60, %v14901_v31 }
 0x21a   :  { %v14939_v27 = vadd.f32 %v1678_v17, %v1662_v33  ;;  %v1679_v18 = vmax.f32 %v1097_v29, 0.0  ;;  %12630 = vmatmul.mubr.bf16.gmra.mrb[252].mxu0 %v425_v22  ;;  %v1665_v22 = vmax.f32 %v1041_v52, 0.0  ;;  %v1054_v33 = vadd.f32 %v14709_v60, %v14899_v20 }
 0x21b   :  { %v14941_v14 = vadd.f32 %v1676_v58, %v1660_v36  ;;  %v1677_v19 = vmax.f32 %v1089_v10, 0.0  ;;  %v1057_v10 = vadd.f32 %v14709_v60, %v14903_v43  ;;  %v1671_v5 = vmax.f32 %v1065_v45, 0.0 }
 0x21c   :  { %v14944_v8 = vadd.f32 %v1679_v18, %v1663_v21  ;;  %v1670_v18 = vmax.f32 %v1062_v56, 0.0  ;;  %v1668_v42 = vmax.f32 %v1054_v33, 0.0 }
 0x21d   :  { %v14947_v37 = vadd.f32 %v1677_v19, %v1661_v50  ;;  %v12527_v44 = vpop.f32.mrb[148].mxu0 }
 0x21e   :  { %v1110_v39 = vadd.f32 %v14709_v60, %v12527_v44  ;;  %v1101_v15 = vpop.f32.mrb[149].mxu0 }
 0x21f   :  { %v1102_v47 = vadd.f32 %v14709_v60, %v1101_v15  ;;  %v12528_v32 = vpop.f32.mrb[150].mxu0  ;;  %v1669_v15 = vmax.f32 %v1057_v10, 0.0 }
 0x220   :  { %v1682_v13 = vmax.f32 %v1110_v39, 0.0  ;;  %v1113_v16 = vadd.f32 %v14709_v60, %v12528_v32  ;;  %v1104_v40 = vpop.f32.mrb[151].mxu0 }
 0x221   :  { %v1680_v34 = vmax.f32 %v1102_v47, 0.0  ;;  %v1105_v48 = vadd.f32 %v14709_v60, %v1104_v40  ;;  %v1078_v47 = vadd.f32 %v14709_v60, %v14917_v24  ;;  %v1081_v40 = vadd.f32 %v14709_v60, %v14921_v12 }
 0x222   :  { %v14955_v59 = vadd.f32 %v1682_v13, %v1666_v54  ;;  %v1683_v46 = vmax.f32 %v1113_v16, 0.0  ;;  %v1070_v54 = vadd.f32 %v14709_v60, %v14919_v3 }
 0x223   :  { %v14957_v23 = vadd.f32 %v1680_v34, %v1664_v41  ;;  %v1681_v2 = vmax.f32 %v1105_v48, 0.0  ;;  %v1073_v48 = vadd.f32 %v14709_v60, %v14923_v51  ;;  %v1675_v45 = vmax.f32 %v1081_v40, 0.0 }
 0x224   :  { %v14961_v63 = vadd.f32 %v1683_v46, %v1667_v1  ;;  %v1674_v46 = vmax.f32 %v1078_v47, 0.0  ;;  %v1672_v56 = vmax.f32 %v1070_v54, 0.0  ;;  %v12757_v54 = vld [vmem:[%s18894_s1 + $0x40] sm:$0xff]  }
 0x225   :  { %v14965_v17 = vadd.f32 %v1681_v2, %v1665_v22  ;;  %v12531_v29 = vpop.f32.mrb[152].mxu0  ;;  %12633 = vmatprep.subr.bf16.mxu1 %v12757_v54 }
 0x226   :  { %v1126_v36 = vadd.f32 %v14709_v60, %v12531_v29  ;;  %v1117_v58 = vpop.f32.mrb[153].mxu0  ;;  %12634 = vmatpush3.bf16.msra.mxu1 %v12757_v54 }
 0x227   :  { %v1118_v21 = vadd.f32 %v14709_v60, %v1117_v58  ;;  %v12532_v0 = vpop.f32.mrb[154].mxu0  ;;  %v1673_v58 = vmax.f32 %v1073_v48, 0.0 }
 0x228   :  { %v1686_v50 = vmax.f32 %v1126_v36, 0.0  ;;  %v1129_v19 = vadd.f32 %v14709_v60, %v12532_v0  ;;  %v1120_v20 = vpop.f32.mrb[155].mxu0 }
 0x229   :  { %v1684_v61 = vmax.f32 %v1118_v21, 0.0  ;;  %v1121_v44 = vadd.f32 %v14709_v60, %v1120_v20 }
 0x22a   :  { %v14975_v31 = vadd.f32 %v1686_v50, %v1670_v18  ;;  %v1687_v39 = vmax.f32 %v1129_v19, 0.0 }
 0x22b   :  { %v14977_v52 = vadd.f32 %v1684_v61, %v1668_v42  ;;  %v1685_v43 = vmax.f32 %v1121_v44, 0.0 }
 0x22c   :  { %v14981_v32 = vadd.f32 %v1687_v39, %v1671_v5 }
 0x22d   :  { %v14985_v13 = vadd.f32 %v1685_v43, %v1669_v15  ;;  %v12535_v16 = vpop.f32.mrb[156].mxu0 }
 0x22e   :  { %v1142_v41 = vadd.f32 %v14709_v60, %v12535_v16  ;;  %v1133_v34 = vpop.f32.mrb[157].mxu0  ;;  %v12758_v16 = vld [vmem:[%s18894_s1 + $0x48] sm:$0xff]  }
 0x22f   :  { %v1134_v1 = vadd.f32 %v14709_v60, %v1133_v34  ;;  %v12536_v24 = vpop.f32.mrb[158].mxu0  ;;  %12635 = vmatprep.subr.bf16.mxu1 %v12758_v16 }
 0x230   :  { %v1690_v22 = vmax.f32 %v1142_v41, 0.0  ;;  %v1145_v2 = vadd.f32 %v14709_v60, %v12536_v24  ;;  %v1136_v3 = vpop.f32.mrb[159].mxu0  ;;  %12636 = vmatpush3.bf16.msra.mxu1 %v12758_v16 }
 0x231   :  { %v1688_v33 = vmax.f32 %v1134_v1, 0.0  ;;  %v1137_v29 = vadd.f32 %v14709_v60, %v1136_v3  ;;  %v12759_v1 = vld [vmem:[%s18894_s1 + $0x50] sm:$0xff]  }
 0x232   :  { %v14995_v12 = vadd.f32 %v1690_v22, %v1674_v46  ;;  %v1691_v36 = vmax.f32 %v1145_v2, 0.0  ;;  %12637 = vmatprep.subr.bf16.mxu1 %v12759_v1  ;;  %v12760_v46 = vld [vmem:[%s18894_s1 + $0x58] sm:$0xff]  }
 0x233   :  { %v14997_v10 = vadd.f32 %v1688_v33, %v1672_v56  ;;  %v1689_v51 = vmax.f32 %v1137_v29, 0.0 }
 0x234   :  { %v14999_v21 = vadd.f32 %v1691_v36, %v1675_v45  ;;  %12638 = vmatpush3.bf16.msra.mxu1 %v12759_v1 }
 0x235   :  { %v15001_v0 = vadd.f32 %v1689_v51, %v1673_v58  ;;  %v12539_v18 = vpop.f32.mrb[160].mxu0  ;;  %12639 = vmatprep.subr.bf16.mxu1 %v12760_v46 }
 0x236   :  { %v1149_v50 = vpop.f32.mrb[161].mxu0  ;;  %v1158_v24 = vadd.f32 %v14709_v60, %v12539_v18 }
 0x237   :  { %v12540_v19 = vpop.f32.mrb[162].mxu0  ;;  %v1150_v22 = vadd.f32 %v14709_v60, %v1149_v50  ;;  %v12761_v50 = vld [vmem:[%s18894_s1 + $0x60] sm:$0xff]  }
 0x238   :  { %v1152_v20 = vpop.f32.mrb[163].mxu0  ;;  %v1161_v3 = vadd.f32 %v14709_v60, %v12540_v19  ;;  %12640 = vmatpush3.bf16.msra.mxu1 %v12760_v46  ;;  %v1694_v58 = vmax.f32 %v1158_v24, 0.0 }
 0x239   :  { %v1153_v29 = vadd.f32 %v14709_v60, %v1152_v20  ;;  %v1692_v19 = vmax.f32 %v1150_v22, 0.0  ;;  %12641 = vmatprep.subr.bf16.mxu1 %v12761_v50  ;;  %v12762_v22 = vld [vmem:[%s18894_s1 + $0x68] sm:$0xff]  }
 0x23c   :  { %12642 = vmatpush3.bf16.msra.mxu1 %v12761_v50 }
 0x23d   :  { %v12543_v42 = vpop.f32.mrb[164].mxu0  ;;  %12643 = vmatprep.subr.bf16.mxu1 %v12762_v22 }
 0x23e   :  { %v1165_v61 = vpop.f32.mrb[165].mxu0  ;;  %v1174_v24 = vadd.f32 %v14709_v60, %v12543_v42 }
 0x23f   :  { %v12544_v44 = vpop.f32.mrb[166].mxu0 }
 0x240   :  { %v1168_v5 = vpop.f32.mrb[167].mxu0  ;;  %12644 = vmatpush3.bf16.msra.mxu1 %v12762_v22 }
 0x241   :  { %v1169_v42 = vadd.f32 %v14709_v60, %v1168_v5 }
 0x245   :  { %v15003_v39 = vpop.f32.mrb[168].mxu0 }
 0x246   :  { %v15005_v15 = vpop.f32.mrb[169].mxu0 }
 0x247   :  { %v15007_v43 = vpop.f32.mrb[170].mxu0 }
 0x248   :  { %v15009_v47 = vpop.f32.mrb[171].mxu0 }
 0x24d   :  { %v15017_v40 = vpop.f32.mrb[172].mxu0 }
 0x24e   :  { %v15019_v41 = vpop.f32.mrb[173].mxu0 }
 0x24f   :  { %v15021_v34 = vpop.f32.mrb[174].mxu0 }
 0x250   :  { %v15023_v48 = vpop.f32.mrb[175].mxu0 }
 0x255   :  { %v12555_v2 = vpop.f32.mrb[176].mxu0 }
 0x256   :  { %v1222_v56 = vadd.f32 %v14709_v60, %v12555_v2  ;;  %v1213_v33 = vpop.f32.mrb[177].mxu0  ;;  %v1695_v2 = vmax.f32 %v1161_v3, 0.0 }
 0x257   :  { %v1214_v45 = vadd.f32 %v14709_v60, %v1213_v33  ;;  %v12556_v36 = vpop.f32.mrb[178].mxu0  ;;  %v1693_v33 = vmax.f32 %v1153_v29, 0.0 }
 0x258   :  { %v1710_v51 = vmax.f32 %v1222_v56, 0.0  ;;  %v1225_v18 = vadd.f32 %v14709_v60, %v12556_v36  ;;  %v1216_v54 = vpop.f32.mrb[179].mxu0 }
 0x259   :  { %v1708_v16 = vmax.f32 %v1214_v45, 0.0  ;;  %v1217_v1 = vadd.f32 %v14709_v60, %v1216_v54  ;;  %v1166_v45 = vadd.f32 %v14709_v60, %v1165_v61 }
 0x25a   :  { %v1870_v62 = vadd.f32 %v1710_v51, %v1694_v58  ;;  %v1711_v20 = vmax.f32 %v1225_v18, 0.0  ;;  %v1177_v51 = vadd.f32 %v14709_v60, %v12544_v44 }
 0x25b   :  { %v1868_v57 = vadd.f32 %v1708_v16, %v1692_v19  ;;  %v1709_v46 = vmax.f32 %v1217_v1, 0.0  ;;  %v1696_v16 = vmax.f32 %v1166_v45, 0.0  ;;  %v12764_v45 = vld [vmem:[%s18894_s1 + $0x78] sm:$0xff]  }
 0x25c   :  { %v15044_v56 = vadd.f32 %v1870_v62, %v14939_v27  ;;  %v1871_v36 = vadd.f32 %v1711_v20, %v1695_v2  ;;  %v1699_v2 = vmax.f32 %v1177_v51, 0.0 }
 0x25d   :  { %v15051_v3 = vadd.f32 %v1868_v57, %v14941_v14  ;;  %v1869_v58 = vadd.f32 %v1709_v46, %v1693_v33  ;;  %v12559_v29 = vpop.f32.mrb[180].mxu0  ;;  %v1698_v14 = vmax.f32 %v1174_v24, 0.0  ;;  %v1697_v33 = vmax.f32 %v1169_v42, 0.0 }
 0x25e   :  { %v15055_v18 = vadd.f32 %v1871_v36, %v14944_v8  ;;  %v1238_v62 = vadd.f32 %v14709_v60, %v12559_v29  ;;  %v1229_v27 = vpop.f32.mrb[181].mxu0  ;;  %v12763_v8 = vld [vmem:[%s18894_s1 + $0x70] sm:$0xff]   ;;  %v1190_v24 = vadd.f32 %v14709_v60, %v15003_v39  ;;  %v1182_v29 = vadd.f32 %v14709_v60, %v15005_v15 }
 0x25f   :  { %v15060_v54 = vadd.f32 %v1869_v58, %v14947_v37  ;;  %v1230_v61 = vadd.f32 %v14709_v60, %v1229_v27  ;;  %v12560_v57 = vpop.f32.mrb[182].mxu0  ;;  %12645 = vmatprep.subr.bf16.mxu1 %v12763_v8  ;;  %v1193_v42 = vadd.f32 %v14709_v60, %v15007_v43 }
 0x260   :  { %v1714_v50 = vmax.f32 %v1238_v62, 0.0  ;;  %v1241_v44 = vadd.f32 %v14709_v60, %v12560_v57  ;;  %v1232_v19 = vpop.f32.mrb[183].mxu0  ;;  %12646 = vmatpush3.bf16.msra.mxu1 %v12763_v8  ;;  %v1185_v57 = vadd.f32 %v14709_v60, %v15009_v47 }
 0x261   :  { %v1712_v1 = vmax.f32 %v1230_v61, 0.0  ;;  %v1233_v5 = vadd.f32 %v14709_v60, %v1232_v19  ;;  %12647 = vmatprep.subr.bf16.mxu1 %v12764_v45  ;;  %v1700_v19 = vmax.f32 %v1182_v29, 0.0  ;;  %v1209_v29 = vadd.f32 %v14709_v60, %v15021_v34 }
 0x262   :  { %v1874_v37 = vadd.f32 %v1714_v50, %v1698_v14  ;;  %v1715_v20 = vmax.f32 %v1241_v44, 0.0  ;;  %v1702_v50 = vmax.f32 %v1190_v24, 0.0  ;;  %v1701_v47 = vmax.f32 %v1185_v57, 0.0 }
 0x263   :  { %v1872_v46 = vadd.f32 %v1712_v1, %v1696_v16  ;;  %v1713_v36 = vmax.f32 %v1233_v5, 0.0  ;;  %v1703_v1 = vmax.f32 %v1193_v42, 0.0 }
 0x264   :  { %v15071_v22 = vadd.f32 %v1874_v37, %v14955_v59  ;;  %v1875_v58 = vadd.f32 %v1715_v20, %v1699_v2  ;;  %12648 = vmatpush3.bf16.msra.mxu1 %v12764_v45  ;;  %v1206_v20 = vadd.f32 %v14709_v60, %v15017_v40 }
 0x265   :  { %v15079_v51 = vadd.f32 %v1872_v46, %v14957_v23  ;;  %v1873_v62 = vadd.f32 %v1713_v36, %v1697_v33  ;;  %v12563_v27 = vpop.f32.mrb[184].mxu0  ;;  %v1198_v36 = vadd.f32 %v14709_v60, %v15019_v41 }
 0x266   :  { %v15084_v39 = vadd.f32 %v1875_v58, %v14961_v63  ;;  %v1254_v59 = vadd.f32 %v14709_v60, %v12563_v27  ;;  %v1245_v61 = vpop.f32.mrb[185].mxu0 }
 0x267   :  { %v15090_v15 = vadd.f32 %v1873_v62, %v14965_v17  ;;  %v1246_v23 = vadd.f32 %v14709_v60, %v1245_v61  ;;  %v12564_v14 = vpop.f32.mrb[186].mxu0 }
 0x268   :  { %v1718_v44 = vmax.f32 %v1254_v59, 0.0  ;;  %v1257_v43 = vadd.f32 %v14709_v60, %v12564_v14  ;;  %v1248_v63 = vpop.f32.mrb[187].mxu0  ;;  %v1706_v59 = vmax.f32 %v1206_v20, 0.0 }
 0x269   :  { %v1716_v8 = vmax.f32 %v1246_v23, 0.0  ;;  %v1249_v16 = vadd.f32 %v14709_v60, %v1248_v63  ;;  %v1704_v23 = vmax.f32 %v1198_v36, 0.0 }
 0x26a   :  { %v1878_v5 = vadd.f32 %v1718_v44, %v1702_v50  ;;  %v1719_v2 = vmax.f32 %v1257_v43, 0.0  ;;  %v1707_v50 = vmax.f32 %v1209_v29, 0.0 }
 0x26b   :  { %v1876_v37 = vadd.f32 %v1716_v8, %v1700_v19  ;;  %v1717_v17 = vmax.f32 %v1249_v16, 0.0 }
 0x26c   :  { %v15098_v33 = vadd.f32 %v1878_v5, %v14975_v31  ;;  %v1879_v46 = vadd.f32 %v1719_v2, %v1703_v1  ;;  %v1201_v31 = vadd.f32 %v14709_v60, %v15023_v48 }
 0x26d   :  { %v15103_v24 = vadd.f32 %v1876_v37, %v14977_v52  ;;  %v1877_v58 = vadd.f32 %v1717_v17, %v1701_v47  ;;  %v12567_v45 = vpop.f32.mrb[188].mxu0 }
 0x26e   :  { %v15108_v62 = vadd.f32 %v1879_v46, %v14981_v32  ;;  %v1270_v40 = vadd.f32 %v14709_v60, %v12567_v45  ;;  %v1261_v27 = vpop.f32.mrb[189].mxu0  ;;  %v1705_v63 = vmax.f32 %v1201_v31, 0.0 }
 0x26f   :  { %18920 = vst [vmem:[#allocation3_spill] sm:$0xff] %v15103_v24  ;;  %v15114_v42 = vadd.f32 %v1877_v58, %v14985_v13  ;;  %v1262_v52 = vadd.f32 %v14709_v60, %v1261_v27  ;;  %v12568_v41 = vpop.f32.mrb[190].mxu0 }
 0x270   :  { %18921 = vst [vmem:[#allocation4_spill] sm:$0xff] %v15108_v62  ;;  %v1722_v61 = vmax.f32 %v1270_v40, 0.0  ;;  %v1273_v57 = vadd.f32 %v14709_v60, %v12568_v41  ;;  %v1264_v34 = vpop.f32.mrb[191].mxu0 }
 0x271   :  { %18922 = vst [vmem:[#allocation12_spill] sm:$0xff] %v15114_v42  ;;  %v1720_v32 = vmax.f32 %v1262_v52, 0.0  ;;  %v1265_v14 = vadd.f32 %v14709_v60, %v1264_v34 }
 0x272   :  { %v1882_v44 = vadd.f32 %v1722_v61, %v1706_v59  ;;  %v1723_v43 = vmax.f32 %v1273_v57, 0.0 }
 0x273   :  { %v1880_v48 = vadd.f32 %v1720_v32, %v1704_v23  ;;  %v1721_v19 = vmax.f32 %v1265_v14, 0.0 }
 0x274   :  { %v15120_v13 = vadd.f32 %v1882_v44, %v14995_v12  ;;  %v1883_v8 = vadd.f32 %v1723_v43, %v1707_v50 }
 0x275   :  { %v15123_v16 = vadd.f32 %v1880_v48, %v14997_v10  ;;  %v1881_v1 = vadd.f32 %v1721_v19, %v1705_v63  ;;  %v12571_v5 = vpop.f32.mrb[192].mxu0 }
 0x276   :  { %18923 = vst [vmem:[#allocation13_spill] sm:$0xff] %v15120_v13  ;;  %v15126_v2 = vadd.f32 %v1883_v8, %v14999_v21  ;;  %v1277_v47 = vpop.f32.mrb[193].mxu0 }
 0x277   :  { %18924 = vst [vmem:[#allocation14_spill] sm:$0xff] %v15123_v16  ;;  %v15129_v37 = vadd.f32 %v1881_v1, %v15001_v0  ;;  %v12572_v17 = vpop.f32.mrb[194].mxu0  ;;  %v1286_v0 = vadd.f32 %v14709_v60, %v12571_v5  ;;  %v1278_v41 = vadd.f32 %v14709_v60, %v1277_v47 }
 0x278   :  { %18925 = vst [vmem:[#allocation15_spill] sm:$0xff] %v15126_v2  ;;  %v1280_v20 = vpop.f32.mrb[195].mxu0  ;;  %v1289_v61 = vadd.f32 %v14709_v60, %v12572_v17 }
 0x279   :  { %18926 = vst [vmem:[#allocation16_spill] sm:$0xff] %v15129_v37  ;;  %v1281_v23 = vadd.f32 %v14709_v60, %v1280_v20  ;;  %v1726_v50 = vmax.f32 %v1286_v0, 0.0  ;;  %v1724_v48 = vmax.f32 %v1278_v41, 0.0 }
 0x27a   :  { %v1727_v1 = vmax.f32 %v1289_v61, 0.0 }
 0x27b   :  { %v1725_v17 = vmax.f32 %v1281_v23, 0.0 }
 0x27d   :  { %v12575_v46 = vpop.f32.mrb[196].mxu0 }
 0x27e   :  { %v1293_v36 = vpop.f32.mrb[197].mxu0 }
 0x27f   :  { %v12576_v58 = vpop.f32.mrb[198].mxu0  ;;  %v1294_v0 = vadd.f32 %v14709_v60, %v1293_v36 }
 0x280   :  { %v1296_v12 = vpop.f32.mrb[199].mxu0 }
 0x285   :  { %v12579_v45 = vpop.f32.mrb[200].mxu0 }
 0x286   :  { %v1309_v29 = vpop.f32.mrb[201].mxu0 }
 0x287   :  { %v12580_v40 = vpop.f32.mrb[202].mxu0 }
 0x288   :  { %v1312_v10 = vpop.f32.mrb[203].mxu0 }
 0x28d   :  { %v15131_v27 = vpop.f32.mrb[204].mxu0 }
 0x28e   :  { %v15133_v31 = vpop.f32.mrb[205].mxu0 }
 0x28f   :  { %v15135_v21 = vpop.f32.mrb[206].mxu0 }
 0x290   :  { %v15137_v52 = vpop.f32.mrb[207].mxu0 }
 0x295   :  { %v12587_v59 = vpop.f32.mrb[208].mxu0 }
 0x296   :  { %v1350_v57 = vadd.f32 %v14709_v60, %v12587_v59  ;;  %v1341_v34 = vpop.f32.mrb[209].mxu0 }
 0x297   :  { %v1342_v32 = vadd.f32 %v14709_v60, %v1341_v34  ;;  %v12588_v14 = vpop.f32.mrb[210].mxu0  ;;  %v1302_v34 = vadd.f32 %v14709_v60, %v12575_v46 }
 0x298   :  { %v1742_v44 = vmax.f32 %v1350_v57, 0.0  ;;  %v1353_v43 = vadd.f32 %v14709_v60, %v12588_v14  ;;  %v1344_v63 = vpop.f32.mrb[211].mxu0 }
 0x299   :  { %v1740_v19 = vmax.f32 %v1342_v32, 0.0  ;;  %v1345_v8 = vadd.f32 %v14709_v60, %v1344_v63  ;;  %v1305_v32 = vadd.f32 %v14709_v60, %v12576_v58 }
 0x29a   :  { %v15147_v5 = vadd.f32 %v1742_v44, %v1726_v50  ;;  %v1743_v47 = vmax.f32 %v1353_v43, 0.0  ;;  %v1297_v50 = vadd.f32 %v14709_v60, %v1296_v12  ;;  %v1730_v43 = vmax.f32 %v1302_v34, 0.0 }
 0x29b   :  { %v15149_v59 = vadd.f32 %v1740_v19, %v1724_v48  ;;  %v1741_v20 = vmax.f32 %v1345_v8, 0.0  ;;  %v1728_v19 = vmax.f32 %v1294_v0, 0.0  ;;  %v15165_v8 = vld [vmem:[%s18896_s5] ss:$0 sm:$0xff] }
 0x29c   :  { %v15152_v7 = vadd.f32 %v1743_v47, %v1727_v1  ;;  %v1731_v1 = vmax.f32 %v1305_v32, 0.0  ;;  %v1310_v0 = vadd.f32 %v15165_v8, %v1309_v29 }
 0x29d   :  { %v15155_v57 = vadd.f32 %v1741_v20, %v1725_v17  ;;  %v12591_v41 = vpop.f32.mrb[212].mxu0  ;;  %v1729_v17 = vmax.f32 %v1297_v50, 0.0 }
 0x29e   :  { %v1366_v61 = vadd.f32 %v14709_v60, %v12591_v41  ;;  %v1357_v14 = vpop.f32.mrb[213].mxu0 }
 0x29f   :  { %v1358_v23 = vadd.f32 %v14709_v60, %v1357_v14  ;;  %v12592_v44 = vpop.f32.mrb[214].mxu0 }
 0x2a0   :  { %v1746_v63 = vmax.f32 %v1366_v61, 0.0  ;;  %v1369_v46 = vadd.f32 %v14709_v60, %v12592_v44  ;;  %v1360_v48 = vpop.f32.mrb[215].mxu0  ;;  %v1318_v60 = vadd.f32 %v15165_v8, %v12579_v45 }
 0x2a1   :  { %v1744_v36 = vmax.f32 %v1358_v23, 0.0  ;;  %v1361_v58 = vadd.f32 %v15165_v8, %v1360_v48  ;;  %v1321_v23 = vadd.f32 %v15165_v8, %v12580_v40 }
 0x2a2   :  { %v15168_v47 = vadd.f32 %v1746_v63, %v1730_v43  ;;  %v1747_v12 = vmax.f32 %v1369_v46, 0.0  ;;  %v1313_v43 = vadd.f32 %v15165_v8, %v1312_v10  ;;  %v1734_v46 = vmax.f32 %v1318_v60, 0.0 }
 0x2a3   :  { %v15170_v20 = vadd.f32 %v1744_v36, %v1728_v19  ;;  %v1745_v34 = vmax.f32 %v1361_v58, 0.0  ;;  %v1732_v36 = vmax.f32 %v1310_v0, 0.0 }
 0x2a4   :  { %v15173_v41 = vadd.f32 %v1747_v12, %v1731_v1  ;;  %v1735_v1 = vmax.f32 %v1321_v23, 0.0  ;;  %v1337_v23 = vadd.f32 %v15165_v8, %v15135_v21 }
 0x2a5   :  { %v15176_v61 = vadd.f32 %v1745_v34, %v1729_v17  ;;  %v12595_v14 = vpop.f32.mrb[216].mxu0  ;;  %v1733_v17 = vmax.f32 %v1313_v43, 0.0 }
 0x2a6   :  { %v1382_v32 = vadd.f32 %v15165_v8, %v12595_v14  ;;  %v1373_v44 = vpop.f32.mrb[217].mxu0  ;;  %v1334_v14 = vadd.f32 %v15165_v8, %v15131_v27 }
 0x2a7   :  { %v1374_v50 = vadd.f32 %v15165_v8, %v1373_v44  ;;  %v12596_v63 = vpop.f32.mrb[218].mxu0 }
 0x2a8   :  { %v1750_v48 = vmax.f32 %v1382_v32, 0.0  ;;  %v1385_v45 = vadd.f32 %v15165_v8, %v12596_v63  ;;  %v1376_v19 = vpop.f32.mrb[219].mxu0  ;;  %v1326_v32 = vadd.f32 %v15165_v8, %v15133_v31  ;;  %v1329_v63 = vadd.f32 %v15165_v8, %v15137_v52 }
 0x2a9   :  { %v1748_v29 = vmax.f32 %v1374_v50, 0.0  ;;  %v1377_v58 = vadd.f32 %v15165_v8, %v1376_v19 }
 0x2aa   :  { %v15184_v12 = vadd.f32 %v1750_v48, %v1734_v46  ;;  %v1751_v40 = vmax.f32 %v1385_v45, 0.0  ;;  %v1738_v48 = vmax.f32 %v1334_v14, 0.0 }
 0x2ab   :  { %v15186_v34 = vadd.f32 %v1748_v29, %v1732_v36  ;;  %v1749_v10 = vmax.f32 %v1377_v58, 0.0  ;;  %v1736_v36 = vmax.f32 %v1326_v32, 0.0 }
 0x2ac   :  { %v15190_v60 = vadd.f32 %v1751_v40, %v1735_v1  ;;  %v1739_v1 = vmax.f32 %v1337_v23, 0.0 }
 0x2ad   :  { %v15194_v0 = vadd.f32 %v1749_v10, %v1733_v17  ;;  %v12599_v44 = vpop.f32.mrb[220].mxu0  ;;  %v1737_v17 = vmax.f32 %v1329_v63, 0.0 }
 0x2ae   :  { %v1398_v50 = vadd.f32 %v15165_v8, %v12599_v44  ;;  %v1389_v43 = vpop.f32.mrb[221].mxu0 }
 0x2af   :  { %18927 = vst [vmem:[#allocation17_spill] sm:$0xff] %v15194_v0  ;;  %v1390_v46 = vadd.f32 %v15165_v8, %v1389_v43  ;;  %v12600_v27 = vpop.f32.mrb[222].mxu0 }
 0x2b0   :  { %v1754_v45 = vmax.f32 %v1398_v50, 0.0  ;;  %v1401_v19 = vadd.f32 %v15165_v8, %v12600_v27  ;;  %v1392_v31 = vpop.f32.mrb[223].mxu0 }
 0x2b1   :  { %v1752_v29 = vmax.f32 %v1390_v46, 0.0  ;;  %v1393_v58 = vadd.f32 %v15165_v8, %v1392_v31 }
 0x2b2   :  { %v15204_v21 = vadd.f32 %v1754_v45, %v1738_v48  ;;  %v1755_v40 = vmax.f32 %v1401_v19, 0.0 }
 0x2b3   :  { %v15206_v10 = vadd.f32 %v1752_v29, %v1736_v36  ;;  %v1753_v52 = vmax.f32 %v1393_v58, 0.0 }
 0x2b4   :  { %18928 = vst [vmem:[#allocation18_spill] sm:$0xff] %v15204_v21  ;;  %v15208_v44 = vadd.f32 %v1755_v40, %v1739_v1 }
 0x2b5   :  { %18929 = vst [vmem:[#allocation19_spill] sm:$0xff] %v15206_v10  ;;  %v15210_v43 = vadd.f32 %v1753_v52, %v1737_v17  ;;  %v12603_v14 = vpop.f32.mrb[224].mxu0 }
 0x2b6   :  { %18930 = vst [vmem:[#allocation20_spill] sm:$0xff] %v15208_v44  ;;  %v1405_v50 = vpop.f32.mrb[225].mxu0  ;;  %v1414_v1 = vadd.f32 %v15165_v8, %v12603_v14 }
 0x2b7   :  { %18931 = vst [vmem:[#allocation21_spill] sm:$0xff] %v15210_v43  ;;  %v12604_v27 = vpop.f32.mrb[226].mxu0  ;;  %v1406_v40 = vadd.f32 %v15165_v8, %v1405_v50 }
 0x2b8   :  { %v1408_v37 = vpop.f32.mrb[227].mxu0  ;;  %v1417_v17 = vadd.f32 %v15165_v8, %v12604_v27  ;;  %v1758_v2 = vmax.f32 %v1414_v1, 0.0 }
 0x2b9   :  { %v1409_v52 = vadd.f32 %v15165_v8, %v1408_v37  ;;  %v1756_v43 = vmax.f32 %v1406_v40, 0.0 }
 0x2ba   :  { %v1759_v44 = vmax.f32 %v1417_v17, 0.0 }
 0x2bb   :  { %v1757_v55 = vmax.f32 %v1409_v52, 0.0 }
 0x2bd   :  { %v12607_v32 = vpop.f32.mrb[228].mxu0 }
 0x2be   :  { %v1421_v46 = vpop.f32.mrb[229].mxu0  ;;  %v1430_v13 = vadd.f32 %v15165_v8, %v12607_v32 }
 0x2bf   :  { %v12608_v4 = vpop.f32.mrb[230].mxu0  ;;  %v1422_v10 = vadd.f32 %v15165_v8, %v1421_v46 }
 0x2c0   :  { %v1424_v31 = vpop.f32.mrb[231].mxu0  ;;  %v1433_v14 = vadd.f32 %v15165_v8, %v12608_v4  ;;  %v1762_v17 = vmax.f32 %v1430_v13, 0.0 }
 0x2c1   :  { %v1425_v50 = vadd.f32 %v15165_v8, %v1424_v31  ;;  %v1760_v52 = vmax.f32 %v1422_v10, 0.0 }
 0x2c2   :  { %v1763_v26 = vmax.f32 %v1433_v14, 0.0 }
 0x2c5   :  { %v12611_v23 = vpop.f32.mrb[232].mxu0 }
 0x2c6   :  { %v1437_v48 = vpop.f32.mrb[233].mxu0  ;;  %v15227_v37 = vadd.f32 %v15165_v8, %v12611_v23 }
 0x2c7   :  { %v12612_v45 = vpop.f32.mrb[234].mxu0  ;;  %v15230_v1 = vadd.f32 %v15165_v8, %v1437_v48  ;;  %v1761_v48 = vmax.f32 %v1425_v50, 0.0 }
 0x2c8   :  { %v1440_v19 = vpop.f32.mrb[235].mxu0 }
 0x2c9   :  { %v15237_v4 = vadd.f32 %v15165_v8, %v1440_v19  ;;  %v1764_v0 = vmax.f32 %v15230_v1, 0.0 }
 0x2cd   :  { %v12615_v63 = vpop.f32.mrb[236].mxu0 }
 0x2ce   :  { %v1453_v36 = vpop.f32.mrb[237].mxu0  ;;  %v15247_v14 = vadd.f32 %v15165_v8, %v12615_v63 }
 0x2cf   :  { %v15212_v29 = vpop.f32.mrb[238].mxu0 }
 0x2d0   :  { %v15214_v58 = vpop.f32.mrb[239].mxu0 }
 0x2d5   :  { %v12619_v16 = vpop.f32.mrb[240].mxu0 }
 0x2d6   :  { %v1478_v21 = vadd.f32 %v15165_v8, %v12619_v16  ;;  %v1469_v25 = vpop.f32.mrb[241].mxu0  ;;  %v15234_v16 = vadd.f32 %v15165_v8, %v12612_v45 }
 0x2d7   :  { %v1470_v27 = vadd.f32 %v15165_v8, %v1469_v25  ;;  %v12620_v6 = vpop.f32.mrb[242].mxu0 }
 0x2d8   :  { %v1774_v32 = vmax.f32 %v1478_v21, 0.0  ;;  %v1481_v46 = vadd.f32 %v15165_v8, %v12620_v6  ;;  %v1472_v40 = vpop.f32.mrb[243].mxu0  ;;  %v1766_v6 = vmax.f32 %v15227_v37, 0.0  ;;  %v1767_v19 = vmax.f32 %v15234_v16, 0.0  ;;  %v18932_v16 = vld [vmem:[#allocation3_spill] sm:$0xff] }
 0x2d9   :  { %v1772_v31 = vmax.f32 %v1470_v27, 0.0  ;;  %v1473_v25 = vadd.f32 %v15165_v8, %v1472_v40  ;;  %v1765_v27 = vmax.f32 %v15237_v4, 0.0 }
 0x2da   :  { %v1902_v23 = vadd.f32 %v1774_v32, %v1758_v2  ;;  %v1775_v42 = vmax.f32 %v1481_v46, 0.0 }
 0x2db   :  { %v1900_v62 = vadd.f32 %v1772_v31, %v1756_v43  ;;  %v1773_v21 = vmax.f32 %v1473_v25, 0.0  ;;  %v1770_v25 = vmax.f32 %v15247_v14, 0.0 }
 0x2dc   :  { %v1966_v45 = vadd.f32 %v1902_v23, %v15147_v5  ;;  %v1903_v24 = vadd.f32 %v1775_v42, %v1759_v44  ;;  %v15253_v42 = vadd.f32 %v15165_v8, %v1453_v36 }
 0x2dd   :  { %v1964_v13 = vadd.f32 %v1900_v62, %v15149_v59  ;;  %v1901_v10 = vadd.f32 %v1773_v21, %v1757_v55  ;;  %v12623_v2 = vpop.f32.mrb[244].mxu0 }
 0x2de   :  { %v1998_v43 = vadd.f32 %v1966_v45, %v15044_v56  ;;  %v1967_v50 = vadd.f32 %v1903_v24, %v15152_v7  ;;  %v1494_v32 = vadd.f32 %v15165_v8, %v12623_v2  ;;  %v1485_v46 = vpop.f32.mrb[245].mxu0 }
 0x2df   :  { %v1965_v5 = vadd.f32 %v1901_v10, %v15155_v57  ;;  %v1486_v44 = vadd.f32 %v15165_v8, %v1485_v46  ;;  %v12624_v62 = vpop.f32.mrb[246].mxu0  ;;  %v1996_v55 = vadd.f32 %v1964_v13, %v15051_v3 }
 0x2e0   :  { %v1999_v59 = vadd.f32 %v1967_v50, %v15055_v18  ;;  %v1778_v63 = vmax.f32 %v1494_v32, 0.0  ;;  %v1497_v56 = vadd.f32 %v15165_v8, %v12624_v62  ;;  %v1488_v40 = vpop.f32.mrb[247].mxu0  ;;  %v2014_v7 = vadd.f32 %v1998_v43, %v14746_v49 }
 0x2e1   :  { %v1776_v24 = vmax.f32 %v1486_v44, 0.0  ;;  %v1489_v31 = vadd.f32 %v15165_v8, %v1488_v40  ;;  %v1997_v36 = vadd.f32 %v1965_v5, %v15060_v54  ;;  %v2012_v57 = vadd.f32 %v1996_v55, %v14755_v30 }
 0x2e2   :  { %v1906_v23 = vadd.f32 %v1778_v63, %v1762_v17  ;;  %v1779_v21 = vmax.f32 %v1497_v56, 0.0  ;;  %v2015_v3 = vadd.f32 %v1999_v59, %v14758_v9  ;;  %v15268_v18 = vadd.f32 %v15165_v8, %v15212_v29 }
 0x2e3   :  { %v1904_v45 = vadd.f32 %v1776_v24, %v1760_v52  ;;  %v1777_v13 = vmax.f32 %v1489_v31, 0.0  ;;  %v2013_v49 = vadd.f32 %v1997_v36, %v14769_v53  ;;  %v2030_v54 = vmul.f32 0.0625, %v2014_v7 }
 0x2e4   :  { %v1970_v10 = vadd.f32 %v1906_v23, %v15168_v47  ;;  %v1907_v2 = vadd.f32 %v1779_v21, %v1763_v26  ;;  %v2031_v43 = vmul.f32 0.0625, %v2015_v3  ;;  %v2028_v32 = vmul.f32 0.0625, %v2012_v57 }
 0x2e5   :  { %v1968_v30 = vadd.f32 %v1904_v45, %v15170_v20  ;;  %v1905_v50 = vadd.f32 %v1777_v13, %v1761_v48  ;;  %v12627_v17 = vpop.f32.mrb[248].mxu0  ;;  %v2029_v46 = vmul.f32 0.0625, %v2013_v49  ;;  %v18933_v45 = vld [vmem:[#allocation17_spill] sm:$0xff] }
 0x2e6   :  { %v2002_v9 = vadd.f32 %v1970_v10, %v15071_v22  ;;  %v1971_v29 = vadd.f32 %v1907_v2, %v15173_v41  ;;  %v1510_v52 = vadd.f32 %v15165_v8, %v12627_v17  ;;  %v1501_v5 = vpop.f32.mrb[249].mxu0  ;;  %v2061_v44 = vpack.c.bf16 %v2031_v43, %v2030_v54  ;;  %v18935_v43 = vld [vmem:[#allocation7_spill] sm:$0xff] }
 0x2e7   :  { %v2000_v53 = vadd.f32 %v1968_v30, %v15079_v51  ;;  %v1969_v26 = vadd.f32 %v1905_v50, %v15176_v61  ;;  %v1502_v47 = vadd.f32 %v15165_v8, %v1501_v5  ;;  %v12628_v62 = vpop.f32.mrb[250].mxu0  ;;  %v2060_v20 = vpack.c.bf16 %v2029_v46, %v2028_v32  ;;  %v18936_v30 = vld [vmem:[#allocation12_spill] sm:$0xff] }
 0x2e8   :  { %v2003_v48 = vadd.f32 %v1971_v29, %v15084_v39  ;;  %v1782_v55 = vmax.f32 %v1510_v52, 0.0  ;;  %v1513_v59 = vadd.f32 %v15165_v8, %v12628_v62  ;;  %v1504_v22 = vpop.f32.mrb[251].mxu0  ;;  %v2018_v41 = vadd.f32 %v2002_v9, %v14786_v35  ;;  %v18937_v46 = vld [vmem:[#allocation8_spill] sm:$0xff] }
 0x2e9   :  { %v2001_v63 = vadd.f32 %v1969_v26, %v15090_v15  ;;  %v1780_v56 = vmax.f32 %v1502_v47, 0.0  ;;  %v1505_v40 = vadd.f32 %v15165_v8, %v1504_v22  ;;  %12649 = vmatprep.mubr.bf16.mxu1 %v2060_v20  ;;  %v2016_v51 = vadd.f32 %v2000_v53, %v14793_v11  ;;  %v18939_v20 = vld [vmem:[#allocation10_spill] sm:$0xff] }
 0x2ea   :  { %v1768_v61 = vmax.f32 %v15253_v42, 0.0  ;;  %v1910_v7 = vadd.f32 %v1782_v55, %v1766_v6  ;;  %v1783_v39 = vmax.f32 %v1513_v59, 0.0  ;;  %12650 = vmatmul.mubr.bf16.vlgmr.msra.gmra.mrb[0].mxu1 %v2061_v44  ;;  %v2019_v24 = vadd.f32 %v2003_v48, %v14798_v38  ;;  %v18938_v44 = vld [vmem:[#allocation9_spill] sm:$0xff]  ;;  %v18940_v55 = vld [vmem:[#allocation18_spill] sm:$0xff] }
 0x2eb   :  { %v1457_v35 = vadd.f32 %v15165_v8, %v15214_v58  ;;  %v1908_v15 = vadd.f32 %v1780_v56, %v1764_v0  ;;  %v1781_v31 = vmax.f32 %v1505_v40, 0.0  ;;  %v2017_v36 = vadd.f32 %v2001_v63, %v14802_v28  ;;  %v18941_v63 = vld [vmem:[#allocation19_spill] sm:$0xff] }
 0x2ec   :  { %v1974_v11 = vadd.f32 %v1910_v7, %v15184_v12  ;;  %v1911_v42 = vadd.f32 %v1783_v39, %v1767_v19  ;;  %v2034_v37 = vmul.f32 0.0625, %v2018_v41  ;;  %v2035_v6 = vmul.f32 0.0625, %v2019_v24  ;;  %v18943_v7 = vld [vmem:[#allocation20_spill] sm:$0xff] }
 0x2ed   :  { %v1972_v57 = vadd.f32 %v1908_v15, %v15186_v34  ;;  %v1909_v38 = vadd.f32 %v1781_v31, %v1765_v27  ;;  %v12631_v23 = vpop.f32.mrb[252].mxu0  ;;  %v2032_v58 = vmul.f32 0.0625, %v2016_v51  ;;  %v2033_v21 = vmul.f32 0.0625, %v2017_v36  ;;  %v18934_v27 = vld [vmem:[#allocation4_spill] sm:$0xff]  ;;  %v18945_v15 = vld [vmem:[#allocation21_spill] sm:$0xff] }
 0x2ee   :  { %v2006_v0 = vadd.f32 %v1974_v11, %v15098_v33  ;;  %v1975_v1 = vadd.f32 %v1911_v42, %v15190_v60  ;;  %v1526_v28 = vadd.f32 %v15165_v8, %v12631_v23  ;;  %v1517_v12 = vpop.f32.mrb[253].mxu0  ;;  %v2063_v3 = vpack.c.bf16 %v2035_v6, %v2034_v37  ;;  %v18946_v11 = vld [vmem:[#allocation15_spill] sm:$0xff]  ;;  %v18949_v23 = vld [vmem:[#allocation5_spill] sm:$0xff] }
 0x2ef   :  { %v2004_v19 = vadd.f32 %v1972_v57, %v18932_v16  ;;  %v1973_v13 = vadd.f32 %v1909_v38, %v18933_v45  ;;  %v1518_v34 = vadd.f32 %v15165_v8, %v1517_v12  ;;  %v12632_v49 = vpop.f32.mrb[254].mxu0  ;;  %v2062_v4 = vpack.c.bf16 %v2033_v21, %v2032_v58  ;;  %v18947_v37 = vld [vmem:[#allocation11_spill] sm:$0xff]  ;;  %v18948_v57 = vld [vmem:[#allocation16_spill] sm:$0xff]  ;;  %v18950_v21 = vld [vmem:[#allocation2_spill] sm:$0xff] }
 0x2f0   :  { %v2007_v10 = vadd.f32 %v1975_v1, %v18934_v27  ;;  %v1786_v2 = vmax.f32 %v1526_v28, 0.0  ;;  %v1529_v54 = vadd.f32 %v15165_v8, %v12632_v49  ;;  %v1520_v33 = vpop.f32.mrb[255].mxu0  ;;  %v2022_v60 = vadd.f32 %v2006_v0, %v18935_v43  ;;  %v18951_v1 = vld [vmem:[#allocation6_spill] sm:$0xff]  ;;  %v12768_v27 = vld [vmem:[%s18897_s2 + $0x10] ss:$8 sps:$4 sm:$0xff]  }
 0x2f1   :  { %v2005_v50 = vadd.f32 %v1973_v13, %v18936_v30  ;;  %v1784_v17 = vmax.f32 %v1518_v34, 0.0  ;;  %v1521_v32 = vadd.f32 %v15165_v8, %v1520_v33  ;;  %12653 = vmatprep.mubr.bf16.mxu1 %v2062_v4  ;;  %v2020_v9 = vadd.f32 %v2004_v19, %v18937_v46  ;;  %v12765_v34 = vld [vmem:[%s18897_s2] ss:$8 sps:$4 sm:$0xff]   ;;  %v12767_v49 = vld [vmem:[%s18897_s2 + $0x4] ss:$8 sps:$4 sm:$0xff]  }
 0x2f2   :  { %v1771_v29 = vmax.f32 %v15268_v18, 0.0  ;;  %v1914_v52 = vadd.f32 %v1786_v2, %v1770_v25  ;;  %v1787_v5 = vmax.f32 %v1529_v54, 0.0  ;;  %12654 = vmatmul.mubr.bf16.gmra.mrb[4].mxu1 %v2063_v3  ;;  %v2023_v53 = vadd.f32 %v2007_v10, %v18938_v44  ;;  %v18942_v25 = vld [vmem:[#allocation13_spill] sm:$0xff]  ;;  %2357 = vmatprep.subr.bf16.mxu1 %v12767_v49  ;;  %v12773_v10 = vld [vmem:[%s18897_s2 + $0x24] ss:$8 sps:$4 sm:$0xff]  }
 0x2f3   :  { %v1769_v26 = vmax.f32 %v1457_v35, 0.0  ;;  %v1912_v47 = vadd.f32 %v1784_v17, %v1768_v61  ;;  %v1785_v62 = vmax.f32 %v1521_v32, 0.0  ;;  %v2021_v48 = vadd.f32 %v2005_v50, %v18939_v20  ;;  %v18944_v35 = vld [vmem:[#allocation14_spill] sm:$0xff]  ;;  %2358 = vmatpush1.bf16.msra.mxu1 %v12765_v34  ;;  %v12770_v4 = vld [vmem:[%s18897_s2 + $0x14] ss:$8 sps:$4 sm:$0xff]  }
 0x2f4   :  { %v1978_v59 = vadd.f32 %v1914_v52, %v18940_v55  ;;  %v1915_v8 = vadd.f32 %v1787_v5, %v1771_v29  ;;  %v2038_v22 = vmul.f32 0.0625, %v2022_v60  ;;  %v2039_v41 = vmul.f32 0.0625, %v2023_v53  ;;  %2359 = vmatprep.subr.bf16.mxu1 %v12770_v4  ;;  %v12771_v2 = vld [vmem:[%s18897_s2 + $0x20] ss:$8 sps:$4 sm:$0xff]   ;;  %v12776_v54 = vld [vmem:[%s18897_s2 + $0x34] ss:$8 sps:$4 sm:$0xff]  }
 0x2f5   :  { %v1976_v56 = vadd.f32 %v1912_v47, %v18941_v63  ;;  %v1913_v18 = vadd.f32 %v1785_v62, %v1769_v26  ;;  %v2036_v40 = vmul.f32 0.0625, %v2020_v9  ;;  %v2037_v14 = vmul.f32 0.0625, %v2021_v48  ;;  %v12774_v33 = vld [vmem:[%s18897_s2 + $0x30] ss:$8 sps:$4 sm:$0xff]   ;;  %v12777_v43 = vld [vmem:[%s18897_s2 + $0x40] ss:$8 sps:$4 sm:$0xff]  }
 0x2f6   :  { %v2010_v51 = vadd.f32 %v1978_v59, %v18942_v25  ;;  %v1979_v39 = vadd.f32 %v1915_v8, %v18943_v7  ;;  %v2065_v24 = vpack.c.bf16 %v2039_v41, %v2038_v22  ;;  %v12779_v60 = vld [vmem:[%s18897_s2 + $0x44] ss:$8 sps:$4 sm:$0xff]   ;;  %v12782_v30 = vld [vmem:[%s18897_s2 + $0x54] ss:$8 sps:$4 sm:$0xff]   ;;  %v12780_v50 = vld [vmem:[%s18897_s2 + $0x50] ss:$8 sps:$4 sm:$0xff]  }
 0x2f7   :  { %v2008_v61 = vadd.f32 %v1976_v56, %v18944_v35  ;;  %v1977_v31 = vadd.f32 %v1913_v18, %v18945_v15  ;;  %v2064_v36 = vpack.c.bf16 %v2037_v14, %v2036_v40  ;;  %2360 = vmatpush1.bf16.msra.mxu1 %v12768_v27  ;;  %v12785_v17 = vld [vmem:[%s18897_s2 + $0x64] ss:$8 sps:$4 sm:$0xff]   ;;  %v12783_v32 = vld [vmem:[%s18897_s2 + $0x60] ss:$8 sps:$4 sm:$0xff]   ;;  %v12788_v46 = vld [vmem:[%s18897_s2 + $0x74] ss:$8 sps:$4 sm:$0xff]  }
 0x2f8   :  { %v2011_v42 = vadd.f32 %v1979_v39, %v18946_v11  ;;  %v2026_v6 = vadd.f32 %v2010_v51, %v18947_v37  ;;  %2361 = vmatprep.subr.bf16.mxu1 %v12773_v10  ;;  %v12786_v9 = vld [vmem:[%s18897_s2 + $0x70] ss:$8 sps:$4 sm:$0xff]   ;;  %v13623_v29 = vmov 0   ;;  %v2068_v26 = vld [vmem:[%s18896_s5 + $0x40] ss:$0 sm:$0xff] }
 0x2f9   :  { %v2009_v38 = vadd.f32 %v1977_v31, %v18948_v57  ;;  %12657 = vmatprep.mubr.bf16.mxu1 %v2064_v36  ;;  %v2024_v58 = vadd.f32 %v2008_v61, %v18949_v23 }
 0x2fa   :  { %12658 = vmatmul.mubr.bf16.gmra.mrb[8].mxu1 %v2065_v24  ;;  %v2027_v0 = vadd.f32 %v2011_v42, %v18950_v21  ;;  %v2042_v12 = vmul.f32 0.0625, %v2026_v6 }
 0x2fb   :  { %v2025_v28 = vadd.f32 %v2009_v38, %v18951_v1  ;;  %v2040_v16 = vmul.f32 0.0625, %v2024_v58  ;;  %2362 = vmatpush1.bf16.msra.mxu1 %v12771_v2 }
 0x2fc   :  { %v2043_v3 = vmul.f32 0.0625, %v2027_v0  ;;  %2363 = vmatprep.subr.bf16.mxu1 %v12776_v54 }
 0x2fd   :  { %v2041_v19 = vmul.f32 0.0625, %v2025_v28 }
 0x2fe   :  { %v2067_v45 = vpack.c.bf16 %v2043_v3, %v2042_v12 }
 0x2ff   :  { %v2066_v13 = vpack.c.bf16 %v2041_v19, %v2040_v16  ;;  %2364 = vmatpush1.bf16.msra.mxu1 %v12774_v33 }
 0x300   :  { %2365 = vmatprep.subr.bf16.mxu1 %v12779_v60 }
 0x301   :  { %12661 = vmatprep.mubr.bf16.mxu1 %v2066_v13 }
 0x302   :  { %12662 = vmatmul.mubr.bf16.gmra.mrb[12].mxu1 %v2067_v45 }
 0x303   :  { %2366 = vmatpush1.bf16.msra.mxu1 %v12777_v43  ;;  %2389 = vmatprep.mubr.bf16.mxu1 %v13623_v29 }
 0x304   :  { %2367 = vmatprep.subr.bf16.mxu1 %v12782_v30 }
 0x307   :  { %2368 = vmatpush1.bf16.msra.mxu1 %v12780_v50 }
 0x308   :  { %2369 = vmatprep.subr.bf16.mxu1 %v12785_v17 }
 0x30b   :  { %2370 = vmatpush1.bf16.msra.mxu1 %v12783_v32 }
 0x30c   :  { %2371 = vmatprep.subr.bf16.mxu1 %v12788_v46 }
 0x30f   :  { %2372 = vmatpush1.bf16.msra.mxu1 %v12786_v9 }
 0x3bd   :  { %v12651_v52 = vpop.f32.mrb[0].mxu1 }
 0x3be   :  { %v2151_v5 = vpop.f32.mrb[1].mxu1  ;;  %v2160_v47 = vadd.f32 %v12651_v52, %v2068_v26 }
 0x3bf   :  { %v12652_v44 = vpop.f32.mrb[2].mxu1  ;;  %v2152_v62 = vadd.f32 %v2151_v5, %v2068_v26 }
 0x3c0   :  { %v2154_v53 = vpop.f32.mrb[3].mxu1  ;;  %v2163_v48 = vadd.f32 %v12652_v44, %v2068_v26  ;;  %v2216_v63 = vmax.f32 %v2160_v47, 0.0  ;;  %v12790_v47 = vld [vmem:[%s18894_s1 + $0x80] sm:$0xff]  }
 0x3c1   :  { %v2155_v8 = vadd.f32 %v2154_v53, %v2068_v26  ;;  %v2214_v14 = vmax.f32 %v2152_v62, 0.0  ;;  %v12791_v62 = vld [vmem:[%s18894_s1 + $0xc8] sm:$0xff]  }
 0x3c2   :  { %v2217_v7 = vmax.f32 %v2163_v48, 0.0  ;;  %v12793_v48 = vld [vmem:[%s18894_s1 + $0xd0] sm:$0xff]  }
 0x3c3   :  { %v2215_v35 = vmax.f32 %v2155_v8, 0.0  ;;  %v12796_v8 = vld [vmem:[%s18894_s1 + $0x98] sm:$0xff]  }
 0x3c5   :  { %v12655_v20 = vpop.f32.mrb[4].mxu1 }
 0x3c6   :  { %v2176_v55 = vadd.f32 %v12655_v20, %v2068_v26  ;;  %v2167_v59 = vpop.f32.mrb[5].mxu1  ;;  %v12792_v20 = vld [vmem:[%s18894_s1 + $0x88] sm:$0xff]  }
 0x3c7   :  { %v2168_v22 = vadd.f32 %v2167_v59, %v2068_v26  ;;  %v12656_v41 = vpop.f32.mrb[6].mxu1  ;;  %v12795_v59 = vld [vmem:[%s18894_s1 + $0xd8] sm:$0xff]  }
 0x3c8   :  { %v2220_v56 = vmax.f32 %v2176_v55, 0.0  ;;  %v2179_v18 = vadd.f32 %v12656_v41, %v2068_v26  ;;  %v2170_v40 = vpop.f32.mrb[7].mxu1  ;;  %v12794_v55 = vld [vmem:[%s18894_s1 + $0x90] sm:$0xff]   ;;  %v12798_v41 = vld [vmem:[%s18894_s1 + $0xa0] sm:$0xff]  }
 0x3c9   :  { %v2218_v25 = vmax.f32 %v2168_v22, 0.0  ;;  %v2171_v51 = vadd.f32 %v2170_v40, %v2068_v26  ;;  %v12797_v22 = vld [vmem:[%s18894_s1 + $0xe0] sm:$0xff]   ;;  %v12802_v40 = vld [vmem:[%s18894_s1 + $0xb0] sm:$0xff]  }
 0x3ca   :  { %v2232_v39 = vadd.f32 %v2220_v56, %v2216_v63  ;;  %v2221_v24 = vmax.f32 %v2179_v18, 0.0  ;;  %v12799_v63 = vld [vmem:[%s18894_s1 + $0xe8] sm:$0xff]   ;;  %v12801_v18 = vld [vmem:[%s18894_s1 + $0xf0] sm:$0xff]  }
 0x3cb   :  { %v2230_v61 = vadd.f32 %v2218_v25, %v2214_v14  ;;  %v2219_v15 = vmax.f32 %v2171_v51, 0.0  ;;  %v12800_v56 = vld [vmem:[%s18894_s1 + $0xa8] sm:$0xff]   ;;  %v12803_v14 = vld [vmem:[%s18894_s1 + $0xf8] sm:$0xff]  }
 0x3cc   :  { %v2233_v31 = vadd.f32 %v2221_v24, %v2217_v7  ;;  %v12804_v25 = vld [vmem:[%s18894_s1 + $0xb8] sm:$0xff]   ;;  %v12807_v51 = vld [vmem:[%s18897_s2 + $0x84] ss:$8 sps:$4 sm:$0xff]   ;;  %v2267_v7 = vlaneseq }
 0x3cd   :  { %v2231_v36 = vadd.f32 %v2219_v15, %v2215_v35  ;;  %v12659_v11 = vpop.f32.mrb[8].mxu1  ;;  %v11003_v35 = vld [vmem:[%s18896_s5 + $0x80] ss:$8 sm:$0x3] }
 0x3ce   :  { %v2183_v42 = vpop.f32.mrb[9].mxu1  ;;  %v2192_v57 = vadd.f32 %v12659_v11, %v2068_v26 }
 0x3cf   :  { %v12660_v37 = vpop.f32.mrb[10].mxu1  ;;  %v2184_v38 = vadd.f32 %v2183_v42, %v2068_v26 }
 0x3d0   :  { %v2186_v6 = vpop.f32.mrb[11].mxu1  ;;  %v2195_v58 = vadd.f32 %v12660_v37, %v2068_v26  ;;  %v2224_v3 = vmax.f32 %v2192_v57, 0.0 }
 0x3d1   :  { %v2187_v1 = vadd.f32 %v2186_v6, %v2068_v26  ;;  %v2222_v13 = vmax.f32 %v2184_v38, 0.0 }
 0x3d2   :  { %v2225_v4 = vmax.f32 %v2195_v58, 0.0 }
 0x3d3   :  { %v2223_v2 = vmax.f32 %v2187_v1, 0.0 }
 0x3d5   :  { %v12663_v23 = vpop.f32.mrb[12].mxu1 }
 0x3d6   :  { %v2208_v21 = vadd.f32 %v12663_v23, %v2068_v26  ;;  %v2199_v0 = vpop.f32.mrb[13].mxu1 }
 0x3d7   :  { %v2200_v28 = vadd.f32 %v2199_v0, %v2068_v26  ;;  %v12664_v12 = vpop.f32.mrb[14].mxu1 }
 0x3d8   :  { %v2228_v16 = vmax.f32 %v2208_v21, 0.0  ;;  %v2211_v19 = vadd.f32 %v12664_v12, %v2068_v26  ;;  %v2202_v45 = vpop.f32.mrb[15].mxu1 }
 0x3d9   :  { %v2226_v34 = vmax.f32 %v2200_v28, 0.0  ;;  %v2203_v49 = vadd.f32 %v2202_v45, %v2068_v26  ;;  %v12789_v26 = vld [vmem:[%s18894_s1 + $0xc0] sm:$0xff]  }
 0x3da   :  { %v2236_v27 = vadd.f32 %v2228_v16, %v2224_v3  ;;  %v2229_v10 = vmax.f32 %v2211_v19, 0.0  ;;  %12251 = vmatprep.subr.bf16.mxu1 %v12789_v26 }
 0x3db   :  { %v2234_v54 = vadd.f32 %v2226_v34, %v2222_v13  ;;  %v2227_v33 = vmax.f32 %v2203_v49, 0.0 }
 0x3dc   :  { %v2240_v43 = vadd.f32 %v2236_v27, %v2232_v39  ;;  %v2237_v60 = vadd.f32 %v2229_v10, %v2225_v4  ;;  %v15433_v39 = vshrl.u32 %v2267_v7, 7 }
 0x3dd   :  { %v2238_v30 = vadd.f32 %v2234_v54, %v2230_v61  ;;  %v2235_v50 = vadd.f32 %v2227_v33, %v2223_v2 }
 0x3de   :  { %v2241_v17 = vadd.f32 %v2237_v60, %v2233_v31  ;;  %v2244_v46 = vmul.f32 0.25, %v2240_v43  ;;  %v15436_v24 = vsub.s32 0, %v15433_v39  ;;  %v15442_v61 = vsub.s32 1, %v15433_v39 }
 0x3df   :  { %v2239_v32 = vadd.f32 %v2235_v50, %v2231_v36  ;;  %v2242_v52 = vmul.f32 0.25, %v2238_v30 }
 0x3e0   :  { %v2245_v9 = vmul.f32 0.25, %v2241_v17  ;;  %v2270_v15 = vrot.slane %v11003_v35, %v15436_v24  ;;  %v2274_v31 = vrot.slane %v11003_v35, %v15442_v61 }
 0x3e1   :  { %v2243_v5 = vmul.f32 0.25, %v2239_v32 }
 0x3e2   :  { %v2263_v44 = vpack.c.bf16 %v2245_v9, %v2244_v46 }
 0x3e3   :  { %v2262_v53 = vpack.c.bf16 %v2243_v5, %v2242_v52 }
 0x3e5   :  { %2390 = vmatmul.mubr.bf16.vlgmr.msra.gmra.mrb[16].mxu1 %v2262_v53 }
 0x3e6   :  { %2399 = vmatprep.mubr.bf16.mxu1 %v13623_v29  ;;  %12252 = vmatpush3.bf16.msra.mxu1 %v12790_v47 }
 0x3e7   :  { %12253 = vmatprep.subr.bf16.mxu1 %v12791_v62 }
 0x3ea   :  { %12254 = vmatpush3.bf16.msra.mxu1 %v12792_v20 }
 0x3eb   :  { %12255 = vmatprep.subr.bf16.mxu1 %v12793_v48 }
 0x3ed   :  { %2400 = vmatmul.mubr.bf16.gmra.mrb[20].mxu1 %v2263_v44 }
 0x3ee   :  { %12256 = vmatpush3.bf16.msra.mxu1 %v12794_v55 }
 0x3ef   :  { %12257 = vmatprep.subr.bf16.mxu1 %v12795_v59 }
 0x3f2   :  { %12258 = vmatpush3.bf16.msra.mxu1 %v12796_v8 }
 0x3f3   :  { %12259 = vmatprep.subr.bf16.mxu1 %v12797_v22 }
 0x3f6   :  { %12260 = vmatpush3.bf16.msra.mxu1 %v12798_v41 }
 0x3f7   :  { %12261 = vmatprep.subr.bf16.mxu1 %v12799_v63 }
 0x3fa   :  { %12262 = vmatpush3.bf16.msra.mxu1 %v12800_v56 }
 0x3fb   :  { %12263 = vmatprep.subr.bf16.mxu1 %v12801_v18 }
 0x3fe   :  { %12264 = vmatpush3.bf16.msra.mxu1 %v12802_v40 }
 0x3ff   :  { %12265 = vmatprep.subr.bf16.mxu1 %v12803_v14 }
 0x402   :  { %12266 = vmatpush3.bf16.msra.mxu1 %v12804_v25 }
 0x403   :  { %2772 = vmatprep.subr.bf16.mxu1 %v12807_v51 }
 0x4b8   :  { %v2391_v36 = vpop.f32.mrb[16].mxu1 }
 0x4b9   :  { %v2392_v11 = vadd.f32 %v2391_v36, %v2270_v15  ;;  %v2393_v42 = vpop.f32.mrb[17].mxu1 }
 0x4ba   :  { %v2394_v37 = vadd.f32 %v2393_v42, %v2274_v31  ;;  %v2395_v6 = vpop.f32.mrb[18].mxu1 }
 0x4bb   :  { %v2396_v57 = vadd.f32 %v2395_v6, %v2270_v15  ;;  %v2397_v38 = vpop.f32.mrb[19].mxu1  ;;  %v15446_v58 = vmax.f32 %v2392_v11, 0.0 }
 0x4bc   :  { %v2398_v23 = vadd.f32 %v2397_v38, %v2274_v31  ;;  %v15450_v0 = vmax.f32 %v2394_v37, 0.0 }
 0x4bd   :  { %v15448_v21 = vmax.f32 %v2396_v57, 0.0  ;;  %v2468_v16 = vrot.slane %v15446_v58, 2  ;;  %v12805_v57 = vld [vmem:[%s18897_s2 + $0x80] ss:$8 sps:$4 sm:$0xff]  }
 0x4be   :  { %v15452_v1 = vmax.f32 %v2398_v23, 0.0  ;;  %v2469_v13 = vrot.slane %v15450_v0, 2  ;;  %v12810_v23 = vld [vmem:[%s18897_s2 + $0x94] ss:$8 sps:$4 sm:$0xff]  }
 0x4bf   :  { %v2476_v28 = vrot.slane %v15448_v21, 2  ;;  %v2472_v60 = vadd.f32 %v2468_v16, %v15446_v58  ;;  %v12816_v16 = vld [vmem:[%s18897_s2 + $0xb4] ss:$8 sps:$4 sm:$0xff]  }
 0x4c0   :  { %v2477_v12 = vrot.slane %v15452_v1, 2  ;;  %v2401_v3 = vpop.f32.mrb[20].mxu1  ;;  %v2473_v17 = vadd.f32 %v2469_v13, %v15450_v0  ;;  %v12822_v13 = vld [vmem:[%s18897_s2 + $0xd4] ss:$8 sps:$4 sm:$0xff]  }
 0x4c1   :  { %v2402_v19 = vadd.f32 %v2401_v3, %v2270_v15  ;;  %v2403_v45 = vpop.f32.mrb[21].mxu1  ;;  %v2480_v4 = vadd.f32 %v2476_v28, %v15448_v21  ;;  %v2500_v47 = vrot.slane %v2472_v60, 4  ;;  %v12808_v28 = vld [vmem:[%s18897_s2 + $0x90] ss:$8 sps:$4 sm:$0xff]   ;;  %v12811_v3 = vld [vmem:[%s18897_s2 + $0xa0] ss:$8 sps:$4 sm:$0xff]  }
 0x4c2   :  { %v2404_v34 = vadd.f32 %v2403_v45, %v2274_v31  ;;  %v2405_v49 = vpop.f32.mrb[22].mxu1  ;;  %v2481_v54 = vadd.f32 %v2477_v12, %v15452_v1  ;;  %v2501_v48 = vrot.slane %v2473_v17, 4  ;;  %v12813_v12 = vld [vmem:[%s18897_s2 + $0xa4] ss:$8 sps:$4 sm:$0xff]   ;;  %v12817_v45 = vld [vmem:[%s18897_s2 + $0xc0] ss:$8 sps:$4 sm:$0xff]  }
 0x4c3   :  { %v15459_v27 = vmax.f32 %v2402_v19, 0.0  ;;  %v2406_v10 = vadd.f32 %v2405_v49, %v2270_v15  ;;  %v2407_v2 = vpop.f32.mrb[23].mxu1  ;;  %v2508_v9 = vrot.slane %v2480_v4, 4  ;;  %v2504_v56 = vadd.f32 %v2500_v47, %v2472_v60  ;;  %v12819_v19 = vld [vmem:[%s18897_s2 + $0xc4] ss:$8 sps:$4 sm:$0xff]  }
 0x4c4   :  { %v15462_v33 = vmax.f32 %v2404_v34, 0.0  ;;  %v2408_v43 = vadd.f32 %v2407_v2, %v2274_v31  ;;  %v2509_v44 = vrot.slane %v2481_v54, 4  ;;  %v2505_v14 = vadd.f32 %v2501_v48, %v2473_v17  ;;  %v12820_v34 = vld [vmem:[%s18897_s2 + $0xd0] ss:$8 sps:$4 sm:$0xff]   ;;  %v12825_v49 = vld [vmem:[%s18897_s2 + $0xe4] ss:$8 sps:$4 sm:$0xff]  }
 0x4c5   :  { %v2484_v30 = vrot.slane %v15459_v27, 2  ;;  %v15466_v50 = vmax.f32 %v2406_v10, 0.0  ;;  %v2512_v8 = vadd.f32 %v2508_v9, %v2480_v4  ;;  %v12823_v4 = vld [vmem:[%s18897_s2 + $0xe0] ss:$8 sps:$4 sm:$0xff]   ;;  %v12828_v10 = vld [vmem:[%s18897_s2 + $0xf4] ss:$8 sps:$4 sm:$0xff]  }
 0x4c6   :  { %v2485_v32 = vrot.slane %v15462_v33, 2  ;;  %v15470_v46 = vmax.f32 %v2408_v43, 0.0  ;;  %v2513_v41 = vadd.f32 %v2509_v44, %v2481_v54  ;;  %v12826_v2 = vld [vmem:[%s18897_s2 + $0xf0] ss:$8 sps:$4 sm:$0xff]   ;;  %v12831_v54 = vld [vmem:[%s18898_s3 + $0x4] ss:$16 sps:$4 sm:$0xff]  }
 0x4c7   :  { %v2488_v52 = vadd.f32 %v2484_v30, %v15459_v27  ;;  %v2492_v5 = vrot.slane %v15466_v50, 2  ;;  %v2530_v7 = vadd.f32 %v2512_v8, %v2504_v56  ;;  %v2540_v43 = vld [vmem:[%s18896_s5 + $0x140] ss:$0 sm:$0xff]  ;;  %v12840_v48 = vld [vmem:[%s18898_s3 + $0x64] ss:$16 sps:$4 sm:$0xff]  }
 0x4c8   :  { %v2489_v53 = vadd.f32 %v2485_v32, %v15462_v33  ;;  %v2493_v26 = vrot.slane %v15470_v46, 2  ;;  %v2531_v15 = vadd.f32 %v2513_v41, %v2505_v14  ;;  %v12832_v47 = vld [vmem:[%s18898_s3 + $0x20] ss:$16 sps:$4 sm:$0xff]   ;;  %v12855_v14 = vld [vmem:[%s18898_s3 + $0x104] ss:$16 sps:$4 sm:$0xff]  }
 0x4c9   :  { %v2516_v62 = vrot.slane %v2488_v52, 4  ;;  %v2496_v20 = vadd.f32 %v2492_v5, %v15466_v50  ;;  %v12829_v5 = vld [vmem:[%s18898_s3] ss:$16 sps:$4 sm:$0xff]  }
 0x4ca   :  { %v2517_v55 = vrot.slane %v2489_v53, 4  ;;  %v2497_v59 = vadd.f32 %v2493_v26, %v15470_v46  ;;  %v12841_v8 = vld [vmem:[%s18898_s3 + $0x80] ss:$16 sps:$4 sm:$0xff]  }
 0x4cb   :  { %v2524_v22 = vrot.slane %v2496_v20, 4  ;;  %v2520_v18 = vadd.f32 %v2516_v62, %v2488_v52  ;;  %v12837_v62 = vld [vmem:[%s18898_s3 + $0x44] ss:$16 sps:$4 sm:$0xff]   ;;  %v12844_v41 = vld [vmem:[%s18898_s3 + $0xa0] ss:$16 sps:$4 sm:$0xff]  }
 0x4cc   :  { %v2525_v63 = vrot.slane %v2497_v59, 4  ;;  %v2521_v25 = vadd.f32 %v2517_v55, %v2489_v53  ;;  %v12834_v53 = vld [vmem:[%s18898_s3 + $0x24] ss:$16 sps:$4 sm:$0xff]   ;;  %v12838_v55 = vld [vmem:[%s18898_s3 + $0x60] ss:$16 sps:$4 sm:$0xff]  }
 0x4cd   :  { %v2528_v40 = vadd.f32 %v2524_v22, %v2496_v20  ;;  %v12835_v20 = vld [vmem:[%s18898_s3 + $0x40] ss:$16 sps:$4 sm:$0xff]   ;;  %v12846_v22 = vld [vmem:[%s18898_s3 + $0xa4] ss:$16 sps:$4 sm:$0xff]  }
 0x4ce   :  { %v2529_v51 = vadd.f32 %v2525_v63, %v2497_v59  ;;  %v12843_v59 = vld [vmem:[%s18898_s3 + $0x84] ss:$16 sps:$4 sm:$0xff]   ;;  %v12847_v56 = vld [vmem:[%s18898_s3 + $0xc0] ss:$16 sps:$4 sm:$0xff]  }
 0x4cf   :  { %v2532_v35 = vadd.f32 %v2528_v40, %v2520_v18  ;;  %v12849_v63 = vld [vmem:[%s18898_s3 + $0xc4] ss:$16 sps:$4 sm:$0xff]   ;;  %v12850_v40 = vld [vmem:[%s18898_s3 + $0xe0] ss:$16 sps:$4 sm:$0xff]  }
 0x4d0   :  { %v2533_v31 = vadd.f32 %v2529_v51, %v2521_v25  ;;  %v12852_v18 = vld [vmem:[%s18898_s3 + $0xe4] ss:$16 sps:$4 sm:$0xff]   ;;  %v12853_v25 = vld [vmem:[%s18898_s3 + $0x100] ss:$16 sps:$4 sm:$0xff]  }
 0x4d1   :  { %v2534_v36 = vadd.f32 %v2532_v35, %v2530_v7  ;;  %v12858_v51 = vld [vmem:[%s18898_s3 + $0x124] ss:$16 sps:$4 sm:$0xff]   ;;  %v12856_v7 = vld [vmem:[%s18898_s3 + $0x120] ss:$16 sps:$4 sm:$0xff]  }
 0x4d2   :  { %v2535_v11 = vadd.f32 %v2533_v31, %v2531_v15  ;;  %v12861_v35 = vld [vmem:[%s18898_s3 + $0x144] ss:$16 sps:$4 sm:$0xff]   ;;  %v12859_v15 = vld [vmem:[%s18898_s3 + $0x140] ss:$16 sps:$4 sm:$0xff]  }
 0x4d3   :  { %v2536_v42 = vmul.f32 0.0625, %v2534_v36  ;;  %v12864_v31 = vld [vmem:[%s18898_s3 + $0x164] ss:$16 sps:$4 sm:$0xff]   ;;  %v12862_v36 = vld [vmem:[%s18898_s3 + $0x160] ss:$16 sps:$4 sm:$0xff]  }
 0x4d4   :  { %v2537_v37 = vmul.f32 0.0625, %v2535_v11  ;;  %v12867_v11 = vld [vmem:[%s18898_s3 + $0x184] ss:$16 sps:$4 sm:$0xff]  }
 0x4d5   :  { %v2538_v38 = vpack.c.bf16 %v2536_v42, %v2536_v42  ;;  %v12865_v42 = vld [vmem:[%s18898_s3 + $0x180] ss:$16 sps:$4 sm:$0xff]  }
 0x4d6   :  { %v2539_v6 = vpack.c.bf16 %v2537_v37, %v2537_v37  ;;  %v12870_v37 = vld [vmem:[%s18898_s3 + $0x1a4] ss:$16 sps:$4 sm:$0xff]  }
 0x4d8   :  { %2669 = vmatprep.mubr.bf16.mxu1 %v2539_v6  ;;  %v12868_v6 = vld [vmem:[%s18898_s3 + $0x1a0] ss:$16 sps:$4 sm:$0xff]  }
 0x4d9   :  { %2670 = vmatmul.mubr.bf16.vlgmr.msra.gmra.mrb[24].mxu1 %v2538_v38  ;;  %v12871_v38 = vld [vmem:[%s18898_s3 + $0x1c0] ss:$16 sps:$4 sm:$0xff]  }
 0x4da   :  { %2773 = vmatpush1.bf16.msra.mxu1 %v12805_v57  ;;  %2804 = vmatprep.mubr.bf16.mxu1 %v13623_v29  ;;  %v12814_v29 = vld [vmem:[%s18897_s2 + $0xb0] ss:$8 sps:$4 sm:$0xff]   ;;  %v12873_v57 = vld [vmem:[%s18898_s3 + $0x1c4] ss:$16 sps:$4 sm:$0xff]  }
 0x4db   :  { %2774 = vmatprep.subr.bf16.mxu1 %v12810_v23  ;;  %v12876_v23 = vld [vmem:[%s18898_s3 + $0x1e4] ss:$16 sps:$4 sm:$0xff]  }
 0x4de   :  { %2775 = vmatpush1.bf16.msra.mxu1 %v12808_v28  ;;  %v12874_v28 = vld [vmem:[%s18898_s3 + $0x1e0] ss:$16 sps:$4 sm:$0xff]  }
 0x4df   :  { %2776 = vmatprep.subr.bf16.mxu1 %v12813_v12  ;;  %v12879_v12 = vld [vmem:[%s18898_s3 + $0xc] ss:$16 sps:$4 sm:$0xff]  }
 0x4e2   :  { %2777 = vmatpush1.bf16.msra.mxu1 %v12811_v3  ;;  %v11036_v3 = vld [vmem:[%s18896_s5 + $0x180] ss:$8 sm:$0x3] }
 0x4e3   :  { %2778 = vmatprep.subr.bf16.mxu1 %v12816_v16  ;;  %v2685_v16 = vrot.slane %v11036_v3, %v15436_v24 }
 0x4e6   :  { %2779 = vmatpush1.bf16.msra.mxu1 %v12814_v29  ;;  %v2689_v29 = vrot.slane %v11036_v3, %v15442_v61  ;;  %v12904_v3 = vld [vmem:[%s18898_s3 + $0x128] ss:$16 sps:$4 sm:$0xff]  }
 0x4e7   :  { %2780 = vmatprep.subr.bf16.mxu1 %v12819_v19 }
 0x4ea   :  { %2781 = vmatpush1.bf16.msra.mxu1 %v12817_v45 }
 0x4eb   :  { %2782 = vmatprep.subr.bf16.mxu1 %v12822_v13 }
 0x4ee   :  { %2783 = vmatpush1.bf16.msra.mxu1 %v12820_v34 }
 0x4ef   :  { %2784 = vmatprep.subr.bf16.mxu1 %v12825_v49 }
 0x4f2   :  { %2785 = vmatpush1.bf16.msra.mxu1 %v12823_v4 }
 0x4f3   :  { %2786 = vmatprep.subr.bf16.mxu1 %v12828_v10 }
 0x4f6   :  { %2787 = vmatpush1.bf16.msra.mxu1 %v12826_v2 }
 0x4f7   :  { %3268 = vmatprep.subr.bf16.mxu1 %v12831_v54 }
 0x5ac   :  { %v12267_v60 = vpop.f32.mrb[24].mxu1 }
 0x5ad   :  { %v12268_v30 = vpop.f32.mrb[25].mxu1 }
 0x5ae   :  { %v12269_v17 = vadd.f32 %v12268_v30, %v12267_v60  ;;  %v12270_v32 = vpop.f32.mrb[26].mxu1 }
 0x5af   :  { %v12271_v9 = vpop.f32.mrb[27].mxu1 }
 0x5b0   :  { %v2672_v52 = vadd.f32 %v12269_v17, %v2540_v43 }
 0x5b2   :  { %v2677_v44 = vmax.f32 %v2672_v52, 0.0 }
 0x5b4   :  { %v2678_v26 = vpack.c.bf16 %v2677_v44, %v2677_v44 }
 0x5b6   :  { %2805 = vmatmul.mubr.bf16.vlgmr.msra.gmra.mrb[28].mxu1 %v2678_v26 }
 0x5b7   :  { %3269 = vmatpush1.bf16.msra.mxu1 %v12829_v5 }
 0x5b8   :  { %3270 = vmatprep.subr.bf16.mxu1 %v12834_v53 }
 0x5bb   :  { %3271 = vmatpush1.bf16.msra.mxu1 %v12832_v47 }
 0x5bc   :  { %3272 = vmatprep.subr.bf16.mxu1 %v12837_v62 }
 0x5bf   :  { %3273 = vmatpush1.bf16.msra.mxu1 %v12835_v20 }
 0x5c0   :  { %3274 = vmatprep.subr.bf16.mxu1 %v12840_v48 }
 0x5c3   :  { %3275 = vmatpush1.bf16.msra.mxu1 %v12838_v55 }
 0x5c4   :  { %3276 = vmatprep.subr.bf16.mxu1 %v12843_v59 }
 0x5c7   :  { %3277 = vmatpush1.bf16.msra.mxu1 %v12841_v8 }
 0x5c8   :  { %3278 = vmatprep.subr.bf16.mxu1 %v12846_v22 }
 0x5cb   :  { %3279 = vmatpush1.bf16.msra.mxu1 %v12844_v41 }
 0x5cc   :  { %3280 = vmatprep.subr.bf16.mxu1 %v12849_v63 }
 0x5cf   :  { %3281 = vmatpush1.bf16.msra.mxu1 %v12847_v56 }
 0x5d0   :  { %3282 = vmatprep.subr.bf16.mxu1 %v12852_v18 }
 0x5d3   :  { %3283 = vmatpush1.bf16.msra.mxu1 %v12850_v40 }
 0x5d4   :  { %3284 = vmatprep.subr.bf16.mxu1 %v12855_v14 }
 0x5d7   :  { %3285 = vmatpush1.bf16.msra.mxu1 %v12853_v25 }
 0x5d8   :  { %3286 = vmatprep.subr.bf16.mxu1 %v12858_v51 }
 0x5db   :  { %3287 = vmatpush1.bf16.msra.mxu1 %v12856_v7 }
 0x5dc   :  { %3288 = vmatprep.subr.bf16.mxu1 %v12861_v35  ;;  %v12888_v35 = vld [vmem:[%s18898_s3 + $0x6c] ss:$16 sps:$4 sm:$0xff]  }
 0x5df   :  { %3289 = vmatpush1.bf16.msra.mxu1 %v12859_v15  ;;  %v12886_v15 = vld [vmem:[%s18898_s3 + $0x68] ss:$16 sps:$4 sm:$0xff]  }
 0x5e0   :  { %3290 = vmatprep.subr.bf16.mxu1 %v12864_v31  ;;  %v12891_v31 = vld [vmem:[%s18898_s3 + $0x8c] ss:$16 sps:$4 sm:$0xff]  }
 0x5e3   :  { %3291 = vmatpush1.bf16.msra.mxu1 %v12862_v36  ;;  %v12889_v36 = vld [vmem:[%s18898_s3 + $0x88] ss:$16 sps:$4 sm:$0xff]  }
 0x5e4   :  { %3292 = vmatprep.subr.bf16.mxu1 %v12867_v11  ;;  %v12894_v11 = vld [vmem:[%s18898_s3 + $0xac] ss:$16 sps:$4 sm:$0xff]  }
 0x5e7   :  { %3293 = vmatpush1.bf16.msra.mxu1 %v12865_v42  ;;  %v12892_v42 = vld [vmem:[%s18898_s3 + $0xa8] ss:$16 sps:$4 sm:$0xff]  }
 0x5e8   :  { %3294 = vmatprep.subr.bf16.mxu1 %v12870_v37  ;;  %v12897_v37 = vld [vmem:[%s18898_s3 + $0xcc] ss:$16 sps:$4 sm:$0xff]  }
 0x5eb   :  { %3295 = vmatpush1.bf16.msra.mxu1 %v12868_v6  ;;  %v12895_v6 = vld [vmem:[%s18898_s3 + $0xc8] ss:$16 sps:$4 sm:$0xff]  }
 0x5ec   :  { %3296 = vmatprep.subr.bf16.mxu1 %v12873_v57  ;;  %v12900_v57 = vld [vmem:[%s18898_s3 + $0xec] ss:$16 sps:$4 sm:$0xff]  }
 0x5ef   :  { %3297 = vmatpush1.bf16.msra.mxu1 %v12871_v38  ;;  %v12898_v38 = vld [vmem:[%s18898_s3 + $0xe8] ss:$16 sps:$4 sm:$0xff]  }
 0x5f0   :  { %3298 = vmatprep.subr.bf16.mxu1 %v12876_v23  ;;  %v12903_v23 = vld [vmem:[%s18898_s3 + $0x10c] ss:$16 sps:$4 sm:$0xff]  }
 0x5f3   :  { %3299 = vmatpush1.bf16.msra.mxu1 %v12874_v28  ;;  %v12901_v28 = vld [vmem:[%s18898_s3 + $0x108] ss:$16 sps:$4 sm:$0xff]  }
 0x5f4   :  { %3309 = vmatprep.subr.bf16.mxu1 %v12879_v12  ;;  %v12906_v12 = vld [vmem:[%s18898_s3 + $0x12c] ss:$16 sps:$4 sm:$0xff]  }
 0x689   :  { %v2806_v19 = vpop.f32.mrb[28].mxu1 }
 0x68a   :  { %v2807_v45 = vadd.f32 %v2806_v19, %v2685_v16  ;;  %v2808_v13 = vpop.f32.mrb[29].mxu1  ;;  %v12909_v16 = vld [vmem:[%s18898_s3 + $0x14c] ss:$16 sps:$4 sm:$0xff]  }
 0x68b   :  { %v2809_v34 = vadd.f32 %v2808_v13, %v2689_v29  ;;  %v2810_v49 = vpop.f32.mrb[30].mxu1  ;;  %v12907_v29 = vld [vmem:[%s18898_s3 + $0x148] ss:$16 sps:$4 sm:$0xff]   ;;  %v12912_v19 = vld [vmem:[%s18898_s3 + $0x16c] ss:$16 sps:$4 sm:$0xff]  }
 0x68c   :  { %v11053_v4 = vmul.f32 -1.442695, %v2807_v45  ;;  %v2811_v10 = vpop.f32.mrb[31].mxu1  ;;  %v12910_v45 = vld [vmem:[%s18898_s3 + $0x168] ss:$16 sps:$4 sm:$0xff]  }
 0x68d   :  { %v11054_v2 = vmul.f32 -1.442695, %v2809_v34  ;;  %v12915_v13 = vld [vmem:[%s18898_s3 + $0x18c] ss:$16 sps:$4 sm:$0xff]   ;;  %v12913_v34 = vld [vmem:[%s18898_s3 + $0x188] ss:$16 sps:$4 sm:$0xff]  }
 0x68e   :  { %13565 = vpow2.f32 %v11053_v4  ;;  %v12918_v49 = vld [vmem:[%s18898_s3 + $0x1ac] ss:$16 sps:$4 sm:$0xff]   ;;  %v12916_v4 = vld [vmem:[%s18898_s3 + $0x1a8] ss:$16 sps:$4 sm:$0xff]  }
 0x68f   :  { %13567 = vpow2.f32 %v11054_v2  ;;  %v12921_v10 = vld [vmem:[%s18898_s3 + $0x1cc] ss:$16 sps:$4 sm:$0xff]   ;;  %v12919_v2 = vld [vmem:[%s18898_s3 + $0x1c8] ss:$16 sps:$4 sm:$0xff]  }
 0x698   :  { %v13566_v54 = vpop.eup %13565 }
 0x699   :  { %v13568_v43 = vpop.eup %13567  ;;  %v2819_v60 = vadd.f32 1.0, %v13566_v54  ;;  %v12924_v54 = vld [vmem:[%s18898_s3 + $0x1ec] ss:$16 sps:$4 sm:$0xff]  }
 0x69a   :  { %v2820_v30 = vadd.f32 1.0, %v13568_v43  ;;  %v12922_v43 = vld [vmem:[%s18898_s3 + $0x1e8] ss:$16 sps:$4 sm:$0xff]  }
 0x69b   :  { %13569 = vrcp.f32 %v2819_v60  ;;  %v12927_v60 = vld [vmem:[%s18897_s2 + $0x104] ss:$8 sps:$4 sm:$0xff]  }
 0x69c   :  { %13571 = vrcp.f32 %v2820_v30  ;;  %v12925_v30 = vld [vmem:[%s18897_s2 + $0x100] ss:$8 sps:$4 sm:$0xff]  }
 0x6a5   :  { %v13570_v17 = vpop.eup %13569 }
 0x6a6   :  { %v13572_v32 = vpop.eup %13571  ;;  %v2827_v9 = vrot.slane %v13570_v17, 6 }
 0x6a7   :  { %v2828_v52 = vrot.slane %v13572_v32, 6 }
 0x6a8   :  { %v2832_v5 = vsel %vm2831_vm0, %v13570_v17, %v2827_v9  ;;  %v12930_v17 = vld [vmem:[%s18897_s2 + $0x114] ss:$8 sps:$4 sm:$0xff]   ;;  %v12933_v9 = vld [vmem:[%s18897_s2 + $0x124] ss:$8 sps:$4 sm:$0xff]  }
 0x6a9   :  { %v2833_v44 = vsel %vm2831_vm0, %v13572_v32, %v2828_v52  ;;  %v2836_v53 = vrot.slane %v2832_v5, 4  ;;  %v12928_v32 = vld [vmem:[%s18897_s2 + $0x110] ss:$8 sps:$4 sm:$0xff]   ;;  %v12931_v52 = vld [vmem:[%s18897_s2 + $0x120] ss:$8 sps:$4 sm:$0xff]  }
 0x6aa   :  { %v2837_v26 = vrot.slane %v2833_v44, 4 }
 0x6ab   :  { %v2841_v47 = vsel %vm2840_vm1, %v2832_v5, %v2836_v53  ;;  %v12936_v5 = vld [vmem:[%s18897_s2 + $0x134] ss:$8 sps:$4 sm:$0xff]   ;;  %v12939_v53 = vld [vmem:[%s18897_s2 + $0x144] ss:$8 sps:$4 sm:$0xff]  }
 0x6ac   :  { %v2842_v62 = vsel %vm2840_vm1, %v2833_v44, %v2837_v26  ;;  %v2843_v20 = vmul.f32 %v2841_v47, %v15446_v58  ;;  %v2845_v48 = vmul.f32 %v2841_v47, %v15448_v21  ;;  %v2847_v55 = vmul.f32 %v2841_v47, %v15459_v27  ;;  %v12882_v27 = vld [vmem:[%s18898_s3 + $0x2c] ss:$16 sps:$4 sm:$0xff]   ;;  %v12934_v44 = vld [vmem:[%s18897_s2 + $0x130] ss:$8 sps:$4 sm:$0xff]   ;;  %v12937_v26 = vld [vmem:[%s18897_s2 + $0x140] ss:$8 sps:$4 sm:$0xff]  }
 0x6ad   :  { %v2844_v59 = vmul.f32 %v2842_v62, %v15450_v0  ;;  %v2846_v8 = vmul.f32 %v2842_v62, %v15452_v1  ;;  %v2848_v22 = vmul.f32 %v2842_v62, %v15462_v33  ;;  %v2850_v41 = vmul.f32 %v2842_v62, %v15470_v46  ;;  %v12877_v0 = vld [vmem:[%s18898_s3 + $0x8] ss:$16 sps:$4 sm:$0xff]  }
 0x6ae   :  { %v2849_v63 = vmul.f32 %v2841_v47, %v15466_v50  ;;  %v2851_v56 = vadd.f32 %v2845_v48, %v2843_v20  ;;  %v12880_v33 = vld [vmem:[%s18898_s3 + $0x28] ss:$16 sps:$4 sm:$0xff]   ;;  %v12885_v50 = vld [vmem:[%s18898_s3 + $0x4c] ss:$16 sps:$4 sm:$0xff]  }
 0x6af   :  { %v2852_v18 = vadd.f32 %v2846_v8, %v2844_v59  ;;  %v2854_v40 = vadd.f32 %v2850_v41, %v2848_v22  ;;  %v12883_v46 = vld [vmem:[%s18898_s3 + $0x48] ss:$16 sps:$4 sm:$0xff]   ;;  %v12942_v47 = vld [vmem:[%s18897_s2 + $0x154] ss:$8 sps:$4 sm:$0xff]   ;;  %v12945_v20 = vld [vmem:[%s18897_s2 + $0x164] ss:$8 sps:$4 sm:$0xff]  }
 0x6b0   :  { %v2853_v14 = vadd.f32 %v2849_v63, %v2847_v55  ;;  %v12940_v62 = vld [vmem:[%s18897_s2 + $0x150] ss:$8 sps:$4 sm:$0xff]   ;;  %v12943_v48 = vld [vmem:[%s18897_s2 + $0x160] ss:$8 sps:$4 sm:$0xff]   ;;  %v12948_v55 = vld [vmem:[%s18897_s2 + $0x174] ss:$8 sps:$4 sm:$0xff]  }
 0x6b1   :  { %v2856_v25 = vadd.f32 %v2854_v40, %v2852_v18  ;;  %v12946_v59 = vld [vmem:[%s18897_s2 + $0x170] ss:$8 sps:$4 sm:$0xff]   ;;  %v12951_v8 = vld [vmem:[%s18897_s2 + $0x184] ss:$8 sps:$4 sm:$0xff]   ;;  %v12949_v22 = vld [vmem:[%s18897_s2 + $0x180] ss:$8 sps:$4 sm:$0xff]  }
 0x6b2   :  { %v2855_v58 = vadd.f32 %v2853_v14, %v2851_v56  ;;  %v12954_v41 = vld [vmem:[%s18897_s2 + $0x194] ss:$8 sps:$4 sm:$0xff]   ;;  %v12952_v63 = vld [vmem:[%s18897_s2 + $0x190] ss:$8 sps:$4 sm:$0xff]   ;;  %v12957_v56 = vld [vmem:[%s18897_s2 + $0x1a4] ss:$8 sps:$4 sm:$0xff]  }
 0x6b3   :  { %v2858_v51 = vmul.f32 0.25, %v2856_v25  ;;  %v12955_v18 = vld [vmem:[%s18897_s2 + $0x1a0] ss:$8 sps:$4 sm:$0xff]   ;;  %v12960_v40 = vld [vmem:[%s18897_s2 + $0x1b4] ss:$8 sps:$4 sm:$0xff]  }
 0x6b4   :  { %v2857_v21 = vmul.f32 0.25, %v2855_v58  ;;  %v12958_v14 = vld [vmem:[%s18897_s2 + $0x1b0] ss:$8 sps:$4 sm:$0xff]   ;;  %v12963_v25 = vld [vmem:[%s18897_s2 + $0x1c4] ss:$8 sps:$4 sm:$0xff]  }
 0x6b5   :  { %v2924_v7 = vpack.c.bf16 %v2858_v51, %v2858_v51  ;;  %v12961_v58 = vld [vmem:[%s18897_s2 + $0x1c0] ss:$8 sps:$4 sm:$0xff]   ;;  %v12966_v51 = vld [vmem:[%s18897_s2 + $0x1d4] ss:$8 sps:$4 sm:$0xff]  }
 0x6b6   :  { %v15646_v1 = vpack.c.bf16 %v2857_v21, %v2857_v21  ;;  %v12964_v21 = vld [vmem:[%s18897_s2 + $0x1d0] ss:$8 sps:$4 sm:$0xff]  }
 0x6b7   :  { %3300 = vmatprep.mubr.bf16.mxu1 %v2924_v7 }
 0x6b8   :  { %3301 = vmatmul.mubr.bf16.vlgmr.msra.gmra.mrb[32].mxu1 %v15646_v1 }
 0x6b9   :  { %3310 = vmatpush1.bf16.msra.mxu1 %v12877_v0  ;;  %3341 = vmatprep.mubr.bf16.mxu1 %v2924_v7  ;;  %v12969_v7 = vld [vmem:[%s18897_s2 + $0x1e4] ss:$8 sps:$4 sm:$0xff]   ;;  %v12967_v0 = vld [vmem:[%s18897_s2 + $0x1e0] ss:$8 sps:$4 sm:$0xff]  }
 0x6ba   :  { %3311 = vmatprep.subr.bf16.mxu1 %v12882_v27  ;;  %v12970_v27 = vld [vmem:[%s18897_s2 + $0x1f0] ss:$8 sps:$4 sm:$0xff]  }
 0x6bd   :  { %3312 = vmatpush1.bf16.msra.mxu1 %v12880_v33  ;;  %v12975_v33 = vld [vmem:[%s18897_s2 + $0x204] ss:$8 sps:$4 sm:$0xff]  }
 0x6be   :  { %3313 = vmatprep.subr.bf16.mxu1 %v12885_v50  ;;  %v4462_v50 = vld [vmem:[%s18899_s4] sm:$0xff] }
 0x6c1   :  { %3314 = vmatpush1.bf16.msra.mxu1 %v12883_v46  ;;  %v4466_v46 = vld [vmem:[%s18899_s4 + $0x20] sm:$0xff] }
 0x6c2   :  { %3315 = vmatprep.subr.bf16.mxu1 %v12888_v35  ;;  %v11256_v35 = vcombine.low %v4462_v50, %v4466_v46 }
 0x6c5   :  { %3316 = vmatpush1.bf16.msra.mxu1 %v12886_v15  ;;  %v11257_v15 = vcombine.high %v4462_v50, %v4466_v46  ;;  %v12982_v50 = vld [vmem:[%s18897_s2 + $0x230] ss:$8 sps:$4 sm:$0xff]   ;;  %v12987_v46 = vld [vmem:[%s18897_s2 + $0x244] ss:$8 sps:$4 sm:$0xff]  }
 0x6c6   :  { %3317 = vmatprep.subr.bf16.mxu1 %v12891_v31  ;;  %v4470_v31 = vld [vmem:[%s18899_s4 + $0x40] sm:$0xff] }
 0x6c7   :  { %6047 = vmatprep.subr.bf16.mxu0 %v11257_v15  ;;  %v12990_v15 = vld [vmem:[%s18897_s2 + $0x254] ss:$8 sps:$4 sm:$0xff]  }
 0x6c8   :  { %6048 = vmatpush1.bf16.msra.mxu0 %v11256_v35  ;;  %v12985_v35 = vld [vmem:[%s18897_s2 + $0x240] ss:$8 sps:$4 sm:$0xff]  }
 0x6c9   :  { %3318 = vmatpush1.bf16.msra.mxu1 %v12889_v36  ;;  %v4474_v36 = vld [vmem:[%s18899_s4 + $0x60] sm:$0xff] }
 0x6ca   :  { %3319 = vmatprep.subr.bf16.mxu1 %v12894_v11  ;;  %v4478_v11 = vld [vmem:[%s18899_s4 + $0x80] sm:$0xff] }
 0x6cd   :  { %3320 = vmatpush1.bf16.msra.mxu1 %v12892_v42  ;;  %v11264_v42 = vcombine.low %v4470_v31, %v4474_v36 }
 0x6ce   :  { %3321 = vmatprep.subr.bf16.mxu1 %v12897_v37  ;;  %v11265_v37 = vcombine.high %v4470_v31, %v4474_v36  ;;  %v12988_v31 = vld [vmem:[%s18897_s2 + $0x250] ss:$8 sps:$4 sm:$0xff]   ;;  %v12993_v36 = vld [vmem:[%s18897_s2 + $0x264] ss:$8 sps:$4 sm:$0xff]  }
 0x6d0   :  { %6049 = vmatprep.subr.bf16.mxu0 %v11265_v37  ;;  %v12994_v37 = vld [vmem:[%s18897_s2 + $0x270] ss:$8 sps:$4 sm:$0xff]  }
 0x6d1   :  { %3322 = vmatpush1.bf16.msra.mxu1 %v12895_v6  ;;  %v4482_v6 = vld [vmem:[%s18899_s4 + $0xa0] sm:$0xff]  ;;  %6050 = vmatpush1.bf16.msra.mxu0 %v11264_v42  ;;  %v12996_v42 = vld [vmem:[%s18897_s2 + $0x274] ss:$8 sps:$4 sm:$0xff]  }
 0x6d2   :  { %3323 = vmatprep.subr.bf16.mxu1 %v12900_v57  ;;  %v11273_v57 = vcombine.high %v4478_v11, %v4482_v6 }
 0x6d4   :  { %6051 = vmatprep.subr.bf16.mxu0 %v11273_v57  ;;  %v12997_v57 = vld [vmem:[%s18897_s2 + $0x280] ss:$8 sps:$4 sm:$0xff]  }
 0x6d5   :  { %3324 = vmatpush1.bf16.msra.mxu1 %v12898_v38  ;;  %v4486_v38 = vld [vmem:[%s18899_s4 + $0xc0] sm:$0xff] }
 0x6d6   :  { %3325 = vmatprep.subr.bf16.mxu1 %v12903_v23  ;;  %v4490_v23 = vld [vmem:[%s18899_s4 + $0xe0] sm:$0xff] }
 0x6d9   :  { %3326 = vmatpush1.bf16.msra.mxu1 %v12901_v28  ;;  %v11272_v28 = vcombine.low %v4478_v11, %v4482_v6  ;;  %v12991_v11 = vld [vmem:[%s18897_s2 + $0x260] ss:$8 sps:$4 sm:$0xff]   ;;  %v12999_v6 = vld [vmem:[%s18897_s2 + $0x284] ss:$8 sps:$4 sm:$0xff]  }
 0x6da   :  { %3327 = vmatprep.subr.bf16.mxu1 %v12906_v12  ;;  %v11281_v12 = vcombine.high %v4486_v38, %v4490_v23 }
 0x6db   :  { %6052 = vmatpush1.bf16.msra.mxu0 %v11272_v28  ;;  %v13005_v28 = vld [vmem:[%s18897_s2 + $0x2a4] ss:$8 sps:$4 sm:$0xff]  }
 0x6dc   :  { %6053 = vmatprep.subr.bf16.mxu0 %v11281_v12  ;;  %v13003_v12 = vld [vmem:[%s18897_s2 + $0x2a0] ss:$8 sps:$4 sm:$0xff]  }
 0x6dd   :  { %3328 = vmatpush1.bf16.msra.mxu1 %v12904_v3  ;;  %v4494_v3 = vld [vmem:[%s18899_s4 + $0x100] sm:$0xff] }
 0x6de   :  { %3329 = vmatprep.subr.bf16.mxu1 %v12909_v16  ;;  %v4498_v16 = vld [vmem:[%s18899_s4 + $0x120] sm:$0xff] }
 0x6e1   :  { %3330 = vmatpush1.bf16.msra.mxu1 %v12907_v29  ;;  %v11280_v29 = vcombine.low %v4486_v38, %v4490_v23  ;;  %v13002_v38 = vld [vmem:[%s18897_s2 + $0x294] ss:$8 sps:$4 sm:$0xff]   ;;  %v13000_v23 = vld [vmem:[%s18897_s2 + $0x290] ss:$8 sps:$4 sm:$0xff]  }
 0x6e2   :  { %3331 = vmatprep.subr.bf16.mxu1 %v12912_v19  ;;  %v11289_v19 = vcombine.high %v4494_v3, %v4498_v16 }
 0x6e3   :  { %6054 = vmatpush1.bf16.msra.mxu0 %v11280_v29  ;;  %v15974_v29 = vsub.s32 3, %v15433_v39 }
 0x6e4   :  { %6055 = vmatprep.subr.bf16.mxu0 %v11289_v19  ;;  %v13006_v19 = vld [vmem:[%s18897_s2 + $0x2b0] ss:$8 sps:$4 sm:$0xff]  }
 0x6e5   :  { %3332 = vmatpush1.bf16.msra.mxu1 %v12910_v45  ;;  %v4502_v45 = vld [vmem:[%s18899_s4 + $0x140] sm:$0xff] }
 0x6e6   :  { %3333 = vmatprep.subr.bf16.mxu1 %v12915_v13  ;;  %v4506_v13 = vld [vmem:[%s18899_s4 + $0x160] sm:$0xff] }
 0x6e9   :  { %3334 = vmatpush1.bf16.msra.mxu1 %v12913_v34  ;;  %v11288_v34 = vcombine.low %v4494_v3, %v4498_v16  ;;  %v13008_v3 = vld [vmem:[%s18897_s2 + $0x2b4] ss:$8 sps:$4 sm:$0xff]   ;;  %v15971_v16 = vsub.s32 2, %v15433_v39 }
 0x6ea   :  { %3335 = vmatprep.subr.bf16.mxu1 %v12918_v49  ;;  %v11297_v49 = vcombine.high %v4502_v45, %v4506_v13 }
 0x6eb   :  { %6056 = vmatpush1.bf16.msra.mxu0 %v11288_v34 }
 0x6ec   :  { %6057 = vmatprep.subr.bf16.mxu0 %v11297_v49 }
 0x6ed   :  { %3336 = vmatpush1.bf16.msra.mxu1 %v12916_v4  ;;  %v4510_v4 = vld [vmem:[%s18899_s4 + $0x180] sm:$0xff] }
 0x6ee   :  { %3337 = vmatprep.subr.bf16.mxu1 %v12921_v10  ;;  %v4514_v10 = vld [vmem:[%s18899_s4 + $0x1a0] sm:$0xff] }
 0x6f1   :  { %3338 = vmatpush1.bf16.msra.mxu1 %v12919_v2  ;;  %v11296_v2 = vcombine.low %v4502_v45, %v4506_v13  ;;  %v13011_v13 = vld [vmem:[%s18897_s2 + $0x2c4] ss:$8 sps:$4 sm:$0xff]  }
 0x6f2   :  { %3339 = vmatprep.subr.bf16.mxu1 %v12924_v54  ;;  %v11305_v54 = vcombine.high %v4510_v4, %v4514_v10 }
 0x6f3   :  { %6058 = vmatpush1.bf16.msra.mxu0 %v11296_v2 }
 0x6f4   :  { %6059 = vmatprep.subr.bf16.mxu0 %v11305_v54  ;;  %v13014_v54 = vld [vmem:[%s18897_s2 + $0x2d4] ss:$8 sps:$4 sm:$0xff]  }
 0x6f5   :  { %3340 = vmatpush1.bf16.msra.mxu1 %v12922_v43  ;;  %v11304_v43 = vcombine.low %v4510_v4, %v4514_v10  ;;  %v13009_v4 = vld [vmem:[%s18897_s2 + $0x2c0] ss:$8 sps:$4 sm:$0xff]  }
 0x6f6   :  { %3855 = vmatprep.subr.bf16.mxu1 %v12927_v60  ;;  %v4518_v60 = vld [vmem:[%s18899_s4 + $0x1c0] sm:$0xff] }
 0x6f7   :  { %6060 = vmatpush1.bf16.msra.mxu0 %v11304_v43 }
 0x6f8   :  { %3342 = vmatmul.mubr.bf16.vlgmr.msra.gmra.mrb[36].mxu1 %v15646_v1  ;;  %v12972_v1 = vld [vmem:[%s18897_s2 + $0x1f4] ss:$8 sps:$4 sm:$0xff]  }
 0x6f9   :  { %3856 = vmatpush1.bf16.msra.mxu1 %v12925_v30  ;;  %v4522_v30 = vld [vmem:[%s18899_s4 + $0x1e0] sm:$0xff] }
 0x6fa   :  { %3857 = vmatprep.subr.bf16.mxu1 %v12930_v17  ;;  %v11312_v17 = vcombine.low %v4518_v60, %v4522_v30 }
 0x6fd   :  { %3858 = vmatpush1.bf16.msra.mxu1 %v12928_v32  ;;  %v11313_v32 = vcombine.high %v4518_v60, %v4522_v30 }
 0x6fe   :  { %3859 = vmatprep.subr.bf16.mxu1 %v12933_v9  ;;  %v15890_v9 = vld [vmem:[%s18896_s5 + $0xc0] ss:$8 sm:$0xf] }
 0x6ff   :  { %6061 = vmatprep.subr.bf16.mxu0 %v11313_v32  ;;  %v2939_v45 = vrot.slane %v15890_v9, %v15971_v16  ;;  %v2943_v34 = vrot.slane %v15890_v9, %v15974_v29 }
 0x700   :  { %6062 = vmatpush1.bf16.msra.mxu0 %v11312_v17 }
 0x701   :  { %3860 = vmatpush1.bf16.msra.mxu1 %v12931_v52  ;;  %v2931_v52 = vrot.slane %v15890_v9, %v15436_v24 }
 0x702   :  { %3861 = vmatprep.subr.bf16.mxu1 %v12936_v5  ;;  %v2935_v5 = vrot.slane %v15890_v9, %v15442_v61  ;;  %v13012_v9 = vld [vmem:[%s18897_s2 + $0x2d0] ss:$8 sps:$4 sm:$0xff]  }
 0x705   :  { %3862 = vmatpush1.bf16.msra.mxu1 %v12934_v44 }
 0x706   :  { %3863 = vmatprep.subr.bf16.mxu1 %v12939_v53 }
 0x709   :  { %3864 = vmatpush1.bf16.msra.mxu1 %v12937_v26 }
 0x70a   :  { %3865 = vmatprep.subr.bf16.mxu1 %v12942_v47 }
 0x70d   :  { %3866 = vmatpush1.bf16.msra.mxu1 %v12940_v62 }
 0x70e   :  { %3867 = vmatprep.subr.bf16.mxu1 %v12945_v20 }
 0x711   :  { %3868 = vmatpush1.bf16.msra.mxu1 %v12943_v48 }
 0x712   :  { %3869 = vmatprep.subr.bf16.mxu1 %v12948_v55 }
 0x715   :  { %3870 = vmatpush1.bf16.msra.mxu1 %v12946_v59 }
 0x716   :  { %3871 = vmatprep.subr.bf16.mxu1 %v12951_v8 }
 0x719   :  { %3872 = vmatpush1.bf16.msra.mxu1 %v12949_v22 }
 0x71a   :  { %3873 = vmatprep.subr.bf16.mxu1 %v12954_v41 }
 0x71d   :  { %3874 = vmatpush1.bf16.msra.mxu1 %v12952_v63 }
 0x71e   :  { %3875 = vmatprep.subr.bf16.mxu1 %v12957_v56 }
 0x721   :  { %3876 = vmatpush1.bf16.msra.mxu1 %v12955_v18 }
 0x722   :  { %3877 = vmatprep.subr.bf16.mxu1 %v12960_v40 }
 0x725   :  { %3878 = vmatpush1.bf16.msra.mxu1 %v12958_v14 }
 0x726   :  { %3879 = vmatprep.subr.bf16.mxu1 %v12963_v25 }
 0x729   :  { %3880 = vmatpush1.bf16.msra.mxu1 %v12961_v58 }
 0x72a   :  { %3881 = vmatprep.subr.bf16.mxu1 %v12966_v51  ;;  %v12973_v51 = vld [vmem:[%s18897_s2 + $0x200] ss:$8 sps:$4 sm:$0xff]  }
 0x72d   :  { %3882 = vmatpush1.bf16.msra.mxu1 %v12964_v21 }
 0x72e   :  { %3883 = vmatprep.subr.bf16.mxu1 %v12969_v7  ;;  %v12978_v7 = vld [vmem:[%s18897_s2 + $0x214] ss:$8 sps:$4 sm:$0xff]  }
 0x731   :  { %3884 = vmatpush1.bf16.msra.mxu1 %v12967_v0  ;;  %v12976_v0 = vld [vmem:[%s18897_s2 + $0x210] ss:$8 sps:$4 sm:$0xff]  }
 0x732   :  { %3885 = vmatprep.subr.bf16.mxu1 %v12972_v1  ;;  %v12981_v1 = vld [vmem:[%s18897_s2 + $0x224] ss:$8 sps:$4 sm:$0xff]  }
 0x735   :  { %3886 = vmatpush1.bf16.msra.mxu1 %v12970_v27  ;;  %v12979_v27 = vld [vmem:[%s18897_s2 + $0x220] ss:$8 sps:$4 sm:$0xff]  }
 0x736   :  { %3896 = vmatprep.subr.bf16.mxu1 %v12975_v33  ;;  %v12984_v33 = vld [vmem:[%s18897_s2 + $0x234] ss:$8 sps:$4 sm:$0xff]  }
 0x78b   :  { %v3302_v44 = vpop.f32.mrb[32].mxu1 }
 0x78c   :  { %v3303_v53 = vadd.f32 %v3302_v44, %v2931_v52  ;;  %v3304_v26 = vpop.f32.mrb[33].mxu1 }
 0x78d   :  { %v3305_v47 = vadd.f32 %v3304_v26, %v2935_v5  ;;  %v3306_v62 = vpop.f32.mrb[34].mxu1  ;;  %v13017_v5 = vld [vmem:[%s18897_s2 + $0x2e4] ss:$8 sps:$4 sm:$0xff]  }
 0x78e   :  { %v15896_v20 = vmax.f32 %v3303_v53, 0.0  ;;  %v3307_v48 = vpop.f32.mrb[35].mxu1 }
 0x78f   :  { %v15898_v55 = vmax.f32 %v3305_v47, 0.0  ;;  %v13015_v47 = vld [vmem:[%s18897_s2 + $0x2e0] ss:$8 sps:$4 sm:$0xff]   ;;  %v13020_v48 = vld [vmem:[%s18897_s2 + $0x2f4] ss:$8 sps:$4 sm:$0xff]  }
 0x790   :  { %v3486_v59 = vrot.slane %v15896_v20, 2 }
 0x791   :  { %v3487_v8 = vrot.slane %v15898_v55, 2 }
 0x792   :  { %v3494_v22 = vadd.f32 %v3486_v59, %v15896_v20 }
 0x793   :  { %v3495_v41 = vadd.f32 %v3487_v8, %v15898_v55 }
 0x794   :  { %v3502_v63 = vrot.slane %v3494_v22, 4 }
 0x795   :  { %v3503_v56 = vrot.slane %v3495_v41, 4 }
 0x796   :  { %v3510_v18 = vadd.f32 %v3502_v63, %v3494_v22  ;;  %v13018_v22 = vld [vmem:[%s18897_s2 + $0x2f0] ss:$8 sps:$4 sm:$0xff]  }
 0x797   :  { %v3511_v40 = vadd.f32 %v3503_v56, %v3495_v41  ;;  %v13023_v56 = vld [vmem:[%s18898_s3 + $0x204] ss:$16 sps:$4 sm:$0xff]  }
 0x798   :  { %v3514_v14 = vmul.f32 0.25, %v3510_v18 }
 0x799   :  { %v3515_v25 = vmul.f32 0.25, %v3511_v40 }
 0x79a   :  { %v3518_v21 = vpack.c.bf16 %v3514_v14, %v3514_v14  ;;  %v13021_v14 = vld [vmem:[%s18898_s3 + $0x200] ss:$16 sps:$4 sm:$0xff]  }
 0x79b   :  { %v3519_v58 = vpack.c.bf16 %v3515_v25, %v3515_v25 }
 0x79d   :  { %3887 = vmatprep.mubr.bf16.mxu1 %v3519_v58  ;;  %v13026_v58 = vld [vmem:[%s18898_s3 + $0x224] ss:$16 sps:$4 sm:$0xff]  }
 0x79e   :  { %3888 = vmatmul.mubr.bf16.vlgmr.msra.gmra.mrb[40].mxu1 %v3518_v21  ;;  %v13029_v21 = vld [vmem:[%s18898_s3 + $0x244] ss:$16 sps:$4 sm:$0xff]  }
 0x79f   :  { %3897 = vmatpush1.bf16.msra.mxu1 %v12973_v51  ;;  %v13024_v51 = vld [vmem:[%s18898_s3 + $0x220] ss:$16 sps:$4 sm:$0xff]  }
 0x7a0   :  { %3898 = vmatprep.subr.bf16.mxu1 %v12978_v7  ;;  %v13027_v7 = vld [vmem:[%s18898_s3 + $0x240] ss:$16 sps:$4 sm:$0xff]  }
 0x7a3   :  { %3899 = vmatpush1.bf16.msra.mxu1 %v12976_v0  ;;  %v13032_v0 = vld [vmem:[%s18898_s3 + $0x264] ss:$16 sps:$4 sm:$0xff]  }
 0x7a4   :  { %3900 = vmatprep.subr.bf16.mxu1 %v12981_v1  ;;  %v13030_v1 = vld [vmem:[%s18898_s3 + $0x260] ss:$16 sps:$4 sm:$0xff]  }
 0x7a7   :  { %3901 = vmatpush1.bf16.msra.mxu1 %v12979_v27  ;;  %v13035_v27 = vld [vmem:[%s18898_s3 + $0x284] ss:$16 sps:$4 sm:$0xff]  }
 0x7a8   :  { %3902 = vmatprep.subr.bf16.mxu1 %v12984_v33  ;;  %v13033_v33 = vld [vmem:[%s18898_s3 + $0x280] ss:$16 sps:$4 sm:$0xff]  }
 0x7ab   :  { %3903 = vmatpush1.bf16.msra.mxu1 %v12982_v50  ;;  %v13038_v50 = vld [vmem:[%s18898_s3 + $0x2a4] ss:$16 sps:$4 sm:$0xff]  }
 0x7ac   :  { %3904 = vmatprep.subr.bf16.mxu1 %v12987_v46  ;;  %v13036_v46 = vld [vmem:[%s18898_s3 + $0x2a0] ss:$16 sps:$4 sm:$0xff]  }
 0x7af   :  { %3905 = vmatpush1.bf16.msra.mxu1 %v12985_v35  ;;  %v13041_v35 = vld [vmem:[%s18898_s3 + $0x2c4] ss:$16 sps:$4 sm:$0xff]  }
 0x7b0   :  { %3906 = vmatprep.subr.bf16.mxu1 %v12990_v15  ;;  %v13039_v15 = vld [vmem:[%s18898_s3 + $0x2c0] ss:$16 sps:$4 sm:$0xff]  }
 0x7b3   :  { %3907 = vmatpush1.bf16.msra.mxu1 %v12988_v31  ;;  %v13044_v31 = vld [vmem:[%s18898_s3 + $0x2e4] ss:$16 sps:$4 sm:$0xff]  }
 0x7b4   :  { %3908 = vmatprep.subr.bf16.mxu1 %v12993_v36  ;;  %v13042_v36 = vld [vmem:[%s18898_s3 + $0x2e0] ss:$16 sps:$4 sm:$0xff]  }
 0x7b7   :  { %3909 = vmatpush1.bf16.msra.mxu1 %v12991_v11  ;;  %v13047_v11 = vld [vmem:[%s18898_s3 + $0x304] ss:$16 sps:$4 sm:$0xff]  }
 0x7b8   :  { %3910 = vmatprep.subr.bf16.mxu1 %v12996_v42  ;;  %v13045_v42 = vld [vmem:[%s18898_s3 + $0x300] ss:$16 sps:$4 sm:$0xff]  }
 0x7bb   :  { %3911 = vmatpush1.bf16.msra.mxu1 %v12994_v37  ;;  %v13050_v37 = vld [vmem:[%s18898_s3 + $0x324] ss:$16 sps:$4 sm:$0xff]  }
 0x7bc   :  { %3912 = vmatprep.subr.bf16.mxu1 %v12999_v6  ;;  %v13048_v6 = vld [vmem:[%s18898_s3 + $0x320] ss:$16 sps:$4 sm:$0xff]  }
 0x7bf   :  { %3913 = vmatpush1.bf16.msra.mxu1 %v12997_v57  ;;  %v13053_v57 = vld [vmem:[%s18898_s3 + $0x344] ss:$16 sps:$4 sm:$0xff]  }
 0x7c0   :  { %3914 = vmatprep.subr.bf16.mxu1 %v13002_v38  ;;  %v13051_v38 = vld [vmem:[%s18898_s3 + $0x340] ss:$16 sps:$4 sm:$0xff]  }
 0x7c3   :  { %3915 = vmatpush1.bf16.msra.mxu1 %v13000_v23  ;;  %v13056_v23 = vld [vmem:[%s18898_s3 + $0x364] ss:$16 sps:$4 sm:$0xff]  }
 0x7c4   :  { %3916 = vmatprep.subr.bf16.mxu1 %v13005_v28  ;;  %v13054_v28 = vld [vmem:[%s18898_s3 + $0x360] ss:$16 sps:$4 sm:$0xff]  }
 0x7c7   :  { %3917 = vmatpush1.bf16.msra.mxu1 %v13003_v12  ;;  %v13059_v12 = vld [vmem:[%s18898_s3 + $0x384] ss:$16 sps:$4 sm:$0xff]  }
 0x7c8   :  { %3918 = vmatprep.subr.bf16.mxu1 %v13008_v3  ;;  %v13057_v3 = vld [vmem:[%s18898_s3 + $0x380] ss:$16 sps:$4 sm:$0xff]  }
 0x7cb   :  { %v3343_v49 = vpop.f32.mrb[36].mxu1  ;;  %3919 = vmatpush1.bf16.msra.mxu1 %v13006_v19  ;;  %v13062_v19 = vld [vmem:[%s18898_s3 + $0x3a4] ss:$16 sps:$4 sm:$0xff]  }
 0x7cc   :  { %v3344_v10 = vadd.f32 %v3343_v49, %v2939_v45  ;;  %v3345_v2 = vpop.f32.mrb[37].mxu1  ;;  %3920 = vmatprep.subr.bf16.mxu1 %v13011_v13  ;;  %v13060_v45 = vld [vmem:[%s18898_s3 + $0x3a0] ss:$16 sps:$4 sm:$0xff]   ;;  %v13065_v13 = vld [vmem:[%s18898_s3 + $0x3c4] ss:$16 sps:$4 sm:$0xff]  }
 0x7cd   :  { %v3346_v43 = vadd.f32 %v3345_v2, %v2943_v34  ;;  %v3347_v60 = vpop.f32.mrb[38].mxu1  ;;  %v13063_v34 = vld [vmem:[%s18898_s3 + $0x3c0] ss:$16 sps:$4 sm:$0xff]   ;;  %v13068_v49 = vld [vmem:[%s18898_s3 + $0x3e4] ss:$16 sps:$4 sm:$0xff]  }
 0x7ce   :  { %v15992_v30 = vmax.f32 %v3344_v10, 0.0  ;;  %v3348_v17 = vpop.f32.mrb[39].mxu1  ;;  %v13071_v10 = vld [vmem:[%s18898_s3 + $0x20c] ss:$16 sps:$4 sm:$0xff]   ;;  %v4526_v2 = vld [vmem:[%s18899_s4 + $0x200] sm:$0xff] }
 0x7cf   :  { %v15994_v32 = vmax.f32 %v3346_v43, 0.0  ;;  %3921 = vmatpush1.bf16.msra.mxu1 %v13009_v4  ;;  %v13066_v4 = vld [vmem:[%s18898_s3 + $0x3e0] ss:$16 sps:$4 sm:$0xff]  }
 0x7d0   :  { %v3488_v52 = vrot.slane %v15992_v30, 2  ;;  %3922 = vmatprep.subr.bf16.mxu1 %v13014_v54  ;;  %v4530_v54 = vld [vmem:[%s18899_s4 + $0x220] sm:$0xff] }
 0x7d1   :  { %v3489_v44 = vrot.slane %v15994_v32, 2  ;;  %v11320_v43 = vcombine.low %v4526_v2, %v4530_v54  ;;  %v11321_v60 = vcombine.high %v4526_v2, %v4530_v54  ;;  %v4534_v17 = vld [vmem:[%s18899_s4 + $0x240] sm:$0xff]  ;;  %v13090_v2 = vld [vmem:[%s18898_s3 + $0x2e8] ss:$16 sps:$4 sm:$0xff]   ;;  %v13095_v54 = vld [vmem:[%s18898_s3 + $0x30c] ss:$16 sps:$4 sm:$0xff]  }
 0x7d2   :  { %v3496_v53 = vadd.f32 %v3488_v52, %v15992_v30 }
 0x7d3   :  { %v3497_v26 = vadd.f32 %v3489_v44, %v15994_v32  ;;  %3923 = vmatpush1.bf16.msra.mxu1 %v13012_v9  ;;  %6063 = vmatprep.subr.bf16.mxu0 %v11321_v60  ;;  %v4538_v9 = vld [vmem:[%s18899_s4 + $0x260] sm:$0xff]  ;;  %v13098_v60 = vld [vmem:[%s18898_s3 + $0x32c] ss:$16 sps:$4 sm:$0xff]  }
 0x7d4   :  { %v3504_v62 = vrot.slane %v3496_v53, 4  ;;  %3924 = vmatprep.subr.bf16.mxu1 %v13017_v5  ;;  %6064 = vmatpush1.bf16.msra.mxu0 %v11320_v43  ;;  %v11328_v52 = vcombine.low %v4534_v17, %v4538_v9  ;;  %v11329_v5 = vcombine.high %v4534_v17, %v4538_v9  ;;  %v4542_v44 = vld [vmem:[%s18899_s4 + $0x280] sm:$0xff]  ;;  %v13093_v43 = vld [vmem:[%s18898_s3 + $0x308] ss:$16 sps:$4 sm:$0xff]   ;;  %v13101_v9 = vld [vmem:[%s18898_s3 + $0x34c] ss:$16 sps:$4 sm:$0xff]  }
 0x7d5   :  { %v3505_v59 = vrot.slane %v3497_v26, 4  ;;  %v13096_v17 = vld [vmem:[%s18898_s3 + $0x328] ss:$16 sps:$4 sm:$0xff]  }
 0x7d6   :  { %v3512_v8 = vadd.f32 %v3504_v62, %v3496_v53  ;;  %6065 = vmatprep.subr.bf16.mxu0 %v11329_v5  ;;  %v4546_v53 = vld [vmem:[%s18899_s4 + $0x2a0] sm:$0xff]  ;;  %v13104_v5 = vld [vmem:[%s18898_s3 + $0x36c] ss:$16 sps:$4 sm:$0xff]  }
 0x7d7   :  { %3925 = vmatpush1.bf16.msra.mxu1 %v13015_v47  ;;  %v3513_v41 = vadd.f32 %v3505_v59, %v3497_v26  ;;  %v4550_v26 = vld [vmem:[%s18899_s4 + $0x2c0] sm:$0xff]  ;;  %v11336_v47 = vcombine.low %v4542_v44, %v4546_v53  ;;  %v11337_v62 = vcombine.high %v4542_v44, %v4546_v53  ;;  %v13102_v44 = vld [vmem:[%s18898_s3 + $0x368] ss:$16 sps:$4 sm:$0xff]   ;;  %v13107_v53 = vld [vmem:[%s18898_s3 + $0x38c] ss:$16 sps:$4 sm:$0xff]  }
 0x7d8   :  { %3926 = vmatprep.subr.bf16.mxu1 %v13020_v48  ;;  %v3516_v63 = vmul.f32 0.25, %v3512_v8  ;;  %6066 = vmatpush1.bf16.msra.mxu0 %v11328_v52  ;;  %v4554_v48 = vld [vmem:[%s18899_s4 + $0x2e0] sm:$0xff]  ;;  %v13099_v52 = vld [vmem:[%s18898_s3 + $0x348] ss:$16 sps:$4 sm:$0xff]  }
 0x7d9   :  { %v3517_v18 = vmul.f32 0.25, %v3513_v41  ;;  %v11345_v59 = vcombine.high %v4550_v26, %v4554_v48  ;;  %v4558_v8 = vld [vmem:[%s18899_s4 + $0x300] sm:$0xff]  ;;  %6067 = vmatprep.subr.bf16.mxu0 %v11337_v62  ;;  %v11344_v41 = vcombine.low %v4550_v26, %v4554_v48  ;;  %v13105_v26 = vld [vmem:[%s18898_s3 + $0x388] ss:$16 sps:$4 sm:$0xff]   ;;  %v13113_v48 = vld [vmem:[%s18898_s3 + $0x3cc] ss:$16 sps:$4 sm:$0xff]  }
 0x7da   :  { %v3520_v25 = vpack.c.bf16 %v3516_v63, %v3516_v63  ;;  %v13108_v62 = vld [vmem:[%s18898_s3 + $0x3a8] ss:$16 sps:$4 sm:$0xff]  }
 0x7db   :  { %3927 = vmatpush1.bf16.msra.mxu1 %v13018_v22  ;;  %v3521_v40 = vpack.c.bf16 %v3517_v18, %v3517_v18  ;;  %v4562_v22 = vld [vmem:[%s18899_s4 + $0x320] sm:$0xff] }
 0x7dc   :  { %4284 = vmatprep.subr.bf16.mxu1 %v13023_v56  ;;  %6068 = vmatpush1.bf16.msra.mxu0 %v11336_v47  ;;  %v11353_v63 = vcombine.high %v4558_v8, %v4562_v22  ;;  %v4566_v56 = vld [vmem:[%s18899_s4 + $0x340] sm:$0xff]  ;;  %v13110_v47 = vld [vmem:[%s18898_s3 + $0x3ac] ss:$16 sps:$4 sm:$0xff]  }
 0x7dd   :  { %3928 = vmatprep.mubr.bf16.mxu1 %v3521_v40  ;;  %6069 = vmatprep.subr.bf16.mxu0 %v11345_v59  ;;  %v4570_v18 = vld [vmem:[%s18899_s4 + $0x360] sm:$0xff]  ;;  %v11352_v40 = vcombine.low %v4558_v8, %v4562_v22  ;;  %v13111_v59 = vld [vmem:[%s18898_s3 + $0x3c8] ss:$16 sps:$4 sm:$0xff]   ;;  %v13116_v8 = vld [vmem:[%s18898_s3 + $0x3ec] ss:$16 sps:$4 sm:$0xff]  }
 0x7de   :  { %3929 = vmatmul.mubr.bf16.vlgmr.msra.gmra.mrb[40].mxu1 %v3520_v25  ;;  %v4574_v25 = vld [vmem:[%s18899_s4 + $0x380] sm:$0xff]  ;;  %v4463_v22 = vld [vmem:[%s18899_s4 + $0x8] sm:$0xff] }
 0x7df   :  { %4285 = vmatpush1.bf16.msra.mxu1 %v13021_v14  ;;  %v11361_v14 = vcombine.high %v4566_v56, %v4570_v18 }
 0x7e0   :  { %4286 = vmatprep.subr.bf16.mxu1 %v13026_v58  ;;  %6070 = vmatpush1.bf16.msra.mxu0 %v11344_v41  ;;  %v4578_v58 = vld [vmem:[%s18899_s4 + $0x3a0] sm:$0xff]  ;;  %v4467_v41 = vld [vmem:[%s18899_s4 + $0x28] sm:$0xff] }
 0x7e1   :  { %6071 = vmatprep.subr.bf16.mxu0 %v11353_v63  ;;  %v13114_v63 = vld [vmem:[%s18898_s3 + $0x3e8] ss:$16 sps:$4 sm:$0xff]  }
 0x7e3   :  { %4287 = vmatpush1.bf16.msra.mxu1 %v13024_v51  ;;  %v11360_v51 = vcombine.low %v4566_v56, %v4570_v18  ;;  %v11259_v56 = vcombine.high %v4463_v22, %v4467_v41  ;;  %v4471_v18 = vld [vmem:[%s18899_s4 + $0x48] sm:$0xff] }
 0x7e4   :  { %4288 = vmatprep.subr.bf16.mxu1 %v13029_v21  ;;  %6072 = vmatpush1.bf16.msra.mxu0 %v11352_v40  ;;  %v11369_v21 = vcombine.high %v4574_v25, %v4578_v58  ;;  %v4475_v40 = vld [vmem:[%s18899_s4 + $0x68] sm:$0xff] }
 0x7e5   :  { %6073 = vmatprep.subr.bf16.mxu0 %v11361_v14  ;;  %v11258_v14 = vcombine.low %v4463_v22, %v4467_v41 }
 0x7e7   :  { %4289 = vmatpush1.bf16.msra.mxu1 %v13027_v7  ;;  %v11368_v7 = vcombine.low %v4574_v25, %v4578_v58  ;;  %v11267_v25 = vcombine.high %v4471_v18, %v4475_v40  ;;  %v4479_v58 = vld [vmem:[%s18899_s4 + $0x88] sm:$0xff] }
 0x7e8   :  { %4290 = vmatprep.subr.bf16.mxu1 %v13032_v0  ;;  %6074 = vmatpush1.bf16.msra.mxu0 %v11360_v51  ;;  %v11120_v0 = vld [vmem:[%s18896_s5 + $0x1c0] ss:$8 sm:$0x3] }
 0x7e9   :  { %6075 = vmatprep.subr.bf16.mxu0 %v11369_v21  ;;  %v4483_v51 = vld [vmem:[%s18899_s4 + $0xa8] sm:$0xff]  ;;  %v11266_v21 = vcombine.low %v4471_v18, %v4475_v40 }
 0x7eb   :  { %4291 = vmatpush1.bf16.msra.mxu1 %v13030_v1  ;;  %v3528_v1 = vrot.slane %v11120_v0, %v15436_v24 }
 0x7ec   :  { %4292 = vmatprep.subr.bf16.mxu1 %v13035_v27  ;;  %6076 = vmatpush1.bf16.msra.mxu0 %v11368_v7  ;;  %v3532_v27 = vrot.slane %v11120_v0, %v15442_v61  ;;  %v11275_v7 = vcombine.high %v4479_v58, %v4483_v51  ;;  %v4487_v0 = vld [vmem:[%s18899_s4 + $0xc8] sm:$0xff] }
 0x7ef   :  { %4293 = vmatpush1.bf16.msra.mxu1 %v13033_v33 }
 0x7f0   :  { %4294 = vmatprep.subr.bf16.mxu1 %v13038_v50 }
 0x7f3   :  { %4295 = vmatpush1.bf16.msra.mxu1 %v13036_v46 }
 0x7f4   :  { %4296 = vmatprep.subr.bf16.mxu1 %v13041_v35 }
 0x7f7   :  { %4297 = vmatpush1.bf16.msra.mxu1 %v13039_v15 }
 0x7f8   :  { %4298 = vmatprep.subr.bf16.mxu1 %v13044_v31 }
 0x7fb   :  { %4299 = vmatpush1.bf16.msra.mxu1 %v13042_v36 }
 0x7fc   :  { %4300 = vmatprep.subr.bf16.mxu1 %v13047_v11 }
 0x7ff   :  { %4301 = vmatpush1.bf16.msra.mxu1 %v13045_v42 }
 0x800   :  { %4302 = vmatprep.subr.bf16.mxu1 %v13050_v37  ;;  %v13069_v37 = vld [vmem:[%s18898_s3 + $0x208] ss:$16 sps:$4 sm:$0xff]  }
 0x803   :  { %4303 = vmatpush1.bf16.msra.mxu1 %v13048_v6 }
 0x804   :  { %4304 = vmatprep.subr.bf16.mxu1 %v13053_v57  ;;  %v13074_v57 = vld [vmem:[%s18898_s3 + $0x22c] ss:$16 sps:$4 sm:$0xff]  }
 0x807   :  { %4305 = vmatpush1.bf16.msra.mxu1 %v13051_v38  ;;  %v13072_v38 = vld [vmem:[%s18898_s3 + $0x228] ss:$16 sps:$4 sm:$0xff]  }
 0x808   :  { %4306 = vmatprep.subr.bf16.mxu1 %v13056_v23  ;;  %v13077_v23 = vld [vmem:[%s18898_s3 + $0x24c] ss:$16 sps:$4 sm:$0xff]  }
 0x80b   :  { %4307 = vmatpush1.bf16.msra.mxu1 %v13054_v28  ;;  %v13075_v28 = vld [vmem:[%s18898_s3 + $0x248] ss:$16 sps:$4 sm:$0xff]  }
 0x80c   :  { %4308 = vmatprep.subr.bf16.mxu1 %v13059_v12  ;;  %v13080_v12 = vld [vmem:[%s18898_s3 + $0x26c] ss:$16 sps:$4 sm:$0xff]  }
 0x80f   :  { %4309 = vmatpush1.bf16.msra.mxu1 %v13057_v3  ;;  %v13078_v3 = vld [vmem:[%s18898_s3 + $0x268] ss:$16 sps:$4 sm:$0xff]  }
 0x810   :  { %4310 = vmatprep.subr.bf16.mxu1 %v13062_v19  ;;  %v13083_v19 = vld [vmem:[%s18898_s3 + $0x28c] ss:$16 sps:$4 sm:$0xff]  }
 0x813   :  { %4311 = vmatpush1.bf16.msra.mxu1 %v13060_v45  ;;  %v13081_v45 = vld [vmem:[%s18898_s3 + $0x288] ss:$16 sps:$4 sm:$0xff]  }
 0x814   :  { %4312 = vmatprep.subr.bf16.mxu1 %v13065_v13  ;;  %v13086_v13 = vld [vmem:[%s18898_s3 + $0x2ac] ss:$16 sps:$4 sm:$0xff]  }
 0x817   :  { %4313 = vmatpush1.bf16.msra.mxu1 %v13063_v34  ;;  %v13084_v34 = vld [vmem:[%s18898_s3 + $0x2a8] ss:$16 sps:$4 sm:$0xff]  }
 0x818   :  { %4314 = vmatprep.subr.bf16.mxu1 %v13068_v49  ;;  %v13089_v49 = vld [vmem:[%s18898_s3 + $0x2cc] ss:$16 sps:$4 sm:$0xff]  }
 0x81b   :  { %4315 = vmatpush1.bf16.msra.mxu1 %v13066_v4  ;;  %v13087_v4 = vld [vmem:[%s18898_s3 + $0x2c8] ss:$16 sps:$4 sm:$0xff]  }
 0x81c   :  { %4325 = vmatprep.subr.bf16.mxu1 %v13071_v10  ;;  %v13092_v10 = vld [vmem:[%s18898_s3 + $0x2ec] ss:$16 sps:$4 sm:$0xff]  }
 0x8b1   :  { %v3930_v33 = vpop.f32.mrb[40].mxu1 }
 0x8b2   :  { %v12665_v50 = vadd.f32 %v3930_v33, %v3528_v1  ;;  %v3932_v46 = vpop.f32.mrb[41].mxu1  ;;  %v4491_v1 = vld [vmem:[%s18899_s4 + $0xe8] sm:$0xff] }
 0x8b3   :  { %v12666_v35 = vadd.f32 %v3932_v46, %v3532_v27  ;;  %v3934_v15 = vpop.f32.mrb[42].mxu1  ;;  %v11274_v27 = vcombine.low %v4479_v58, %v4483_v51  ;;  %v11283_v33 = vcombine.high %v4487_v0, %v4491_v1  ;;  %v4495_v46 = vld [vmem:[%s18899_s4 + $0x108] sm:$0xff] }
 0x8b4   :  { %v3937_v31 = vmax.f32 %v12665_v50, 0.0  ;;  %v3935_v36 = vpop.f32.mrb[43].mxu1  ;;  %v11282_v50 = vcombine.low %v4487_v0, %v4491_v1  ;;  %v4583_v58 = vld [vmem:[%s18899_s4 + $0x3c8] sm:$0xff] }
 0x8b5   :  { %v3938_v11 = vmax.f32 %v12666_v35, 0.0  ;;  %v4499_v35 = vld [vmem:[%s18899_s4 + $0x128] sm:$0xff] }
 0x8b6   :  { %v16164_v6 = vpack.c.bf16 %v3937_v31, %v3937_v31  ;;  %v11291_v15 = vcombine.high %v4495_v46, %v4499_v35  ;;  %v11290_v31 = vcombine.low %v4495_v46, %v4499_v35  ;;  %v4503_v36 = vld [vmem:[%s18899_s4 + $0x148] sm:$0xff] }
 0x8b7   :  { %v3940_v42 = vpack.c.bf16 %v3938_v11, %v3938_v11  ;;  %v4507_v11 = vld [vmem:[%s18899_s4 + $0x168] sm:$0xff] }
 0x8b8   :  { %v16380_v35 = vld [vmem:[%s18899_s4 + $0x428] sm:$0xff] }
 0x8b9   :  { %4316 = vmatprep.mubr.bf16.mxu1 %v3940_v42 }
 0x8ba   :  { %4317 = vmatmul.mubr.bf16.vlgmr.msra.gmra.mrb[44].mxu1 %v16164_v6 }
 0x8bb   :  { %4326 = vmatpush1.bf16.msra.mxu1 %v13069_v37  ;;  %4357 = vmatprep.mubr.bf16.mxu1 %v3940_v42  ;;  %v11299_v42 = vcombine.high %v4503_v36, %v4507_v11  ;;  %v11298_v37 = vcombine.low %v4503_v36, %v4507_v11  ;;  %v16391_v11 = vld [vmem:[%s18896_s5 + $0x200] ss:$8 sm:$0xf] }
 0x8bc   :  { %4327 = vmatprep.subr.bf16.mxu1 %v13074_v57  ;;  %v4515_v57 = vld [vmem:[%s18899_s4 + $0x1a8] sm:$0xff] }
 0x8bf   :  { %4328 = vmatpush1.bf16.msra.mxu1 %v13072_v38 }
 0x8c0   :  { %4329 = vmatprep.subr.bf16.mxu1 %v13077_v23 }
 0x8c3   :  { %4330 = vmatpush1.bf16.msra.mxu1 %v13075_v28  ;;  %v4519_v28 = vld [vmem:[%s18899_s4 + $0x1c8] sm:$0xff] }
 0x8c4   :  { %4331 = vmatprep.subr.bf16.mxu1 %v13080_v12  ;;  %v4523_v12 = vld [vmem:[%s18899_s4 + $0x1e8] sm:$0xff] }
 0x8c7   :  { %4332 = vmatpush1.bf16.msra.mxu1 %v13078_v3  ;;  %v11315_v3 = vcombine.high %v4519_v28, %v4523_v12 }
 0x8c8   :  { %4333 = vmatprep.subr.bf16.mxu1 %v13083_v19  ;;  %v11314_v19 = vcombine.low %v4519_v28, %v4523_v12 }
 0x8cb   :  { %4334 = vmatpush1.bf16.msra.mxu1 %v13081_v45  ;;  %v4527_v45 = vld [vmem:[%s18899_s4 + $0x208] sm:$0xff] }
 0x8cc   :  { %4335 = vmatprep.subr.bf16.mxu1 %v13086_v13  ;;  %v4531_v13 = vld [vmem:[%s18899_s4 + $0x228] sm:$0xff] }
 0x8cf   :  { %4336 = vmatpush1.bf16.msra.mxu1 %v13084_v34  ;;  %v11323_v34 = vcombine.high %v4527_v45, %v4531_v13 }
 0x8d0   :  { %4337 = vmatprep.subr.bf16.mxu1 %v13089_v49  ;;  %v11322_v49 = vcombine.low %v4527_v45, %v4531_v13 }
 0x8d3   :  { %4338 = vmatpush1.bf16.msra.mxu1 %v13087_v4  ;;  %v4535_v4 = vld [vmem:[%s18899_s4 + $0x248] sm:$0xff] }
 0x8d4   :  { %4339 = vmatprep.subr.bf16.mxu1 %v13092_v10  ;;  %v4539_v10 = vld [vmem:[%s18899_s4 + $0x268] sm:$0xff] }
 0x8d7   :  { %4340 = vmatpush1.bf16.msra.mxu1 %v13090_v2  ;;  %v11331_v2 = vcombine.high %v4535_v4, %v4539_v10 }
 0x8d8   :  { %4341 = vmatprep.subr.bf16.mxu1 %v13095_v54  ;;  %v11330_v54 = vcombine.low %v4535_v4, %v4539_v10 }
 0x8db   :  { %4342 = vmatpush1.bf16.msra.mxu1 %v13093_v43  ;;  %v4543_v43 = vld [vmem:[%s18899_s4 + $0x288] sm:$0xff] }
 0x8dc   :  { %4343 = vmatprep.subr.bf16.mxu1 %v13098_v60  ;;  %v4547_v60 = vld [vmem:[%s18899_s4 + $0x2a8] sm:$0xff] }
 0x8df   :  { %4344 = vmatpush1.bf16.msra.mxu1 %v13096_v17  ;;  %v11339_v17 = vcombine.high %v4543_v43, %v4547_v60 }
 0x8e0   :  { %4345 = vmatprep.subr.bf16.mxu1 %v13101_v9  ;;  %v11338_v9 = vcombine.low %v4543_v43, %v4547_v60 }
 0x8e3   :  { %4346 = vmatpush1.bf16.msra.mxu1 %v13099_v52  ;;  %v4551_v52 = vld [vmem:[%s18899_s4 + $0x2c8] sm:$0xff] }
 0x8e4   :  { %4347 = vmatprep.subr.bf16.mxu1 %v13104_v5  ;;  %v4555_v5 = vld [vmem:[%s18899_s4 + $0x2e8] sm:$0xff] }
 0x8e7   :  { %4348 = vmatpush1.bf16.msra.mxu1 %v13102_v44  ;;  %v11347_v44 = vcombine.high %v4551_v52, %v4555_v5 }
 0x8e8   :  { %4349 = vmatprep.subr.bf16.mxu1 %v13107_v53  ;;  %v11346_v53 = vcombine.low %v4551_v52, %v4555_v5 }
 0x8eb   :  { %4350 = vmatpush1.bf16.msra.mxu1 %v13105_v26  ;;  %v4559_v26 = vld [vmem:[%s18899_s4 + $0x308] sm:$0xff] }
 0x8ec   :  { %4351 = vmatprep.subr.bf16.mxu1 %v13110_v47  ;;  %v4563_v47 = vld [vmem:[%s18899_s4 + $0x328] sm:$0xff] }
 0x8ef   :  { %4352 = vmatpush1.bf16.msra.mxu1 %v13108_v62  ;;  %v11355_v62 = vcombine.high %v4559_v26, %v4563_v47 }
 0x8f0   :  { %4353 = vmatprep.subr.bf16.mxu1 %v13113_v48  ;;  %v11354_v48 = vcombine.low %v4559_v26, %v4563_v47 }
 0x8f3   :  { %4354 = vmatpush1.bf16.msra.mxu1 %v13111_v59  ;;  %v4567_v59 = vld [vmem:[%s18899_s4 + $0x348] sm:$0xff] }
 0x8f4   :  { %4355 = vmatprep.subr.bf16.mxu1 %v13116_v8  ;;  %v4571_v8 = vld [vmem:[%s18899_s4 + $0x368] sm:$0xff] }
 0x8f5   :  { %v11363_v22 = vcombine.high %v4567_v59, %v4571_v8  ;;  %v11362_v41 = vcombine.low %v4567_v59, %v4571_v8 }
 0x8f7   :  { %4356 = vmatpush1.bf16.msra.mxu1 %v13114_v63  ;;  %v4575_v63 = vld [vmem:[%s18899_s4 + $0x388] sm:$0xff] }
 0x8f8   :  { %6129 = vmatprep.subr.bf16.mxu1 %v11259_v56  ;;  %v4579_v56 = vld [vmem:[%s18899_s4 + $0x3a8] sm:$0xff] }
 0x8f9   :  { %v11371_v18 = vcombine.high %v4575_v63, %v4579_v56  ;;  %v11370_v40 = vcombine.low %v4575_v63, %v4579_v56  ;;  %v4598_v56 = vld [vmem:[%s18899_s4 + $0x440] sm:$0xff] }
 0x8fa   :  { %4358 = vmatmul.mubr.bf16.vlgmr.msra.gmra.mrb[48].mxu1 %v16164_v6  ;;  %v4511_v6 = vld [vmem:[%s18899_s4 + $0x188] sm:$0xff] }
 0x8fb   :  { %6130 = vmatpush1.bf16.msra.mxu1 %v11258_v14  ;;  %v11307_v38 = vcombine.high %v4511_v6, %v4515_v57  ;;  %v11306_v23 = vcombine.low %v4511_v6, %v4515_v57  ;;  %v4582_v14 = vld [vmem:[%s18899_s4 + $0x3c0] sm:$0xff] }
 0x8fc   :  { %6131 = vmatprep.subr.bf16.mxu1 %v11267_v25  ;;  %v4586_v25 = vld [vmem:[%s18899_s4 + $0x3e0] sm:$0xff] }
 0x8fd   :  { %v11377_v51 = vcombine.high %v4582_v14, %v4586_v25 }
 0x8ff   :  { %6132 = vmatpush1.bf16.msra.mxu1 %v11266_v21  ;;  %v4587_v21 = vld [vmem:[%s18899_s4 + $0x3e8] sm:$0xff]  ;;  %6077 = vmatprep.subr.bf16.mxu0 %v11377_v51 }
 0x900   :  { %6133 = vmatprep.subr.bf16.mxu1 %v11275_v7  ;;  %v11376_v7 = vcombine.low %v4582_v14, %v4586_v25  ;;  %v11378_v0 = vcombine.low %v4583_v58, %v4587_v21  ;;  %v11379_v1 = vcombine.high %v4583_v58, %v4587_v21  ;;  %v4606_v21 = vld [vmem:[%s18899_s4 + $0x480] sm:$0xff] }
 0x902   :  { %6078 = vmatpush1.bf16.msra.mxu0 %v11376_v7  ;;  %v4610_v7 = vld [vmem:[%s18899_s4 + $0x4a0] sm:$0xff] }
 0x903   :  { %6134 = vmatpush1.bf16.msra.mxu1 %v11274_v27  ;;  %v16363_v27 = vld [vmem:[%s18899_s4 + $0x400] sm:$0xff] }
 0x904   :  { %6135 = vmatprep.subr.bf16.mxu1 %v11283_v33  ;;  %v16368_v33 = vld [vmem:[%s18899_s4 + $0x420] sm:$0xff] }
 0x905   :  { %v11385_v46 = vcombine.high %v16363_v27, %v16368_v33 }
 0x907   :  { %6136 = vmatpush1.bf16.msra.mxu1 %v11282_v50  ;;  %v16373_v50 = vld [vmem:[%s18899_s4 + $0x408] sm:$0xff]  ;;  %6088 = vmatprep.subr.bf16.mxu0 %v11385_v46 }
 0x908   :  { %6137 = vmatprep.subr.bf16.mxu1 %v11291_v15  ;;  %v11384_v15 = vcombine.low %v16363_v27, %v16368_v33  ;;  %v11387_v36 = vcombine.high %v16373_v50, %v16380_v35 }
 0x90b   :  { %6138 = vmatpush1.bf16.msra.mxu1 %v11290_v31  ;;  %v11386_v31 = vcombine.low %v16373_v50, %v16380_v35  ;;  %v11401_v50 = vcombine.high %v4606_v21, %v4610_v7  ;;  %v4614_v35 = vld [vmem:[%s18899_s4 + $0x4c0] sm:$0xff] }
 0x90c   :  { %6139 = vmatprep.subr.bf16.mxu1 %v11299_v42  ;;  %v3947_v42 = vrot.slane %v16391_v11, %v15436_v24 }
 0x90f   :  { %6140 = vmatpush1.bf16.msra.mxu1 %v11298_v37  ;;  %v3951_v37 = vrot.slane %v16391_v11, %v15442_v61 }
 0x910   :  { %6141 = vmatprep.subr.bf16.mxu1 %v11307_v38 }
 0x913   :  { %6142 = vmatpush1.bf16.msra.mxu1 %v11306_v23 }
 0x914   :  { %6143 = vmatprep.subr.bf16.mxu1 %v11315_v3 }
 0x917   :  { %6144 = vmatpush1.bf16.msra.mxu1 %v11314_v19 }
 0x918   :  { %6145 = vmatprep.subr.bf16.mxu1 %v11323_v34 }
 0x91b   :  { %6146 = vmatpush1.bf16.msra.mxu1 %v11322_v49 }
 0x91c   :  { %6147 = vmatprep.subr.bf16.mxu1 %v11331_v2 }
 0x91f   :  { %6148 = vmatpush1.bf16.msra.mxu1 %v11330_v54 }
 0x920   :  { %6149 = vmatprep.subr.bf16.mxu1 %v11339_v17 }
 0x923   :  { %6150 = vmatpush1.bf16.msra.mxu1 %v11338_v9 }
 0x924   :  { %6151 = vmatprep.subr.bf16.mxu1 %v11347_v44 }
 0x927   :  { %6152 = vmatpush1.bf16.msra.mxu1 %v11346_v53 }
 0x928   :  { %6153 = vmatprep.subr.bf16.mxu1 %v11355_v62 }
 0x92b   :  { %6154 = vmatpush1.bf16.msra.mxu1 %v11354_v48 }
 0x92c   :  { %6155 = vmatprep.subr.bf16.mxu1 %v11363_v22 }
 0x92f   :  { %6156 = vmatpush1.bf16.msra.mxu1 %v11362_v41 }
 0x930   :  { %6157 = vmatprep.subr.bf16.mxu1 %v11371_v18 }
 0x933   :  { %6158 = vmatpush1.bf16.msra.mxu1 %v11370_v40  ;;  %v4603_v40 = vld [vmem:[%s18899_s4 + $0x468] sm:$0xff] }
 0x934   :  { %6159 = vmatprep.subr.bf16.mxu1 %v11379_v1  ;;  %v4611_v1 = vld [vmem:[%s18899_s4 + $0x4a8] sm:$0xff] }
 0x937   :  { %6160 = vmatpush1.bf16.msra.mxu1 %v11378_v0  ;;  %v4607_v0 = vld [vmem:[%s18899_s4 + $0x488] sm:$0xff] }
 0x938   :  { %6170 = vmatprep.subr.bf16.mxu1 %v11387_v36  ;;  %v11403_v46 = vcombine.high %v4607_v0, %v4611_v1  ;;  %v4618_v36 = vld [vmem:[%s18899_s4 + $0x4e0] sm:$0xff] }
 0x98d   :  { %v4318_v6 = vpop.f32.mrb[44].mxu1 }
 0x98e   :  { %v4319_v57 = vadd.f32 %v4318_v6, %v3947_v42  ;;  %v4320_v38 = vpop.f32.mrb[45].mxu1  ;;  %v4615_v42 = vld [vmem:[%s18899_s4 + $0x4c8] sm:$0xff]  ;;  %v11409_v6 = vcombine.high %v4614_v35, %v4618_v36 }
 0x98f   :  { %v4321_v23 = vadd.f32 %v4320_v38, %v3951_v37  ;;  %v4322_v28 = vpop.f32.mrb[46].mxu1  ;;  %v11402_v37 = vcombine.low %v4607_v0, %v4611_v1  ;;  %v4622_v38 = vld [vmem:[%s18899_s4 + $0x500] sm:$0xff] }
 0x990   :  { %v11250_v12 = vmul.f32 -1.442695, %v4319_v57  ;;  %v4323_v3 = vpop.f32.mrb[47].mxu1  ;;  %v4623_v28 = vld [vmem:[%s18899_s4 + $0x508] sm:$0xff]  ;;  %v4654_v1 = vld [vmem:[%s18899_s4 + $0x600] sm:$0xff] }
 0x991   :  { %v11251_v19 = vmul.f32 -1.442695, %v4321_v23  ;;  %v4626_v23 = vld [vmem:[%s18899_s4 + $0x520] sm:$0xff]  ;;  %v11408_v3 = vcombine.low %v4614_v35, %v4618_v36 }
 0x992   :  { %13573 = vpow2.f32 %v11250_v12  ;;  %v4627_v12 = vld [vmem:[%s18899_s4 + $0x528] sm:$0xff] }
 0x993   :  { %13575 = vpow2.f32 %v11251_v19 }
 0x99c   :  { %v13574_v45 = vpop.eup %13573 }
 0x99d   :  { %v13576_v13 = vpop.eup %13575  ;;  %v4378_v34 = vadd.f32 1.0, %v13574_v45  ;;  %v3955_v45 = vrot.slane %v16391_v11, %v15971_v16 }
 0x99e   :  { %v4379_v49 = vadd.f32 1.0, %v13576_v13  ;;  %v11417_v13 = vcombine.high %v4622_v38, %v4626_v23 }
 0x99f   :  { %13577 = vrcp.f32 %v4378_v34  ;;  %v11419_v34 = vcombine.high %v4623_v28, %v4627_v12 }
 0x9a0   :  { %13579 = vrcp.f32 %v4379_v49  ;;  %v4630_v49 = vld [vmem:[%s18899_s4 + $0x540] sm:$0xff] }
 0x9a9   :  { %v13578_v4 = vpop.eup %13577 }
 0x9aa   :  { %v13580_v10 = vpop.eup %13579  ;;  %v4394_v2 = vrot.slane %v13578_v4, 6 }
 0x9ab   :  { %v4395_v54 = vrot.slane %v13580_v10, 6 }
 0x9ac   :  { %v4402_v43 = vsel %vm2831_vm0, %v13578_v4, %v4394_v2  ;;  %v3959_v4 = vrot.slane %v16391_v11, %v15974_v29  ;;  %v4631_v2 = vld [vmem:[%s18899_s4 + $0x548] sm:$0xff] }
 0x9ad   :  { %v4410_v60 = vrot.slane %v4402_v43, 4  ;;  %v4403_v17 = vsel %vm2831_vm0, %v13580_v10, %v4395_v54  ;;  %v4634_v10 = vld [vmem:[%s18899_s4 + $0x560] sm:$0xff]  ;;  %v4635_v54 = vld [vmem:[%s18899_s4 + $0x568] sm:$0xff] }
 0x9ae   :  { %v4411_v9 = vrot.slane %v4403_v17, 4  ;;  %v11425_v11 = vcombine.high %v4630_v49, %v4634_v10 }
 0x9af   :  { %v4418_v52 = vsel %vm2840_vm1, %v4402_v43, %v4410_v60  ;;  %v11416_v60 = vcombine.low %v4622_v38, %v4626_v23 }
 0x9b0   :  { %v4422_v5 = vmul.f32 %v4418_v52, %v15896_v20  ;;  %v4419_v44 = vsel %vm2840_vm1, %v4403_v17, %v4411_v9  ;;  %v4602_v20 = vld [vmem:[%s18899_s4 + $0x460] sm:$0xff]  ;;  %v11418_v17 = vcombine.low %v4623_v28, %v4627_v12 }
 0x9b1   :  { %v4423_v53 = vmul.f32 %v4419_v44, %v15898_v55  ;;  %v4599_v55 = vld [vmem:[%s18899_s4 + $0x448] sm:$0xff]  ;;  %v11393_v58 = vcombine.high %v4598_v56, %v4602_v20  ;;  %v11392_v27 = vcombine.low %v4598_v56, %v4602_v20  ;;  %v4638_v44 = vld [vmem:[%s18899_s4 + $0x580] sm:$0xff] }
 0x9b2   :  { %v4430_v26 = vrot.slane %v4422_v5, 2  ;;  %v11395_v51 = vcombine.high %v4599_v55, %v4603_v40  ;;  %v11394_v33 = vcombine.low %v4599_v55, %v4603_v40  ;;  %v4646_v20 = vld [vmem:[%s18899_s4 + $0x5c0] sm:$0xff]  ;;  %v4647_v40 = vld [vmem:[%s18899_s4 + $0x5c8] sm:$0xff] }
 0x9b3   :  { %v4431_v47 = vrot.slane %v4423_v53, 2  ;;  %v4650_v55 = vld [vmem:[%s18899_s4 + $0x5e0] sm:$0xff] }
 0x9b4   :  { %v4438_v62 = vadd.f32 %v4430_v26, %v4422_v5  ;;  %v11427_v5 = vcombine.high %v4631_v2, %v4635_v54 }
 0x9b5   :  { %v4439_v48 = vadd.f32 %v4431_v47, %v4423_v53  ;;  %v4642_v47 = vld [vmem:[%s18899_s4 + $0x5a0] sm:$0xff] }
 0x9b6   :  { %v4446_v59 = vrot.slane %v4438_v62, 4  ;;  %v11433_v56 = vcombine.high %v4638_v44, %v4642_v47 }
 0x9b7   :  { %v4447_v8 = vrot.slane %v4439_v48, 4 }
 0x9b8   :  { %v4454_v22 = vadd.f32 %v4446_v59, %v4438_v62  ;;  %v4639_v62 = vld [vmem:[%s18899_s4 + $0x588] sm:$0xff] }
 0x9b9   :  { %v4455_v41 = vadd.f32 %v4447_v8, %v4439_v48  ;;  %v4643_v48 = vld [vmem:[%s18899_s4 + $0x5a8] sm:$0xff] }
 0x9ba   :  { %v4458_v63 = vmul.f32 0.25, %v4454_v22 }
 0x9bb   :  { %v4459_v18 = vmul.f32 0.25, %v4455_v41  ;;  %v11424_v41 = vcombine.low %v4630_v49, %v4634_v10  ;;  %v4671_v49 = vld [vmem:[%s18899_s4 + $0x688] sm:$0xff] }
 0x9bc   :  { %v16417_v25 = vpack.c.bf16 %v4458_v63, %v4458_v63  ;;  %v11426_v63 = vcombine.low %v4631_v2, %v4635_v54 }
 0x9bd   :  { %v16415_v14 = vpack.c.bf16 %v4459_v18, %v4459_v18  ;;  %v11435_v18 = vcombine.high %v4639_v62, %v4643_v48 }
 0x9bf   :  { %6079 = vmatprep.mubr.bf16.mxu0 %v16415_v14  ;;  %6161 = vmatprep.mubr.bf16.mxu1 %v16415_v14 }
 0x9c0   :  { %6080 = vmatmul.mubr.bf16.vlgmr.msra.gmra.mrb[0].mxu0 %v16417_v25  ;;  %6162 = vmatmul.mubr.bf16.vlgmr.msra.gmra.mrb[52].mxu1 %v16417_v25 }
 0x9c1   :  { %6089 = vmatpush1.bf16.msra.mxu0 %v11384_v15  ;;  %6171 = vmatpush1.bf16.msra.mxu1 %v11386_v31  ;;  %v4619_v15 = vld [vmem:[%s18899_s4 + $0x4e8] sm:$0xff]  ;;  %v11400_v31 = vcombine.low %v4606_v21, %v4610_v7  ;;  %v11434_v21 = vcombine.low %v4639_v62, %v4643_v48  ;;  %v11441_v7 = vcombine.high %v4646_v20, %v4650_v55 }
 0x9c2   :  { %6090 = vmatprep.subr.bf16.mxu0 %v11393_v58  ;;  %6172 = vmatprep.subr.bf16.mxu1 %v11395_v51  ;;  %v11411_v57 = vcombine.high %v4615_v42, %v4619_v15  ;;  %v11410_v19 = vcombine.low %v4615_v42, %v4619_v15  ;;  %v4651_v58 = vld [vmem:[%s18899_s4 + $0x5e8] sm:$0xff]  ;;  %v11432_v51 = vcombine.low %v4638_v44, %v4642_v47  ;;  %v4662_v15 = vld [vmem:[%s18899_s4 + $0x640] sm:$0xff] }
 0x9c3   :  { %v11443_v0 = vcombine.high %v4647_v40, %v4651_v58  ;;  %v11442_v35 = vcombine.low %v4647_v40, %v4651_v58  ;;  %v4690_v47 = vld [vmem:[%s18899_s4 + $0x720] sm:$0xff]  ;;  %v4687_v62 = vld [vmem:[%s18899_s4 + $0x708] sm:$0xff] }
 0x9c4   :  { %v4691_v48 = vld [vmem:[%s18899_s4 + $0x728] sm:$0xff]  ;;  %v4698_v40 = vld [vmem:[%s18899_s4 + $0x760] sm:$0xff] }
 0x9c5   :  { %6091 = vmatpush1.bf16.msra.mxu0 %v11392_v27  ;;  %6173 = vmatpush1.bf16.msra.mxu1 %v11394_v33  ;;  %v4658_v27 = vld [vmem:[%s18899_s4 + $0x620] sm:$0xff]  ;;  %v4655_v33 = vld [vmem:[%s18899_s4 + $0x608] sm:$0xff] }
 0x9c6   :  { %6092 = vmatprep.subr.bf16.mxu0 %v11401_v50  ;;  %6174 = vmatprep.subr.bf16.mxu1 %v11403_v46  ;;  %v4659_v50 = vld [vmem:[%s18899_s4 + $0x628] sm:$0xff]  ;;  %v11440_v46 = vcombine.low %v4646_v20, %v4650_v55  ;;  %v11449_v36 = vcombine.high %v4654_v1, %v4658_v27  ;;  %v11448_v28 = vcombine.low %v4654_v1, %v4658_v27  ;;  %v4694_v20 = vld [vmem:[%s18899_s4 + $0x740] sm:$0xff] }
 0x9c7   :  { %v11451_v42 = vcombine.high %v4655_v33, %v4659_v50  ;;  %v11450_v12 = vcombine.low %v4655_v33, %v4659_v50  ;;  %v4695_v58 = vld [vmem:[%s18899_s4 + $0x748] sm:$0xff]  ;;  %v11482_v1 = vcombine.low %v4687_v62, %v4691_v48  ;;  %v11489_v33 = vcombine.high %v4694_v20, %v4698_v40 }
 0x9c9   :  { %6093 = vmatpush1.bf16.msra.mxu0 %v11400_v31  ;;  %6175 = vmatpush1.bf16.msra.mxu1 %v11402_v37  ;;  %v4666_v31 = vld [vmem:[%s18899_s4 + $0x660] sm:$0xff]  ;;  %v4663_v37 = vld [vmem:[%s18899_s4 + $0x648] sm:$0xff] }
 0x9ca   :  { %6094 = vmatprep.subr.bf16.mxu0 %v11409_v6  ;;  %6176 = vmatprep.subr.bf16.mxu1 %v11411_v57  ;;  %v4667_v6 = vld [vmem:[%s18899_s4 + $0x668] sm:$0xff]  ;;  %v11456_v10 = vcombine.low %v4662_v15, %v4666_v31 }
 0x9cb   :  { %v11458_v2 = vcombine.low %v4663_v37, %v4667_v6 }
 0x9cd   :  { %v4359_v43 = vpop.f32.mrb[48].mxu1  ;;  %6095 = vmatpush1.bf16.msra.mxu0 %v11408_v3  ;;  %6177 = vmatpush1.bf16.msra.mxu1 %v11410_v19  ;;  %v11457_v19 = vcombine.high %v4662_v15, %v4666_v31  ;;  %v4703_v15 = vld [vmem:[%s18899_s4 + $0x788] sm:$0xff] }
 0x9ce   :  { %v4360_v9 = vadd.f32 %v4359_v43, %v3955_v45  ;;  %v4361_v52 = vpop.f32.mrb[49].mxu1  ;;  %6096 = vmatprep.subr.bf16.mxu0 %v11417_v13  ;;  %6178 = vmatprep.subr.bf16.mxu1 %v11419_v34  ;;  %v11459_v45 = vcombine.high %v4663_v37, %v4667_v6  ;;  %v4670_v13 = vld [vmem:[%s18899_s4 + $0x680] sm:$0xff]  ;;  %v4707_v31 = vld [vmem:[%s18899_s4 + $0x7a8] sm:$0xff] }
 0x9cf   :  { %v4362_v53 = vadd.f32 %v4361_v52, %v3959_v4  ;;  %v4363_v26 = vpop.f32.mrb[50].mxu1  ;;  %v4674_v34 = vld [vmem:[%s18899_s4 + $0x6a0] sm:$0xff]  ;;  %v4675_v4 = vld [vmem:[%s18899_s4 + $0x6a8] sm:$0xff] }
 0x9d0   :  { %v11252_v59 = vmul.f32 -1.442695, %v4360_v9  ;;  %v4364_v8 = vpop.f32.mrb[51].mxu1  ;;  %v11465_v54 = vcombine.high %v4670_v13, %v4674_v34  ;;  %v11467_v43 = vcombine.high %v4671_v49, %v4675_v4  ;;  %v4679_v9 = vld [vmem:[%s18899_s4 + $0x6c8] sm:$0xff]  ;;  %v4686_v26 = vld [vmem:[%s18899_s4 + $0x700] sm:$0xff] }
 0x9d1   :  { %v11253_v22 = vmul.f32 -1.442695, %v4362_v53  ;;  %6097 = vmatpush1.bf16.msra.mxu0 %v11416_v60  ;;  %6179 = vmatpush1.bf16.msra.mxu1 %v11418_v17  ;;  %v4678_v60 = vld [vmem:[%s18899_s4 + $0x6c0] sm:$0xff]  ;;  %v4683_v52 = vld [vmem:[%s18899_s4 + $0x6e8] sm:$0xff] }
 0x9d2   :  { %13581 = vpow2.f32 %v11252_v59  ;;  %6098 = vmatprep.subr.bf16.mxu0 %v11425_v11  ;;  %6180 = vmatprep.subr.bf16.mxu1 %v11427_v5  ;;  %v4682_v17 = vld [vmem:[%s18899_s4 + $0x6e0] sm:$0xff]  ;;  %v11464_v11 = vcombine.low %v4670_v13, %v4674_v34  ;;  %v11466_v5 = vcombine.low %v4671_v49, %v4675_v4  ;;  %v11475_v53 = vcombine.high %v4679_v9, %v4683_v52 }
 0x9d3   :  { %13583 = vpow2.f32 %v11253_v22  ;;  %v11473_v44 = vcombine.high %v4678_v60, %v4682_v17  ;;  %v11472_v8 = vcombine.low %v4678_v60, %v4682_v17  ;;  %v11474_v22 = vcombine.low %v4679_v9, %v4683_v52  ;;  %v4464_v60 = vld [vmem:[%s18899_s4 + $0x10] sm:$0xff]  ;;  %v4465_v52 = vld [vmem:[%s18899_s4 + $0x18] sm:$0xff] }
 0x9d4   :  { %v11498_v4 = vcombine.low %v4703_v15, %v4707_v31  ;;  %v4468_v9 = vld [vmem:[%s18899_s4 + $0x30] sm:$0xff] }
 0x9d5   :  { %6099 = vmatpush1.bf16.msra.mxu0 %v11424_v41  ;;  %6181 = vmatpush1.bf16.msra.mxu1 %v11426_v63 }
 0x9d6   :  { %6100 = vmatprep.subr.bf16.mxu0 %v11433_v56  ;;  %6182 = vmatprep.subr.bf16.mxu1 %v11435_v18  ;;  %v11481_v56 = vcombine.high %v4686_v26, %v4690_v47  ;;  %v11483_v18 = vcombine.high %v4687_v62, %v4691_v48  ;;  %v11261_v62 = vcombine.high %v4464_v60, %v4468_v9 }
 0x9d9   :  { %6101 = vmatpush1.bf16.msra.mxu0 %v11432_v51  ;;  %6183 = vmatpush1.bf16.msra.mxu1 %v11434_v21  ;;  %v4699_v51 = vld [vmem:[%s18899_s4 + $0x768] sm:$0xff] }
 0x9da   :  { %6102 = vmatprep.subr.bf16.mxu0 %v11441_v7  ;;  %6184 = vmatprep.subr.bf16.mxu1 %v11443_v0  ;;  %v11480_v0 = vcombine.low %v4686_v26, %v4690_v47  ;;  %v11491_v50 = vcombine.high %v4695_v58, %v4699_v51 }
 0x9dc   :  { %v13582_v57 = vpop.eup %13581 }
 0x9dd   :  { %v13584_v38 = vpop.eup %13583  ;;  %v4380_v23 = vadd.f32 1.0, %v13582_v57  ;;  %6103 = vmatpush1.bf16.msra.mxu0 %v11440_v46  ;;  %6185 = vmatpush1.bf16.msra.mxu1 %v11442_v35  ;;  %v4702_v46 = vld [vmem:[%s18899_s4 + $0x780] sm:$0xff]  ;;  %v11488_v57 = vcombine.low %v4694_v20, %v4698_v40 }
 0x9de   :  { %v4381_v3 = vadd.f32 1.0, %v13584_v38  ;;  %6104 = vmatprep.subr.bf16.mxu0 %v11449_v36  ;;  %6186 = vmatprep.subr.bf16.mxu1 %v11451_v42  ;;  %v4706_v42 = vld [vmem:[%s18899_s4 + $0x7a0] sm:$0xff]  ;;  %v11490_v38 = vcombine.low %v4695_v58, %v4699_v51  ;;  %v4480_v51 = vld [vmem:[%s18899_s4 + $0x90] sm:$0xff] }
 0x9df   :  { %13585 = vrcp.f32 %v4380_v23  ;;  %v11496_v49 = vcombine.low %v4702_v46, %v4706_v42 }
 0x9e0   :  { %13587 = vrcp.f32 %v4381_v3  ;;  %v11499_v3 = vcombine.high %v4703_v15, %v4707_v31 }
 0x9e1   :  { %6105 = vmatpush1.bf16.msra.mxu0 %v11448_v28  ;;  %6187 = vmatpush1.bf16.msra.mxu1 %v11450_v12  ;;  %v11497_v12 = vcombine.high %v4702_v46, %v4706_v42  ;;  %v4488_v46 = vld [vmem:[%s18899_s4 + $0xd0] sm:$0xff] }
 0x9e2   :  { %6106 = vmatprep.subr.bf16.mxu0 %v11457_v19  ;;  %6188 = vmatprep.subr.bf16.mxu1 %v11459_v45  ;;  %v4710_v19 = vld [vmem:[%s18899_s4 + $0x7c0] sm:$0xff]  ;;  %v4711_v45 = vld [vmem:[%s18899_s4 + $0x7c8] sm:$0xff] }
 0x9e5   :  { %6107 = vmatpush1.bf16.msra.mxu0 %v11456_v10  ;;  %6189 = vmatpush1.bf16.msra.mxu1 %v11458_v2 }
 0x9e6   :  { %6108 = vmatprep.subr.bf16.mxu0 %v11465_v54  ;;  %6190 = vmatprep.subr.bf16.mxu1 %v11467_v43 }
 0x9e9   :  { %v13586_v59 = vpop.eup %13585  ;;  %6109 = vmatpush1.bf16.msra.mxu0 %v11464_v11  ;;  %6191 = vmatpush1.bf16.msra.mxu1 %v11466_v5  ;;  %v4469_v11 = vld [vmem:[%s18899_s4 + $0x38] sm:$0xff] }
 0x9ea   :  { %v13588_v41 = vpop.eup %13587  ;;  %v4396_v63 = vrot.slane %v13586_v59, 6  ;;  %6110 = vmatprep.subr.bf16.mxu0 %v11473_v44  ;;  %6192 = vmatprep.subr.bf16.mxu1 %v11475_v53  ;;  %v11263_v48 = vcombine.high %v4465_v52, %v4469_v11 }
 0x9eb   :  { %v4397_v55 = vrot.slane %v13588_v41, 6 }
 0x9ec   :  { %v4404_v21 = vsel %vm2831_vm0, %v13586_v59, %v4396_v63  ;;  %v4477_v63 = vld [vmem:[%s18899_s4 + $0x78] sm:$0xff] }
 0x9ed   :  { %v4412_v7 = vrot.slane %v4404_v21, 4  ;;  %6111 = vmatpush1.bf16.msra.mxu0 %v11472_v8  ;;  %6193 = vmatpush1.bf16.msra.mxu1 %v11474_v22  ;;  %v4405_v27 = vsel %vm2831_vm0, %v13588_v41, %v4397_v55  ;;  %v4472_v8 = vld [vmem:[%s18899_s4 + $0x50] sm:$0xff]  ;;  %v4473_v41 = vld [vmem:[%s18899_s4 + $0x58] sm:$0xff]  ;;  %v11262_v55 = vcombine.low %v4465_v52, %v4469_v11 }
 0x9ee   :  { %6112 = vmatprep.subr.bf16.mxu0 %v11481_v56  ;;  %6194 = vmatprep.subr.bf16.mxu1 %v11483_v18  ;;  %v4413_v35 = vrot.slane %v4405_v27, 4  ;;  %v4476_v22 = vld [vmem:[%s18899_s4 + $0x70] sm:$0xff]  ;;  %v11260_v18 = vcombine.low %v4464_v60, %v4468_v9  ;;  %v11271_v58 = vcombine.high %v4473_v41, %v4477_v63  ;;  %v4517_v60 = vld [vmem:[%s18899_s4 + $0x1b8] sm:$0xff] }
 0x9ef   :  { %v4420_v36 = vsel %vm2840_vm1, %v4404_v21, %v4412_v7  ;;  %v11269_v40 = vcombine.high %v4472_v8, %v4476_v22  ;;  %v4484_v21 = vld [vmem:[%s18899_s4 + $0xb0] sm:$0xff]  ;;  %v4481_v7 = vld [vmem:[%s18899_s4 + $0x98] sm:$0xff] }
 0x9f0   :  { %v4424_v37 = vmul.f32 %v4420_v36, %v15992_v30  ;;  %v4421_v6 = vsel %vm2840_vm1, %v4405_v27, %v4413_v35  ;;  %v4714_v30 = vld [vmem:[%s18899_s4 + $0x7e0] sm:$0xff]  ;;  %v11270_v27 = vcombine.low %v4473_v41, %v4477_v63  ;;  %v4492_v35 = vld [vmem:[%s18899_s4 + $0xf0] sm:$0xff]  ;;  %v4489_v36 = vld [vmem:[%s18899_s4 + $0xd8] sm:$0xff]  ;;  %v11276_v42 = vcombine.low %v4480_v51, %v4484_v21 }
 0x9f1   :  { %6113 = vmatpush1.bf16.msra.mxu0 %v11480_v0  ;;  %6195 = vmatpush1.bf16.msra.mxu1 %v11482_v1  ;;  %v4425_v23 = vmul.f32 %v4421_v6, %v15994_v32  ;;  %v4715_v32 = vld [vmem:[%s18899_s4 + $0x7e8] sm:$0xff]  ;;  %v11505_v54 = vcombine.high %v4710_v19, %v4714_v30  ;;  %v11504_v44 = vcombine.low %v4710_v19, %v4714_v30  ;;  %v4485_v0 = vld [vmem:[%s18899_s4 + $0xb8] sm:$0xff]  ;;  %v4496_v6 = vld [vmem:[%s18899_s4 + $0x110] sm:$0xff] }
 0x9f2   :  { %v4432_v28 = vrot.slane %v4424_v37, 2  ;;  %6114 = vmatprep.subr.bf16.mxu0 %v11489_v33  ;;  %6196 = vmatprep.subr.bf16.mxu1 %v11491_v50  ;;  %v11507_v43 = vcombine.high %v4711_v45, %v4715_v32  ;;  %v11506_v53 = vcombine.low %v4711_v45, %v4715_v32  ;;  %v11268_v1 = vcombine.low %v4472_v8, %v4476_v22  ;;  %v4504_v30 = vld [vmem:[%s18899_s4 + $0x150] sm:$0xff]  ;;  %v4505_v32 = vld [vmem:[%s18899_s4 + $0x158] sm:$0xff] }
 0x9f3   :  { %v4433_v13 = vrot.slane %v4425_v23, 2  ;;  %v11277_v33 = vcombine.high %v4480_v51, %v4484_v21  ;;  %v11279_v50 = vcombine.high %v4481_v7, %v4485_v0  ;;  %v11278_v15 = vcombine.low %v4481_v7, %v4485_v0  ;;  %v4508_v45 = vld [vmem:[%s18899_s4 + $0x170] sm:$0xff]  ;;  %v4529_v41 = vld [vmem:[%s18899_s4 + $0x218] sm:$0xff] }
 0x9f4   :  { %v4440_v34 = vadd.f32 %v4432_v28, %v4424_v37  ;;  %v11285_v31 = vcombine.high %v4488_v46, %v4492_v35  ;;  %v11284_v28 = vcombine.low %v4488_v46, %v4492_v35  ;;  %v4528_v8 = vld [vmem:[%s18899_s4 + $0x210] sm:$0xff]  ;;  %v4533_v63 = vld [vmem:[%s18899_s4 + $0x238] sm:$0xff] }
 0x9f5   :  { %6115 = vmatpush1.bf16.msra.mxu0 %v11488_v57  ;;  %6197 = vmatpush1.bf16.msra.mxu1 %v11490_v38  ;;  %v4441_v10 = vadd.f32 %v4433_v13, %v4425_v23  ;;  %v4500_v57 = vld [vmem:[%s18899_s4 + $0x130] sm:$0xff]  ;;  %v4497_v38 = vld [vmem:[%s18899_s4 + $0x118] sm:$0xff] }
 0x9f6   :  { %v4448_v2 = vrot.slane %v4440_v34, 4  ;;  %6116 = vmatprep.subr.bf16.mxu0 %v11497_v12  ;;  %6198 = vmatprep.subr.bf16.mxu1 %v11499_v3  ;;  %v4501_v23 = vld [vmem:[%s18899_s4 + $0x138] sm:$0xff]  ;;  %v11293_v3 = vcombine.high %v4496_v6, %v4500_v57  ;;  %v4532_v22 = vld [vmem:[%s18899_s4 + $0x230] sm:$0xff] }
 0x9f7   :  { %v4449_v17 = vrot.slane %v4441_v10, 4  ;;  %v11295_v19 = vcombine.high %v4497_v38, %v4501_v23  ;;  %v4509_v13 = vld [vmem:[%s18899_s4 + $0x178] sm:$0xff]  ;;  %v4536_v51 = vld [vmem:[%s18899_s4 + $0x250] sm:$0xff] }
 0x9f8   :  { %v4456_v5 = vadd.f32 %v4448_v2, %v4440_v34  ;;  %v11292_v34 = vcombine.low %v4496_v6, %v4500_v57  ;;  %v4512_v2 = vld [vmem:[%s18899_s4 + $0x190] sm:$0xff]  ;;  %v11302_v9 = vcombine.low %v4505_v32, %v4509_v13  ;;  %v4537_v7 = vld [vmem:[%s18899_s4 + $0x258] sm:$0xff] }
 0x9f9   :  { %6117 = vmatpush1.bf16.msra.mxu0 %v11496_v49  ;;  %6199 = vmatpush1.bf16.msra.mxu1 %v11498_v4  ;;  %v4457_v26 = vadd.f32 %v4449_v17, %v4441_v10  ;;  %v11294_v49 = vcombine.low %v4497_v38, %v4501_v23  ;;  %v11301_v4 = vcombine.high %v4504_v30, %v4508_v45  ;;  %v4540_v21 = vld [vmem:[%s18899_s4 + $0x270] sm:$0xff]  ;;  %v4541_v0 = vld [vmem:[%s18899_s4 + $0x278] sm:$0xff] }
 0x9fa   :  { %v4460_v47 = vmul.f32 0.25, %v4456_v5  ;;  %6118 = vmatprep.subr.bf16.mxu0 %v11505_v54  ;;  %6200 = vmatprep.subr.bf16.mxu1 %v11507_v43  ;;  %v11303_v10 = vcombine.high %v4505_v32, %v4509_v13  ;;  %v4516_v54 = vld [vmem:[%s18899_s4 + $0x1b0] sm:$0xff]  ;;  %v4513_v43 = vld [vmem:[%s18899_s4 + $0x198] sm:$0xff]  ;;  %v11300_v17 = vcombine.low %v4504_v30, %v4508_v45 }
 0x9fb   :  { %v4461_v59 = vmul.f32 0.25, %v4457_v26  ;;  %v11309_v52 = vcombine.high %v4512_v2, %v4516_v54  ;;  %v11311_v11 = vcombine.high %v4513_v43, %v4517_v60  ;;  %v4520_v5 = vld [vmem:[%s18899_s4 + $0x1d0] sm:$0xff]  ;;  %v4525_v26 = vld [vmem:[%s18899_s4 + $0x1f8] sm:$0xff] }
 0x9fc   :  { %v16627_v20 = vpack.c.bf16 %v4460_v47, %v4460_v47  ;;  %v11308_v47 = vcombine.low %v4512_v2, %v4516_v54  ;;  %v4544_v46 = vld [vmem:[%s18899_s4 + $0x290] sm:$0xff]  ;;  %v4553_v38 = vld [vmem:[%s18899_s4 + $0x2d8] sm:$0xff] }
 0x9fd   :  { %6119 = vmatpush1.bf16.msra.mxu0 %v11504_v44  ;;  %6201 = vmatpush1.bf16.msra.mxu1 %v11506_v53  ;;  %v16625_v56 = vpack.c.bf16 %v4461_v59, %v4461_v59  ;;  %v4524_v44 = vld [vmem:[%s18899_s4 + $0x1f0] sm:$0xff]  ;;  %v4521_v53 = vld [vmem:[%s18899_s4 + $0x1d8] sm:$0xff] }
 0x9fe   :  { %6211 = vmatprep.subr.bf16.mxu0 %v11261_v62  ;;  %6293 = vmatprep.subr.bf16.mxu1 %v11263_v48  ;;  %v11310_v62 = vcombine.low %v4513_v43, %v4517_v60  ;;  %v11317_v48 = vcombine.high %v4520_v5, %v4524_v44  ;;  %v11319_v59 = vcombine.high %v4521_v53, %v4525_v26  ;;  %v4548_v35 = vld [vmem:[%s18899_s4 + $0x2b0] sm:$0xff]  ;;  %v4557_v23 = vld [vmem:[%s18899_s4 + $0x2f8] sm:$0xff] }
 0x9ff   :  { %6120 = vmatprep.mubr.bf16.mxu0 %v16625_v56  ;;  %6202 = vmatprep.mubr.bf16.mxu1 %v16625_v56  ;;  %v4552_v6 = vld [vmem:[%s18899_s4 + $0x2d0] sm:$0xff]  ;;  %v4561_v32 = vld [vmem:[%s18899_s4 + $0x318] sm:$0xff] }
 0xa00   :  { %6121 = vmatmul.mubr.bf16.vlgmr.msra.gmra.mrb[0].mxu0 %v16627_v20  ;;  %6203 = vmatmul.mubr.bf16.vlgmr.msra.gmra.mrb[52].mxu1 %v16627_v20  ;;  %v4556_v57 = vld [vmem:[%s18899_s4 + $0x2f0] sm:$0xff]  ;;  %v4565_v13 = vld [vmem:[%s18899_s4 + $0x338] sm:$0xff] }
 0xa01   :  { %6212 = vmatpush1.bf16.msra.mxu0 %v11260_v18  ;;  %6243 = vmatprep.mubr.bf16.mxu0 %v16415_v14  ;;  %v11316_v18 = vcombine.low %v4520_v5, %v4524_v44  ;;  %v4560_v30 = vld [vmem:[%s18899_s4 + $0x310] sm:$0xff]  ;;  %v4569_v43 = vld [vmem:[%s18899_s4 + $0x358] sm:$0xff] }
 0xa02   :  { %6294 = vmatpush1.bf16.msra.mxu1 %v11262_v55  ;;  %6325 = vmatprep.mubr.bf16.mxu1 %v16415_v14  ;;  %v4493_v14 = vld [vmem:[%s18899_s4 + $0xf8] sm:$0xff]  ;;  %v11318_v55 = vcombine.low %v4521_v53, %v4525_v26  ;;  %v4564_v45 = vld [vmem:[%s18899_s4 + $0x330] sm:$0xff] }
 0xa03   :  { %6213 = vmatprep.subr.bf16.mxu0 %v11269_v40  ;;  %6295 = vmatprep.subr.bf16.mxu1 %v11271_v58  ;;  %v11287_v37 = vcombine.high %v4489_v36, %v4493_v14  ;;  %v11286_v12 = vcombine.low %v4489_v36, %v4493_v14  ;;  %v11325_v40 = vcombine.high %v4528_v8, %v4532_v22  ;;  %v4545_v36 = vld [vmem:[%s18899_s4 + $0x298] sm:$0xff]  ;;  %v4568_v2 = vld [vmem:[%s18899_s4 + $0x350] sm:$0xff] }
 0xa04   :  { %v11327_v58 = vcombine.high %v4529_v41, %v4533_v63  ;;  %v4549_v14 = vld [vmem:[%s18899_s4 + $0x2b8] sm:$0xff]  ;;  %v4572_v54 = vld [vmem:[%s18899_s4 + $0x370] sm:$0xff] }
 0xa05   :  { %6214 = vmatpush1.bf16.msra.mxu0 %v11268_v1  ;;  %v11324_v1 = vcombine.low %v4528_v8, %v4532_v22  ;;  %v4573_v60 = vld [vmem:[%s18899_s4 + $0x378] sm:$0xff]  ;;  %v4576_v5 = vld [vmem:[%s18899_s4 + $0x390] sm:$0xff] }
 0xa06   :  { %6296 = vmatpush1.bf16.msra.mxu1 %v11270_v27  ;;  %6215 = vmatprep.subr.bf16.mxu0 %v11277_v33  ;;  %v11326_v27 = vcombine.low %v4529_v41, %v4533_v63  ;;  %v11333_v33 = vcombine.high %v4536_v51, %v4540_v21  ;;  %v4580_v44 = vld [vmem:[%s18899_s4 + $0x3b0] sm:$0xff]  ;;  %v4577_v53 = vld [vmem:[%s18899_s4 + $0x398] sm:$0xff] }
 0xa07   :  { %6297 = vmatprep.subr.bf16.mxu1 %v11279_v50  ;;  %v11335_v50 = vcombine.high %v4537_v7, %v4541_v0  ;;  %v4581_v26 = vld [vmem:[%s18899_s4 + $0x3b8] sm:$0xff]  ;;  %v4584_v8 = vld [vmem:[%s18899_s4 + $0x3d0] sm:$0xff] }
 0xa08   :  { %v4588_v22 = vld [vmem:[%s18899_s4 + $0x3f0] sm:$0xff]  ;;  %v4585_v41 = vld [vmem:[%s18899_s4 + $0x3d8] sm:$0xff] }
 0xa09   :  { %6216 = vmatpush1.bf16.msra.mxu0 %v11276_v42  ;;  %v11332_v42 = vcombine.low %v4536_v51, %v4540_v21  ;;  %v4589_v63 = vld [vmem:[%s18899_s4 + $0x3f8] sm:$0xff]  ;;  %v4592_v51 = vld [vmem:[%s18899_s4 + $0x410] sm:$0xff] }
 0xa0a   :  { %6298 = vmatpush1.bf16.msra.mxu1 %v11278_v15  ;;  %6217 = vmatprep.subr.bf16.mxu0 %v11285_v31  ;;  %v11334_v15 = vcombine.low %v4537_v7, %v4541_v0  ;;  %v11341_v31 = vcombine.high %v4544_v46, %v4548_v35  ;;  %v4596_v21 = vld [vmem:[%s18899_s4 + $0x430] sm:$0xff]  ;;  %v4593_v7 = vld [vmem:[%s18899_s4 + $0x418] sm:$0xff] }
 0xa0b   :  { %6299 = vmatprep.subr.bf16.mxu1 %v11287_v37  ;;  %v11343_v37 = vcombine.high %v4545_v36, %v4549_v14  ;;  %v4597_v0 = vld [vmem:[%s18899_s4 + $0x438] sm:$0xff] }
 0xa0d   :  { %6218 = vmatpush1.bf16.msra.mxu0 %v11284_v28  ;;  %v11340_v28 = vcombine.low %v4544_v46, %v4548_v35  ;;  %v4600_v46 = vld [vmem:[%s18899_s4 + $0x450] sm:$0xff] }
 0xa0e   :  { %6300 = vmatpush1.bf16.msra.mxu1 %v11286_v12  ;;  %6219 = vmatprep.subr.bf16.mxu0 %v11293_v3  ;;  %v11342_v12 = vcombine.low %v4545_v36, %v4549_v14  ;;  %v11349_v3 = vcombine.high %v4552_v6, %v4556_v57  ;;  %v4604_v35 = vld [vmem:[%s18899_s4 + $0x470] sm:$0xff]  ;;  %v11388_v36 = vcombine.low %v4592_v51, %v4596_v21  ;;  %v4601_v14 = vld [vmem:[%s18899_s4 + $0x458] sm:$0xff] }
 0xa0f   :  { %6301 = vmatprep.subr.bf16.mxu1 %v11295_v19  ;;  %v11351_v19 = vcombine.high %v4553_v38, %v4557_v23 }
 0xa11   :  { %6220 = vmatpush1.bf16.msra.mxu0 %v11292_v34  ;;  %v11348_v34 = vcombine.low %v4552_v6, %v4556_v57  ;;  %v4612_v6 = vld [vmem:[%s18899_s4 + $0x4b0] sm:$0xff] }
 0xa12   :  { %6302 = vmatpush1.bf16.msra.mxu1 %v11294_v49  ;;  %6221 = vmatprep.subr.bf16.mxu0 %v11301_v4  ;;  %v11350_v49 = vcombine.low %v4553_v38, %v4557_v23  ;;  %v11357_v4 = vcombine.high %v4560_v30, %v4564_v45  ;;  %v4609_v38 = vld [vmem:[%s18899_s4 + $0x498] sm:$0xff] }
 0xa13   :  { %6303 = vmatprep.subr.bf16.mxu1 %v11303_v10  ;;  %v11359_v10 = vcombine.high %v4561_v32, %v4565_v13  ;;  %v4613_v23 = vld [vmem:[%s18899_s4 + $0x4b8] sm:$0xff] }
 0xa15   :  { %6222 = vmatpush1.bf16.msra.mxu0 %v11300_v17  ;;  %v11356_v17 = vcombine.low %v4560_v30, %v4564_v45  ;;  %v4616_v30 = vld [vmem:[%s18899_s4 + $0x4d0] sm:$0xff] }
 0xa16   :  { %6304 = vmatpush1.bf16.msra.mxu1 %v11302_v9  ;;  %6223 = vmatprep.subr.bf16.mxu0 %v11309_v52  ;;  %v11358_v9 = vcombine.low %v4561_v32, %v4565_v13  ;;  %v11365_v52 = vcombine.high %v4568_v2, %v4572_v54  ;;  %v4620_v45 = vld [vmem:[%s18899_s4 + $0x4f0] sm:$0xff]  ;;  %v4621_v32 = vld [vmem:[%s18899_s4 + $0x4f8] sm:$0xff]  ;;  %v11406_v13 = vcombine.low %v4609_v38, %v4613_v23 }
 0xa17   :  { %6305 = vmatprep.subr.bf16.mxu1 %v11311_v11  ;;  %v11367_v11 = vcombine.high %v4569_v43, %v4573_v60 }
 0xa19   :  { %6224 = vmatpush1.bf16.msra.mxu0 %v11308_v47  ;;  %v11364_v47 = vcombine.low %v4568_v2, %v4572_v54  ;;  %v4625_v2 = vld [vmem:[%s18899_s4 + $0x518] sm:$0xff] }
 0xa1a   :  { %6306 = vmatpush1.bf16.msra.mxu1 %v11310_v62  ;;  %6225 = vmatprep.subr.bf16.mxu0 %v11317_v48  ;;  %v11366_v62 = vcombine.low %v4569_v43, %v4573_v60  ;;  %v11373_v48 = vcombine.high %v4576_v5, %v4580_v44  ;;  %v4629_v54 = vld [vmem:[%s18899_s4 + $0x538] sm:$0xff]  ;;  %v11412_v43 = vcombine.low %v4616_v30, %v4620_v45 }
 0xa1b   :  { %6307 = vmatprep.subr.bf16.mxu1 %v11319_v59  ;;  %v11375_v59 = vcombine.high %v4577_v53, %v4581_v26 }
 0xa1d   :  { %6226 = vmatpush1.bf16.msra.mxu0 %v11316_v18  ;;  %v11372_v18 = vcombine.low %v4576_v5, %v4580_v44  ;;  %v4633_v5 = vld [vmem:[%s18899_s4 + $0x558] sm:$0xff] }
 0xa1e   :  { %6308 = vmatpush1.bf16.msra.mxu1 %v11318_v55  ;;  %6227 = vmatprep.subr.bf16.mxu0 %v11325_v40  ;;  %v11374_v55 = vcombine.low %v4577_v53, %v4581_v26  ;;  %v11381_v40 = vcombine.high %v4584_v8, %v4588_v22  ;;  %v4637_v44 = vld [vmem:[%s18899_s4 + $0x578] sm:$0xff]  ;;  %v11422_v26 = vcombine.low %v4625_v2, %v4629_v54 }
 0xa1f   :  { %6309 = vmatprep.subr.bf16.mxu1 %v11327_v58  ;;  %v11383_v58 = vcombine.high %v4585_v41, %v4589_v63 }
 0xa21   :  { %6228 = vmatpush1.bf16.msra.mxu0 %v11324_v1  ;;  %v11380_v1 = vcombine.low %v4584_v8, %v4588_v22  ;;  %v4641_v8 = vld [vmem:[%s18899_s4 + $0x598] sm:$0xff] }
 0xa22   :  { %6310 = vmatpush1.bf16.msra.mxu1 %v11326_v27  ;;  %6229 = vmatprep.subr.bf16.mxu0 %v11333_v33  ;;  %v11382_v27 = vcombine.low %v4585_v41, %v4589_v63  ;;  %v11389_v33 = vcombine.high %v4592_v51, %v4596_v21  ;;  %v4645_v22 = vld [vmem:[%s18899_s4 + $0x5b8] sm:$0xff]  ;;  %v11430_v63 = vcombine.low %v4633_v5, %v4637_v44 }
 0xa23   :  { %6311 = vmatprep.subr.bf16.mxu1 %v11335_v50  ;;  %v11391_v50 = vcombine.high %v4593_v7, %v4597_v0  ;;  %v4649_v51 = vld [vmem:[%s18899_s4 + $0x5d8] sm:$0xff] }
 0xa24   :  { %v4653_v21 = vld [vmem:[%s18899_s4 + $0x5f8] sm:$0xff] }
 0xa25   :  { %6230 = vmatpush1.bf16.msra.mxu0 %v11332_v42  ;;  %v4605_v42 = vld [vmem:[%s18899_s4 + $0x478] sm:$0xff] }
 0xa26   :  { %6312 = vmatpush1.bf16.msra.mxu1 %v11334_v15  ;;  %6231 = vmatprep.subr.bf16.mxu0 %v11341_v31  ;;  %v11390_v15 = vcombine.low %v4593_v7, %v4597_v0  ;;  %v11397_v31 = vcombine.high %v4600_v46, %v4604_v35  ;;  %v11399_v57 = vcombine.high %v4601_v14, %v4605_v42 }
 0xa27   :  { %6313 = vmatprep.subr.bf16.mxu1 %v11343_v37  ;;  %v4608_v37 = vld [vmem:[%s18899_s4 + $0x490] sm:$0xff]  ;;  %v11438_v0 = vcombine.low %v4641_v8, %v4645_v22 }
 0xa29   :  { %6232 = vmatpush1.bf16.msra.mxu0 %v11340_v28  ;;  %v11396_v28 = vcombine.low %v4600_v46, %v4604_v35  ;;  %v4657_v46 = vld [vmem:[%s18899_s4 + $0x618] sm:$0xff] }
 0xa2a   :  { %6314 = vmatpush1.bf16.msra.mxu1 %v11342_v12  ;;  %6233 = vmatprep.subr.bf16.mxu0 %v11349_v3  ;;  %v11398_v12 = vcombine.low %v4601_v14, %v4605_v42  ;;  %v11405_v3 = vcombine.high %v4608_v37, %v4612_v6  ;;  %v4661_v35 = vld [vmem:[%s18899_s4 + $0x638] sm:$0xff]  ;;  %v11446_v14 = vcombine.low %v4649_v51, %v4653_v21 }
 0xa2b   :  { %6315 = vmatprep.subr.bf16.mxu1 %v11351_v19  ;;  %v11407_v19 = vcombine.high %v4609_v38, %v4613_v23  ;;  %v11454_v23 = vcombine.low %v4657_v46, %v4661_v35 }
 0xa2d   :  { %6234 = vmatpush1.bf16.msra.mxu0 %v11348_v34  ;;  %v11413_v34 = vcombine.high %v4616_v30, %v4620_v45  ;;  %v4673_v30 = vld [vmem:[%s18899_s4 + $0x698] sm:$0xff] }
 0xa2e   :  { %6316 = vmatpush1.bf16.msra.mxu1 %v11350_v49  ;;  %6235 = vmatprep.subr.bf16.mxu0 %v11357_v4  ;;  %v4624_v4 = vld [vmem:[%s18899_s4 + $0x510] sm:$0xff]  ;;  %v4677_v45 = vld [vmem:[%s18899_s4 + $0x6b8] sm:$0xff] }
 0xa2f   :  { %6317 = vmatprep.subr.bf16.mxu1 %v11359_v10  ;;  %v4628_v10 = vld [vmem:[%s18899_s4 + $0x530] sm:$0xff] }
 0xa30   :  { %v11420_v53 = vcombine.low %v4624_v4, %v4628_v10 }
 0xa31   :  { %6236 = vmatpush1.bf16.msra.mxu0 %v11356_v17  ;;  %v11421_v17 = vcombine.high %v4624_v4, %v4628_v10  ;;  %v4681_v4 = vld [vmem:[%s18899_s4 + $0x6d8] sm:$0xff] }
 0xa32   :  { %6318 = vmatpush1.bf16.msra.mxu1 %v11358_v9  ;;  %6237 = vmatprep.subr.bf16.mxu0 %v11365_v52  ;;  %v11423_v9 = vcombine.high %v4625_v2, %v4629_v54  ;;  %v4632_v52 = vld [vmem:[%s18899_s4 + $0x550] sm:$0xff]  ;;  %v4685_v10 = vld [vmem:[%s18899_s4 + $0x6f8] sm:$0xff]  ;;  %v11470_v54 = vcombine.low %v4673_v30, %v4677_v45 }
 0xa33   :  { %6319 = vmatprep.subr.bf16.mxu1 %v11367_v11  ;;  %v4636_v11 = vld [vmem:[%s18899_s4 + $0x570] sm:$0xff] }
 0xa34   :  { %v11428_v41 = vcombine.low %v4632_v52, %v4636_v11 }
 0xa35   :  { %6238 = vmatpush1.bf16.msra.mxu0 %v11364_v47  ;;  %v11429_v47 = vcombine.high %v4632_v52, %v4636_v11  ;;  %v4689_v52 = vld [vmem:[%s18899_s4 + $0x718] sm:$0xff] }
 0xa36   :  { %6320 = vmatpush1.bf16.msra.mxu1 %v11366_v62  ;;  %6239 = vmatprep.subr.bf16.mxu0 %v11373_v48  ;;  %v11431_v62 = vcombine.high %v4633_v5, %v4637_v44  ;;  %v4640_v48 = vld [vmem:[%s18899_s4 + $0x590] sm:$0xff]  ;;  %v4693_v11 = vld [vmem:[%s18899_s4 + $0x738] sm:$0xff]  ;;  %v11478_v44 = vcombine.low %v4681_v4, %v4685_v10 }
 0xa37   :  { %6321 = vmatprep.subr.bf16.mxu1 %v11375_v59  ;;  %v4644_v59 = vld [vmem:[%s18899_s4 + $0x5b0] sm:$0xff] }
 0xa38   :  { %v11436_v7 = vcombine.low %v4640_v48, %v4644_v59 }
 0xa39   :  { %6240 = vmatpush1.bf16.msra.mxu0 %v11372_v18  ;;  %v11437_v18 = vcombine.high %v4640_v48, %v4644_v59  ;;  %v4697_v48 = vld [vmem:[%s18899_s4 + $0x758] sm:$0xff] }
 0xa3a   :  { %6322 = vmatpush1.bf16.msra.mxu1 %v11374_v55  ;;  %6241 = vmatprep.subr.bf16.mxu0 %v11381_v40  ;;  %v11439_v55 = vcombine.high %v4641_v8, %v4645_v22  ;;  %v4648_v40 = vld [vmem:[%s18899_s4 + $0x5d0] sm:$0xff]  ;;  %v4701_v59 = vld [vmem:[%s18899_s4 + $0x778] sm:$0xff]  ;;  %v11486_v22 = vcombine.low %v4689_v52, %v4693_v11 }
 0xa3b   :  { %6323 = vmatprep.subr.bf16.mxu1 %v11383_v58  ;;  %v4652_v58 = vld [vmem:[%s18899_s4 + $0x5f0] sm:$0xff] }
 0xa3d   :  { %6242 = vmatpush1.bf16.msra.mxu0 %v11380_v1  ;;  %v11445_v1 = vcombine.high %v4648_v40, %v4652_v58 }
 0xa3e   :  { %6324 = vmatpush1.bf16.msra.mxu1 %v11382_v27  ;;  %6252 = vmatprep.subr.bf16.mxu0 %v11389_v33  ;;  %v11447_v27 = vcombine.high %v4649_v51, %v4653_v21  ;;  %v4656_v33 = vld [vmem:[%s18899_s4 + $0x610] sm:$0xff]  ;;  %v11494_v21 = vcombine.low %v4697_v48, %v4701_v59 }
 0xa3f   :  { %6334 = vmatprep.subr.bf16.mxu1 %v11391_v50  ;;  %v4660_v50 = vld [vmem:[%s18899_s4 + $0x630] sm:$0xff] }
 0xa40   :  { %6244 = vmatmul.mubr.bf16.vlgmr.msra.gmra.mrb[4].mxu0 %v16417_v25  ;;  %v11453_v42 = vcombine.high %v4656_v33, %v4660_v50  ;;  %v11452_v38 = vcombine.low %v4656_v33, %v4660_v50  ;;  %v4713_v33 = vld [vmem:[%s18899_s4 + $0x7d8] sm:$0xff] }
 0xa41   :  { %6326 = vmatmul.mubr.bf16.vlgmr.msra.gmra.mrb[56].mxu1 %v16417_v25  ;;  %6253 = vmatpush1.bf16.msra.mxu0 %v11388_v36  ;;  %v4617_v25 = vld [vmem:[%s18899_s4 + $0x4d8] sm:$0xff]  ;;  %v11444_v36 = vcombine.low %v4648_v40, %v4652_v58 }
 0xa42   :  { %6284 = vmatprep.mubr.bf16.mxu0 %v16625_v56  ;;  %6335 = vmatpush1.bf16.msra.mxu1 %v11390_v15  ;;  %v11415_v49 = vcombine.high %v4617_v25, %v4621_v32  ;;  %v11414_v60 = vcombine.low %v4617_v25, %v4621_v32  ;;  %v11455_v15 = vcombine.high %v4657_v46, %v4661_v35  ;;  %v4705_v40 = vld [vmem:[%s18899_s4 + $0x798] sm:$0xff] }
 0xa43   :  { %6366 = vmatprep.mubr.bf16.mxu1 %v16625_v56  ;;  %6254 = vmatprep.subr.bf16.mxu0 %v11397_v31  ;;  %v11404_v56 = vcombine.low %v4608_v37, %v4612_v6  ;;  %v4664_v31 = vld [vmem:[%s18899_s4 + $0x650] sm:$0xff]  ;;  %v4665_v6 = vld [vmem:[%s18899_s4 + $0x658] sm:$0xff] }
 0xa44   :  { %6336 = vmatprep.subr.bf16.mxu1 %v11399_v57  ;;  %v4668_v37 = vld [vmem:[%s18899_s4 + $0x670] sm:$0xff]  ;;  %v4669_v57 = vld [vmem:[%s18899_s4 + $0x678] sm:$0xff] }
 0xa45   :  { %6255 = vmatpush1.bf16.msra.mxu0 %v11396_v28  ;;  %v11461_v28 = vcombine.high %v4664_v31, %v4668_v37  ;;  %v11460_v25 = vcombine.low %v4664_v31, %v4668_v37  ;;  %v11462_v32 = vcombine.low %v4665_v6, %v4669_v57  ;;  %v4709_v58 = vld [vmem:[%s18899_s4 + $0x7b8] sm:$0xff]  ;;  %v13119_v31 = vld [vmem:[%s18898_s3 + $0x404] ss:$16 sps:$4 sm:$0xff]  }
 0xa46   :  { %6337 = vmatpush1.bf16.msra.mxu1 %v11398_v12  ;;  %6256 = vmatprep.subr.bf16.mxu0 %v11405_v3  ;;  %v11463_v12 = vcombine.high %v4665_v6, %v4669_v57  ;;  %v4672_v3 = vld [vmem:[%s18899_s4 + $0x690] sm:$0xff]  ;;  %v4717_v50 = vld [vmem:[%s18899_s4 + $0x7f8] sm:$0xff]  ;;  %v11502_v35 = vcombine.low %v4705_v40, %v4709_v58 }
 0xa47   :  { %6338 = vmatprep.subr.bf16.mxu1 %v11407_v19  ;;  %v4676_v19 = vld [vmem:[%s18899_s4 + $0x6b0] sm:$0xff]  ;;  %v13122_v37 = vld [vmem:[%s18898_s3 + $0x40c] ss:$16 sps:$4 sm:$0xff]   ;;  %v13120_v57 = vld [vmem:[%s18898_s3 + $0x408] ss:$16 sps:$4 sm:$0xff]  }
 0xa48   :  { %v11468_v2 = vcombine.low %v4672_v3, %v4676_v19  ;;  %v13117_v6 = vld [vmem:[%s18898_s3 + $0x400] ss:$16 sps:$4 sm:$0xff]  }
 0xa49   :  { %6257 = vmatpush1.bf16.msra.mxu0 %v11404_v56  ;;  %v11469_v56 = vcombine.high %v4672_v3, %v4676_v19  ;;  %v13131_v3 = vld [vmem:[%s18898_s3 + $0x444] ss:$16 sps:$4 sm:$0xff]   ;;  %v13129_v19 = vld [vmem:[%s18898_s3 + $0x440] ss:$16 sps:$4 sm:$0xff]  }
 0xa4a   :  { %6339 = vmatpush1.bf16.msra.mxu1 %v11406_v13  ;;  %6258 = vmatprep.subr.bf16.mxu0 %v11413_v34  ;;  %v11471_v13 = vcombine.high %v4673_v30, %v4677_v45  ;;  %v4680_v34 = vld [vmem:[%s18899_s4 + $0x6d0] sm:$0xff]  ;;  %v13132_v30 = vld [vmem:[%s18898_s3 + $0x448] ss:$16 sps:$4 sm:$0xff]  }
 0xa4b   :  { %6340 = vmatprep.subr.bf16.mxu1 %v11415_v49  ;;  %v4684_v49 = vld [vmem:[%s18899_s4 + $0x6f0] sm:$0xff] }
 0xa4c   :  { %v11476_v5 = vcombine.low %v4680_v34, %v4684_v49  ;;  %v13137_v45 = vld [vmem:[%s18898_s3 + $0x464] ss:$16 sps:$4 sm:$0xff]  }
 0xa4d   :  { %6259 = vmatpush1.bf16.msra.mxu0 %v11412_v43  ;;  %v11477_v43 = vcombine.high %v4680_v34, %v4684_v49  ;;  %v13146_v34 = vld [vmem:[%s18898_s3 + $0x48c] ss:$16 sps:$4 sm:$0xff]   ;;  %v13141_v49 = vld [vmem:[%s18898_s3 + $0x480] ss:$16 sps:$4 sm:$0xff]  }
 0xa4e   :  { %6341 = vmatpush1.bf16.msra.mxu1 %v11414_v60  ;;  %6260 = vmatprep.subr.bf16.mxu0 %v11421_v17  ;;  %v11479_v60 = vcombine.high %v4681_v4, %v4685_v10  ;;  %v4688_v17 = vld [vmem:[%s18899_s4 + $0x710] sm:$0xff]  ;;  %v13144_v4 = vld [vmem:[%s18898_s3 + $0x488] ss:$16 sps:$4 sm:$0xff]  }
 0xa4f   :  { %6342 = vmatprep.subr.bf16.mxu1 %v11423_v9  ;;  %v4692_v9 = vld [vmem:[%s18899_s4 + $0x730] sm:$0xff] }
 0xa50   :  { %v11484_v8 = vcombine.low %v4688_v17, %v4692_v9  ;;  %v13149_v10 = vld [vmem:[%s18898_s3 + $0x4a4] ss:$16 sps:$4 sm:$0xff]  }
 0xa51   :  { %6261 = vmatpush1.bf16.msra.mxu0 %v11420_v53  ;;  %v11485_v53 = vcombine.high %v4688_v17, %v4692_v9  ;;  %v13158_v17 = vld [vmem:[%s18898_s3 + $0x4cc] ss:$16 sps:$4 sm:$0xff]   ;;  %v13153_v9 = vld [vmem:[%s18898_s3 + $0x4c0] ss:$16 sps:$4 sm:$0xff]  }
 0xa52   :  { %6343 = vmatpush1.bf16.msra.mxu1 %v11422_v26  ;;  %6262 = vmatprep.subr.bf16.mxu0 %v11429_v47  ;;  %v11487_v26 = vcombine.high %v4689_v52, %v4693_v11  ;;  %v4696_v47 = vld [vmem:[%s18899_s4 + $0x750] sm:$0xff]  ;;  %v13156_v52 = vld [vmem:[%s18898_s3 + $0x4c8] ss:$16 sps:$4 sm:$0xff]  }
 0xa53   :  { %6344 = vmatprep.subr.bf16.mxu1 %v11431_v62  ;;  %v4700_v62 = vld [vmem:[%s18899_s4 + $0x770] sm:$0xff] }
 0xa54   :  { %v11492_v51 = vcombine.low %v4696_v47, %v4700_v62  ;;  %v13161_v11 = vld [vmem:[%s18898_s3 + $0x4e4] ss:$16 sps:$4 sm:$0xff]  }
 0xa55   :  { %6263 = vmatpush1.bf16.msra.mxu0 %v11428_v41  ;;  %v11493_v41 = vcombine.high %v4696_v47, %v4700_v62  ;;  %v13170_v47 = vld [vmem:[%s18898_s3 + $0x50c] ss:$16 sps:$4 sm:$0xff]   ;;  %v13165_v62 = vld [vmem:[%s18898_s3 + $0x500] ss:$16 sps:$4 sm:$0xff]  }
 0xa56   :  { %6345 = vmatpush1.bf16.msra.mxu1 %v11430_v63  ;;  %6264 = vmatprep.subr.bf16.mxu0 %v11437_v18  ;;  %v11495_v63 = vcombine.high %v4697_v48, %v4701_v59  ;;  %v4704_v18 = vld [vmem:[%s18899_s4 + $0x790] sm:$0xff]  ;;  %v13168_v48 = vld [vmem:[%s18898_s3 + $0x508] ss:$16 sps:$4 sm:$0xff]  }
 0xa57   :  { %6346 = vmatprep.subr.bf16.mxu1 %v11439_v55  ;;  %v4708_v55 = vld [vmem:[%s18899_s4 + $0x7b0] sm:$0xff] }
 0xa58   :  { %v11500_v46 = vcombine.low %v4704_v18, %v4708_v55  ;;  %v13173_v59 = vld [vmem:[%s18898_s3 + $0x524] ss:$16 sps:$4 sm:$0xff]  }
 0xa59   :  { %6265 = vmatpush1.bf16.msra.mxu0 %v11436_v7  ;;  %v11501_v7 = vcombine.high %v4704_v18, %v4708_v55  ;;  %v13182_v18 = vld [vmem:[%s18898_s3 + $0x54c] ss:$16 sps:$4 sm:$0xff]   ;;  %v13177_v55 = vld [vmem:[%s18898_s3 + $0x540] ss:$16 sps:$4 sm:$0xff]  }
 0xa5a   :  { %6347 = vmatpush1.bf16.msra.mxu1 %v11438_v0  ;;  %6266 = vmatprep.subr.bf16.mxu0 %v11445_v1  ;;  %v11503_v0 = vcombine.high %v4705_v40, %v4709_v58  ;;  %v4712_v1 = vld [vmem:[%s18899_s4 + $0x7d0] sm:$0xff]  ;;  %v13180_v40 = vld [vmem:[%s18898_s3 + $0x548] ss:$16 sps:$4 sm:$0xff]  }
 0xa5b   :  { %6348 = vmatprep.subr.bf16.mxu1 %v11447_v27  ;;  %v4716_v27 = vld [vmem:[%s18899_s4 + $0x7f0] sm:$0xff] }
 0xa5c   :  { %v13185_v58 = vld [vmem:[%s18898_s3 + $0x564] ss:$16 sps:$4 sm:$0xff]  }
 0xa5d   :  { %6267 = vmatpush1.bf16.msra.mxu0 %v11444_v36  ;;  %v11509_v36 = vcombine.high %v4712_v1, %v4716_v27 }
 0xa5e   :  { %6349 = vmatpush1.bf16.msra.mxu1 %v11446_v14  ;;  %6268 = vmatprep.subr.bf16.mxu0 %v11453_v42  ;;  %v11511_v14 = vcombine.high %v4713_v33, %v4717_v50  ;;  %v11508_v42 = vcombine.low %v4712_v1, %v4716_v27  ;;  %v13194_v1 = vld [vmem:[%s18898_s3 + $0x58c] ss:$16 sps:$4 sm:$0xff]   ;;  %v13189_v27 = vld [vmem:[%s18898_s3 + $0x580] ss:$16 sps:$4 sm:$0xff]  }
 0xa5f   :  { %6350 = vmatprep.subr.bf16.mxu1 %v11455_v15  ;;  %v11510_v15 = vcombine.low %v4713_v33, %v4717_v50  ;;  %v13192_v33 = vld [vmem:[%s18898_s3 + $0x588] ss:$16 sps:$4 sm:$0xff]   ;;  %v13197_v50 = vld [vmem:[%s18898_s3 + $0x5a4] ss:$16 sps:$4 sm:$0xff]  }
 0xa61   :  { %6269 = vmatpush1.bf16.msra.mxu0 %v11452_v38  ;;  %v13125_v38 = vld [vmem:[%s18898_s3 + $0x424] ss:$16 sps:$4 sm:$0xff]  }
 0xa62   :  { %6351 = vmatpush1.bf16.msra.mxu1 %v11454_v23  ;;  %6270 = vmatprep.subr.bf16.mxu0 %v11461_v28  ;;  %v13128_v23 = vld [vmem:[%s18898_s3 + $0x42c] ss:$16 sps:$4 sm:$0xff]   ;;  %v13123_v28 = vld [vmem:[%s18898_s3 + $0x420] ss:$16 sps:$4 sm:$0xff]  }
 0xa63   :  { %6352 = vmatprep.subr.bf16.mxu1 %v11463_v12  ;;  %v13126_v12 = vld [vmem:[%s18898_s3 + $0x428] ss:$16 sps:$4 sm:$0xff]  }
 0xa65   :  { %6271 = vmatpush1.bf16.msra.mxu0 %v11460_v25  ;;  %v13140_v25 = vld [vmem:[%s18898_s3 + $0x46c] ss:$16 sps:$4 sm:$0xff]  }
 0xa66   :  { %6353 = vmatpush1.bf16.msra.mxu1 %v11462_v32  ;;  %6272 = vmatprep.subr.bf16.mxu0 %v11469_v56  ;;  %v13135_v32 = vld [vmem:[%s18898_s3 + $0x460] ss:$16 sps:$4 sm:$0xff]   ;;  %v13138_v56 = vld [vmem:[%s18898_s3 + $0x468] ss:$16 sps:$4 sm:$0xff]  }
 0xa67   :  { %6354 = vmatprep.subr.bf16.mxu1 %v11471_v13  ;;  %v13143_v13 = vld [vmem:[%s18898_s3 + $0x484] ss:$16 sps:$4 sm:$0xff]  }
 0xa69   :  { %6273 = vmatpush1.bf16.msra.mxu0 %v11468_v2  ;;  %v13152_v2 = vld [vmem:[%s18898_s3 + $0x4ac] ss:$16 sps:$4 sm:$0xff]  }
 0xa6a   :  { %6355 = vmatpush1.bf16.msra.mxu1 %v11470_v54  ;;  %6274 = vmatprep.subr.bf16.mxu0 %v11477_v43  ;;  %v13147_v54 = vld [vmem:[%s18898_s3 + $0x4a0] ss:$16 sps:$4 sm:$0xff]   ;;  %v13150_v43 = vld [vmem:[%s18898_s3 + $0x4a8] ss:$16 sps:$4 sm:$0xff]  }
 0xa6b   :  { %6356 = vmatprep.subr.bf16.mxu1 %v11479_v60  ;;  %v13155_v60 = vld [vmem:[%s18898_s3 + $0x4c4] ss:$16 sps:$4 sm:$0xff]  }
 0xa6d   :  { %6275 = vmatpush1.bf16.msra.mxu0 %v11476_v5  ;;  %v13164_v5 = vld [vmem:[%s18898_s3 + $0x4ec] ss:$16 sps:$4 sm:$0xff]  }
 0xa6e   :  { %6357 = vmatpush1.bf16.msra.mxu1 %v11478_v44  ;;  %6276 = vmatprep.subr.bf16.mxu0 %v11485_v53  ;;  %v13159_v44 = vld [vmem:[%s18898_s3 + $0x4e0] ss:$16 sps:$4 sm:$0xff]   ;;  %v13162_v53 = vld [vmem:[%s18898_s3 + $0x4e8] ss:$16 sps:$4 sm:$0xff]  }
 0xa6f   :  { %6358 = vmatprep.subr.bf16.mxu1 %v11487_v26  ;;  %v13167_v26 = vld [vmem:[%s18898_s3 + $0x504] ss:$16 sps:$4 sm:$0xff]  }
 0xa71   :  { %6277 = vmatpush1.bf16.msra.mxu0 %v11484_v8  ;;  %v13176_v8 = vld [vmem:[%s18898_s3 + $0x52c] ss:$16 sps:$4 sm:$0xff]  }
 0xa72   :  { %6359 = vmatpush1.bf16.msra.mxu1 %v11486_v22  ;;  %6278 = vmatprep.subr.bf16.mxu0 %v11493_v41  ;;  %v13171_v22 = vld [vmem:[%s18898_s3 + $0x520] ss:$16 sps:$4 sm:$0xff]   ;;  %v13174_v41 = vld [vmem:[%s18898_s3 + $0x528] ss:$16 sps:$4 sm:$0xff]  }
 0xa73   :  { %6360 = vmatprep.subr.bf16.mxu1 %v11495_v63  ;;  %v13179_v63 = vld [vmem:[%s18898_s3 + $0x544] ss:$16 sps:$4 sm:$0xff]  }
 0xa75   :  { %6279 = vmatpush1.bf16.msra.mxu0 %v11492_v51  ;;  %v13188_v51 = vld [vmem:[%s18898_s3 + $0x56c] ss:$16 sps:$4 sm:$0xff]  }
 0xa76   :  { %6361 = vmatpush1.bf16.msra.mxu1 %v11494_v21  ;;  %6280 = vmatprep.subr.bf16.mxu0 %v11501_v7  ;;  %v13183_v21 = vld [vmem:[%s18898_s3 + $0x560] ss:$16 sps:$4 sm:$0xff]   ;;  %v13186_v7 = vld [vmem:[%s18898_s3 + $0x568] ss:$16 sps:$4 sm:$0xff]  }
 0xa77   :  { %6362 = vmatprep.subr.bf16.mxu1 %v11503_v0  ;;  %v13191_v0 = vld [vmem:[%s18898_s3 + $0x584] ss:$16 sps:$4 sm:$0xff]  }
 0xa79   :  { %6281 = vmatpush1.bf16.msra.mxu0 %v11500_v46  ;;  %v13200_v46 = vld [vmem:[%s18898_s3 + $0x5ac] ss:$16 sps:$4 sm:$0xff]  }
 0xa7a   :  { %6363 = vmatpush1.bf16.msra.mxu1 %v11502_v35  ;;  %6282 = vmatprep.subr.bf16.mxu0 %v11509_v36  ;;  %v13195_v35 = vld [vmem:[%s18898_s3 + $0x5a0] ss:$16 sps:$4 sm:$0xff]   ;;  %v13198_v36 = vld [vmem:[%s18898_s3 + $0x5a8] ss:$16 sps:$4 sm:$0xff]  }
 0xa7b   :  { %6364 = vmatprep.subr.bf16.mxu1 %v11511_v14  ;;  %v13203_v14 = vld [vmem:[%s18898_s3 + $0x5c4] ss:$16 sps:$4 sm:$0xff]  }
 0xa7d   :  { %6283 = vmatpush1.bf16.msra.mxu0 %v11508_v42  ;;  %v13206_v42 = vld [vmem:[%s18898_s3 + $0x5cc] ss:$16 sps:$4 sm:$0xff]  }
 0xa7e   :  { %6365 = vmatpush1.bf16.msra.mxu1 %v11510_v15  ;;  %8206 = vmatprep.subr.bf16.mxu0 %v13119_v31  ;;  %v13201_v15 = vld [vmem:[%s18898_s3 + $0x5c0] ss:$16 sps:$4 sm:$0xff]   ;;  %v13204_v31 = vld [vmem:[%s18898_s3 + $0x5c8] ss:$16 sps:$4 sm:$0xff]  }
 0xa7f   :  { %8370 = vmatprep.subr.bf16.mxu1 %v13122_v37  ;;  %v13209_v37 = vld [vmem:[%s18898_s3 + $0x5e4] ss:$16 sps:$4 sm:$0xff]  }
 0xa80   :  { %6285 = vmatmul.mubr.bf16.vlgmr.msra.gmra.mrb[4].mxu0 %v16627_v20 }
 0xa81   :  { %6367 = vmatmul.mubr.bf16.vlgmr.msra.gmra.mrb[56].mxu1 %v16627_v20  ;;  %8207 = vmatpush1.bf16.msra.mxu0 %v13117_v6  ;;  %v13134_v20 = vld [vmem:[%s18898_s3 + $0x44c] ss:$16 sps:$4 sm:$0xff]  }
 0xa82   :  { %8371 = vmatpush1.bf16.msra.mxu1 %v13120_v57  ;;  %8208 = vmatprep.subr.bf16.mxu0 %v13125_v38  ;;  %v13212_v6 = vld [vmem:[%s18898_s3 + $0x5ec] ss:$16 sps:$4 sm:$0xff]   ;;  %v13207_v57 = vld [vmem:[%s18898_s3 + $0x5e0] ss:$16 sps:$4 sm:$0xff]   ;;  %v13210_v38 = vld [vmem:[%s18898_s3 + $0x5e8] ss:$16 sps:$4 sm:$0xff]  }
 0xa83   :  { %8372 = vmatprep.subr.bf16.mxu1 %v13128_v23  ;;  %v13215_v23 = vld [vmem:[%s18898_s3 + $0x604] ss:$16 sps:$4 sm:$0xff]  }
 0xa85   :  { %8209 = vmatpush1.bf16.msra.mxu0 %v13123_v28  ;;  %v13218_v28 = vld [vmem:[%s18898_s3 + $0x60c] ss:$16 sps:$4 sm:$0xff]  }
 0xa86   :  { %8373 = vmatpush1.bf16.msra.mxu1 %v13126_v12  ;;  %8210 = vmatprep.subr.bf16.mxu0 %v13131_v3  ;;  %v11254_v12 = vld [vmem:[%s18896_s5 + $0x100] ss:$8 sm:$0xf] }
 0xa87   :  { %8374 = vmatprep.subr.bf16.mxu1 %v13134_v20  ;;  %v11255_v3 = vld [vmem:[%s18896_s5 + $0x100] ss:$8 sm:$0xf0] }
 0xa88   :  { %v17205_v20 = vor.u32 %v11255_v3, %v11254_v12  ;;  %v13267_v12 = vld [vmem:[%s18898_s3 + $0x720] ss:$16 sps:$4 sm:$0xff]   ;;  %v13270_v3 = vld [vmem:[%s18898_s3 + $0x728] ss:$16 sps:$4 sm:$0xff]  }
 0xa89   :  { %8211 = vmatpush1.bf16.msra.mxu0 %v13129_v19 }
 0xa8a   :  { %8375 = vmatpush1.bf16.msra.mxu1 %v13132_v30  ;;  %8212 = vmatprep.subr.bf16.mxu0 %v13137_v45  ;;  %v4730_v19 = vrot.slane %v17205_v20, %v15436_v24  ;;  %v4734_v30 = vrot.slane %v17205_v20, %v15442_v61  ;;  %v4742_v45 = vrot.slane %v17205_v20, %v15974_v29 }
 0xa8b   :  { %8376 = vmatprep.subr.bf16.mxu1 %v13140_v25 }
 0xa8d   :  { %8213 = vmatpush1.bf16.msra.mxu0 %v13135_v32 }
 0xa8e   :  { %8377 = vmatpush1.bf16.msra.mxu1 %v13138_v56  ;;  %8214 = vmatprep.subr.bf16.mxu0 %v13143_v13 }
 0xa8f   :  { %8378 = vmatprep.subr.bf16.mxu1 %v13146_v34 }
 0xa91   :  { %8215 = vmatpush1.bf16.msra.mxu0 %v13141_v49 }
 0xa92   :  { %8379 = vmatpush1.bf16.msra.mxu1 %v13144_v4  ;;  %8216 = vmatprep.subr.bf16.mxu0 %v13149_v10 }
 0xa93   :  { %8380 = vmatprep.subr.bf16.mxu1 %v13152_v2 }
 0xa95   :  { %8217 = vmatpush1.bf16.msra.mxu0 %v13147_v54 }
 0xa96   :  { %8381 = vmatpush1.bf16.msra.mxu1 %v13150_v43  ;;  %8218 = vmatprep.subr.bf16.mxu0 %v13155_v60 }
 0xa97   :  { %8382 = vmatprep.subr.bf16.mxu1 %v13158_v17 }
 0xa99   :  { %8219 = vmatpush1.bf16.msra.mxu0 %v13153_v9 }
 0xa9a   :  { %8383 = vmatpush1.bf16.msra.mxu1 %v13156_v52  ;;  %8220 = vmatprep.subr.bf16.mxu0 %v13161_v11  ;;  %v13213_v11 = vld [vmem:[%s18898_s3 + $0x600] ss:$16 sps:$4 sm:$0xff]  }
 0xa9b   :  { %8384 = vmatprep.subr.bf16.mxu1 %v13164_v5  ;;  %v13216_v5 = vld [vmem:[%s18898_s3 + $0x608] ss:$16 sps:$4 sm:$0xff]  }
 0xa9d   :  { %8221 = vmatpush1.bf16.msra.mxu0 %v13159_v44 }
 0xa9e   :  { %8385 = vmatpush1.bf16.msra.mxu1 %v13162_v53  ;;  %8222 = vmatprep.subr.bf16.mxu0 %v13167_v26  ;;  %v13221_v53 = vld [vmem:[%s18898_s3 + $0x624] ss:$16 sps:$4 sm:$0xff]   ;;  %v13224_v26 = vld [vmem:[%s18898_s3 + $0x62c] ss:$16 sps:$4 sm:$0xff]  }
 0xa9f   :  { %8386 = vmatprep.subr.bf16.mxu1 %v13170_v47 }
 0xaa1   :  { %8223 = vmatpush1.bf16.msra.mxu0 %v13165_v62  ;;  %v13219_v62 = vld [vmem:[%s18898_s3 + $0x620] ss:$16 sps:$4 sm:$0xff]  }
 0xaa2   :  { %8387 = vmatpush1.bf16.msra.mxu1 %v13168_v48  ;;  %8224 = vmatprep.subr.bf16.mxu0 %v13173_v59  ;;  %v13222_v48 = vld [vmem:[%s18898_s3 + $0x628] ss:$16 sps:$4 sm:$0xff]   ;;  %v13227_v59 = vld [vmem:[%s18898_s3 + $0x644] ss:$16 sps:$4 sm:$0xff]  }
 0xaa3   :  { %8388 = vmatprep.subr.bf16.mxu1 %v13176_v8  ;;  %v13230_v8 = vld [vmem:[%s18898_s3 + $0x64c] ss:$16 sps:$4 sm:$0xff]  }
 0xaa5   :  { %8225 = vmatpush1.bf16.msra.mxu0 %v13171_v22  ;;  %v13225_v22 = vld [vmem:[%s18898_s3 + $0x640] ss:$16 sps:$4 sm:$0xff]  }
 0xaa6   :  { %8389 = vmatpush1.bf16.msra.mxu1 %v13174_v41  ;;  %8226 = vmatprep.subr.bf16.mxu0 %v13179_v63  ;;  %v13228_v41 = vld [vmem:[%s18898_s3 + $0x648] ss:$16 sps:$4 sm:$0xff]   ;;  %v13233_v63 = vld [vmem:[%s18898_s3 + $0x664] ss:$16 sps:$4 sm:$0xff]  }
 0xaa7   :  { %8390 = vmatprep.subr.bf16.mxu1 %v13182_v18  ;;  %v13236_v18 = vld [vmem:[%s18898_s3 + $0x66c] ss:$16 sps:$4 sm:$0xff]  }
 0xaa9   :  { %8227 = vmatpush1.bf16.msra.mxu0 %v13177_v55  ;;  %v13231_v55 = vld [vmem:[%s18898_s3 + $0x660] ss:$16 sps:$4 sm:$0xff]  }
 0xaaa   :  { %8391 = vmatpush1.bf16.msra.mxu1 %v13180_v40  ;;  %8228 = vmatprep.subr.bf16.mxu0 %v13185_v58  ;;  %v13234_v40 = vld [vmem:[%s18898_s3 + $0x668] ss:$16 sps:$4 sm:$0xff]   ;;  %v13239_v58 = vld [vmem:[%s18898_s3 + $0x684] ss:$16 sps:$4 sm:$0xff]  }
 0xaab   :  { %8392 = vmatprep.subr.bf16.mxu1 %v13188_v51  ;;  %v13242_v51 = vld [vmem:[%s18898_s3 + $0x68c] ss:$16 sps:$4 sm:$0xff]  }
 0xaad   :  { %8229 = vmatpush1.bf16.msra.mxu0 %v13183_v21  ;;  %v13237_v21 = vld [vmem:[%s18898_s3 + $0x680] ss:$16 sps:$4 sm:$0xff]  }
 0xaae   :  { %8393 = vmatpush1.bf16.msra.mxu1 %v13186_v7  ;;  %8230 = vmatprep.subr.bf16.mxu0 %v13191_v0  ;;  %v13240_v7 = vld [vmem:[%s18898_s3 + $0x688] ss:$16 sps:$4 sm:$0xff]   ;;  %v13245_v0 = vld [vmem:[%s18898_s3 + $0x6a4] ss:$16 sps:$4 sm:$0xff]  }
 0xaaf   :  { %8394 = vmatprep.subr.bf16.mxu1 %v13194_v1  ;;  %v13248_v1 = vld [vmem:[%s18898_s3 + $0x6ac] ss:$16 sps:$4 sm:$0xff]  }
 0xab1   :  { %8231 = vmatpush1.bf16.msra.mxu0 %v13189_v27  ;;  %v13243_v27 = vld [vmem:[%s18898_s3 + $0x6a0] ss:$16 sps:$4 sm:$0xff]  }
 0xab2   :  { %8395 = vmatpush1.bf16.msra.mxu1 %v13192_v33  ;;  %8232 = vmatprep.subr.bf16.mxu0 %v13197_v50  ;;  %v13246_v33 = vld [vmem:[%s18898_s3 + $0x6a8] ss:$16 sps:$4 sm:$0xff]   ;;  %v13251_v50 = vld [vmem:[%s18898_s3 + $0x6c4] ss:$16 sps:$4 sm:$0xff]  }
 0xab3   :  { %8396 = vmatprep.subr.bf16.mxu1 %v13200_v46  ;;  %v13254_v46 = vld [vmem:[%s18898_s3 + $0x6cc] ss:$16 sps:$4 sm:$0xff]  }
 0xab5   :  { %8233 = vmatpush1.bf16.msra.mxu0 %v13195_v35  ;;  %v13249_v35 = vld [vmem:[%s18898_s3 + $0x6c0] ss:$16 sps:$4 sm:$0xff]  }
 0xab6   :  { %8397 = vmatpush1.bf16.msra.mxu1 %v13198_v36  ;;  %8234 = vmatprep.subr.bf16.mxu0 %v13203_v14  ;;  %v13252_v36 = vld [vmem:[%s18898_s3 + $0x6c8] ss:$16 sps:$4 sm:$0xff]   ;;  %v13257_v14 = vld [vmem:[%s18898_s3 + $0x6e4] ss:$16 sps:$4 sm:$0xff]  }
 0xab7   :  { %8398 = vmatprep.subr.bf16.mxu1 %v13206_v42  ;;  %v13260_v42 = vld [vmem:[%s18898_s3 + $0x6ec] ss:$16 sps:$4 sm:$0xff]  }
 0xab9   :  { %8235 = vmatpush1.bf16.msra.mxu0 %v13201_v15  ;;  %v13255_v15 = vld [vmem:[%s18898_s3 + $0x6e0] ss:$16 sps:$4 sm:$0xff]  }
 0xaba   :  { %8399 = vmatpush1.bf16.msra.mxu1 %v13204_v31  ;;  %8236 = vmatprep.subr.bf16.mxu0 %v13209_v37  ;;  %v13258_v31 = vld [vmem:[%s18898_s3 + $0x6e8] ss:$16 sps:$4 sm:$0xff]   ;;  %v13263_v37 = vld [vmem:[%s18898_s3 + $0x704] ss:$16 sps:$4 sm:$0xff]  }
 0xabb   :  { %8400 = vmatprep.subr.bf16.mxu1 %v13212_v6  ;;  %v13266_v6 = vld [vmem:[%s18898_s3 + $0x70c] ss:$16 sps:$4 sm:$0xff]  }
 0xabd   :  { %8237 = vmatpush1.bf16.msra.mxu0 %v13207_v57  ;;  %v13261_v57 = vld [vmem:[%s18898_s3 + $0x700] ss:$16 sps:$4 sm:$0xff]  }
 0xabe   :  { %8401 = vmatpush1.bf16.msra.mxu1 %v13210_v38  ;;  %8247 = vmatprep.subr.bf16.mxu0 %v13215_v23  ;;  %v13264_v38 = vld [vmem:[%s18898_s3 + $0x708] ss:$16 sps:$4 sm:$0xff]   ;;  %v13269_v23 = vld [vmem:[%s18898_s3 + $0x724] ss:$16 sps:$4 sm:$0xff]  }
 0xabf   :  { %8411 = vmatprep.subr.bf16.mxu1 %v13218_v28  ;;  %v13272_v28 = vld [vmem:[%s18898_s3 + $0x72c] ss:$16 sps:$4 sm:$0xff]  }
 0xad3   :  { %v6122_v25 = vpop.f32.mrb[0].mxu0  ;;  %v17213_v32 = vpop.f32.mrb[52].mxu1 }
 0xad4   :  { %v12667_v56 = vadd.f32 %v6122_v25, %v4730_v19  ;;  %v6124_v13 = vpop.f32.mrb[1].mxu0  ;;  %v6206_v34 = vpop.f32.mrb[53].mxu1  ;;  %v13275_v19 = vld [vmem:[%s18898_s3 + $0x744] ss:$16 sps:$4 sm:$0xff]   ;;  %v13276_v25 = vld [vmem:[%s18898_s3 + $0x748] ss:$16 sps:$4 sm:$0xff]  }
 0xad5   :  { %v12668_v49 = vadd.f32 %v6124_v13, %v4734_v30  ;;  %v12670_v4 = vadd.f32 %v6206_v34, %v4742_v45  ;;  %v6126_v10 = vpop.f32.mrb[2].mxu0  ;;  %v6208_v2 = vpop.f32.mrb[54].mxu1  ;;  %v13278_v30 = vld [vmem:[%s18898_s3 + $0x74c] ss:$16 sps:$4 sm:$0xff]   ;;  %v13273_v45 = vld [vmem:[%s18898_s3 + $0x740] ss:$16 sps:$4 sm:$0xff]  }
 0xad6   :  { %v17215_v54 = vmax.f32 %v12667_v56, 0.0  ;;  %v6127_v43 = vpop.f32.mrb[3].mxu0  ;;  %v6209_v60 = vpop.f32.mrb[55].mxu1  ;;  %v13281_v56 = vld [vmem:[%s18898_s3 + $0x764] ss:$16 sps:$4 sm:$0xff]  }
 0xad7   :  { %v17217_v17 = vmax.f32 %v12668_v49, 0.0  ;;  %v17219_v9 = vmax.f32 %v12670_v4, 0.0  ;;  %v13284_v13 = vld [vmem:[%s18898_s3 + $0x76c] ss:$16 sps:$4 sm:$0xff]   ;;  %v13279_v34 = vld [vmem:[%s18898_s3 + $0x760] ss:$16 sps:$4 sm:$0xff]  }
 0xad8   :  { %v6895_v44 = vpack.c.bf16 %v17215_v54, %v17215_v54  ;;  %v13282_v49 = vld [vmem:[%s18898_s3 + $0x768] ss:$16 sps:$4 sm:$0xff]   ;;  %v13287_v4 = vld [vmem:[%s18898_s3 + $0x784] ss:$16 sps:$4 sm:$0xff]   ;;  %v13290_v10 = vld [vmem:[%s18898_s3 + $0x78c] ss:$16 sps:$4 sm:$0xff]  }
 0xad9   :  { %v6896_v52 = vpack.c.bf16 %v17217_v17, %v17217_v17  ;;  %v6898_v47 = vpack.c.bf16 %v17219_v9, %v17219_v9  ;;  %v13285_v2 = vld [vmem:[%s18898_s3 + $0x780] ss:$16 sps:$4 sm:$0xff]   ;;  %v13288_v43 = vld [vmem:[%s18898_s3 + $0x788] ss:$16 sps:$4 sm:$0xff]   ;;  %v13293_v60 = vld [vmem:[%s18898_s3 + $0x7a4] ss:$16 sps:$4 sm:$0xff]  }
 0xadb   :  { %8238 = vmatprep.mubr.bf16.mxu0 %v6896_v52  ;;  %8402 = vmatprep.mubr.bf16.mxu1 %v6896_v52  ;;  %v13296_v52 = vld [vmem:[%s18898_s3 + $0x7ac] ss:$16 sps:$4 sm:$0xff]  }
 0xadc   :  { %8239 = vmatmul.mubr.bf16.vlgmr.msra.gmra.mrb[8].mxu0 %v6895_v44  ;;  %8403 = vmatmul.mubr.bf16.vlgmr.msra.gmra.mrb[60].mxu1 %v6895_v44  ;;  %v4738_v44 = vrot.slane %v17205_v20, %v15971_v16 }
 0xadd   :  { %8248 = vmatpush1.bf16.msra.mxu0 %v13213_v11  ;;  %8412 = vmatpush1.bf16.msra.mxu1 %v13216_v5  ;;  %v13291_v11 = vld [vmem:[%s18898_s3 + $0x7a0] ss:$16 sps:$4 sm:$0xff]   ;;  %v13294_v5 = vld [vmem:[%s18898_s3 + $0x7a8] ss:$16 sps:$4 sm:$0xff]  }
 0xade   :  { %8279 = vmatprep.mubr.bf16.mxu0 %v6898_v47  ;;  %8443 = vmatprep.mubr.bf16.mxu1 %v6898_v47  ;;  %v13297_v47 = vld [vmem:[%s18898_s3 + $0x7c0] ss:$16 sps:$4 sm:$0xff]  }
 0xadf   :  { %8249 = vmatprep.subr.bf16.mxu0 %v13221_v53  ;;  %8413 = vmatprep.subr.bf16.mxu1 %v13224_v26  ;;  %v13299_v53 = vld [vmem:[%s18898_s3 + $0x7c4] ss:$16 sps:$4 sm:$0xff]   ;;  %v13302_v26 = vld [vmem:[%s18898_s3 + $0x7cc] ss:$16 sps:$4 sm:$0xff]  }
 0xae1   :  { %8250 = vmatpush1.bf16.msra.mxu0 %v13219_v62  ;;  %8414 = vmatpush1.bf16.msra.mxu1 %v13222_v48  ;;  %v13300_v62 = vld [vmem:[%s18898_s3 + $0x7c8] ss:$16 sps:$4 sm:$0xff]   ;;  %v12669_v48 = vadd.f32 %v17213_v32, %v4738_v44 }
 0xae2   :  { %8251 = vmatprep.subr.bf16.mxu0 %v13227_v59  ;;  %8415 = vmatprep.subr.bf16.mxu1 %v13230_v8  ;;  %v13305_v59 = vld [vmem:[%s18898_s3 + $0x7e4] ss:$16 sps:$4 sm:$0xff]   ;;  %v13308_v8 = vld [vmem:[%s18898_s3 + $0x7ec] ss:$16 sps:$4 sm:$0xff]   ;;  %v13306_v32 = vld [vmem:[%s18898_s3 + $0x7e8] ss:$16 sps:$4 sm:$0xff]  }
 0xae3   :  { %v13372_v44 = vld [vmem:[%s18898_s3 + $0x948] ss:$16 sps:$4 sm:$0xff]  }
 0xae5   :  { %8252 = vmatpush1.bf16.msra.mxu0 %v13225_v22  ;;  %8416 = vmatpush1.bf16.msra.mxu1 %v13228_v41  ;;  %v13303_v22 = vld [vmem:[%s18898_s3 + $0x7e0] ss:$16 sps:$4 sm:$0xff]   ;;  %v17416_v41 = vmax.f32 %v12669_v48, 0.0  ;;  %v13383_v48 = vld [vmem:[%s18898_s3 + $0x984] ss:$16 sps:$4 sm:$0xff]  }
 0xae6   :  { %8253 = vmatprep.subr.bf16.mxu0 %v13233_v63  ;;  %8417 = vmatprep.subr.bf16.mxu1 %v13236_v18  ;;  %v13311_v63 = vld [vmem:[%s18898_s3 + $0x804] ss:$16 sps:$4 sm:$0xff]   ;;  %v13314_v18 = vld [vmem:[%s18898_s3 + $0x80c] ss:$16 sps:$4 sm:$0xff]  }
 0xae9   :  { %8254 = vmatpush1.bf16.msra.mxu0 %v13231_v55  ;;  %8418 = vmatpush1.bf16.msra.mxu1 %v13234_v40  ;;  %v13309_v55 = vld [vmem:[%s18898_s3 + $0x800] ss:$16 sps:$4 sm:$0xff]   ;;  %v13312_v40 = vld [vmem:[%s18898_s3 + $0x808] ss:$16 sps:$4 sm:$0xff]  }
 0xaea   :  { %8255 = vmatprep.subr.bf16.mxu0 %v13239_v58  ;;  %8419 = vmatprep.subr.bf16.mxu1 %v13242_v51  ;;  %v6897_v58 = vpack.c.bf16 %v17416_v41, %v17416_v41  ;;  %v13317_v51 = vld [vmem:[%s18898_s3 + $0x824] ss:$16 sps:$4 sm:$0xff]  }
 0xaed   :  { %8256 = vmatpush1.bf16.msra.mxu0 %v13237_v21  ;;  %8420 = vmatpush1.bf16.msra.mxu1 %v13240_v7  ;;  %v13320_v21 = vld [vmem:[%s18898_s3 + $0x82c] ss:$16 sps:$4 sm:$0xff]   ;;  %v13315_v7 = vld [vmem:[%s18898_s3 + $0x820] ss:$16 sps:$4 sm:$0xff]  }
 0xaee   :  { %8257 = vmatprep.subr.bf16.mxu0 %v13245_v0  ;;  %8421 = vmatprep.subr.bf16.mxu1 %v13248_v1  ;;  %v13318_v0 = vld [vmem:[%s18898_s3 + $0x828] ss:$16 sps:$4 sm:$0xff]   ;;  %v13323_v1 = vld [vmem:[%s18898_s3 + $0x844] ss:$16 sps:$4 sm:$0xff]  }
 0xaf1   :  { %8258 = vmatpush1.bf16.msra.mxu0 %v13243_v27  ;;  %8422 = vmatpush1.bf16.msra.mxu1 %v13246_v33  ;;  %v13326_v27 = vld [vmem:[%s18898_s3 + $0x84c] ss:$16 sps:$4 sm:$0xff]   ;;  %v13321_v33 = vld [vmem:[%s18898_s3 + $0x840] ss:$16 sps:$4 sm:$0xff]  }
 0xaf2   :  { %8259 = vmatprep.subr.bf16.mxu0 %v13251_v50  ;;  %8423 = vmatprep.subr.bf16.mxu1 %v13254_v46  ;;  %v13324_v50 = vld [vmem:[%s18898_s3 + $0x848] ss:$16 sps:$4 sm:$0xff]   ;;  %v13329_v46 = vld [vmem:[%s18898_s3 + $0x864] ss:$16 sps:$4 sm:$0xff]  }
 0xaf5   :  { %8260 = vmatpush1.bf16.msra.mxu0 %v13249_v35  ;;  %8424 = vmatpush1.bf16.msra.mxu1 %v13252_v36  ;;  %v13332_v35 = vld [vmem:[%s18898_s3 + $0x86c] ss:$16 sps:$4 sm:$0xff]   ;;  %v13327_v36 = vld [vmem:[%s18898_s3 + $0x860] ss:$16 sps:$4 sm:$0xff]  }
 0xaf6   :  { %8261 = vmatprep.subr.bf16.mxu0 %v13257_v14  ;;  %8425 = vmatprep.subr.bf16.mxu1 %v13260_v42  ;;  %v13330_v14 = vld [vmem:[%s18898_s3 + $0x868] ss:$16 sps:$4 sm:$0xff]   ;;  %v13335_v42 = vld [vmem:[%s18898_s3 + $0x884] ss:$16 sps:$4 sm:$0xff]  }
 0xaf9   :  { %8262 = vmatpush1.bf16.msra.mxu0 %v13255_v15  ;;  %8426 = vmatpush1.bf16.msra.mxu1 %v13258_v31  ;;  %v13338_v15 = vld [vmem:[%s18898_s3 + $0x88c] ss:$16 sps:$4 sm:$0xff]   ;;  %v13333_v31 = vld [vmem:[%s18898_s3 + $0x880] ss:$16 sps:$4 sm:$0xff]  }
 0xafa   :  { %8263 = vmatprep.subr.bf16.mxu0 %v13263_v37  ;;  %8427 = vmatprep.subr.bf16.mxu1 %v13266_v6  ;;  %v13336_v37 = vld [vmem:[%s18898_s3 + $0x888] ss:$16 sps:$4 sm:$0xff]   ;;  %v13341_v6 = vld [vmem:[%s18898_s3 + $0x8a4] ss:$16 sps:$4 sm:$0xff]  }
 0xafd   :  { %8264 = vmatpush1.bf16.msra.mxu0 %v13261_v57  ;;  %8428 = vmatpush1.bf16.msra.mxu1 %v13264_v38  ;;  %v13344_v57 = vld [vmem:[%s18898_s3 + $0x8ac] ss:$16 sps:$4 sm:$0xff]   ;;  %v13339_v38 = vld [vmem:[%s18898_s3 + $0x8a0] ss:$16 sps:$4 sm:$0xff]  }
 0xafe   :  { %8265 = vmatprep.subr.bf16.mxu0 %v13269_v23  ;;  %8429 = vmatprep.subr.bf16.mxu1 %v13272_v28  ;;  %v13342_v23 = vld [vmem:[%s18898_s3 + $0x8a8] ss:$16 sps:$4 sm:$0xff]   ;;  %v13347_v28 = vld [vmem:[%s18898_s3 + $0x8c4] ss:$16 sps:$4 sm:$0xff]  }
 0xb01   :  { %8266 = vmatpush1.bf16.msra.mxu0 %v13267_v12  ;;  %8430 = vmatpush1.bf16.msra.mxu1 %v13270_v3  ;;  %v13350_v12 = vld [vmem:[%s18898_s3 + $0x8cc] ss:$16 sps:$4 sm:$0xff]   ;;  %v13345_v3 = vld [vmem:[%s18898_s3 + $0x8c0] ss:$16 sps:$4 sm:$0xff]  }
 0xb02   :  { %8267 = vmatprep.subr.bf16.mxu0 %v13275_v19  ;;  %8431 = vmatprep.subr.bf16.mxu1 %v13278_v30  ;;  %v13348_v19 = vld [vmem:[%s18898_s3 + $0x8c8] ss:$16 sps:$4 sm:$0xff]   ;;  %v13353_v30 = vld [vmem:[%s18898_s3 + $0x8e4] ss:$16 sps:$4 sm:$0xff]  }
 0xb05   :  { %8268 = vmatpush1.bf16.msra.mxu0 %v13273_v45  ;;  %8432 = vmatpush1.bf16.msra.mxu1 %v13276_v25  ;;  %v13356_v45 = vld [vmem:[%s18898_s3 + $0x8ec] ss:$16 sps:$4 sm:$0xff]   ;;  %v13351_v25 = vld [vmem:[%s18898_s3 + $0x8e0] ss:$16 sps:$4 sm:$0xff]  }
 0xb06   :  { %8269 = vmatprep.subr.bf16.mxu0 %v13281_v56  ;;  %8433 = vmatprep.subr.bf16.mxu1 %v13284_v13  ;;  %v13354_v56 = vld [vmem:[%s18898_s3 + $0x8e8] ss:$16 sps:$4 sm:$0xff]   ;;  %v13359_v13 = vld [vmem:[%s18898_s3 + $0x904] ss:$16 sps:$4 sm:$0xff]  }
 0xb09   :  { %8270 = vmatpush1.bf16.msra.mxu0 %v13279_v34  ;;  %8434 = vmatpush1.bf16.msra.mxu1 %v13282_v49  ;;  %v13362_v34 = vld [vmem:[%s18898_s3 + $0x90c] ss:$16 sps:$4 sm:$0xff]   ;;  %v13357_v49 = vld [vmem:[%s18898_s3 + $0x900] ss:$16 sps:$4 sm:$0xff]  }
 0xb0a   :  { %8271 = vmatprep.subr.bf16.mxu0 %v13287_v4  ;;  %8435 = vmatprep.subr.bf16.mxu1 %v13290_v10  ;;  %v13360_v4 = vld [vmem:[%s18898_s3 + $0x908] ss:$16 sps:$4 sm:$0xff]   ;;  %v13365_v10 = vld [vmem:[%s18898_s3 + $0x924] ss:$16 sps:$4 sm:$0xff]  }
 0xb0d   :  { %8272 = vmatpush1.bf16.msra.mxu0 %v13285_v2  ;;  %8436 = vmatpush1.bf16.msra.mxu1 %v13288_v43  ;;  %v13368_v2 = vld [vmem:[%s18898_s3 + $0x92c] ss:$16 sps:$4 sm:$0xff]   ;;  %v13363_v43 = vld [vmem:[%s18898_s3 + $0x920] ss:$16 sps:$4 sm:$0xff]  }
 0xb0e   :  { %8273 = vmatprep.subr.bf16.mxu0 %v13293_v60  ;;  %8437 = vmatprep.subr.bf16.mxu1 %v13296_v52  ;;  %v13366_v60 = vld [vmem:[%s18898_s3 + $0x928] ss:$16 sps:$4 sm:$0xff]   ;;  %v13371_v52 = vld [vmem:[%s18898_s3 + $0x944] ss:$16 sps:$4 sm:$0xff]  }
 0xb11   :  { %8274 = vmatpush1.bf16.msra.mxu0 %v13291_v11  ;;  %8438 = vmatpush1.bf16.msra.mxu1 %v13294_v5  ;;  %v13374_v11 = vld [vmem:[%s18898_s3 + $0x94c] ss:$16 sps:$4 sm:$0xff]   ;;  %v13369_v5 = vld [vmem:[%s18898_s3 + $0x940] ss:$16 sps:$4 sm:$0xff]  }
 0xb12   :  { %8275 = vmatprep.subr.bf16.mxu0 %v13299_v53  ;;  %8439 = vmatprep.subr.bf16.mxu1 %v13302_v26  ;;  %v13377_v53 = vld [vmem:[%s18898_s3 + $0x964] ss:$16 sps:$4 sm:$0xff]   ;;  %v13380_v26 = vld [vmem:[%s18898_s3 + $0x96c] ss:$16 sps:$4 sm:$0xff]  }
 0xb15   :  { %8276 = vmatpush1.bf16.msra.mxu0 %v13297_v47  ;;  %8440 = vmatpush1.bf16.msra.mxu1 %v13300_v62  ;;  %v13375_v47 = vld [vmem:[%s18898_s3 + $0x960] ss:$16 sps:$4 sm:$0xff]   ;;  %v13378_v62 = vld [vmem:[%s18898_s3 + $0x968] ss:$16 sps:$4 sm:$0xff]  }
 0xb16   :  { %8277 = vmatprep.subr.bf16.mxu0 %v13305_v59  ;;  %8441 = vmatprep.subr.bf16.mxu1 %v13308_v8  ;;  %v13386_v59 = vld [vmem:[%s18898_s3 + $0x98c] ss:$16 sps:$4 sm:$0xff]   ;;  %v13381_v8 = vld [vmem:[%s18898_s3 + $0x980] ss:$16 sps:$4 sm:$0xff]  }
 0xb19   :  { %8278 = vmatpush1.bf16.msra.mxu0 %v13303_v22  ;;  %8442 = vmatpush1.bf16.msra.mxu1 %v13306_v32  ;;  %v13384_v22 = vld [vmem:[%s18898_s3 + $0x988] ss:$16 sps:$4 sm:$0xff]   ;;  %v13389_v32 = vld [vmem:[%s18898_s3 + $0x9a4] ss:$16 sps:$4 sm:$0xff]  }
 0xb1a   :  { %8288 = vmatprep.subr.bf16.mxu0 %v13311_v63  ;;  %8452 = vmatprep.subr.bf16.mxu1 %v13314_v18  ;;  %v13392_v63 = vld [vmem:[%s18898_s3 + $0x9ac] ss:$16 sps:$4 sm:$0xff]   ;;  %v4745_v18 = vsub.s32 4, %v15433_v39 }
 0xb1c   :  { %8280 = vmatmul.mubr.bf16.vlgmr.msra.gmra.mrb[8].mxu0 %v6897_v58  ;;  %8444 = vmatmul.mubr.bf16.vlgmr.msra.gmra.mrb[60].mxu1 %v6897_v58  ;;  %v4749_v58 = vsub.s32 5, %v15433_v39 }
 0xb1d   :  { %8289 = vmatpush1.bf16.msra.mxu0 %v13309_v55  ;;  %8453 = vmatpush1.bf16.msra.mxu1 %v13312_v40  ;;  %v13387_v55 = vld [vmem:[%s18898_s3 + $0x9a0] ss:$16 sps:$4 sm:$0xff]   ;;  %v13390_v40 = vld [vmem:[%s18898_s3 + $0x9a8] ss:$16 sps:$4 sm:$0xff]  }
 0xb1e   :  { %8290 = vmatprep.subr.bf16.mxu0 %v13317_v51  ;;  %8454 = vmatprep.subr.bf16.mxu1 %v13320_v21  ;;  %v13395_v51 = vld [vmem:[%s18898_s3 + $0x9c4] ss:$16 sps:$4 sm:$0xff]   ;;  %v13398_v21 = vld [vmem:[%s18898_s3 + $0x9cc] ss:$16 sps:$4 sm:$0xff]  }
 0xb21   :  { %8291 = vmatpush1.bf16.msra.mxu0 %v13315_v7  ;;  %8455 = vmatpush1.bf16.msra.mxu1 %v13318_v0  ;;  %v4757_v7 = vsub.s32 7, %v15433_v39  ;;  %v4746_v0 = vrot.slane %v17205_v20, %v4745_v18 }
 0xb22   :  { %8292 = vmatprep.subr.bf16.mxu0 %v13323_v1  ;;  %8456 = vmatprep.subr.bf16.mxu1 %v13326_v27  ;;  %v13393_v1 = vld [vmem:[%s18898_s3 + $0x9c0] ss:$16 sps:$4 sm:$0xff]   ;;  %v13396_v27 = vld [vmem:[%s18898_s3 + $0x9c8] ss:$16 sps:$4 sm:$0xff]  }
 0xb25   :  { %8293 = vmatpush1.bf16.msra.mxu0 %v13321_v33  ;;  %8457 = vmatpush1.bf16.msra.mxu1 %v13324_v50  ;;  %v4750_v33 = vrot.slane %v17205_v20, %v4749_v58  ;;  %v4758_v50 = vrot.slane %v17205_v20, %v4757_v7 }
 0xb26   :  { %8294 = vmatprep.subr.bf16.mxu0 %v13329_v46  ;;  %8458 = vmatprep.subr.bf16.mxu1 %v13332_v35  ;;  %v13401_v46 = vld [vmem:[%s18898_s3 + $0x9e4] ss:$16 sps:$4 sm:$0xff]   ;;  %v13404_v35 = vld [vmem:[%s18898_s3 + $0x9ec] ss:$16 sps:$4 sm:$0xff]  }
 0xb29   :  { %8295 = vmatpush1.bf16.msra.mxu0 %v13327_v36  ;;  %8459 = vmatpush1.bf16.msra.mxu1 %v13330_v14 }
 0xb2a   :  { %8296 = vmatprep.subr.bf16.mxu0 %v13335_v42  ;;  %8460 = vmatprep.subr.bf16.mxu1 %v13338_v15 }
 0xb2d   :  { %8297 = vmatpush1.bf16.msra.mxu0 %v13333_v31  ;;  %8461 = vmatpush1.bf16.msra.mxu1 %v13336_v37  ;;  %v13399_v31 = vld [vmem:[%s18898_s3 + $0x9e0] ss:$16 sps:$4 sm:$0xff]  }
 0xb2e   :  { %8298 = vmatprep.subr.bf16.mxu0 %v13341_v6  ;;  %8462 = vmatprep.subr.bf16.mxu1 %v13344_v57 }
 0xb31   :  { %8299 = vmatpush1.bf16.msra.mxu0 %v13339_v38  ;;  %8463 = vmatpush1.bf16.msra.mxu1 %v13342_v23  ;;  %v13402_v38 = vld [vmem:[%s18898_s3 + $0x9e8] ss:$16 sps:$4 sm:$0xff]   ;;  %v13407_v23 = vld [vmem:[%s18898_s3 + $0xa04] ss:$16 sps:$4 sm:$0xff]  }
 0xb32   :  { %8300 = vmatprep.subr.bf16.mxu0 %v13347_v28  ;;  %8464 = vmatprep.subr.bf16.mxu1 %v13350_v12 }
 0xb35   :  { %8301 = vmatpush1.bf16.msra.mxu0 %v13345_v3  ;;  %8465 = vmatpush1.bf16.msra.mxu1 %v13348_v19 }
 0xb36   :  { %8302 = vmatprep.subr.bf16.mxu0 %v13353_v30  ;;  %8466 = vmatprep.subr.bf16.mxu1 %v13356_v45  ;;  %v13410_v30 = vld [vmem:[%s18898_s3 + $0xa0c] ss:$16 sps:$4 sm:$0xff]  }
 0xb39   :  { %8303 = vmatpush1.bf16.msra.mxu0 %v13351_v25  ;;  %8467 = vmatpush1.bf16.msra.mxu1 %v13354_v56 }
 0xb3a   :  { %8304 = vmatprep.subr.bf16.mxu0 %v13359_v13  ;;  %8468 = vmatprep.subr.bf16.mxu1 %v13362_v34  ;;  %v13405_v34 = vld [vmem:[%s18898_s3 + $0xa00] ss:$16 sps:$4 sm:$0xff]  }
 0xb3d   :  { %8305 = vmatpush1.bf16.msra.mxu0 %v13357_v49  ;;  %8469 = vmatpush1.bf16.msra.mxu1 %v13360_v4  ;;  %v13408_v49 = vld [vmem:[%s18898_s3 + $0xa08] ss:$16 sps:$4 sm:$0xff]  }
 0xb3e   :  { %8306 = vmatprep.subr.bf16.mxu0 %v13365_v10  ;;  %8470 = vmatprep.subr.bf16.mxu1 %v13368_v2  ;;  %v13413_v10 = vld [vmem:[%s18898_s3 + $0xa24] ss:$16 sps:$4 sm:$0xff]   ;;  %v13416_v2 = vld [vmem:[%s18898_s3 + $0xa2c] ss:$16 sps:$4 sm:$0xff]  }
 0xb41   :  { %8307 = vmatpush1.bf16.msra.mxu0 %v13363_v43  ;;  %8471 = vmatpush1.bf16.msra.mxu1 %v13366_v60  ;;  %v13411_v60 = vld [vmem:[%s18898_s3 + $0xa20] ss:$16 sps:$4 sm:$0xff]  }
 0xb42   :  { %8308 = vmatprep.subr.bf16.mxu0 %v13371_v52  ;;  %8472 = vmatprep.subr.bf16.mxu1 %v13374_v11  ;;  %v13414_v52 = vld [vmem:[%s18898_s3 + $0xa28] ss:$16 sps:$4 sm:$0xff]   ;;  %v13419_v11 = vld [vmem:[%s18898_s3 + $0xa44] ss:$16 sps:$4 sm:$0xff]  }
 0xb45   :  { %8309 = vmatpush1.bf16.msra.mxu0 %v13369_v5  ;;  %8473 = vmatpush1.bf16.msra.mxu1 %v13372_v44  ;;  %v13422_v5 = vld [vmem:[%s18898_s3 + $0xa4c] ss:$16 sps:$4 sm:$0xff]   ;;  %v13417_v44 = vld [vmem:[%s18898_s3 + $0xa40] ss:$16 sps:$4 sm:$0xff]  }
 0xb46   :  { %8310 = vmatprep.subr.bf16.mxu0 %v13377_v53  ;;  %8474 = vmatprep.subr.bf16.mxu1 %v13380_v26  ;;  %v13420_v53 = vld [vmem:[%s18898_s3 + $0xa48] ss:$16 sps:$4 sm:$0xff]   ;;  %v13425_v26 = vld [vmem:[%s18898_s3 + $0xa64] ss:$16 sps:$4 sm:$0xff]  }
 0xb49   :  { %8311 = vmatpush1.bf16.msra.mxu0 %v13375_v47  ;;  %8475 = vmatpush1.bf16.msra.mxu1 %v13378_v62  ;;  %v13428_v47 = vld [vmem:[%s18898_s3 + $0xa6c] ss:$16 sps:$4 sm:$0xff]   ;;  %v13423_v62 = vld [vmem:[%s18898_s3 + $0xa60] ss:$16 sps:$4 sm:$0xff]  }
 0xb4a   :  { %8312 = vmatprep.subr.bf16.mxu0 %v13383_v48  ;;  %8476 = vmatprep.subr.bf16.mxu1 %v13386_v59  ;;  %v13426_v48 = vld [vmem:[%s18898_s3 + $0xa68] ss:$16 sps:$4 sm:$0xff]   ;;  %v13431_v59 = vld [vmem:[%s18898_s3 + $0xa84] ss:$16 sps:$4 sm:$0xff]  }
 0xb4d   :  { %8313 = vmatpush1.bf16.msra.mxu0 %v13381_v8  ;;  %8477 = vmatpush1.bf16.msra.mxu1 %v13384_v22  ;;  %v13434_v8 = vld [vmem:[%s18898_s3 + $0xa8c] ss:$16 sps:$4 sm:$0xff]   ;;  %v13429_v22 = vld [vmem:[%s18898_s3 + $0xa80] ss:$16 sps:$4 sm:$0xff]  }
 0xb4e   :  { %8314 = vmatprep.subr.bf16.mxu0 %v13389_v32  ;;  %8478 = vmatprep.subr.bf16.mxu1 %v13392_v63  ;;  %v13432_v32 = vld [vmem:[%s18898_s3 + $0xa88] ss:$16 sps:$4 sm:$0xff]   ;;  %v13437_v63 = vld [vmem:[%s18898_s3 + $0xaa4] ss:$16 sps:$4 sm:$0xff]  }
 0xb51   :  { %8315 = vmatpush1.bf16.msra.mxu0 %v13387_v55  ;;  %8479 = vmatpush1.bf16.msra.mxu1 %v13390_v40  ;;  %v13440_v55 = vld [vmem:[%s18898_s3 + $0xaac] ss:$16 sps:$4 sm:$0xff]   ;;  %v13435_v40 = vld [vmem:[%s18898_s3 + $0xaa0] ss:$16 sps:$4 sm:$0xff]  }
 0xb52   :  { %8316 = vmatprep.subr.bf16.mxu0 %v13395_v51  ;;  %8480 = vmatprep.subr.bf16.mxu1 %v13398_v21  ;;  %v13438_v51 = vld [vmem:[%s18898_s3 + $0xaa8] ss:$16 sps:$4 sm:$0xff]   ;;  %v13443_v21 = vld [vmem:[%s18898_s3 + $0xac4] ss:$16 sps:$4 sm:$0xff]  }
 0xb53   :  { %v6286_v36 = vpop.f32.mrb[4].mxu0 }
 0xb54   :  { %v12671_v14 = vadd.f32 %v6286_v36, %v4746_v0  ;;  %v17618_v42 = vpop.f32.mrb[56].mxu1  ;;  %v6288_v15 = vpop.f32.mrb[5].mxu0  ;;  %v13446_v0 = vld [vmem:[%s18898_s3 + $0xacc] ss:$16 sps:$4 sm:$0xff]   ;;  %v13455_v36 = vld [vmem:[%s18898_s3 + $0xb04] ss:$16 sps:$4 sm:$0xff]  }
 0xb55   :  { %v12672_v37 = vadd.f32 %v6288_v15, %v4750_v33  ;;  %v6370_v6 = vpop.f32.mrb[57].mxu1  ;;  %8317 = vmatpush1.bf16.msra.mxu0 %v13393_v1  ;;  %8481 = vmatpush1.bf16.msra.mxu1 %v13396_v27  ;;  %v6290_v57 = vpop.f32.mrb[6].mxu0  ;;  %v13441_v1 = vld [vmem:[%s18898_s3 + $0xac0] ss:$16 sps:$4 sm:$0xff]   ;;  %v13444_v27 = vld [vmem:[%s18898_s3 + $0xac8] ss:$16 sps:$4 sm:$0xff]  }
 0xb56   :  { %v17629_v28 = vmax.f32 %v12671_v14, 0.0  ;;  %v12674_v12 = vadd.f32 %v6370_v6, %v4758_v50  ;;  %v6372_v3 = vpop.f32.mrb[58].mxu1  ;;  %v6291_v19 = vpop.f32.mrb[7].mxu0  ;;  %8318 = vmatprep.subr.bf16.mxu0 %v13401_v46  ;;  %8482 = vmatprep.subr.bf16.mxu1 %v13404_v35  ;;  %v13449_v33 = vld [vmem:[%s18898_s3 + $0xae4] ss:$16 sps:$4 sm:$0xff]  }
 0xb57   :  { %v17634_v45 = vmax.f32 %v12672_v37, 0.0  ;;  %v6373_v25 = vpop.f32.mrb[59].mxu1  ;;  %v13452_v50 = vld [vmem:[%s18898_s3 + $0xaec] ss:$16 sps:$4 sm:$0xff]   ;;  %v13447_v46 = vld [vmem:[%s18898_s3 + $0xae0] ss:$16 sps:$4 sm:$0xff]  }
 0xb58   :  { %v17636_v56 = vmax.f32 %v12674_v12, 0.0  ;;  %v6899_v4 = vpack.c.bf16 %v17629_v28, %v17629_v28  ;;  %v13450_v35 = vld [vmem:[%s18898_s3 + $0xae8] ss:$16 sps:$4 sm:$0xff]   ;;  %v13458_v14 = vld [vmem:[%s18898_s3 + $0xb0c] ss:$16 sps:$4 sm:$0xff]  }
 0xb59   :  { %v6900_v13 = vpack.c.bf16 %v17634_v45, %v17634_v45  ;;  %8319 = vmatpush1.bf16.msra.mxu0 %v13399_v31  ;;  %8483 = vmatpush1.bf16.msra.mxu1 %v13402_v38  ;;  %v13453_v15 = vld [vmem:[%s18898_s3 + $0xb00] ss:$16 sps:$4 sm:$0xff]   ;;  %v13456_v31 = vld [vmem:[%s18898_s3 + $0xb08] ss:$16 sps:$4 sm:$0xff]   ;;  %v13461_v37 = vld [vmem:[%s18898_s3 + $0xb24] ss:$16 sps:$4 sm:$0xff]  }
 0xb5a   :  { %8329 = vmatprep.subr.bf16.mxu0 %v13407_v23  ;;  %8493 = vmatprep.subr.bf16.mxu1 %v13410_v30  ;;  %v6902_v43 = vpack.c.bf16 %v17636_v56, %v17636_v56  ;;  %v13464_v6 = vld [vmem:[%s18898_s3 + $0xb2c] ss:$16 sps:$4 sm:$0xff]   ;;  %v13459_v57 = vld [vmem:[%s18898_s3 + $0xb20] ss:$16 sps:$4 sm:$0xff]   ;;  %v13462_v38 = vld [vmem:[%s18898_s3 + $0xb28] ss:$16 sps:$4 sm:$0xff]  }
 0xb5b   :  { %8320 = vmatprep.mubr.bf16.mxu0 %v6900_v13  ;;  %8484 = vmatprep.mubr.bf16.mxu1 %v6900_v13  ;;  %v13467_v23 = vld [vmem:[%s18898_s3 + $0xb44] ss:$16 sps:$4 sm:$0xff]   ;;  %v13470_v12 = vld [vmem:[%s18898_s3 + $0xb4c] ss:$16 sps:$4 sm:$0xff]   ;;  %v13465_v3 = vld [vmem:[%s18898_s3 + $0xb40] ss:$16 sps:$4 sm:$0xff]  }
 0xb5c   :  { %8321 = vmatmul.mubr.bf16.vlgmr.msra.gmra.mrb[8].mxu0 %v6899_v4  ;;  %8485 = vmatmul.mubr.bf16.vlgmr.msra.gmra.mrb[60].mxu1 %v6899_v4  ;;  %v13468_v19 = vld [vmem:[%s18898_s3 + $0xb48] ss:$16 sps:$4 sm:$0xff]   ;;  %v13473_v30 = vld [vmem:[%s18898_s3 + $0xb64] ss:$16 sps:$4 sm:$0xff]   ;;  %v13476_v25 = vld [vmem:[%s18898_s3 + $0xb6c] ss:$16 sps:$4 sm:$0xff]  }
 0xb5d   :  { %8330 = vmatpush1.bf16.msra.mxu0 %v13405_v34  ;;  %8494 = vmatpush1.bf16.msra.mxu1 %v13408_v49  ;;  %v13471_v13 = vld [vmem:[%s18898_s3 + $0xb60] ss:$16 sps:$4 sm:$0xff]   ;;  %v13474_v34 = vld [vmem:[%s18898_s3 + $0xb68] ss:$16 sps:$4 sm:$0xff]   ;;  %v13479_v49 = vld [vmem:[%s18898_s3 + $0xb84] ss:$16 sps:$4 sm:$0xff]  }
 0xb5e   :  { %8361 = vmatprep.mubr.bf16.mxu0 %v6902_v43  ;;  %8525 = vmatprep.mubr.bf16.mxu1 %v6902_v43  ;;  %v13482_v4 = vld [vmem:[%s18898_s3 + $0xb8c] ss:$16 sps:$4 sm:$0xff]   ;;  %v4753_v43 = vsub.s32 6, %v15433_v39 }
 0xb5f   :  { %8331 = vmatprep.subr.bf16.mxu0 %v13413_v10  ;;  %8495 = vmatprep.subr.bf16.mxu1 %v13416_v2  ;;  %v13477_v10 = vld [vmem:[%s18898_s3 + $0xb80] ss:$16 sps:$4 sm:$0xff]   ;;  %v13480_v2 = vld [vmem:[%s18898_s3 + $0xb88] ss:$16 sps:$4 sm:$0xff]  }
 0xb61   :  { %8332 = vmatpush1.bf16.msra.mxu0 %v13411_v60  ;;  %8496 = vmatpush1.bf16.msra.mxu1 %v13414_v52  ;;  %v13485_v60 = vld [vmem:[%s18898_s3 + $0xba4] ss:$16 sps:$4 sm:$0xff]   ;;  %v13488_v52 = vld [vmem:[%s18898_s3 + $0xbac] ss:$16 sps:$4 sm:$0xff]  }
 0xb62   :  { %8333 = vmatprep.subr.bf16.mxu0 %v13419_v11  ;;  %8497 = vmatprep.subr.bf16.mxu1 %v13422_v5  ;;  %v13483_v11 = vld [vmem:[%s18898_s3 + $0xba0] ss:$16 sps:$4 sm:$0xff]   ;;  %v13486_v5 = vld [vmem:[%s18898_s3 + $0xba8] ss:$16 sps:$4 sm:$0xff]  }
 0xb65   :  { %8334 = vmatpush1.bf16.msra.mxu0 %v13417_v44  ;;  %8498 = vmatpush1.bf16.msra.mxu1 %v13420_v53  ;;  %v4754_v44 = vrot.slane %v17205_v20, %v4753_v43  ;;  %v13491_v53 = vld [vmem:[%s18898_s3 + $0xbc4] ss:$16 sps:$4 sm:$0xff]   ;;  %v13492_v20 = vld [vmem:[%s18898_s3 + $0xbc8] ss:$16 sps:$4 sm:$0xff]  }
 0xb66   :  { %8335 = vmatprep.subr.bf16.mxu0 %v13425_v26  ;;  %8499 = vmatprep.subr.bf16.mxu1 %v13428_v47  ;;  %v13494_v26 = vld [vmem:[%s18898_s3 + $0xbcc] ss:$16 sps:$4 sm:$0xff]   ;;  %v13489_v47 = vld [vmem:[%s18898_s3 + $0xbc0] ss:$16 sps:$4 sm:$0xff]  }
 0xb69   :  { %8336 = vmatpush1.bf16.msra.mxu0 %v13423_v62  ;;  %8500 = vmatpush1.bf16.msra.mxu1 %v13426_v48  ;;  %v12673_v62 = vadd.f32 %v17618_v42, %v4754_v44  ;;  %v13497_v48 = vld [vmem:[%s18898_s3 + $0xbe4] ss:$16 sps:$4 sm:$0xff]   ;;  %v6640_v42 = vld [vmem:[%s18899_s4 + $0x808] sm:$0xff] }
 0xb6a   :  { %8337 = vmatprep.subr.bf16.mxu0 %v13431_v59  ;;  %8501 = vmatprep.subr.bf16.mxu1 %v13434_v8  ;;  %v13500_v59 = vld [vmem:[%s18898_s3 + $0xbec] ss:$16 sps:$4 sm:$0xff]   ;;  %v6639_v8 = vld [vmem:[%s18899_s4 + $0x800] sm:$0xff] }
 0xb6d   :  { %8338 = vmatpush1.bf16.msra.mxu0 %v13429_v22  ;;  %8502 = vmatpush1.bf16.msra.mxu1 %v13432_v32  ;;  %v6643_v22 = vld [vmem:[%s18899_s4 + $0x820] sm:$0xff]  ;;  %v6644_v32 = vld [vmem:[%s18899_s4 + $0x828] sm:$0xff] }
 0xb6e   :  { %8339 = vmatprep.subr.bf16.mxu0 %v13437_v63  ;;  %8503 = vmatprep.subr.bf16.mxu1 %v13440_v55  ;;  %v13495_v63 = vld [vmem:[%s18898_s3 + $0xbe0] ss:$16 sps:$4 sm:$0xff]   ;;  %v13498_v55 = vld [vmem:[%s18898_s3 + $0xbe8] ss:$16 sps:$4 sm:$0xff]  }
 0xb71   :  { %8340 = vmatpush1.bf16.msra.mxu0 %v13435_v40  ;;  %8504 = vmatpush1.bf16.msra.mxu1 %v13438_v51  ;;  %v17847_v40 = vmax.f32 %v12673_v62, 0.0  ;;  %v11772_v51 = vcombine.high %v6639_v8, %v6643_v22  ;;  %v6684_v62 = vld [vmem:[%s18899_s4 + $0x968] sm:$0xff] }
 0xb72   :  { %8341 = vmatprep.subr.bf16.mxu0 %v13443_v21  ;;  %8505 = vmatprep.subr.bf16.mxu1 %v13446_v0  ;;  %v11774_v21 = vcombine.high %v6640_v42, %v6644_v32  ;;  %v6647_v0 = vld [vmem:[%s18899_s4 + $0x840] sm:$0xff] }
 0xb75   :  { %8342 = vmatpush1.bf16.msra.mxu0 %v13441_v1  ;;  %8506 = vmatpush1.bf16.msra.mxu1 %v13444_v27  ;;  %v6651_v1 = vld [vmem:[%s18899_s4 + $0x860] sm:$0xff]  ;;  %v6648_v27 = vld [vmem:[%s18899_s4 + $0x848] sm:$0xff] }
 0xb76   :  { %8343 = vmatprep.subr.bf16.mxu0 %v13449_v33  ;;  %8507 = vmatprep.subr.bf16.mxu1 %v13452_v50  ;;  %v6652_v33 = vld [vmem:[%s18899_s4 + $0x868] sm:$0xff]  ;;  %v11771_v50 = vcombine.low %v6639_v8, %v6643_v22 }
 0xb79   :  { %8344 = vmatpush1.bf16.msra.mxu0 %v13447_v46  ;;  %8508 = vmatpush1.bf16.msra.mxu1 %v13450_v35  ;;  %v11773_v46 = vcombine.low %v6640_v42, %v6644_v32  ;;  %v6901_v35 = vpack.c.bf16 %v17847_v40, %v17847_v40  ;;  %v6687_v42 = vld [vmem:[%s18899_s4 + $0x980] sm:$0xff] }
 0xb7a   :  { %8345 = vmatprep.subr.bf16.mxu0 %v13455_v36  ;;  %8509 = vmatprep.subr.bf16.mxu1 %v13458_v14  ;;  %v11780_v36 = vcombine.high %v6647_v0, %v6651_v1  ;;  %v11782_v14 = vcombine.high %v6648_v27, %v6652_v33  ;;  %v6691_v32 = vld [vmem:[%s18899_s4 + $0x9a0] sm:$0xff] }
 0xb7d   :  { %8346 = vmatpush1.bf16.msra.mxu0 %v13453_v15  ;;  %8510 = vmatpush1.bf16.msra.mxu1 %v13456_v31  ;;  %v6655_v15 = vld [vmem:[%s18899_s4 + $0x880] sm:$0xff] }
 0xb7e   :  { %8347 = vmatprep.subr.bf16.mxu0 %v13461_v37  ;;  %8511 = vmatprep.subr.bf16.mxu1 %v13464_v6  ;;  %v6659_v31 = vld [vmem:[%s18899_s4 + $0x8a0] sm:$0xff]  ;;  %v6656_v37 = vld [vmem:[%s18899_s4 + $0x888] sm:$0xff] }
 0xb7f   :  { %v6660_v6 = vld [vmem:[%s18899_s4 + $0x8a8] sm:$0xff] }
 0xb81   :  { %8348 = vmatpush1.bf16.msra.mxu0 %v13459_v57  ;;  %8512 = vmatpush1.bf16.msra.mxu1 %v13462_v38  ;;  %v11779_v57 = vcombine.low %v6647_v0, %v6651_v1  ;;  %v11781_v38 = vcombine.low %v6648_v27, %v6652_v33  ;;  %v11820_v0 = vcombine.high %v6687_v42, %v6691_v32  ;;  %v6695_v27 = vld [vmem:[%s18899_s4 + $0x9c0] sm:$0xff] }
 0xb82   :  { %8349 = vmatprep.subr.bf16.mxu0 %v13467_v23  ;;  %8513 = vmatprep.subr.bf16.mxu1 %v13470_v12  ;;  %v11788_v23 = vcombine.high %v6655_v15, %v6659_v31  ;;  %v11790_v12 = vcombine.high %v6656_v37, %v6660_v6  ;;  %v6699_v33 = vld [vmem:[%s18899_s4 + $0x9e0] sm:$0xff] }
 0xb85   :  { %8350 = vmatpush1.bf16.msra.mxu0 %v13465_v3  ;;  %8514 = vmatpush1.bf16.msra.mxu1 %v13468_v19  ;;  %v6663_v3 = vld [vmem:[%s18899_s4 + $0x8c0] sm:$0xff] }
 0xb86   :  { %8351 = vmatprep.subr.bf16.mxu0 %v13473_v30  ;;  %8515 = vmatprep.subr.bf16.mxu1 %v13476_v25  ;;  %v6667_v19 = vld [vmem:[%s18899_s4 + $0x8e0] sm:$0xff]  ;;  %v6664_v30 = vld [vmem:[%s18899_s4 + $0x8c8] sm:$0xff] }
 0xb87   :  { %v6668_v25 = vld [vmem:[%s18899_s4 + $0x8e8] sm:$0xff] }
 0xb89   :  { %8352 = vmatpush1.bf16.msra.mxu0 %v13471_v13  ;;  %8516 = vmatpush1.bf16.msra.mxu1 %v13474_v34  ;;  %v11787_v13 = vcombine.low %v6655_v15, %v6659_v31  ;;  %v11789_v34 = vcombine.low %v6656_v37, %v6660_v6  ;;  %v6703_v31 = vld [vmem:[%s18899_s4 + $0xa00] sm:$0xff]  ;;  %v6704_v6 = vld [vmem:[%s18899_s4 + $0xa08] sm:$0xff] }
 0xb8a   :  { %8353 = vmatprep.subr.bf16.mxu0 %v13479_v49  ;;  %8517 = vmatprep.subr.bf16.mxu1 %v13482_v4  ;;  %v11796_v49 = vcombine.high %v6663_v3, %v6667_v19  ;;  %v11798_v4 = vcombine.high %v6664_v30, %v6668_v25  ;;  %v6707_v37 = vld [vmem:[%s18899_s4 + $0xa20] sm:$0xff] }
 0xb8d   :  { %8354 = vmatpush1.bf16.msra.mxu0 %v13477_v10  ;;  %8518 = vmatpush1.bf16.msra.mxu1 %v13480_v2  ;;  %v6671_v10 = vld [vmem:[%s18899_s4 + $0x900] sm:$0xff] }
 0xb8e   :  { %8355 = vmatprep.subr.bf16.mxu0 %v13485_v60  ;;  %8519 = vmatprep.subr.bf16.mxu1 %v13488_v52  ;;  %v6675_v2 = vld [vmem:[%s18899_s4 + $0x920] sm:$0xff]  ;;  %v6672_v60 = vld [vmem:[%s18899_s4 + $0x908] sm:$0xff] }
 0xb8f   :  { %v6676_v52 = vld [vmem:[%s18899_s4 + $0x928] sm:$0xff]  ;;  %v11804_v44 = vcombine.high %v6671_v10, %v6675_v2 }
 0xb91   :  { %8356 = vmatpush1.bf16.msra.mxu0 %v13483_v11  ;;  %8520 = vmatpush1.bf16.msra.mxu1 %v13486_v5  ;;  %v11795_v11 = vcombine.low %v6663_v3, %v6667_v19  ;;  %v11797_v5 = vcombine.low %v6664_v30, %v6668_v25  ;;  %v6711_v19 = vld [vmem:[%s18899_s4 + $0xa40] sm:$0xff]  ;;  %v6712_v25 = vld [vmem:[%s18899_s4 + $0xa48] sm:$0xff] }
 0xb92   :  { %8357 = vmatprep.subr.bf16.mxu0 %v13491_v53  ;;  %8521 = vmatprep.subr.bf16.mxu1 %v13494_v26  ;;  %v11806_v53 = vcombine.high %v6672_v60, %v6676_v52  ;;  %v6679_v26 = vld [vmem:[%s18899_s4 + $0x940] sm:$0xff] }
 0xb93   :  { %v6715_v30 = vld [vmem:[%s18899_s4 + $0xa60] sm:$0xff] }
 0xb95   :  { %8358 = vmatpush1.bf16.msra.mxu0 %v13489_v47  ;;  %8522 = vmatpush1.bf16.msra.mxu1 %v13492_v20  ;;  %v6683_v47 = vld [vmem:[%s18899_s4 + $0x960] sm:$0xff]  ;;  %v6680_v20 = vld [vmem:[%s18899_s4 + $0x948] sm:$0xff] }
 0xb96   :  { %8359 = vmatprep.subr.bf16.mxu0 %v13497_v48  ;;  %8523 = vmatprep.subr.bf16.mxu1 %v13500_v59  ;;  %v11803_v48 = vcombine.low %v6671_v10, %v6675_v2  ;;  %v11805_v59 = vcombine.low %v6672_v60, %v6676_v52  ;;  %v11812_v8 = vcombine.high %v6679_v26, %v6683_v47  ;;  %v6719_v2 = vld [vmem:[%s18899_s4 + $0xa80] sm:$0xff]  ;;  %v6720_v52 = vld [vmem:[%s18899_s4 + $0xa88] sm:$0xff] }
 0xb97   :  { %v11814_v22 = vcombine.high %v6680_v20, %v6684_v62  ;;  %v6723_v60 = vld [vmem:[%s18899_s4 + $0xaa0] sm:$0xff] }
 0xb99   :  { %8360 = vmatpush1.bf16.msra.mxu0 %v13495_v63  ;;  %8524 = vmatpush1.bf16.msra.mxu1 %v13498_v55  ;;  %v6688_v63 = vld [vmem:[%s18899_s4 + $0x988] sm:$0xff] }
 0xb9a   :  { %9867 = vmatprep.subr.bf16.mxu0 %v11772_v51  ;;  %9949 = vmatprep.subr.bf16.mxu1 %v11774_v21  ;;  %v6692_v55 = vld [vmem:[%s18899_s4 + $0x9a8] sm:$0xff]  ;;  %v11811_v51 = vcombine.low %v6679_v26, %v6683_v47  ;;  %v11813_v21 = vcombine.low %v6680_v20, %v6684_v62  ;;  %v6727_v47 = vld [vmem:[%s18899_s4 + $0xac0] sm:$0xff] }
 0xb9b   :  { %v11822_v1 = vcombine.high %v6688_v63, %v6692_v55  ;;  %v6731_v20 = vld [vmem:[%s18899_s4 + $0xae0] sm:$0xff]  ;;  %v6728_v62 = vld [vmem:[%s18899_s4 + $0xac8] sm:$0xff] }
 0xb9c   :  { %8362 = vmatmul.mubr.bf16.vlgmr.msra.gmra.mrb[8].mxu0 %v6901_v35  ;;  %8526 = vmatmul.mubr.bf16.vlgmr.msra.gmra.mrb[60].mxu1 %v6901_v35  ;;  %v11819_v35 = vcombine.low %v6687_v42, %v6691_v32  ;;  %v6735_v32 = vld [vmem:[%s18899_s4 + $0xb00] sm:$0xff] }
 0xb9d   :  { %9868 = vmatpush1.bf16.msra.mxu0 %v11771_v50  ;;  %9950 = vmatpush1.bf16.msra.mxu1 %v11773_v46  ;;  %v6696_v50 = vld [vmem:[%s18899_s4 + $0x9c8] sm:$0xff] }
 0xb9e   :  { %9869 = vmatprep.subr.bf16.mxu0 %v11780_v36  ;;  %9951 = vmatprep.subr.bf16.mxu1 %v11782_v14  ;;  %v6700_v46 = vld [vmem:[%s18899_s4 + $0x9e8] sm:$0xff]  ;;  %v11821_v36 = vcombine.low %v6688_v63, %v6692_v55  ;;  %v11828_v14 = vcombine.high %v6695_v27, %v6699_v33  ;;  %v6739_v63 = vld [vmem:[%s18899_s4 + $0xb20] sm:$0xff] }
 0xb9f   :  { %v11830_v15 = vcombine.high %v6696_v50, %v6700_v46  ;;  %v6736_v55 = vld [vmem:[%s18899_s4 + $0xb08] sm:$0xff] }
 0xba1   :  { %9870 = vmatpush1.bf16.msra.mxu0 %v11779_v57  ;;  %9952 = vmatpush1.bf16.msra.mxu1 %v11781_v38  ;;  %v6708_v57 = vld [vmem:[%s18899_s4 + $0xa28] sm:$0xff]  ;;  %v11827_v38 = vcombine.low %v6695_v27, %v6699_v33  ;;  %v6743_v33 = vld [vmem:[%s18899_s4 + $0xb40] sm:$0xff] }
 0xba2   :  { %9871 = vmatprep.subr.bf16.mxu0 %v11788_v23  ;;  %9953 = vmatprep.subr.bf16.mxu1 %v11790_v12  ;;  %v11829_v23 = vcombine.low %v6696_v50, %v6700_v46  ;;  %v11836_v12 = vcombine.high %v6703_v31, %v6707_v37  ;;  %v11838_v3 = vcombine.high %v6704_v6, %v6708_v57  ;;  %v6747_v50 = vld [vmem:[%s18899_s4 + $0xb60] sm:$0xff]  ;;  %v6744_v46 = vld [vmem:[%s18899_s4 + $0xb48] sm:$0xff] }
 0xba5   :  { %9872 = vmatpush1.bf16.msra.mxu0 %v11787_v13  ;;  %9954 = vmatpush1.bf16.msra.mxu1 %v11789_v34  ;;  %v6716_v13 = vld [vmem:[%s18899_s4 + $0xa68] sm:$0xff]  ;;  %v11835_v34 = vcombine.low %v6703_v31, %v6707_v37  ;;  %v11875_v37 = vcombine.low %v6743_v33, %v6747_v50 }
 0xba6   :  { %9873 = vmatprep.subr.bf16.mxu0 %v11796_v49  ;;  %9955 = vmatprep.subr.bf16.mxu1 %v11798_v4  ;;  %v11837_v49 = vcombine.low %v6704_v6, %v6708_v57  ;;  %v11844_v4 = vcombine.high %v6711_v19, %v6715_v30  ;;  %v11846_v10 = vcombine.high %v6712_v25, %v6716_v13  ;;  %v6751_v57 = vld [vmem:[%s18899_s4 + $0xb80] sm:$0xff] }
 0xba9   :  { %9874 = vmatpush1.bf16.msra.mxu0 %v11795_v11  ;;  %9956 = vmatpush1.bf16.msra.mxu1 %v11797_v5  ;;  %v6724_v11 = vld [vmem:[%s18899_s4 + $0xaa8] sm:$0xff]  ;;  %v11843_v5 = vcombine.low %v6711_v19, %v6715_v30 }
 0xbaa   :  { %9875 = vmatprep.subr.bf16.mxu0 %v11804_v44  ;;  %9957 = vmatprep.subr.bf16.mxu1 %v11806_v53  ;;  %v11845_v44 = vcombine.low %v6712_v25, %v6716_v13  ;;  %v11852_v53 = vcombine.high %v6719_v2, %v6723_v60  ;;  %v11854_v26 = vcombine.high %v6720_v52, %v6724_v11  ;;  %v6759_v13 = vld [vmem:[%s18899_s4 + $0xbc0] sm:$0xff] }
 0xbad   :  { %9876 = vmatpush1.bf16.msra.mxu0 %v11803_v48  ;;  %9958 = vmatpush1.bf16.msra.mxu1 %v11805_v59  ;;  %v6732_v48 = vld [vmem:[%s18899_s4 + $0xae8] sm:$0xff]  ;;  %v11851_v59 = vcombine.low %v6719_v2, %v6723_v60 }
 0xbae   :  { %9877 = vmatprep.subr.bf16.mxu0 %v11812_v8  ;;  %9959 = vmatprep.subr.bf16.mxu1 %v11814_v22  ;;  %v11853_v8 = vcombine.low %v6720_v52, %v6724_v11  ;;  %v11860_v22 = vcombine.high %v6727_v47, %v6731_v20  ;;  %v11862_v42 = vcombine.high %v6728_v62, %v6732_v48  ;;  %v6767_v11 = vld [vmem:[%s18899_s4 + $0xc00] sm:$0xff] }
 0xbb1   :  { %9878 = vmatpush1.bf16.msra.mxu0 %v11811_v51  ;;  %9960 = vmatpush1.bf16.msra.mxu1 %v11813_v21  ;;  %v6740_v51 = vld [vmem:[%s18899_s4 + $0xb28] sm:$0xff]  ;;  %v11859_v21 = vcombine.low %v6727_v47, %v6731_v20 }
 0xbb2   :  { %9879 = vmatprep.subr.bf16.mxu0 %v11820_v0  ;;  %9961 = vmatprep.subr.bf16.mxu1 %v11822_v1  ;;  %v11861_v0 = vcombine.low %v6728_v62, %v6732_v48  ;;  %v11868_v1 = vcombine.high %v6735_v32, %v6739_v63  ;;  %v11870_v27 = vcombine.high %v6736_v55, %v6740_v51  ;;  %v18046_v48 = vld [vmem:[%s18896_s5 + $0x240] ss:$8 sm:$0xf] }
 0xbb5   :  { %9880 = vmatpush1.bf16.msra.mxu0 %v11819_v35  ;;  %9962 = vmatpush1.bf16.msra.mxu1 %v11821_v36  ;;  %v6748_v35 = vld [vmem:[%s18899_s4 + $0xb68] sm:$0xff]  ;;  %v11867_v36 = vcombine.low %v6735_v32, %v6739_v63 }
 0xbb6   :  { %9881 = vmatprep.subr.bf16.mxu0 %v11828_v14  ;;  %9963 = vmatprep.subr.bf16.mxu1 %v11830_v15  ;;  %v11869_v14 = vcombine.low %v6736_v55, %v6740_v51  ;;  %v11876_v15 = vcombine.high %v6743_v33, %v6747_v50  ;;  %v11878_v31 = vcombine.high %v6744_v46, %v6748_v35 }
 0xbb7   :  { %v11877_v6 = vcombine.low %v6744_v46, %v6748_v35 }
 0xbb9   :  { %9882 = vmatpush1.bf16.msra.mxu0 %v11827_v38  ;;  %9964 = vmatpush1.bf16.msra.mxu1 %v11829_v23  ;;  %v6755_v38 = vld [vmem:[%s18899_s4 + $0xba0] sm:$0xff]  ;;  %v6752_v23 = vld [vmem:[%s18899_s4 + $0xb88] sm:$0xff] }
 0xbba   :  { %9883 = vmatprep.subr.bf16.mxu0 %v11836_v12  ;;  %9965 = vmatprep.subr.bf16.mxu1 %v11838_v3  ;;  %v11884_v12 = vcombine.high %v6751_v57, %v6755_v38  ;;  %v6756_v3 = vld [vmem:[%s18899_s4 + $0xba8] sm:$0xff]  ;;  %v11883_v19 = vcombine.low %v6751_v57, %v6755_v38  ;;  %v6783_v38 = vld [vmem:[%s18899_s4 + $0xc80] sm:$0xff] }
 0xbbb   :  { %v11885_v30 = vcombine.low %v6752_v23, %v6756_v3  ;;  %v11886_v25 = vcombine.high %v6752_v23, %v6756_v3  ;;  %v6787_v3 = vld [vmem:[%s18899_s4 + $0xca0] sm:$0xff] }
 0xbbd   :  { %9884 = vmatpush1.bf16.msra.mxu0 %v11835_v34  ;;  %9966 = vmatpush1.bf16.msra.mxu1 %v11837_v49  ;;  %v6763_v34 = vld [vmem:[%s18899_s4 + $0xbe0] sm:$0xff]  ;;  %v6760_v49 = vld [vmem:[%s18899_s4 + $0xbc8] sm:$0xff] }
 0xbbe   :  { %9885 = vmatprep.subr.bf16.mxu0 %v11844_v4  ;;  %9967 = vmatprep.subr.bf16.mxu1 %v11846_v10  ;;  %v11892_v4 = vcombine.high %v6759_v13, %v6763_v34  ;;  %v6764_v10 = vld [vmem:[%s18899_s4 + $0xbe8] sm:$0xff]  ;;  %v11891_v2 = vcombine.low %v6759_v13, %v6763_v34 }
 0xbbf   :  { %v11893_v60 = vcombine.low %v6760_v49, %v6764_v10  ;;  %v11894_v52 = vcombine.high %v6760_v49, %v6764_v10  ;;  %v11916_v49 = vcombine.high %v6783_v38, %v6787_v3  ;;  %v6791_v10 = vld [vmem:[%s18899_s4 + $0xcc0] sm:$0xff] }
 0xbc1   :  { %9886 = vmatpush1.bf16.msra.mxu0 %v11843_v5  ;;  %9968 = vmatpush1.bf16.msra.mxu1 %v11845_v44  ;;  %v6771_v5 = vld [vmem:[%s18899_s4 + $0xc20] sm:$0xff]  ;;  %v6768_v44 = vld [vmem:[%s18899_s4 + $0xc08] sm:$0xff] }
 0xbc2   :  { %9887 = vmatprep.subr.bf16.mxu0 %v11852_v53  ;;  %9969 = vmatprep.subr.bf16.mxu1 %v11854_v26  ;;  %v11900_v53 = vcombine.high %v6767_v11, %v6771_v5  ;;  %v6772_v26 = vld [vmem:[%s18899_s4 + $0xc28] sm:$0xff]  ;;  %v11899_v47 = vcombine.low %v6767_v11, %v6771_v5  ;;  %v11915_v11 = vcombine.low %v6783_v38, %v6787_v3  ;;  %v6823_v38 = vld [vmem:[%s18899_s4 + $0xdc0] sm:$0xff] }
 0xbc3   :  { %v11901_v20 = vcombine.low %v6768_v44, %v6772_v26  ;;  %v11902_v62 = vcombine.high %v6768_v44, %v6772_v26  ;;  %v6799_v26 = vld [vmem:[%s18899_s4 + $0xd00] sm:$0xff]  ;;  %v6828_v3 = vld [vmem:[%s18899_s4 + $0xde8] sm:$0xff] }
 0xbc5   :  { %9888 = vmatpush1.bf16.msra.mxu0 %v11851_v59  ;;  %9970 = vmatpush1.bf16.msra.mxu1 %v11853_v8  ;;  %v6909_v59 = vrot.slane %v18046_v48, %v15436_v24  ;;  %v6913_v8 = vrot.slane %v18046_v48, %v15442_v61 }
 0xbc6   :  { %9889 = vmatprep.subr.bf16.mxu0 %v11860_v22  ;;  %9971 = vmatprep.subr.bf16.mxu1 %v11862_v42  ;;  %v6921_v22 = vrot.slane %v18046_v48, %v15974_v29 }
 0xbc9   :  { %9890 = vmatpush1.bf16.msra.mxu0 %v11859_v21  ;;  %9972 = vmatpush1.bf16.msra.mxu1 %v11861_v0 }
 0xbca   :  { %9891 = vmatprep.subr.bf16.mxu0 %v11868_v1  ;;  %9973 = vmatprep.subr.bf16.mxu1 %v11870_v27 }
 0xbcd   :  { %9892 = vmatpush1.bf16.msra.mxu0 %v11867_v36  ;;  %9974 = vmatpush1.bf16.msra.mxu1 %v11869_v14  ;;  %v6775_v36 = vld [vmem:[%s18899_s4 + $0xc40] sm:$0xff] }
 0xbce   :  { %9893 = vmatprep.subr.bf16.mxu0 %v11876_v15  ;;  %9975 = vmatprep.subr.bf16.mxu1 %v11878_v31  ;;  %v6779_v15 = vld [vmem:[%s18899_s4 + $0xc60] sm:$0xff]  ;;  %v6776_v31 = vld [vmem:[%s18899_s4 + $0xc48] sm:$0xff] }
 0xbcf   :  { %v11908_v23 = vcombine.high %v6775_v36, %v6779_v15  ;;  %v11907_v13 = vcombine.low %v6775_v36, %v6779_v15  ;;  %v6820_v36 = vld [vmem:[%s18899_s4 + $0xda8] sm:$0xff] }
 0xbd1   :  { %9894 = vmatpush1.bf16.msra.mxu0 %v11875_v37  ;;  %9976 = vmatpush1.bf16.msra.mxu1 %v11877_v6  ;;  %v6780_v37 = vld [vmem:[%s18899_s4 + $0xc68] sm:$0xff] }
 0xbd2   :  { %9895 = vmatprep.subr.bf16.mxu0 %v11884_v12  ;;  %9977 = vmatprep.subr.bf16.mxu1 %v11886_v25  ;;  %v11910_v12 = vcombine.high %v6776_v31, %v6780_v37  ;;  %v11909_v34 = vcombine.low %v6776_v31, %v6780_v37 }
 0xbd5   :  { %9896 = vmatpush1.bf16.msra.mxu0 %v11883_v19  ;;  %9978 = vmatpush1.bf16.msra.mxu1 %v11885_v30  ;;  %v6784_v19 = vld [vmem:[%s18899_s4 + $0xc88] sm:$0xff] }
 0xbd6   :  { %9897 = vmatprep.subr.bf16.mxu0 %v11892_v4  ;;  %9979 = vmatprep.subr.bf16.mxu1 %v11894_v52  ;;  %v6788_v30 = vld [vmem:[%s18899_s4 + $0xca8] sm:$0xff] }
 0xbd7   :  { %v11918_v4 = vcombine.high %v6784_v19, %v6788_v30  ;;  %v6796_v52 = vld [vmem:[%s18899_s4 + $0xce8] sm:$0xff]  ;;  %v11917_v5 = vcombine.low %v6784_v19, %v6788_v30 }
 0xbd9   :  { %9898 = vmatpush1.bf16.msra.mxu0 %v11891_v2  ;;  %9980 = vmatpush1.bf16.msra.mxu1 %v11893_v60  ;;  %v6795_v2 = vld [vmem:[%s18899_s4 + $0xce0] sm:$0xff]  ;;  %v6792_v60 = vld [vmem:[%s18899_s4 + $0xcc8] sm:$0xff] }
 0xbda   :  { %9908 = vmatprep.subr.bf16.mxu0 %v11900_v53  ;;  %9990 = vmatprep.subr.bf16.mxu1 %v11902_v62  ;;  %v11924_v44 = vcombine.high %v6791_v10, %v6795_v2  ;;  %v11926_v53 = vcombine.high %v6792_v60, %v6796_v52  ;;  %v6804_v62 = vld [vmem:[%s18899_s4 + $0xd28] sm:$0xff] }
 0xc6f   :  { %v8363_v42 = vpop.f32.mrb[8].mxu0  ;;  %v18054_v32 = vpop.f32.mrb[60].mxu1 }
 0xc70   :  { %v12675_v63 = vadd.f32 %v8363_v42, %v6909_v59  ;;  %v8365_v55 = vpop.f32.mrb[9].mxu0  ;;  %v8529_v51 = vpop.f32.mrb[61].mxu1  ;;  %v11923_v59 = vcombine.low %v6791_v10, %v6795_v2  ;;  %v6832_v10 = vld [vmem:[%s18899_s4 + $0xe08] sm:$0xff] }
 0xc71   :  { %v12676_v21 = vadd.f32 %v8365_v55, %v6913_v8  ;;  %v12678_v0 = vadd.f32 %v8529_v51, %v6921_v22  ;;  %v8367_v1 = vpop.f32.mrb[10].mxu0  ;;  %v8531_v27 = vpop.f32.mrb[62].mxu1  ;;  %v11925_v8 = vcombine.low %v6792_v60, %v6796_v52  ;;  %v6811_v55 = vld [vmem:[%s18899_s4 + $0xd60] sm:$0xff]  ;;  %v6808_v51 = vld [vmem:[%s18899_s4 + $0xd48] sm:$0xff] }
 0xc72   :  { %v8534_v33 = vmax.f32 %v12675_v63, 0.0  ;;  %v8368_v50 = vpop.f32.mrb[11].mxu0  ;;  %v8532_v46 = vpop.f32.mrb[63].mxu1  ;;  %v6807_v63 = vld [vmem:[%s18899_s4 + $0xd40] sm:$0xff]  ;;  %v6836_v2 = vld [vmem:[%s18899_s4 + $0xe28] sm:$0xff] }
 0xc73   :  { %v8535_v35 = vmax.f32 %v12676_v21, 0.0  ;;  %v8537_v14 = vmax.f32 %v12678_v0, 0.0  ;;  %v6812_v21 = vld [vmem:[%s18899_s4 + $0xd68] sm:$0xff]  ;;  %v11940_v27 = vcombine.high %v6807_v63, %v6811_v55  ;;  %v6815_v50 = vld [vmem:[%s18899_s4 + $0xd80] sm:$0xff] }
 0xc74   :  { %v18070_v57 = vpack.c.bf16 %v8534_v33, %v8534_v33  ;;  %v11942_v33 = vcombine.high %v6808_v51, %v6812_v21  ;;  %v6819_v46 = vld [vmem:[%s18899_s4 + $0xda0] sm:$0xff]  ;;  %v11941_v15 = vcombine.low %v6808_v51, %v6812_v21 }
 0xc75   :  { %v18068_v6 = vpack.c.bf16 %v8535_v35, %v8535_v35  ;;  %v18086_v25 = vpack.c.bf16 %v8537_v14, %v8537_v14  ;;  %v6816_v35 = vld [vmem:[%s18899_s4 + $0xd88] sm:$0xff]  ;;  %v11939_v14 = vcombine.low %v6807_v63, %v6811_v55  ;;  %v11948_v31 = vcombine.high %v6815_v50, %v6819_v46 }
 0xc76   :  { %v11950_v37 = vcombine.high %v6816_v35, %v6820_v36  ;;  %v11947_v19 = vcombine.low %v6815_v50, %v6819_v46  ;;  %v11949_v30 = vcombine.low %v6816_v35, %v6820_v36  ;;  %v6848_v63 = vld [vmem:[%s18899_s4 + $0xe88] sm:$0xff] }
 0xc77   :  { %9899 = vmatprep.mubr.bf16.mxu0 %v18068_v6  ;;  %9981 = vmatprep.mubr.bf16.mxu1 %v18068_v6  ;;  %v6852_v55 = vld [vmem:[%s18899_s4 + $0xea8] sm:$0xff] }
 0xc78   :  { %9900 = vmatmul.mubr.bf16.vlgmr.msra.gmra.mrb[12].mxu0 %v18070_v57  ;;  %9982 = vmatmul.mubr.bf16.vlgmr.msra.gmra.mrb[64].mxu1 %v18070_v57  ;;  %v6856_v50 = vld [vmem:[%s18899_s4 + $0xec8] sm:$0xff]  ;;  %v11981_v36 = vcombine.low %v6848_v63, %v6852_v55 }
 0xc79   :  { %9909 = vmatpush1.bf16.msra.mxu0 %v11899_v47  ;;  %9991 = vmatpush1.bf16.msra.mxu1 %v11901_v20  ;;  %v6803_v47 = vld [vmem:[%s18899_s4 + $0xd20] sm:$0xff]  ;;  %v6800_v20 = vld [vmem:[%s18899_s4 + $0xd08] sm:$0xff] }
 0xc7a   :  { %9940 = vmatprep.mubr.bf16.mxu0 %v18086_v25  ;;  %10022 = vmatprep.mubr.bf16.mxu1 %v18086_v25  ;;  %v11932_v22 = vcombine.high %v6799_v26, %v6803_v47  ;;  %v11934_v42 = vcombine.high %v6800_v20, %v6804_v62  ;;  %v11931_v0 = vcombine.low %v6799_v26, %v6803_v47  ;;  %v6840_v26 = vld [vmem:[%s18899_s4 + $0xe48] sm:$0xff] }
 0xc7b   :  { %9910 = vmatprep.subr.bf16.mxu0 %v11908_v23  ;;  %9992 = vmatprep.subr.bf16.mxu1 %v11910_v12  ;;  %v11933_v1 = vcombine.low %v6800_v20, %v6804_v62  ;;  %v6827_v23 = vld [vmem:[%s18899_s4 + $0xde0] sm:$0xff]  ;;  %v6824_v12 = vld [vmem:[%s18899_s4 + $0xdc8] sm:$0xff]  ;;  %v11965_v62 = vcombine.low %v6832_v10, %v6836_v2 }
 0xc7c   :  { %v11955_v60 = vcombine.low %v6823_v38, %v6827_v23  ;;  %v11957_v52 = vcombine.low %v6824_v12, %v6828_v3  ;;  %v6844_v47 = vld [vmem:[%s18899_s4 + $0xe68] sm:$0xff] }
 0xc7d   :  { %9911 = vmatpush1.bf16.msra.mxu0 %v11907_v13  ;;  %9993 = vmatpush1.bf16.msra.mxu1 %v11909_v34  ;;  %v11956_v13 = vcombine.high %v6823_v38, %v6827_v23  ;;  %v11958_v34 = vcombine.high %v6824_v12, %v6828_v3  ;;  %v11973_v21 = vcombine.low %v6840_v26, %v6844_v47  ;;  %v6860_v46 = vld [vmem:[%s18899_s4 + $0xee8] sm:$0xff] }
 0xc7e   :  { %9912 = vmatprep.subr.bf16.mxu0 %v11916_v49  ;;  %9994 = vmatprep.subr.bf16.mxu1 %v11918_v4  ;;  %v6831_v49 = vld [vmem:[%s18899_s4 + $0xe00] sm:$0xff]  ;;  %v6864_v38 = vld [vmem:[%s18899_s4 + $0xf08] sm:$0xff]  ;;  %v11989_v3 = vcombine.low %v6856_v50, %v6860_v46 }
 0xc7f   :  { %v6835_v4 = vld [vmem:[%s18899_s4 + $0xe20] sm:$0xff]  ;;  %v6868_v23 = vld [vmem:[%s18899_s4 + $0xf28] sm:$0xff] }
 0xc80   :  { %v11963_v20 = vcombine.low %v6831_v49, %v6835_v4 }
 0xc81   :  { %9913 = vmatpush1.bf16.msra.mxu0 %v11915_v11  ;;  %9995 = vmatpush1.bf16.msra.mxu1 %v11917_v5  ;;  %v11964_v11 = vcombine.high %v6831_v49, %v6835_v4  ;;  %v11966_v5 = vcombine.high %v6832_v10, %v6836_v2  ;;  %v6872_v49 = vld [vmem:[%s18899_s4 + $0xf48] sm:$0xff]  ;;  %v11997_v2 = vcombine.low %v6864_v38, %v6868_v23 }
 0xc82   :  { %9914 = vmatprep.subr.bf16.mxu0 %v11924_v44  ;;  %9996 = vmatprep.subr.bf16.mxu1 %v11926_v53  ;;  %v6839_v44 = vld [vmem:[%s18899_s4 + $0xe40] sm:$0xff]  ;;  %v6876_v4 = vld [vmem:[%s18899_s4 + $0xf68] sm:$0xff] }
 0xc83   :  { %v6843_v53 = vld [vmem:[%s18899_s4 + $0xe60] sm:$0xff] }
 0xc84   :  { %v11971_v51 = vcombine.low %v6839_v44, %v6843_v53 }
 0xc85   :  { %9915 = vmatpush1.bf16.msra.mxu0 %v11923_v59  ;;  %9997 = vmatpush1.bf16.msra.mxu1 %v11925_v8  ;;  %v11972_v59 = vcombine.high %v6839_v44, %v6843_v53  ;;  %v11974_v8 = vcombine.high %v6840_v26, %v6844_v47  ;;  %v6880_v44 = vld [vmem:[%s18899_s4 + $0xf88] sm:$0xff]  ;;  %v12005_v47 = vcombine.low %v6872_v49, %v6876_v4 }
 0xc86   :  { %9916 = vmatprep.subr.bf16.mxu0 %v11932_v22  ;;  %9998 = vmatprep.subr.bf16.mxu1 %v11934_v42  ;;  %v6847_v22 = vld [vmem:[%s18899_s4 + $0xe80] sm:$0xff]  ;;  %v6884_v53 = vld [vmem:[%s18899_s4 + $0xfa8] sm:$0xff] }
 0xc87   :  { %v6851_v42 = vld [vmem:[%s18899_s4 + $0xea0] sm:$0xff] }
 0xc88   :  { %v11979_v35 = vcombine.low %v6847_v22, %v6851_v42 }
 0xc89   :  { %9917 = vmatpush1.bf16.msra.mxu0 %v11931_v0  ;;  %9999 = vmatpush1.bf16.msra.mxu1 %v11933_v1  ;;  %v11980_v0 = vcombine.high %v6847_v22, %v6851_v42  ;;  %v11982_v1 = vcombine.high %v6848_v63, %v6852_v55  ;;  %v6891_v22 = vld [vmem:[%s18899_s4 + $0xfe0] sm:$0xff]  ;;  %v6888_v42 = vld [vmem:[%s18899_s4 + $0xfc8] sm:$0xff]  ;;  %v12013_v55 = vcombine.low %v6880_v44, %v6884_v53 }
 0xc8a   :  { %9918 = vmatprep.subr.bf16.mxu0 %v11940_v27  ;;  %10000 = vmatprep.subr.bf16.mxu1 %v11942_v33  ;;  %v6855_v27 = vld [vmem:[%s18899_s4 + $0xec0] sm:$0xff] }
 0xc8b   :  { %v6859_v33 = vld [vmem:[%s18899_s4 + $0xee0] sm:$0xff] }
 0xc8c   :  { %v11987_v12 = vcombine.low %v6855_v27, %v6859_v33 }
 0xc8d   :  { %9919 = vmatpush1.bf16.msra.mxu0 %v11939_v14  ;;  %10001 = vmatpush1.bf16.msra.mxu1 %v11941_v15  ;;  %v11988_v14 = vcombine.high %v6855_v27, %v6859_v33  ;;  %v11990_v15 = vcombine.high %v6856_v50, %v6860_v46  ;;  %v6645_v27 = vld [vmem:[%s18899_s4 + $0x830] sm:$0xff]  ;;  %v6642_v33 = vld [vmem:[%s18899_s4 + $0x818] sm:$0xff] }
 0xc8e   :  { %9920 = vmatprep.subr.bf16.mxu0 %v11948_v31  ;;  %10002 = vmatprep.subr.bf16.mxu1 %v11950_v37  ;;  %v6863_v31 = vld [vmem:[%s18899_s4 + $0xf00] sm:$0xff] }
 0xc8f   :  { %v6867_v37 = vld [vmem:[%s18899_s4 + $0xf20] sm:$0xff] }
 0xc90   :  { %v11995_v10 = vcombine.low %v6863_v31, %v6867_v37 }
 0xc91   :  { %9921 = vmatpush1.bf16.msra.mxu0 %v11947_v19  ;;  %10003 = vmatpush1.bf16.msra.mxu1 %v11949_v30  ;;  %v11996_v19 = vcombine.high %v6863_v31, %v6867_v37  ;;  %v11998_v30 = vcombine.high %v6864_v38, %v6868_v23  ;;  %v6653_v31 = vld [vmem:[%s18899_s4 + $0x870] sm:$0xff]  ;;  %v6650_v37 = vld [vmem:[%s18899_s4 + $0x858] sm:$0xff] }
 0xc92   :  { %9922 = vmatprep.subr.bf16.mxu0 %v11956_v13  ;;  %10004 = vmatprep.subr.bf16.mxu1 %v11958_v34  ;;  %v6871_v13 = vld [vmem:[%s18899_s4 + $0xf40] sm:$0xff]  ;;  %v6654_v38 = vld [vmem:[%s18899_s4 + $0x878] sm:$0xff] }
 0xc93   :  { %v6875_v34 = vld [vmem:[%s18899_s4 + $0xf60] sm:$0xff] }
 0xc94   :  { %v12003_v26 = vcombine.low %v6871_v13, %v6875_v34 }
 0xc95   :  { %9923 = vmatpush1.bf16.msra.mxu0 %v11955_v60  ;;  %10005 = vmatpush1.bf16.msra.mxu1 %v11957_v52  ;;  %v12004_v60 = vcombine.high %v6871_v13, %v6875_v34  ;;  %v12006_v52 = vcombine.high %v6872_v49, %v6876_v4  ;;  %v6657_v13 = vld [vmem:[%s18899_s4 + $0x890] sm:$0xff]  ;;  %v6658_v49 = vld [vmem:[%s18899_s4 + $0x898] sm:$0xff] }
 0xc96   :  { %9924 = vmatprep.subr.bf16.mxu0 %v11964_v11  ;;  %10006 = vmatprep.subr.bf16.mxu1 %v11966_v5  ;;  %v6879_v11 = vld [vmem:[%s18899_s4 + $0xf80] sm:$0xff]  ;;  %v6661_v34 = vld [vmem:[%s18899_s4 + $0x8b0] sm:$0xff]  ;;  %v6662_v4 = vld [vmem:[%s18899_s4 + $0x8b8] sm:$0xff] }
 0xc97   :  { %v6883_v5 = vld [vmem:[%s18899_s4 + $0xfa0] sm:$0xff] }
 0xc98   :  { %v12011_v63 = vcombine.low %v6879_v11, %v6883_v5 }
 0xc99   :  { %9925 = vmatpush1.bf16.msra.mxu0 %v11963_v20  ;;  %10007 = vmatpush1.bf16.msra.mxu1 %v11965_v62  ;;  %v6917_v20 = vrot.slane %v18046_v48, %v15971_v16  ;;  %v12012_v62 = vcombine.high %v6879_v11, %v6883_v5  ;;  %v6892_v48 = vld [vmem:[%s18899_s4 + $0xfe8] sm:$0xff]  ;;  %v6665_v11 = vld [vmem:[%s18899_s4 + $0x8d0] sm:$0xff] }
 0xc9a   :  { %9926 = vmatprep.subr.bf16.mxu0 %v11972_v59  ;;  %10008 = vmatprep.subr.bf16.mxu1 %v11974_v8  ;;  %v12014_v59 = vcombine.high %v6880_v44, %v6884_v53  ;;  %v6887_v8 = vld [vmem:[%s18899_s4 + $0xfc0] sm:$0xff]  ;;  %v12021_v46 = vcombine.low %v6888_v42, %v6892_v48  ;;  %v6669_v5 = vld [vmem:[%s18899_s4 + $0x8f0] sm:$0xff]  ;;  %v6666_v44 = vld [vmem:[%s18899_s4 + $0x8d8] sm:$0xff]  ;;  %v11791_v53 = vcombine.low %v6657_v13, %v6661_v34 }
 0xc9b   :  { %v12019_v50 = vcombine.low %v6887_v8, %v6891_v22 }
 0xc9d   :  { %9927 = vmatpush1.bf16.msra.mxu0 %v11971_v51  ;;  %10009 = vmatpush1.bf16.msra.mxu1 %v11973_v21  ;;  %v12677_v51 = vadd.f32 %v18054_v32, %v6917_v20  ;;  %v12020_v21 = vcombine.high %v6887_v8, %v6891_v22  ;;  %v6646_v32 = vld [vmem:[%s18899_s4 + $0x838] sm:$0xff] }
 0xc9e   :  { %9928 = vmatprep.subr.bf16.mxu0 %v11980_v0  ;;  %10010 = vmatprep.subr.bf16.mxu1 %v11982_v1  ;;  %v12022_v0 = vcombine.high %v6888_v42, %v6892_v48  ;;  %v6641_v1 = vld [vmem:[%s18899_s4 + $0x810] sm:$0xff]  ;;  %v6674_v8 = vld [vmem:[%s18899_s4 + $0x918] sm:$0xff]  ;;  %v11799_v42 = vcombine.low %v6665_v11, %v6669_v5 }
 0xc9f   :  { %v11775_v23 = vcombine.low %v6641_v1, %v6645_v27  ;;  %v6678_v22 = vld [vmem:[%s18899_s4 + $0x938] sm:$0xff] }
 0xca1   :  { %9929 = vmatpush1.bf16.msra.mxu0 %v11979_v35  ;;  %10011 = vmatpush1.bf16.msra.mxu1 %v11981_v36  ;;  %v8536_v35 = vmax.f32 %v12677_v51, 0.0  ;;  %v11776_v36 = vcombine.high %v6641_v1, %v6645_v27  ;;  %v6681_v51 = vld [vmem:[%s18899_s4 + $0x950] sm:$0xff]  ;;  %v6686_v1 = vld [vmem:[%s18899_s4 + $0x978] sm:$0xff] }
 0xca2   :  { %9930 = vmatprep.subr.bf16.mxu0 %v11988_v14  ;;  %10012 = vmatprep.subr.bf16.mxu1 %v11990_v15  ;;  %v11778_v14 = vcombine.high %v6642_v33, %v6646_v32  ;;  %v6649_v15 = vld [vmem:[%s18899_s4 + $0x850] sm:$0xff] }
 0xca5   :  { %9931 = vmatpush1.bf16.msra.mxu0 %v11987_v12  ;;  %10013 = vmatpush1.bf16.msra.mxu1 %v11989_v3  ;;  %v18275_v12 = vpack.c.bf16 %v8536_v35, %v8536_v35  ;;  %v11777_v3 = vcombine.low %v6642_v33, %v6646_v32  ;;  %v11809_v33 = vcombine.low %v6674_v8, %v6678_v22  ;;  %v6693_v35 = vld [vmem:[%s18899_s4 + $0x9b0] sm:$0xff] }
 0xca6   :  { %9932 = vmatprep.subr.bf16.mxu0 %v11996_v19  ;;  %10014 = vmatprep.subr.bf16.mxu1 %v11998_v30  ;;  %v11784_v19 = vcombine.high %v6649_v15, %v6653_v31  ;;  %v11786_v30 = vcombine.high %v6650_v37, %v6654_v38 }
 0xca9   :  { %9933 = vmatpush1.bf16.msra.mxu0 %v11995_v10  ;;  %10015 = vmatpush1.bf16.msra.mxu1 %v11997_v2  ;;  %v11783_v10 = vcombine.low %v6649_v15, %v6653_v31  ;;  %v11785_v2 = vcombine.low %v6650_v37, %v6654_v38 }
 0xcaa   :  { %9934 = vmatprep.subr.bf16.mxu0 %v12004_v60  ;;  %10016 = vmatprep.subr.bf16.mxu1 %v12006_v52  ;;  %v11792_v60 = vcombine.high %v6657_v13, %v6661_v34  ;;  %v11794_v52 = vcombine.high %v6658_v49, %v6662_v4 }
 0xcad   :  { %9935 = vmatpush1.bf16.msra.mxu0 %v12003_v26  ;;  %10017 = vmatpush1.bf16.msra.mxu1 %v12005_v47  ;;  %v11793_v26 = vcombine.low %v6658_v49, %v6662_v4  ;;  %v11800_v47 = vcombine.high %v6665_v11, %v6669_v5 }
 0xcae   :  { %9936 = vmatprep.subr.bf16.mxu0 %v12012_v62  ;;  %10018 = vmatprep.subr.bf16.mxu1 %v12014_v59  ;;  %v6673_v62 = vld [vmem:[%s18899_s4 + $0x910] sm:$0xff] }
 0xcaf   :  { %v6677_v59 = vld [vmem:[%s18899_s4 + $0x930] sm:$0xff] }
 0xcb0   :  { %v11807_v27 = vcombine.low %v6673_v62, %v6677_v59 }
 0xcb1   :  { %9937 = vmatpush1.bf16.msra.mxu0 %v12011_v63  ;;  %10019 = vmatpush1.bf16.msra.mxu1 %v12013_v55  ;;  %v11808_v63 = vcombine.high %v6673_v62, %v6677_v59  ;;  %v11810_v55 = vcombine.high %v6674_v8, %v6678_v22 }
 0xcb2   :  { %9938 = vmatprep.subr.bf16.mxu0 %v12020_v21  ;;  %10020 = vmatprep.subr.bf16.mxu1 %v12022_v0  ;;  %v6685_v21 = vld [vmem:[%s18899_s4 + $0x970] sm:$0xff]  ;;  %v6682_v0 = vld [vmem:[%s18899_s4 + $0x958] sm:$0xff] }
 0xcb3   :  { %v11816_v32 = vcombine.high %v6681_v51, %v6685_v21  ;;  %v11815_v15 = vcombine.low %v6681_v51, %v6685_v21  ;;  %v11817_v31 = vcombine.low %v6682_v0, %v6686_v1 }
 0xcb5   :  { %9939 = vmatpush1.bf16.msra.mxu0 %v12019_v50  ;;  %10021 = vmatpush1.bf16.msra.mxu1 %v12021_v46  ;;  %v11818_v50 = vcombine.high %v6682_v0, %v6686_v1  ;;  %v6689_v46 = vld [vmem:[%s18899_s4 + $0x990] sm:$0xff] }
 0xcb6   :  { %10031 = vmatprep.subr.bf16.mxu0 %v11776_v36  ;;  %10113 = vmatprep.subr.bf16.mxu1 %v11778_v14  ;;  %v6690_v36 = vld [vmem:[%s18899_s4 + $0x998] sm:$0xff]  ;;  %v11824_v37 = vcombine.high %v6689_v46, %v6693_v35  ;;  %v11823_v13 = vcombine.low %v6689_v46, %v6693_v35 }
 0xcb7   :  { %v6694_v14 = vld [vmem:[%s18899_s4 + $0x9b8] sm:$0xff] }
 0xcb8   :  { %9941 = vmatmul.mubr.bf16.vlgmr.msra.gmra.mrb[12].mxu0 %v18275_v12  ;;  %10023 = vmatmul.mubr.bf16.vlgmr.msra.gmra.mrb[64].mxu1 %v18275_v12  ;;  %v11826_v38 = vcombine.high %v6690_v36, %v6694_v14  ;;  %v11825_v34 = vcombine.low %v6690_v36, %v6694_v14 }
 0xcb9   :  { %10032 = vmatpush1.bf16.msra.mxu0 %v11775_v23  ;;  %10063 = vmatprep.mubr.bf16.mxu0 %v18068_v6  ;;  %v6697_v23 = vld [vmem:[%s18899_s4 + $0x9d0] sm:$0xff] }
 0xcba   :  { %10114 = vmatpush1.bf16.msra.mxu1 %v11777_v3  ;;  %10145 = vmatprep.mubr.bf16.mxu1 %v18068_v6  ;;  %v6670_v6 = vld [vmem:[%s18899_s4 + $0x8f8] sm:$0xff]  ;;  %v6701_v3 = vld [vmem:[%s18899_s4 + $0x9f0] sm:$0xff] }
 0xcbb   :  { %10033 = vmatprep.subr.bf16.mxu0 %v11784_v19  ;;  %10115 = vmatprep.subr.bf16.mxu1 %v11786_v30  ;;  %v11802_v20 = vcombine.high %v6666_v44, %v6670_v6  ;;  %v11801_v48 = vcombine.low %v6666_v44, %v6670_v6  ;;  %v6698_v19 = vld [vmem:[%s18899_s4 + $0x9d8] sm:$0xff]  ;;  %v11832_v49 = vcombine.high %v6697_v23, %v6701_v3 }
 0xcbc   :  { %v6702_v30 = vld [vmem:[%s18899_s4 + $0x9f8] sm:$0xff]  ;;  %v11831_v11 = vcombine.low %v6697_v23, %v6701_v3 }
 0xcbd   :  { %10034 = vmatpush1.bf16.msra.mxu0 %v11783_v10  ;;  %v11834_v4 = vcombine.high %v6698_v19, %v6702_v30  ;;  %v6705_v10 = vld [vmem:[%s18899_s4 + $0xa10] sm:$0xff]  ;;  %v11833_v5 = vcombine.low %v6698_v19, %v6702_v30 }
 0xcbe   :  { %10116 = vmatpush1.bf16.msra.mxu1 %v11785_v2  ;;  %10035 = vmatprep.subr.bf16.mxu0 %v11792_v60  ;;  %v6709_v2 = vld [vmem:[%s18899_s4 + $0xa30] sm:$0xff]  ;;  %v6706_v60 = vld [vmem:[%s18899_s4 + $0xa18] sm:$0xff] }
 0xcbf   :  { %10117 = vmatprep.subr.bf16.mxu1 %v11794_v52  ;;  %v6710_v52 = vld [vmem:[%s18899_s4 + $0xa38] sm:$0xff]  ;;  %v11840_v44 = vcombine.high %v6705_v10, %v6709_v2  ;;  %v11839_v62 = vcombine.low %v6705_v10, %v6709_v2 }
 0xcc0   :  { %v11842_v6 = vcombine.high %v6706_v60, %v6710_v52  ;;  %v11841_v59 = vcombine.low %v6706_v60, %v6710_v52 }
 0xcc1   :  { %10036 = vmatpush1.bf16.msra.mxu0 %v11791_v53  ;;  %v6713_v53 = vld [vmem:[%s18899_s4 + $0xa50] sm:$0xff] }
 0xcc2   :  { %10118 = vmatpush1.bf16.msra.mxu1 %v11793_v26  ;;  %10037 = vmatprep.subr.bf16.mxu0 %v11800_v47  ;;  %v6717_v26 = vld [vmem:[%s18899_s4 + $0xa70] sm:$0xff]  ;;  %v6714_v47 = vld [vmem:[%s18899_s4 + $0xa58] sm:$0xff] }
 0xcc3   :  { %10119 = vmatprep.subr.bf16.mxu1 %v11802_v20  ;;  %v6718_v20 = vld [vmem:[%s18899_s4 + $0xa78] sm:$0xff]  ;;  %v11848_v8 = vcombine.high %v6713_v53, %v6717_v26  ;;  %v11847_v51 = vcombine.low %v6713_v53, %v6717_v26 }
 0xcc4   :  { %v11850_v22 = vcombine.high %v6714_v47, %v6718_v20  ;;  %v11849_v21 = vcombine.low %v6714_v47, %v6718_v20 }
 0xcc5   :  { %10038 = vmatpush1.bf16.msra.mxu0 %v11799_v42  ;;  %v6721_v42 = vld [vmem:[%s18899_s4 + $0xa90] sm:$0xff] }
 0xcc6   :  { %10120 = vmatpush1.bf16.msra.mxu1 %v11801_v48  ;;  %10039 = vmatprep.subr.bf16.mxu0 %v11808_v63  ;;  %v6725_v48 = vld [vmem:[%s18899_s4 + $0xab0] sm:$0xff]  ;;  %v6722_v63 = vld [vmem:[%s18899_s4 + $0xa98] sm:$0xff] }
 0xcc7   :  { %10121 = vmatprep.subr.bf16.mxu1 %v11810_v55  ;;  %v6726_v55 = vld [vmem:[%s18899_s4 + $0xab8] sm:$0xff]  ;;  %v11856_v0 = vcombine.high %v6721_v42, %v6725_v48  ;;  %v11855_v46 = vcombine.low %v6721_v42, %v6725_v48 }
 0xcc8   :  { %v11858_v1 = vcombine.high %v6722_v63, %v6726_v55  ;;  %v11857_v35 = vcombine.low %v6722_v63, %v6726_v55 }
 0xcc9   :  { %10040 = vmatpush1.bf16.msra.mxu0 %v11807_v27  ;;  %v6729_v27 = vld [vmem:[%s18899_s4 + $0xad0] sm:$0xff] }
 0xcca   :  { %10122 = vmatpush1.bf16.msra.mxu1 %v11809_v33  ;;  %10041 = vmatprep.subr.bf16.mxu0 %v11816_v32  ;;  %v6733_v33 = vld [vmem:[%s18899_s4 + $0xaf0] sm:$0xff]  ;;  %v6730_v32 = vld [vmem:[%s18899_s4 + $0xad8] sm:$0xff] }
 0xccb   :  { %10123 = vmatprep.subr.bf16.mxu1 %v11818_v50  ;;  %v6734_v50 = vld [vmem:[%s18899_s4 + $0xaf8] sm:$0xff]  ;;  %v11864_v36 = vcombine.high %v6729_v27, %v6733_v33  ;;  %v11863_v23 = vcombine.low %v6729_v27, %v6733_v33 }
 0xccc   :  { %v11866_v14 = vcombine.high %v6730_v32, %v6734_v50  ;;  %v11865_v3 = vcombine.low %v6730_v32, %v6734_v50 }
 0xccd   :  { %10042 = vmatpush1.bf16.msra.mxu0 %v11815_v15  ;;  %v6737_v15 = vld [vmem:[%s18899_s4 + $0xb10] sm:$0xff] }
 0xcce   :  { %10124 = vmatpush1.bf16.msra.mxu1 %v11817_v31  ;;  %10043 = vmatprep.subr.bf16.mxu0 %v11824_v37  ;;  %v6741_v31 = vld [vmem:[%s18899_s4 + $0xb30] sm:$0xff]  ;;  %v6738_v37 = vld [vmem:[%s18899_s4 + $0xb18] sm:$0xff] }
 0xccf   :  { %10125 = vmatprep.subr.bf16.mxu1 %v11826_v38  ;;  %v6742_v38 = vld [vmem:[%s18899_s4 + $0xb38] sm:$0xff]  ;;  %v11872_v19 = vcombine.high %v6737_v15, %v6741_v31  ;;  %v11871_v10 = vcombine.low %v6737_v15, %v6741_v31 }
 0xcd0   :  { %v11874_v30 = vcombine.high %v6738_v37, %v6742_v38  ;;  %v11873_v2 = vcombine.low %v6738_v37, %v6742_v38  ;;  %v6782_v15 = vld [vmem:[%s18899_s4 + $0xc78] sm:$0xff]  ;;  %v6785_v38 = vld [vmem:[%s18899_s4 + $0xc90] sm:$0xff] }
 0xcd1   :  { %10044 = vmatpush1.bf16.msra.mxu0 %v11823_v13  ;;  %v6745_v13 = vld [vmem:[%s18899_s4 + $0xb50] sm:$0xff] }
 0xcd2   :  { %10126 = vmatpush1.bf16.msra.mxu1 %v11825_v34  ;;  %10045 = vmatprep.subr.bf16.mxu0 %v11832_v49  ;;  %v6749_v34 = vld [vmem:[%s18899_s4 + $0xb70] sm:$0xff]  ;;  %v6746_v49 = vld [vmem:[%s18899_s4 + $0xb58] sm:$0xff] }
 0xcd3   :  { %10127 = vmatprep.subr.bf16.mxu1 %v11834_v4  ;;  %v6750_v4 = vld [vmem:[%s18899_s4 + $0xb78] sm:$0xff]  ;;  %v11880_v60 = vcombine.high %v6745_v13, %v6749_v34  ;;  %v11879_v53 = vcombine.low %v6745_v13, %v6749_v34 }
 0xcd4   :  { %v11882_v52 = vcombine.high %v6746_v49, %v6750_v4  ;;  %v11881_v26 = vcombine.low %v6746_v49, %v6750_v4 }
 0xcd5   :  { %10046 = vmatpush1.bf16.msra.mxu0 %v11831_v11  ;;  %v6753_v11 = vld [vmem:[%s18899_s4 + $0xb90] sm:$0xff] }
 0xcd6   :  { %10128 = vmatpush1.bf16.msra.mxu1 %v11833_v5  ;;  %10047 = vmatprep.subr.bf16.mxu0 %v11840_v44  ;;  %v6757_v5 = vld [vmem:[%s18899_s4 + $0xbb0] sm:$0xff]  ;;  %v6754_v44 = vld [vmem:[%s18899_s4 + $0xb98] sm:$0xff] }
 0xcd7   :  { %10129 = vmatprep.subr.bf16.mxu1 %v11842_v6  ;;  %v6758_v6 = vld [vmem:[%s18899_s4 + $0xbb8] sm:$0xff]  ;;  %v11888_v47 = vcombine.high %v6753_v11, %v6757_v5  ;;  %v11887_v42 = vcombine.low %v6753_v11, %v6757_v5 }
 0xcd8   :  { %v11890_v20 = vcombine.high %v6754_v44, %v6758_v6  ;;  %v11889_v48 = vcombine.low %v6754_v44, %v6758_v6  ;;  %v6801_v44 = vld [vmem:[%s18899_s4 + $0xd10] sm:$0xff] }
 0xcd9   :  { %10048 = vmatpush1.bf16.msra.mxu0 %v11839_v62  ;;  %v6761_v62 = vld [vmem:[%s18899_s4 + $0xbd0] sm:$0xff] }
 0xcda   :  { %10130 = vmatpush1.bf16.msra.mxu1 %v11841_v59  ;;  %10049 = vmatprep.subr.bf16.mxu0 %v11848_v8  ;;  %v6765_v59 = vld [vmem:[%s18899_s4 + $0xbf0] sm:$0xff]  ;;  %v6762_v8 = vld [vmem:[%s18899_s4 + $0xbd8] sm:$0xff] }
 0xcdb   :  { %10131 = vmatprep.subr.bf16.mxu1 %v11850_v22  ;;  %v6766_v22 = vld [vmem:[%s18899_s4 + $0xbf8] sm:$0xff]  ;;  %v11896_v63 = vcombine.high %v6761_v62, %v6765_v59  ;;  %v11895_v27 = vcombine.low %v6761_v62, %v6765_v59  ;;  %v6805_v6 = vld [vmem:[%s18899_s4 + $0xd30] sm:$0xff] }
 0xcdc   :  { %v11898_v55 = vcombine.high %v6762_v8, %v6766_v22  ;;  %v11897_v33 = vcombine.low %v6762_v8, %v6766_v22  ;;  %v11936_v62 = vcombine.high %v6801_v44, %v6805_v6  ;;  %v6809_v8 = vld [vmem:[%s18899_s4 + $0xd50] sm:$0xff] }
 0xcdd   :  { %10050 = vmatpush1.bf16.msra.mxu0 %v11847_v51  ;;  %v6769_v51 = vld [vmem:[%s18899_s4 + $0xc10] sm:$0xff] }
 0xcde   :  { %10132 = vmatpush1.bf16.msra.mxu1 %v11849_v21  ;;  %10051 = vmatprep.subr.bf16.mxu0 %v11856_v0  ;;  %v6773_v21 = vld [vmem:[%s18899_s4 + $0xc30] sm:$0xff]  ;;  %v6770_v0 = vld [vmem:[%s18899_s4 + $0xc18] sm:$0xff] }
 0xcdf   :  { %10133 = vmatprep.subr.bf16.mxu1 %v11858_v1  ;;  %v6774_v1 = vld [vmem:[%s18899_s4 + $0xc38] sm:$0xff]  ;;  %v11904_v32 = vcombine.high %v6769_v51, %v6773_v21  ;;  %v6813_v22 = vld [vmem:[%s18899_s4 + $0xd70] sm:$0xff] }
 0xce0   :  { %v11906_v50 = vcombine.high %v6770_v0, %v6774_v1  ;;  %v11905_v31 = vcombine.low %v6770_v0, %v6774_v1  ;;  %v6817_v0 = vld [vmem:[%s18899_s4 + $0xd90] sm:$0xff] }
 0xce1   :  { %10052 = vmatpush1.bf16.msra.mxu0 %v11855_v46  ;;  %v6777_v46 = vld [vmem:[%s18899_s4 + $0xc50] sm:$0xff] }
 0xce2   :  { %10134 = vmatpush1.bf16.msra.mxu1 %v11857_v35  ;;  %10053 = vmatprep.subr.bf16.mxu0 %v11864_v36  ;;  %v6781_v35 = vld [vmem:[%s18899_s4 + $0xc70] sm:$0xff]  ;;  %v11903_v36 = vcombine.low %v6769_v51, %v6773_v21  ;;  %v11944_v51 = vcombine.high %v6809_v8, %v6813_v22 }
 0xce3   :  { %10135 = vmatprep.subr.bf16.mxu1 %v11866_v14  ;;  %v6778_v14 = vld [vmem:[%s18899_s4 + $0xc58] sm:$0xff]  ;;  %v11912_v37 = vcombine.high %v6777_v46, %v6781_v35  ;;  %v11911_v13 = vcombine.low %v6777_v46, %v6781_v35  ;;  %v6821_v1 = vld [vmem:[%s18899_s4 + $0xdb0] sm:$0xff] }
 0xce4   :  { %v11913_v34 = vcombine.low %v6778_v14, %v6782_v15  ;;  %v11952_v46 = vcombine.high %v6817_v0, %v6821_v1 }
 0xce5   :  { %10054 = vmatpush1.bf16.msra.mxu0 %v11863_v23  ;;  %v6789_v23 = vld [vmem:[%s18899_s4 + $0xcb0] sm:$0xff] }
 0xce6   :  { %10136 = vmatpush1.bf16.msra.mxu1 %v11865_v3  ;;  %10055 = vmatprep.subr.bf16.mxu0 %v11872_v19  ;;  %v11914_v3 = vcombine.high %v6778_v14, %v6782_v15  ;;  %v6786_v19 = vld [vmem:[%s18899_s4 + $0xc98] sm:$0xff]  ;;  %v11920_v49 = vcombine.high %v6785_v38, %v6789_v23  ;;  %v6829_v14 = vld [vmem:[%s18899_s4 + $0xdf0] sm:$0xff] }
 0xce7   :  { %10137 = vmatprep.subr.bf16.mxu1 %v11874_v30  ;;  %v6790_v30 = vld [vmem:[%s18899_s4 + $0xcb8] sm:$0xff] }
 0xce8   :  { %v11922_v4 = vcombine.high %v6786_v19, %v6790_v30  ;;  %v6826_v15 = vld [vmem:[%s18899_s4 + $0xdd8] sm:$0xff] }
 0xce9   :  { %10056 = vmatpush1.bf16.msra.mxu0 %v11871_v10  ;;  %v6793_v10 = vld [vmem:[%s18899_s4 + $0xcd0] sm:$0xff] }
 0xcea   :  { %10138 = vmatpush1.bf16.msra.mxu1 %v11873_v2  ;;  %10057 = vmatprep.subr.bf16.mxu0 %v11880_v60  ;;  %v6797_v2 = vld [vmem:[%s18899_s4 + $0xcf0] sm:$0xff]  ;;  %v6798_v60 = vld [vmem:[%s18899_s4 + $0xcf8] sm:$0xff] }
 0xceb   :  { %10139 = vmatprep.subr.bf16.mxu1 %v11882_v52  ;;  %v11921_v52 = vcombine.low %v6786_v19, %v6790_v30  ;;  %v11928_v11 = vcombine.high %v6793_v10, %v6797_v2  ;;  %v6833_v19 = vld [vmem:[%s18899_s4 + $0xe10] sm:$0xff] }
 0xcec   :  { %v6837_v30 = vld [vmem:[%s18899_s4 + $0xe30] sm:$0xff] }
 0xced   :  { %10058 = vmatpush1.bf16.msra.mxu0 %v11879_v53  ;;  %v6802_v53 = vld [vmem:[%s18899_s4 + $0xd18] sm:$0xff] }
 0xcee   :  { %10140 = vmatpush1.bf16.msra.mxu1 %v11881_v26  ;;  %10059 = vmatprep.subr.bf16.mxu0 %v11888_v47  ;;  %v6806_v26 = vld [vmem:[%s18899_s4 + $0xd38] sm:$0xff]  ;;  %v11927_v47 = vcombine.low %v6793_v10, %v6797_v2  ;;  %v11968_v10 = vcombine.high %v6833_v19, %v6837_v30 }
 0xcef   :  { %10141 = vmatprep.subr.bf16.mxu1 %v11890_v20  ;;  %v11938_v59 = vcombine.high %v6802_v53, %v6806_v26 }
 0xcf1   :  { %10060 = vmatpush1.bf16.msra.mxu0 %v11887_v42  ;;  %v6810_v42 = vld [vmem:[%s18899_s4 + $0xd58] sm:$0xff] }
 0xcf2   :  { %10142 = vmatpush1.bf16.msra.mxu1 %v11889_v48  ;;  %10061 = vmatprep.subr.bf16.mxu0 %v11896_v63  ;;  %v6814_v48 = vld [vmem:[%s18899_s4 + $0xd78] sm:$0xff]  ;;  %v11935_v63 = vcombine.low %v6801_v44, %v6805_v6 }
 0xcf3   :  { %10143 = vmatprep.subr.bf16.mxu1 %v11898_v55  ;;  %v11937_v55 = vcombine.low %v6802_v53, %v6806_v26  ;;  %v11946_v21 = vcombine.high %v6810_v42, %v6814_v48  ;;  %v6849_v53 = vld [vmem:[%s18899_s4 + $0xe90] sm:$0xff] }
 0xcf4   :  { %v6853_v26 = vld [vmem:[%s18899_s4 + $0xeb0] sm:$0xff] }
 0xcf5   :  { %10062 = vmatpush1.bf16.msra.mxu0 %v11895_v27  ;;  %v6818_v27 = vld [vmem:[%s18899_s4 + $0xd98] sm:$0xff] }
 0xcf6   :  { %10144 = vmatpush1.bf16.msra.mxu1 %v11897_v33  ;;  %10072 = vmatprep.subr.bf16.mxu0 %v11904_v32  ;;  %v6822_v33 = vld [vmem:[%s18899_s4 + $0xdb8] sm:$0xff]  ;;  %v11943_v32 = vcombine.low %v6809_v8, %v6813_v22  ;;  %v11984_v8 = vcombine.high %v6849_v53, %v6853_v26 }
 0xcf7   :  { %10154 = vmatprep.subr.bf16.mxu1 %v11906_v50  ;;  %v11945_v50 = vcombine.low %v6810_v42, %v6814_v48  ;;  %v11954_v35 = vcombine.high %v6818_v27, %v6822_v33  ;;  %v6857_v42 = vld [vmem:[%s18899_s4 + $0xed0] sm:$0xff] }
 0xcf8   :  { %10064 = vmatmul.mubr.bf16.vlgmr.msra.gmra.mrb[16].mxu0 %v18070_v57  ;;  %v6861_v48 = vld [vmem:[%s18899_s4 + $0xef0] sm:$0xff] }
 0xcf9   :  { %10146 = vmatmul.mubr.bf16.vlgmr.msra.gmra.mrb[68].mxu1 %v18070_v57  ;;  %10073 = vmatpush1.bf16.msra.mxu0 %v11903_v36  ;;  %v6794_v57 = vld [vmem:[%s18899_s4 + $0xcd8] sm:$0xff]  ;;  %v6825_v36 = vld [vmem:[%s18899_s4 + $0xdd0] sm:$0xff] }
 0xcfa   :  { %10104 = vmatprep.mubr.bf16.mxu0 %v18086_v25  ;;  %10155 = vmatpush1.bf16.msra.mxu1 %v11905_v31  ;;  %v11930_v5 = vcombine.high %v6794_v57, %v6798_v60  ;;  %v11929_v20 = vcombine.low %v6794_v57, %v6798_v60  ;;  %v6830_v31 = vld [vmem:[%s18899_s4 + $0xdf8] sm:$0xff]  ;;  %v6841_v57 = vld [vmem:[%s18899_s4 + $0xe50] sm:$0xff] }
 0xcfb   :  { %10186 = vmatprep.mubr.bf16.mxu1 %v18086_v25  ;;  %10074 = vmatprep.subr.bf16.mxu0 %v11912_v37  ;;  %v11919_v25 = vcombine.low %v6785_v38, %v6789_v23  ;;  %v11951_v37 = vcombine.low %v6817_v0, %v6821_v1  ;;  %v11953_v38 = vcombine.low %v6818_v27, %v6822_v33  ;;  %v6845_v60 = vld [vmem:[%s18899_s4 + $0xe70] sm:$0xff] }
 0xcfc   :  { %10156 = vmatprep.subr.bf16.mxu1 %v11914_v3  ;;  %v11960_v23 = vcombine.high %v6825_v36, %v6829_v14  ;;  %v11962_v3 = vcombine.high %v6826_v15, %v6830_v31  ;;  %v11976_v44 = vcombine.high %v6841_v57, %v6845_v60  ;;  %v11992_v0 = vcombine.high %v6857_v42, %v6861_v48  ;;  %v6865_v27 = vld [vmem:[%s18899_s4 + $0xf10] sm:$0xff] }
 0xcfd   :  { %10075 = vmatpush1.bf16.msra.mxu0 %v11911_v13  ;;  %v6834_v13 = vld [vmem:[%s18899_s4 + $0xe18] sm:$0xff]  ;;  %v6869_v33 = vld [vmem:[%s18899_s4 + $0xf30] sm:$0xff] }
 0xcfe   :  { %10157 = vmatpush1.bf16.msra.mxu1 %v11913_v34  ;;  %10076 = vmatprep.subr.bf16.mxu0 %v11920_v49  ;;  %v6838_v34 = vld [vmem:[%s18899_s4 + $0xe38] sm:$0xff]  ;;  %v11959_v49 = vcombine.low %v6825_v36, %v6829_v14  ;;  %v12000_v36 = vcombine.high %v6865_v27, %v6869_v33 }
 0xcff   :  { %10158 = vmatprep.subr.bf16.mxu1 %v11922_v4  ;;  %v11961_v4 = vcombine.low %v6826_v15, %v6830_v31  ;;  %v11970_v2 = vcombine.high %v6834_v13, %v6838_v34  ;;  %v6873_v15 = vld [vmem:[%s18899_s4 + $0xf50] sm:$0xff] }
 0xd00   :  { %v6877_v31 = vld [vmem:[%s18899_s4 + $0xf70] sm:$0xff] }
 0xd01   :  { %10077 = vmatpush1.bf16.msra.mxu0 %v11919_v25  ;;  %v6842_v25 = vld [vmem:[%s18899_s4 + $0xe58] sm:$0xff] }
 0xd02   :  { %10159 = vmatpush1.bf16.msra.mxu1 %v11921_v52  ;;  %10078 = vmatprep.subr.bf16.mxu0 %v11928_v11  ;;  %v6846_v52 = vld [vmem:[%s18899_s4 + $0xe78] sm:$0xff]  ;;  %v11967_v11 = vcombine.low %v6833_v19, %v6837_v30  ;;  %v12008_v19 = vcombine.high %v6873_v15, %v6877_v31 }
 0xd03   :  { %10160 = vmatprep.subr.bf16.mxu1 %v11930_v5  ;;  %v11969_v5 = vcombine.low %v6834_v13, %v6838_v34  ;;  %v11978_v6 = vcombine.high %v6842_v25, %v6846_v52  ;;  %v6881_v13 = vld [vmem:[%s18899_s4 + $0xf90] sm:$0xff] }
 0xd04   :  { %v6885_v34 = vld [vmem:[%s18899_s4 + $0xfb0] sm:$0xff] }
 0xd05   :  { %10079 = vmatpush1.bf16.msra.mxu0 %v11927_v47  ;;  %v6850_v47 = vld [vmem:[%s18899_s4 + $0xe98] sm:$0xff] }
 0xd06   :  { %10161 = vmatpush1.bf16.msra.mxu1 %v11929_v20  ;;  %10080 = vmatprep.subr.bf16.mxu0 %v11936_v62  ;;  %v6854_v20 = vld [vmem:[%s18899_s4 + $0xeb8] sm:$0xff]  ;;  %v11975_v62 = vcombine.low %v6841_v57, %v6845_v60  ;;  %v12016_v57 = vcombine.high %v6881_v13, %v6885_v34 }
 0xd07   :  { %10162 = vmatprep.subr.bf16.mxu1 %v11938_v59  ;;  %v11977_v59 = vcombine.low %v6842_v25, %v6846_v52  ;;  %v11986_v22 = vcombine.high %v6850_v47, %v6854_v20  ;;  %v6889_v25 = vld [vmem:[%s18899_s4 + $0xfd0] sm:$0xff] }
 0xd08   :  { %v6893_v52 = vld [vmem:[%s18899_s4 + $0xff0] sm:$0xff] }
 0xd09   :  { %10081 = vmatpush1.bf16.msra.mxu0 %v11935_v63  ;;  %v6858_v63 = vld [vmem:[%s18899_s4 + $0xed8] sm:$0xff] }
 0xd0a   :  { %10163 = vmatpush1.bf16.msra.mxu1 %v11937_v55  ;;  %10082 = vmatprep.subr.bf16.mxu0 %v11944_v51  ;;  %v6862_v55 = vld [vmem:[%s18899_s4 + $0xef8] sm:$0xff]  ;;  %v11983_v51 = vcombine.low %v6849_v53, %v6853_v26  ;;  %v12024_v53 = vcombine.high %v6889_v25, %v6893_v52 }
 0xd0b   :  { %10164 = vmatprep.subr.bf16.mxu1 %v11946_v21  ;;  %v11985_v21 = vcombine.low %v6850_v47, %v6854_v20  ;;  %v11994_v1 = vcombine.high %v6858_v63, %v6862_v55  ;;  %v12023_v47 = vcombine.low %v6889_v25, %v6893_v52  ;;  %v13537_v52 = vld [vmem:[%s18894_s1 + $0x248] sm:$0xff]  }
 0xd0d   :  { %10083 = vmatpush1.bf16.msra.mxu0 %v11943_v32  ;;  %v6866_v32 = vld [vmem:[%s18899_s4 + $0xf18] sm:$0xff] }
 0xd0e   :  { %10165 = vmatpush1.bf16.msra.mxu1 %v11945_v50  ;;  %10084 = vmatprep.subr.bf16.mxu0 %v11952_v46  ;;  %v6870_v50 = vld [vmem:[%s18899_s4 + $0xf38] sm:$0xff]  ;;  %v11991_v46 = vcombine.low %v6857_v42, %v6861_v48  ;;  %v13505_v42 = vld [vmem:[%s18894_s1 + $0x150] sm:$0xff]  }
 0xd0f   :  { %10166 = vmatprep.subr.bf16.mxu1 %v11954_v35  ;;  %v11993_v35 = vcombine.low %v6858_v63, %v6862_v55  ;;  %v12002_v14 = vcombine.high %v6866_v32, %v6870_v50  ;;  %v13506_v48 = vld [vmem:[%s18894_s1 + $0x110] sm:$0xff]   ;;  %v13508_v63 = vld [vmem:[%s18894_s1 + $0x118] sm:$0xff]   ;;  %v13509_v55 = vld [vmem:[%s18894_s1 + $0x160] sm:$0xff]  }
 0xd11   :  { %10085 = vmatpush1.bf16.msra.mxu0 %v11951_v37  ;;  %v6874_v37 = vld [vmem:[%s18899_s4 + $0xf58] sm:$0xff] }
 0xd12   :  { %10167 = vmatpush1.bf16.msra.mxu1 %v11953_v38  ;;  %10086 = vmatprep.subr.bf16.mxu0 %v11960_v23  ;;  %v6878_v38 = vld [vmem:[%s18899_s4 + $0xf78] sm:$0xff]  ;;  %v11999_v23 = vcombine.low %v6865_v27, %v6869_v33  ;;  %v13514_v27 = vld [vmem:[%s18894_s1 + $0x130] sm:$0xff]  }
 0xd13   :  { %10168 = vmatprep.subr.bf16.mxu1 %v11962_v3  ;;  %v12001_v3 = vcombine.low %v6866_v32, %v6870_v50  ;;  %v12010_v30 = vcombine.high %v6874_v37, %v6878_v38  ;;  %v13515_v33 = vld [vmem:[%s18894_s1 + $0x178] sm:$0xff]   ;;  %v13517_v50 = vld [vmem:[%s18894_s1 + $0x1c0] sm:$0xff]  }
 0xd14   :  { %v13516_v32 = vld [vmem:[%s18894_s1 + $0x138] sm:$0xff]  }
 0xd15   :  { %10087 = vmatpush1.bf16.msra.mxu0 %v11959_v49  ;;  %v6882_v49 = vld [vmem:[%s18899_s4 + $0xf98] sm:$0xff] }
 0xd16   :  { %10169 = vmatpush1.bf16.msra.mxu1 %v11961_v4  ;;  %10088 = vmatprep.subr.bf16.mxu0 %v11968_v10  ;;  %v6886_v4 = vld [vmem:[%s18899_s4 + $0xfb8] sm:$0xff]  ;;  %v12007_v10 = vcombine.low %v6873_v15, %v6877_v31 }
 0xd17   :  { %10170 = vmatprep.subr.bf16.mxu1 %v11970_v2  ;;  %v12009_v2 = vcombine.low %v6874_v37, %v6878_v38  ;;  %v12018_v60 = vcombine.high %v6882_v49, %v6886_v4 }
 0xd19   :  { %10089 = vmatpush1.bf16.msra.mxu0 %v11967_v11  ;;  %v6890_v11 = vld [vmem:[%s18899_s4 + $0xfd8] sm:$0xff] }
 0xd1a   :  { %10171 = vmatpush1.bf16.msra.mxu1 %v11969_v5  ;;  %10090 = vmatprep.subr.bf16.mxu0 %v11976_v44  ;;  %v6894_v5 = vld [vmem:[%s18899_s4 + $0xff8] sm:$0xff]  ;;  %v12015_v44 = vcombine.low %v6881_v13, %v6885_v34 }
 0xd1b   :  { %10172 = vmatprep.subr.bf16.mxu1 %v11978_v6  ;;  %v12017_v6 = vcombine.low %v6882_v49, %v6886_v4  ;;  %v12026_v26 = vcombine.high %v6890_v11, %v6894_v5  ;;  %v12025_v20 = vcombine.low %v6890_v11, %v6894_v5  ;;  %v13539_v11 = vld [vmem:[%s18894_s1 + $0x208] sm:$0xff]   ;;  %v13541_v5 = vld [vmem:[%s18894_s1 + $0x250] sm:$0xff]  }
 0xd1d   :  { %10091 = vmatpush1.bf16.msra.mxu0 %v11975_v62  ;;  %v13501_v62 = vld [vmem:[%s18894_s1 + $0x140] sm:$0xff]  }
 0xd1e   :  { %10173 = vmatpush1.bf16.msra.mxu1 %v11977_v59  ;;  %10092 = vmatprep.subr.bf16.mxu0 %v11984_v8  ;;  %v13502_v59 = vld [vmem:[%s18894_s1 + $0x100] sm:$0xff]   ;;  %v13503_v8 = vld [vmem:[%s18894_s1 + $0x148] sm:$0xff]  }
 0xd1f   :  { %10174 = vmatprep.subr.bf16.mxu1 %v11986_v22  ;;  %v13504_v22 = vld [vmem:[%s18894_s1 + $0x108] sm:$0xff]  }
 0xd21   :  { %10093 = vmatpush1.bf16.msra.mxu0 %v11983_v51  ;;  %v13510_v51 = vld [vmem:[%s18894_s1 + $0x120] sm:$0xff]  }
 0xd22   :  { %10175 = vmatpush1.bf16.msra.mxu1 %v11985_v21  ;;  %10094 = vmatprep.subr.bf16.mxu0 %v11992_v0  ;;  %v13511_v21 = vld [vmem:[%s18894_s1 + $0x168] sm:$0xff]  }
 0xd23   :  { %10176 = vmatprep.subr.bf16.mxu1 %v11994_v1  ;;  %v13512_v0 = vld [vmem:[%s18894_s1 + $0x128] sm:$0xff]   ;;  %v13513_v1 = vld [vmem:[%s18894_s1 + $0x170] sm:$0xff]  }
 0xd25   :  { %10095 = vmatpush1.bf16.msra.mxu0 %v11991_v46  ;;  %v11769_v46 = vld [vmem:[%s18896_s5 + $0x280] ss:$8 sm:$0xf] }
 0xd26   :  { %10177 = vmatpush1.bf16.msra.mxu1 %v11993_v35  ;;  %10096 = vmatprep.subr.bf16.mxu0 %v12000_v36  ;;  %v11770_v35 = vld [vmem:[%s18896_s5 + $0x280] ss:$8 sm:$0xf0] }
 0xd27   :  { %10178 = vmatprep.subr.bf16.mxu1 %v12002_v14  ;;  %v18704_v36 = vor.u32 %v11770_v35, %v11769_v46 }
 0xd29   :  { %10097 = vmatpush1.bf16.msra.mxu0 %v11999_v23  ;;  %v8550_v14 = vrot.slane %v18704_v36, %v15436_v24  ;;  %v8558_v15 = vrot.slane %v18704_v36, %v15971_v16  ;;  %v8554_v31 = vrot.slane %v18704_v36, %v15442_v61  ;;  %v8562_v37 = vrot.slane %v18704_v36, %v15974_v29  ;;  %v13533_v61 = vld [vmem:[%s18894_s1 + $0x240] sm:$0xff]  }
 0xd2a   :  { %10179 = vmatpush1.bf16.msra.mxu1 %v12001_v3  ;;  %10098 = vmatprep.subr.bf16.mxu0 %v12008_v19  ;;  %v13535_v29 = vld [vmem:[%s18894_s1 + $0x200] sm:$0xff]  }
 0xd2b   :  { %10180 = vmatprep.subr.bf16.mxu1 %v12010_v30 }
 0xd2d   :  { %10099 = vmatpush1.bf16.msra.mxu0 %v12007_v10 }
 0xd2e   :  { %10181 = vmatpush1.bf16.msra.mxu1 %v12009_v2  ;;  %10100 = vmatprep.subr.bf16.mxu0 %v12016_v57 }
 0xd2f   :  { %10182 = vmatprep.subr.bf16.mxu1 %v12018_v60 }
 0xd31   :  { %10101 = vmatpush1.bf16.msra.mxu0 %v12015_v44  ;;  %v13543_v44 = vld [vmem:[%s18894_s1 + $0x210] sm:$0xff]  }
 0xd32   :  { %10183 = vmatpush1.bf16.msra.mxu1 %v12017_v6  ;;  %10102 = vmatprep.subr.bf16.mxu0 %v12024_v53  ;;  %v13545_v53 = vld [vmem:[%s18894_s1 + $0x258] sm:$0xff]  }
 0xd33   :  { %10184 = vmatprep.subr.bf16.mxu1 %v12026_v26 }
 0xd35   :  { %10103 = vmatpush1.bf16.msra.mxu0 %v12023_v47 }
 0xd36   :  { %10185 = vmatpush1.bf16.msra.mxu1 %v12025_v20  ;;  %12273 = vmatprep.subr.bf16.mxu0 %v13501_v62  ;;  %v13547_v20 = vld [vmem:[%s18894_s1 + $0x218] sm:$0xff]  }
 0xd37   :  { %12317 = vmatprep.subr.bf16.mxu1 %v13533_v61  ;;  %v13528_v61 = vld [vmem:[%s18894_s1 + $0x1a8] sm:$0xff]  }
 0xd38   :  { %10105 = vmatmul.mubr.bf16.vlgmr.msra.gmra.mrb[16].mxu0 %v18275_v12 }
 0xd39   :  { %10187 = vmatmul.mubr.bf16.vlgmr.msra.gmra.mrb[68].mxu1 %v18275_v12  ;;  %12274 = vmatpush3.bf16.msra.mxu0 %v13502_v59  ;;  %v13507_v12 = vld [vmem:[%s18894_s1 + $0x158] sm:$0xff]  }
 0xd3a   :  { %12275 = vmatprep.subr.bf16.mxu0 %v13503_v8  ;;  %12318 = vmatpush3.bf16.msra.mxu1 %v13535_v29  ;;  %v13529_v29 = vld [vmem:[%s18894_s1 + $0x1f0] sm:$0xff]  }
 0xd3b   :  { %12319 = vmatprep.subr.bf16.mxu1 %v13537_v52  ;;  %v13530_v52 = vld [vmem:[%s18894_s1 + $0x1b0] sm:$0xff]  }
 0xd3d   :  { %12276 = vmatpush3.bf16.msra.mxu0 %v13504_v22 }
 0xd3e   :  { %12277 = vmatprep.subr.bf16.mxu0 %v13505_v42  ;;  %12320 = vmatpush3.bf16.msra.mxu1 %v13539_v11  ;;  %v13531_v11 = vld [vmem:[%s18894_s1 + $0x1f8] sm:$0xff]  }
 0xd3f   :  { %12321 = vmatprep.subr.bf16.mxu1 %v13541_v5  ;;  %v13532_v5 = vld [vmem:[%s18894_s1 + $0x1b8] sm:$0xff]  }
 0xd41   :  { %12278 = vmatpush3.bf16.msra.mxu0 %v13506_v48  ;;  %v13549_v48 = vld [vmem:[%s18894_s1 + $0x260] sm:$0xff]  }
 0xd42   :  { %12279 = vmatprep.subr.bf16.mxu0 %v13507_v12  ;;  %12322 = vmatpush3.bf16.msra.mxu1 %v13543_v44  ;;  %v13551_v12 = vld [vmem:[%s18894_s1 + $0x220] sm:$0xff]  }
 0xd43   :  { %12323 = vmatprep.subr.bf16.mxu1 %v13545_v53  ;;  %v13534_v44 = vld [vmem:[%s18894_s1 + $0x2c0] sm:$0xff]  }
 0xd45   :  { %12280 = vmatpush3.bf16.msra.mxu0 %v13508_v63  ;;  %v13553_v63 = vld [vmem:[%s18894_s1 + $0x268] sm:$0xff]  }
 0xd46   :  { %12281 = vmatprep.subr.bf16.mxu0 %v13509_v55  ;;  %12324 = vmatpush3.bf16.msra.mxu1 %v13547_v20  ;;  %v13624_v55 = vmov 1983009808   ;;  %v13542_v20 = vld [vmem:[%s18894_s1 + $0x2d0] sm:$0xff]  }
 0xd47   :  { %12325 = vmatprep.subr.bf16.mxu1 %v13549_v48  ;;  %v13554_v48 = vld [vmem:[%s18894_s1 + $0x2e8] sm:$0xff]  }
 0xd49   :  { %12282 = vmatpush3.bf16.msra.mxu0 %v13510_v51  ;;  %v10262_v51 = vunpack.c.l.s4 %v13624_v55  ;;  %v13560_v55 = vld [vmem:[%s18894_s1 + $0x2b0] sm:$0xff]  }
 0xd4a   :  { %12283 = vmatprep.subr.bf16.mxu0 %v13511_v21  ;;  %12326 = vmatpush3.bf16.msra.mxu1 %v13551_v12  ;;  %v13555_v21 = vld [vmem:[%s18894_s1 + $0x228] sm:$0xff]  }
 0xd4b   :  { %12327 = vmatprep.subr.bf16.mxu1 %v13553_v63  ;;  %v13556_v12 = vld [vmem:[%s18894_s1 + $0x2a8] sm:$0xff]   ;;  %v13558_v63 = vld [vmem:[%s18894_s1 + $0x2f0] sm:$0xff]  }
 0xd4d   :  { %12284 = vmatpush3.bf16.msra.mxu0 %v13512_v0  ;;  %v13557_v0 = vld [vmem:[%s18894_s1 + $0x270] sm:$0xff]  }
 0xd4e   :  { %12285 = vmatprep.subr.bf16.mxu0 %v13513_v1  ;;  %v10263_v1 = vunpack.c.0.s8 %v10262_v51  ;;  %12328 = vmatpush3.bf16.msra.mxu1 %v13555_v21  ;;  %v13562_v51 = vld [vmem:[%s18894_s1 + $0x2f8] sm:$0xff]  }
 0xd4f   :  { %12329 = vmatprep.subr.bf16.mxu1 %v13557_v0  ;;  %v13564_v21 = vld [vmem:[%s18894_s1 + $0x2b8] sm:$0xff]   ;;  %v8566_v0 = vrot.slane %v18704_v36, %v4745_v18 }
 0xd51   :  { %12286 = vmatpush3.bf16.msra.mxu0 %v13514_v27  ;;  %v13559_v27 = vld [vmem:[%s18894_s1 + $0x230] sm:$0xff]  }
 0xd52   :  { %12287 = vmatprep.subr.bf16.mxu0 %v13515_v33  ;;  %12330 = vmatpush3.bf16.msra.mxu1 %v13559_v27  ;;  %v8570_v27 = vrot.slane %v18704_v36, %v4749_v58 }
 0xd55   :  { %12288 = vmatpush3.bf16.msra.mxu0 %v13516_v32  ;;  %v13561_v32 = vld [vmem:[%s18894_s1 + $0x278] sm:$0xff]  }
 0xd56   :  { %12295 = vmatprep.subr.bf16.mxu0 %v13517_v50  ;;  %12331 = vmatprep.subr.bf16.mxu1 %v13561_v32 }
 0xd8b   :  { %v9942_v38 = vpop.f32.mrb[12].mxu0  ;;  %v10024_v23 = vpop.f32.mrb[64].mxu1 }
 0xd8c   :  { %v12679_v3 = vadd.f32 %v9942_v38, %v8550_v14  ;;  %v12681_v19 = vadd.f32 %v10024_v23, %v8558_v15  ;;  %v9944_v30 = vpop.f32.mrb[13].mxu0  ;;  %v10026_v13 = vpop.f32.mrb[65].mxu1  ;;  %v13563_v38 = vld [vmem:[%s18894_s1 + $0x238] sm:$0xff]  }
 0xd8d   :  { %v12680_v34 = vadd.f32 %v9944_v30, %v8554_v31  ;;  %v12682_v49 = vadd.f32 %v10026_v13, %v8562_v37  ;;  %v9946_v4 = vpop.f32.mrb[14].mxu0  ;;  %v10028_v10 = vpop.f32.mrb[66].mxu1  ;;  %v18763_v37 = vsub.s32 %v10263_v1, %v15433_v39  ;;  %12332 = vmatpush3.bf16.msra.mxu1 %v13563_v38  ;;  %v8574_v1 = vrot.slane %v18704_v36, %v4753_v43 }
 0xd8e   :  { %v12027_v24 = vmul.f32 -1.442695, %v12679_v3  ;;  %v12029_v2 = vmul.f32 -1.442695, %v12681_v19  ;;  %v9947_v57 = vpop.f32.mrb[15].mxu0  ;;  %v10029_v16 = vpop.f32.mrb[67].mxu1 }
 0xd8f   :  { %v12028_v60 = vmul.f32 -1.442695, %v12680_v34  ;;  %v12030_v25 = vmul.f32 -1.442695, %v12682_v49  ;;  %v13520_v49 = vld [vmem:[%s18894_s1 + $0x188] sm:$0xff]   ;;  %v13521_v10 = vld [vmem:[%s18894_s1 + $0x1d0] sm:$0xff]  }
 0xd90   :  { %13589 = vpow2.f32 %v12027_v24  ;;  %v13522_v24 = vld [vmem:[%s18894_s1 + $0x190] sm:$0xff]   ;;  %v13524_v57 = vld [vmem:[%s18894_s1 + $0x198] sm:$0xff]   ;;  %v13525_v16 = vld [vmem:[%s18894_s1 + $0x1e0] sm:$0xff]  }
 0xd91   :  { %13591 = vpow2.f32 %v12029_v2  ;;  %v13523_v2 = vld [vmem:[%s18894_s1 + $0x1d8] sm:$0xff]  }
 0xd92   :  { %13593 = vpow2.f32 %v12028_v60  ;;  %v13526_v60 = vld [vmem:[%s18894_s1 + $0x1a0] sm:$0xff]  }
 0xd93   :  { %13595 = vpow2.f32 %v12030_v25  ;;  %v13527_v25 = vld [vmem:[%s18894_s1 + $0x1e8] sm:$0xff]  }
 0xd9a   :  { %v13590_v6 = vpop.eup %13589 }
 0xd9b   :  { %v13592_v26 = vpop.eup %13591  ;;  %v10219_v47 = vadd.f32 1.0, %v13590_v6  ;;  %v13536_v6 = vld [vmem:[%s18894_s1 + $0x280] sm:$0xff]  }
 0xd9c   :  { %v13594_v62 = vpop.eup %13593  ;;  %v10221_v59 = vadd.f32 1.0, %v13592_v26  ;;  %v13538_v26 = vld [vmem:[%s18894_s1 + $0x2c8] sm:$0xff]  }
 0xd9d   :  { %v13596_v8 = vpop.eup %13595  ;;  %13597 = vrcp.f32 %v10219_v47  ;;  %v10220_v22 = vadd.f32 1.0, %v13594_v62  ;;  %v13540_v47 = vld [vmem:[%s18894_s1 + $0x288] sm:$0xff]   ;;  %v13544_v62 = vld [vmem:[%s18894_s1 + $0x290] sm:$0xff]  }
 0xd9e   :  { %13599 = vrcp.f32 %v10221_v59  ;;  %v10222_v42 = vadd.f32 1.0, %v13596_v8  ;;  %v13546_v59 = vld [vmem:[%s18894_s1 + $0x2d8] sm:$0xff]  }
 0xd9f   :  { %13601 = vrcp.f32 %v10220_v22  ;;  %v13548_v8 = vld [vmem:[%s18894_s1 + $0x298] sm:$0xff]   ;;  %v13550_v22 = vld [vmem:[%s18894_s1 + $0x2e0] sm:$0xff]  }
 0xda0   :  { %13603 = vrcp.f32 %v10222_v42  ;;  %v13552_v42 = vld [vmem:[%s18894_s1 + $0x2a0] sm:$0xff]  }
 0xda7   :  { %v13598_v33 = vpop.eup %13597 }
 0xda8   :  { %v13600_v50 = vpop.eup %13599  ;;  %v10243_v46 = vmul.f32 %v13598_v33, %v17215_v54  ;;  %v13518_v54 = vld [vmem:[%s18894_s1 + $0x180] sm:$0xff]   ;;  %v8578_v33 = vrot.slane %v18704_v36, %v4757_v7 }
 0xda9   :  { %v13602_v35 = vpop.eup %13601  ;;  %v10245_v14 = vmul.f32 %v13600_v50, %v17416_v41 }
 0xdaa   :  { %v13604_v15 = vpop.eup %13603  ;;  %v10244_v31 = vmul.f32 %v13602_v35, %v17217_v17  ;;  %v10425_v41 = vpack.c.bf16 %v10243_v46, %v10243_v46  ;;  %v13519_v17 = vld [vmem:[%s18894_s1 + $0x1c8] sm:$0xff]  }
 0xdab   :  { %v10246_v23 = vmul.f32 %v13604_v15, %v17219_v9  ;;  %v10427_v53 = vpack.c.bf16 %v10245_v14, %v10245_v14 }
 0xdac   :  { %v10259_v3 = vcombine.low %v10243_v46, %v10244_v31  ;;  %v10426_v19 = vpack.c.bf16 %v10244_v31, %v10244_v31 }
 0xdad   :  { %v10260_v30 = vcombine.low %v10245_v14, %v10246_v23  ;;  %v10428_v34 = vpack.c.bf16 %v10246_v23, %v10246_v23 }
 0xdae   :  { %v10267_v13 = vrot.slane %v10259_v3, %v18763_v37  ;;  %10850 = vmatprep.mubr.bf16.mxu0 %v10426_v19 }
 0xdaf   :  { %10851 = vmatmul.mubr.bf16.vlgmr.msra.gmra.mrb[20].mxu0 %v10425_v41  ;;  %v10274_v9 = vrot.slane %v10260_v30, %v18763_v37 }
 0xdb0   :  { %12296 = vmatpush3.bf16.msra.mxu0 %v13518_v54  ;;  %10890 = vmatprep.mubr.bf16.mxu0 %v10428_v34 }
 0xdb1   :  { %v10275_v4 = vcombine.low %v10267_v13, %v10274_v9  ;;  %12297 = vmatprep.subr.bf16.mxu0 %v13519_v17 }
 0xdb3   :  { %10295 = vst [vmem:[%s18900_s7] sm:$0xff] %v10275_v4 }
 0xdb4   :  { %12298 = vmatpush3.bf16.msra.mxu0 %v13520_v49 }
 0xdb5   :  { %12299 = vmatprep.subr.bf16.mxu0 %v13521_v10 }
 0xdb8   :  { %12300 = vmatpush3.bf16.msra.mxu0 %v13522_v24 }
 0xdb9   :  { %12301 = vmatprep.subr.bf16.mxu0 %v13523_v2 }
 0xdbc   :  { %12302 = vmatpush3.bf16.msra.mxu0 %v13524_v57 }
 0xdbd   :  { %12303 = vmatprep.subr.bf16.mxu0 %v13525_v16 }
 0xdc0   :  { %12304 = vmatpush3.bf16.msra.mxu0 %v13526_v60 }
 0xdc1   :  { %12305 = vmatprep.subr.bf16.mxu0 %v13527_v25 }
 0xdc4   :  { %12306 = vmatpush3.bf16.msra.mxu0 %v13528_v61 }
 0xdc5   :  { %12307 = vmatprep.subr.bf16.mxu0 %v13529_v29 }
 0xdc8   :  { %12308 = vmatpush3.bf16.msra.mxu0 %v13530_v52 }
 0xdc9   :  { %12309 = vmatprep.subr.bf16.mxu0 %v13531_v11 }
 0xdcc   :  { %12310 = vmatpush3.bf16.msra.mxu0 %v13532_v5 }
 0xdcd   :  { %12339 = vmatprep.subr.bf16.mxu0 %v13534_v44 }
 0xdcf   :  { %10891 = vmatmul.mubr.bf16.vlgmr.msra.gmra.mrb[24].mxu0 %v10427_v53 }
 0xdd0   :  { %12340 = vmatpush3.bf16.msra.mxu0 %v13536_v6 }
 0xdd1   :  { %12341 = vmatprep.subr.bf16.mxu0 %v13538_v26 }
 0xdd4   :  { %12342 = vmatpush3.bf16.msra.mxu0 %v13540_v47  ;;  %v10433_v47 = vld [vmem:[%s18896_s5 + $0x2c0] ss:$0 sm:$0xff] }
 0xdd5   :  { %12343 = vmatprep.subr.bf16.mxu0 %v13542_v20 }
 0xdd8   :  { %12344 = vmatpush3.bf16.msra.mxu0 %v13544_v62 }
 0xdd9   :  { %12345 = vmatprep.subr.bf16.mxu0 %v13546_v59 }
 0xddc   :  { %12346 = vmatpush3.bf16.msra.mxu0 %v13548_v8 }
 0xddd   :  { %12347 = vmatprep.subr.bf16.mxu0 %v13550_v22 }
 0xde0   :  { %12348 = vmatpush3.bf16.msra.mxu0 %v13552_v42 }
 0xde1   :  { %12349 = vmatprep.subr.bf16.mxu0 %v13554_v48 }
 0xde4   :  { %12350 = vmatpush3.bf16.msra.mxu0 %v13556_v12 }
 0xde5   :  { %12351 = vmatprep.subr.bf16.mxu0 %v13558_v63 }
 0xde8   :  { %12352 = vmatpush3.bf16.msra.mxu0 %v13560_v55 }
 0xde9   :  { %12353 = vmatprep.subr.bf16.mxu0 %v13562_v51 }
 0xdec   :  { %12354 = vmatpush3.bf16.msra.mxu0 %v13564_v21 }
 0xe0b   :  { %v10106_v32 = vpop.f32.mrb[16].mxu0 }
 0xe0c   :  { %v12683_v50 = vadd.f32 %v10106_v32, %v8566_v0  ;;  %v10188_v46 = vpop.f32.mrb[68].mxu1  ;;  %v10108_v35 = vpop.f32.mrb[17].mxu0 }
 0xe0d   :  { %v12685_v14 = vadd.f32 %v10188_v46, %v8574_v1  ;;  %v12684_v15 = vadd.f32 %v10108_v35, %v8570_v27  ;;  %v10190_v31 = vpop.f32.mrb[69].mxu1  ;;  %v10110_v18 = vpop.f32.mrb[18].mxu0 }
 0xe0e   :  { %v12031_v38 = vmul.f32 -1.442695, %v12683_v50  ;;  %v12686_v23 = vadd.f32 %v10190_v31, %v8578_v33  ;;  %v10192_v3 = vpop.f32.mrb[70].mxu1  ;;  %v10111_v43 = vpop.f32.mrb[19].mxu0 }
 0xe0f   :  { %v12033_v19 = vmul.f32 -1.442695, %v12685_v14  ;;  %v12032_v54 = vmul.f32 -1.442695, %v12684_v15  ;;  %v10193_v41 = vpop.f32.mrb[71].mxu1 }
 0xe10   :  { %13605 = vpow2.f32 %v12031_v38  ;;  %v12034_v58 = vmul.f32 -1.442695, %v12686_v23 }
 0xe11   :  { %13607 = vpow2.f32 %v12033_v19 }
 0xe12   :  { %13609 = vpow2.f32 %v12032_v54 }
 0xe13   :  { %13611 = vpow2.f32 %v12034_v58 }
 0xe1a   :  { %v13606_v39 = vpop.eup %13605 }
 0xe1b   :  { %v13608_v7 = vpop.eup %13607  ;;  %v10223_v36 = vadd.f32 1.0, %v13606_v39 }
 0xe1c   :  { %v13610_v30 = vpop.eup %13609  ;;  %v10225_v17 = vadd.f32 1.0, %v13608_v7 }
 0xe1d   :  { %v13612_v13 = vpop.eup %13611  ;;  %13613 = vrcp.f32 %v10223_v36  ;;  %v10224_v34 = vadd.f32 1.0, %v13610_v30 }
 0xe1e   :  { %13615 = vrcp.f32 %v10225_v17  ;;  %v10226_v9 = vadd.f32 1.0, %v13612_v13 }
 0xe1f   :  { %13617 = vrcp.f32 %v10224_v34 }
 0xe20   :  { %13619 = vrcp.f32 %v10226_v9 }
 0xe27   :  { %v13614_v49 = vpop.eup %13613 }
 0xe28   :  { %v13616_v4 = vpop.eup %13615  ;;  %v10247_v10 = vmul.f32 %v13614_v49, %v17629_v28 }
 0xe29   :  { %v13618_v24 = vpop.eup %13617  ;;  %v10249_v2 = vmul.f32 %v13616_v4, %v17847_v40 }
 0xe2a   :  { %v13620_v57 = vpop.eup %13619  ;;  %v10248_v16 = vmul.f32 %v13618_v24, %v17634_v45  ;;  %v10429_v11 = vpack.c.bf16 %v10247_v10, %v10247_v10 }
 0xe2b   :  { %v10250_v60 = vmul.f32 %v13620_v57, %v17636_v56  ;;  %v10431_v44 = vpack.c.bf16 %v10249_v2, %v10249_v2 }
 0xe2c   :  { %v10276_v25 = vcombine.low %v10247_v10, %v10248_v16  ;;  %v10430_v61 = vpack.c.bf16 %v10248_v16, %v10248_v16 }
 0xe2d   :  { %v10277_v29 = vcombine.low %v10249_v2, %v10250_v60  ;;  %v10432_v52 = vpack.c.bf16 %v10250_v60, %v10250_v60 }
 0xe2e   :  { %v10284_v5 = vrot.slane %v10276_v25, %v18763_v37  ;;  %10930 = vmatprep.mubr.bf16.mxu1 %v10430_v61 }
 0xe2f   :  { %v10291_v6 = vrot.slane %v10277_v29, %v18763_v37  ;;  %10970 = vmatprep.mubr.bf16.mxu0 %v10432_v52  ;;  %10931 = vmatmul.mubr.bf16.vlgmr.msra.gmra.mrb[72].mxu1 %v10429_v11 }
 0xe30   :  { %10971 = vmatmul.mubr.bf16.vlgmr.msra.gmra.mrb[28].mxu0 %v10431_v44 }
 0xe31   :  { %v10292_v28 = vcombine.low %v10284_v5, %v10291_v6 }
 0xe33   :  { %10296 = vst [vmem:[%s18900_s7 + $0x8] sm:$0xff] %v10292_v28 }
 0xe82   :  { %v12289_v45 = vpop.f32.mrb[20].mxu0 }
 0xe83   :  { %v12290_v56 = vpop.f32.mrb[21].mxu0 }
 0xe84   :  { %v12291_v40 = vadd.f32 %v12290_v56, %v12289_v45  ;;  %v12292_v53 = vpop.f32.mrb[22].mxu0 }
 0xe85   :  { %v12293_v26 = vpop.f32.mrb[23].mxu0 }
 0xe86   :  { %v10853_v37 = vadd.f32 %v12291_v40, %v10433_v47 }
 0xea2   :  { %v12311_v20 = vpop.f32.mrb[24].mxu0 }
 0xea3   :  { %v12312_v62 = vpop.f32.mrb[25].mxu0 }
 0xea4   :  { %v12313_v59 = vadd.f32 %v12312_v62, %v12311_v20  ;;  %v12314_v8 = vpop.f32.mrb[26].mxu0 }
 0xea5   :  { %v12315_v22 = vpop.f32.mrb[27].mxu0 }
 0xea6   :  { %v10893_v42 = vadd.f32 %v12313_v59, %v10853_v37 }
 0xf02   :  { %v12333_v48 = vpop.f32.mrb[72].mxu1 }
 0xf03   :  { %v12355_v12 = vpop.f32.mrb[28].mxu0  ;;  %v12334_v63 = vpop.f32.mrb[73].mxu1 }
 0xf04   :  { %v12335_v55 = vadd.f32 %v12334_v63, %v12333_v48  ;;  %v12356_v51 = vpop.f32.mrb[29].mxu0  ;;  %v12336_v21 = vpop.f32.mrb[74].mxu1 }
 0xf05   :  { %v12357_v0 = vadd.f32 %v12356_v51, %v12355_v12  ;;  %v12358_v1 = vpop.f32.mrb[30].mxu0  ;;  %v12337_v27 = vpop.f32.mrb[75].mxu1 }
 0xf06   :  { %v10933_v33 = vadd.f32 %v12335_v55, %v10893_v42  ;;  %v12359_v32 = vpop.f32.mrb[31].mxu0 }
 0xf08   :  { %v10973_v50 = vadd.f32 %v12357_v0, %v10933_v33 }
 0xf0a   :  { %10978 = vst [vmem:[%s18901_s6] sm:$0x3] %v10973_v50 }

</bundles_post_ra>
